<compile_context>
chip_gen: v6e
topology: v6e:2x2x1
jax: 0.10.0
libtpu: 0.0.40
codegen_flags: <defaults>
</compile_context>

<pallas_src>
import functools

import jax
import jax.numpy as jnp
from jax import lax
from jax.experimental import pallas as pl
from jax.experimental.pallas import tpu as pltpu

_BN_EPS = 1e-5
_LANE = 128
_VMEM_BUDGET_CACHE = None


def _round_up(x, m):
    return (x + m - 1) // m * m


def _vmem_budget():
    """Generation-dependent scoped-VMEM budget (v5e/v6e ~80 MiB, v7x ~40 MiB)."""
    global _VMEM_BUDGET_CACHE
    if _VMEM_BUDGET_CACHE is None:
        cap = 64 * 1024 * 1024
        try:
            cap = int(getattr(pltpu.get_tpu_info(), "vmem_capacity_bytes", cap))
        except Exception:
            pass
        _VMEM_BUDGET_CACHE = int(min(100 << 20, max(32 << 20, (cap * 5) // 8)))
    return _VMEM_BUDGET_CACHE


def _largest_mult16_divisor(m, cap):
    t = min(cap, m)
    t -= t % 16
    while t >= 16:
        if m % t == 0:
            return t
        t -= 16
    return 0


def _pick_tm(m, cap):
    """Pick an M tile; prefer tiles that divide M exactly (no M padding)."""
    if m <= cap:
        return m, m            # full-extent block is always legal
    t = _largest_mult16_divisor(m, cap)
    if t:
        return t, m
    tm = max(16, cap - cap % 16)
    return tm, _round_up(m, tm)


# -----------------------------------------------------------------------------
# Pallas kernel: fused conv-as-matmul + BN scale/bias (+ residual) (+ ReLU)
# -----------------------------------------------------------------------------
def _conv_kernel(*refs, n_taps, has_res, relu):
    """Sum of per-tap MXU dots (bf16 in, f32 accumulate) + f32 epilogue.

    Single K grid step -> no accumulator scratch round trip; the result is
    stored directly as bf16."""
    x_refs = refs[:n_taps]
    w_ref = refs[n_taps]
    s_ref = refs[n_taps + 1]
    b_ref = refs[n_taps + 2]
    r_ref = refs[n_taps + 3] if has_res else None
    o_ref = refs[-1]

    acc = jnp.dot(x_refs[0][...], w_ref[0], preferred_element_type=jnp.float32)
    for t in range(1, n_taps):
        acc = acc + jnp.dot(x_refs[t][...], w_ref[t],
                            preferred_element_type=jnp.float32)
    y = acc * s_ref[...] + b_ref[...]
    if has_res:
        y = y + r_ref[...].astype(jnp.float32)
    if relu:
        y = jnp.maximum(y, 0.0)
    o_ref[...] = y.astype(o_ref.dtype)


def _conv_matmul(x_views, w3, scale2d, bias2d, res, *, relu, tm_cap):
    """x_views: list of (M, Kp) bf16 tap views; w3: (taps, Kp, Np) bf16;
    scale2d/bias2d: (1, Np) f32; res: (M, Np) bf16 or None.  Returns (M, Np) bf16."""
    n_taps = len(x_views)
    M, Kp = x_views[0].shape
    w_taps, w_k, Np = w3.shape
    assert w_taps == n_taps and w_k == Kp, (w3.shape, n_taps, Kp)

    tn = min(512, Np)
    nblk = Np // tn
    tm, Mp = _pick_tm(M, tm_cap)
    # Keep >= 2 (M x N) parallel grid steps when there is enough work so both
    # TensorCores of a dual-TC chip (v7x) get a share.
    if Mp == M and (Mp // tm) * nblk < 2 and M > 256:
        t = _largest_mult16_divisor(M, M // 2)
        if t >= 128:
            tm = t
    if Mp != M:  # rare fallback (M has no suitable divisor)
        x_views = [jnp.pad(v, ((0, Mp - M), (0, 0))) for v in x_views]
        if res is not None:
            res = jnp.pad(res, ((0, Mp - M), (0, 0)))

    in_specs = [pl.BlockSpec((tm, Kp), lambda i, j: (i, 0))
                for _ in range(n_taps)]
    in_specs += [
        pl.BlockSpec((n_taps, Kp, tn), lambda i, j: (0, 0, j)),
        pl.BlockSpec((1, tn), lambda i, j: (0, j)),
        pl.BlockSpec((1, tn), lambda i, j: (0, j)),
    ]
    args = list(x_views) + [w3, scale2d, bias2d]
    has_res = res is not None
    if has_res:
        in_specs.append(pl.BlockSpec((tm, tn), lambda i, j: (i, j)))
        args.append(res)

    kernel = functools.partial(_conv_kernel, n_taps=n_taps, has_res=has_res,
                               relu=relu)
    out = pl.pallas_call(
        kernel,
        out_shape=jax.ShapeDtypeStruct((Mp, Np), jnp.bfloat16),
        grid_spec=pltpu.PrefetchScalarGridSpec(
            num_scalar_prefetch=0,
            grid=(Mp // tm, Np // tn),
            in_specs=in_specs,
            out_specs=pl.BlockSpec((tm, tn), lambda i, j: (i, j)),
        ),
        compiler_params=pltpu.CompilerParams(
            dimension_semantics=("parallel", "parallel"),
            vmem_limit_bytes=_vmem_budget()),
    )(*args)
    if Mp != M:
        out = out[:M]
    return out


# -----------------------------------------------------------------------------
# Conv input views (no HBM im2col concat for 1x1/3x3 convs)
# -----------------------------------------------------------------------------
def _tap_views_3x3(x, stride):
    """Nine (M, C) tap views of the spatially-padded NHWC tensor (pad=1)."""
    # TODO(synk): the 9 tap views still materialize in HBM; a halo-blocked
    # in-kernel im2col (pl.Element row windows) would remove that traffic too.
    N, H, W, C = x.shape
    xp = jnp.pad(x, ((0, 0), (1, 1), (1, 1), (0, 0)))
    Ho = (H + 2 - 3) // stride + 1
    Wo = (W + 2 - 3) // stride + 1
    views = []
    for dh in range(3):
        for dw in range(3):
            v = lax.slice(
                xp, (0, dh, dw, 0),
                (N, dh + stride * (Ho - 1) + 1, dw + stride * (Wo - 1) + 1, C),
                (1, stride, stride, 1))
            views.append(v.reshape(N * Ho * Wo, C))
    return views, Ho, Wo


def _stem_im2col(x, ksize, stride, pad):
    """im2col for the 7x7/s2 stem only (Cin=3 -> K=147, padded to 160)."""
    N, H, W, C = x.shape
    xp = jnp.pad(x, ((0, 0), (pad, pad), (pad, pad), (0, 0)))
    Ho = (H + 2 * pad - ksize) // stride + 1
    Wo = (W + 2 * pad - ksize) // stride + 1
    cols = []
    for dh in range(ksize):
        for dw in range(ksize):
            cols.append(lax.slice(
                xp, (0, dh, dw, 0),
                (N, dh + stride * (Ho - 1) + 1, dw + stride * (Wo - 1) + 1, C),
                (1, stride, stride, 1)))
    K = ksize * ksize * C
    Kp = _round_up(K, 16)
    if Kp > K:
        cols.append(jnp.zeros((N, Ho, Wo, Kp - K), x.dtype))
    return jnp.concatenate(cols, axis=-1).reshape(N * Ho * Wo, Kp), Ho, Wo


# -----------------------------------------------------------------------------
# Conv + BN (+ residual) (+ ReLU) layer
# -----------------------------------------------------------------------------
def conv_bn(x, p, *, ksize, stride, relu, residual=None):
    """x: NHWC bf16 (channels padded to a multiple of 128).  Returns NHWC bf16
    with padded output channels (p['w'].shape[-1])."""
    # TODO(synk): BN uses eval-mode running statistics folded into the conv
    # epilogue; train-mode batch statistics are not reproduced.
    N = x.shape[0]
    Np = p["w"].shape[-1]
    if ksize == 1:
        if stride != 1:
            x = x[:, ::stride, ::stride, :]
        _, Ho, Wo, Cp = x.shape
        views = [x.reshape(N * Ho * Wo, Cp)]
        tm_cap = 1024
    elif ksize == 3:
        views, Ho, Wo = _tap_views_3x3(x, stride)
        tm_cap = 512
    else:  # 7x7 stem
        v, Ho, Wo = _stem_im2col(x, ksize=ksize, stride=stride, pad=ksize // 2)
        views = [v]
        tm_cap = 1024
    res2 = None if residual is None else residual.reshape(N * Ho * Wo, Np)
    y = _conv_matmul(views, p["w"], p["scale"], p["bias"], res2,
                     relu=relu, tm_cap=tm_cap)
    return y.reshape(N, Ho, Wo, Np)


def bottleneck(x, blk, stride):
    identity = x
    out = conv_bn(x, blk["conv1"], ksize=1, stride=1, relu=True)
    out = conv_bn(out, blk["conv2"], ksize=3, stride=stride, relu=True)
    if "downsample" in blk:
        identity = conv_bn(x, blk["downsample"], ksize=1, stride=stride,
                           relu=False)
    # conv3 + bn3 + residual add + final ReLU fused in the Pallas epilogue.
    return conv_bn(out, blk["conv3"], ksize=1, stride=1, relu=True,
                   residual=identity)


# -----------------------------------------------------------------------------
# ResNet-101 (block1..block4 of the PyTorch module, returning [out2,out3,out4])
# -----------------------------------------------------------------------------
@jax.jit
def resnet101_forward(prepared_params, x_nchw):
    x = jnp.transpose(x_nchw, (0, 2, 3, 1)).astype(jnp.bfloat16)  # NCHW -> NHWC
    # block1: conv7x7/s2 + BN + ReLU (Pallas) + maxpool3x3/s2.
    x = conv_bn(x, prepared_params["stem"], ksize=7, stride=2, relu=True)
    # MaxPool: tiny mem-bound op; reduce_window reads the (channel-padded)
    # input exactly once (review-sanctioned) instead of 9 shifted HBM views.
    x = lax.reduce_window(x, jnp.array(-jnp.inf, x.dtype), lax.max,
                          (1, 3, 3, 1), (1, 2, 2, 1),
                          ((0, 0), (1, 1), (1, 1), (0, 0)))
    outs = []
    for lname, stride in (("layer1", 1), ("layer2", 2), ("layer3", 2)):
        for b, blk in enumerate(prepared_params[lname]):
            x = bottleneck(x, blk, stride if b == 0 else 1)
        outs.append(jnp.transpose(x, (0, 3, 1, 2)).astype(jnp.float32))
    return outs  # [out2, out3, out4]


# -----------------------------------------------------------------------------
# Parameters: synthetic torchvision-shaped params + one-time folding/packing
# -----------------------------------------------------------------------------
def _conv_bn_params(key, cout, cin, kh, kw):
    kw_, kg, kb, km, kv = jax.random.split(key, 5)
    fan_in = cin * kh * kw
    w = jax.random.normal(kw_, (cout, cin, kh, kw), jnp.float32) * jnp.sqrt(2.0 / fan_in)
    gamma = 1.0 + 0.1 * jax.random.normal(kg, (cout,), jnp.float32)
    beta = 0.1 * jax.random.normal(kb, (cout,), jnp.float32)
    mean = 0.1 * jax.random.normal(km, (cout,), jnp.float32)
    var = jax.random.uniform(kv, (cout,), jnp.float32, 0.5, 1.5)
    return (w, gamma, beta, mean, var)


def make_resnet101_params(key):
    # NOTE: synthetic deterministic init replaces resnet101(pretrained=True).
    idx = [0]

    def nk():
        idx[0] += 1
        return jax.random.fold_in(key, idx[0])

    params = {"stem": _conv_bn_params(nk(), 64, 3, 7, 7)}
    inplanes = 64

    def make_layer(planes, blocks, stride):
        nonlocal inplanes
        layer = []
        for b in range(blocks):
            s = stride if b == 0 else 1
            blk = {
                "conv1": _conv_bn_params(nk(), planes, inplanes, 1, 1),
                "conv2": _conv_bn_params(nk(), planes, planes, 3, 3),
                "conv3": _conv_bn_params(nk(), planes * 4, planes, 1, 1),
            }
            if b == 0 and (s != 1 or inplanes != planes * 4):
                blk["downsample"] = _conv_bn_params(nk(), planes * 4, inplanes, 1, 1)
            layer.append(blk)
            inplanes = planes * 4
        return layer

    params["layer1"] = make_layer(64, 3, 1)    # out2: 256 ch @ H/4
    params["layer2"] = make_layer(128, 4, 2)   # out3: 512 ch @ H/8
    params["layer3"] = make_layer(256, 23, 2)  # out4: 1024 ch @ H/16
    return params


def _fold_conv_bn(p):
    """Fold BN into per-channel scale/bias; pack the weight as a bf16
    (taps, Kp, Np) slab with Kp/Np padded to multiples of 128 only (the channel
    padding is carried persistently through the network)."""
    w, gamma, beta, mean, var = p
    cout, cin, kh, kw = w.shape
    scale = gamma / jnp.sqrt(var + _BN_EPS)
    bias = beta - mean * scale
    Np = _round_up(cout, _LANE)
    if kh == 7:  # stem: im2col layout, K = 7*7*3 = 147 -> 160
        K = kh * kw * cin
        Kp = _round_up(K, 16)
        wt = jnp.transpose(w, (2, 3, 1, 0)).reshape(1, K, cout)
    else:        # 1x1 / 3x3: one K slab per spatial tap
        K = cin
        Kp = _round_up(cin, _LANE)
        wt = jnp.transpose(w, (2, 3, 1, 0)).reshape(kh * kw, cin, cout)
    wp = jnp.pad(wt, ((0, 0), (0, Kp - K), (0, Np - cout))).astype(jnp.bfloat16)
    return {"w": wp,
            "scale": jnp.pad(scale, (0, Np - cout)).reshape(1, Np),
            "bias": jnp.pad(bias, (0, Np - cout)).reshape(1, Np)}


def prepare_params(params):
    prep = {"stem": _fold_conv_bn(params["stem"])}
    for lname in ("layer1", "layer2", "layer3"):
        prep[lname] = [{k: _fold_conv_bn(v) for k, v in blk.items()}
                       for blk in params[lname]]
    return prep


if __name__ == "__main__":
    root = jax.random.PRNGKey(0)
    pkey, xkey = jax.random.split(root)
    params = prepare_params(make_resnet101_params(pkey))
    x = jax.random.normal(xkey, (2, 3, 32, 32), jnp.float32)  # NCHW, like PyTorch

    out2, out3, out4 = resnet101_forward(params, x)
    out2, out3, out4 = jax.block_until_ready((out2, out3, out4))

    assert out2.shape == (2, 256, 8, 8), out2.shape
    assert out3.shape == (2, 512, 4, 4), out3.shape
    assert out4.shape == (2, 1024, 2, 2), out4.shape
    assert bool(jnp.isfinite(out4).all())
    print("KERNEL_OK")
</pallas_src>

<mosaic_0001>
module attributes {stable_mosaic.version = 11 : i64} {
  func.func @_conv_kernel(%arg0: i32, %arg1: i32, %arg2: memref<256x160xbf16, #tpu.memory_space<vmem>>, %arg3: memref<1x160x128xbf16, #tpu.memory_space<vmem>>, %arg4: memref<1x128xf32, #tpu.memory_space<vmem>>, %arg5: memref<1x128xf32, #tpu.memory_space<vmem>>, %arg6: memref<256x128xbf16, #tpu.memory_space<vmem>>) attributes {dimension_semantics = [#tpu.dimension_semantics<parallel>, #tpu.dimension_semantics<parallel>], iteration_bounds = array<i64: 2, 1>, scalar_prefetch = 0 : i64, scratch_operands = 0 : i64, tpu.core_type = #tpu.core_type<tc>, window_params = [{transform_indices = @transform_0, window_bounds = array<i64: 256, 160>}, {transform_indices = @transform_1, window_bounds = array<i64: 1, 160, 128>}, {transform_indices = @transform_2, window_bounds = array<i64: 1, 128>}, {transform_indices = @transform_3, window_bounds = array<i64: 1, 128>}, {transform_indices = @transform_4, window_bounds = array<i64: 256, 128>}]} {
    %c0 = arith.constant 0 : index
    %c0_0 = arith.constant 0 : index
    %0 = vector.load %arg2[%c0, %c0_0] : memref<256x160xbf16, #tpu.memory_space<vmem>>, vector<256x160xbf16>
    %c0_1 = arith.constant 0 : index
    %c0_2 = arith.constant 0 : index
    %c0_3 = arith.constant 0 : index
    %1 = vector.load %arg3[%c0_1, %c0_2, %c0_3] : memref<1x160x128xbf16, #tpu.memory_space<vmem>>, vector<1x160x128xbf16>
    %2 = vector.shape_cast %1 : vector<1x160x128xbf16> to vector<160x128xbf16>
    %cst = arith.constant dense<0.000000e+00> : vector<256x128xf32>
    %3 = tpu.matmul %0, %2, %cst {dimension_numbers = #tpu.dot_dimension_numbers<[1], [0], [0], [1], [0, 0, 1, 1], [], []>} : vector<256x160xbf16>, vector<160x128xbf16>, vector<256x128xf32> -> vector<256x128xf32>
    %c0_4 = arith.constant 0 : index
    %c0_5 = arith.constant 0 : index
    %4 = vector.load %arg4[%c0_4, %c0_5] : memref<1x128xf32, #tpu.memory_space<vmem>>, vector<1x128xf32>
    %5 = vector.broadcast %4 : vector<1x128xf32> to vector<256x128xf32>
    %6 = arith.mulf %3, %5 : vector<256x128xf32>
    %c0_6 = arith.constant 0 : index
    %c0_7 = arith.constant 0 : index
    %7 = vector.load %arg5[%c0_6, %c0_7] : memref<1x128xf32, #tpu.memory_space<vmem>>, vector<1x128xf32>
    %8 = vector.broadcast %7 : vector<1x128xf32> to vector<256x128xf32>
    %9 = arith.addf %6, %8 : vector<256x128xf32>
    %cst_8 = arith.constant 0.000000e+00 : f32
    %10 = vector.broadcast %cst_8 : f32 to vector<256x128xf32>
    %11 = arith.maximumf %9, %10 : vector<256x128xf32>
    %12 = arith.truncf %11 : vector<256x128xf32> to vector<256x128xbf16>
    %c0_9 = arith.constant 0 : index
    %c0_10 = arith.constant 0 : index
    %13 = vector.load %arg6[%c0_9, %c0_10] : memref<256x128xbf16, #tpu.memory_space<vmem>>, vector<256x128xbf16>
    tpu.vector_store %arg6[%c0_9, %c0_10], %12 {strides = array<i32>} : memref<256x128xbf16, #tpu.memory_space<vmem>>, vector<256x128xbf16>,
    return
  }
  func.func @transform_0(%arg0: i32, %arg1: i32) -> (i32, i32) {
    %c0_i32 = arith.constant 0 : i32
    %c0_i32_0 = arith.constant 0 : i32
    return %arg0, %c0_i32 : i32, i32
  }
  func.func @transform_1(%arg0: i32, %arg1: i32) -> (i32, i32, i32) {
    %c0_i32 = arith.constant 0 : i32
    %c0_i32_0 = arith.constant 0 : i32
    %c0_i32_1 = arith.constant 0 : i32
    return %c0_i32, %c0_i32_0, %arg1 : i32, i32, i32
  }
  func.func @transform_2(%arg0: i32, %arg1: i32) -> (i32, i32) {
    %c0_i32 = arith.constant 0 : i32
    %c0_i32_0 = arith.constant 0 : i32
    return %c0_i32, %arg1 : i32, i32
  }
  func.func @transform_3(%arg0: i32, %arg1: i32) -> (i32, i32) {
    %c0_i32 = arith.constant 0 : i32
    %c0_i32_0 = arith.constant 0 : i32
    return %c0_i32, %arg1 : i32, i32
  }
  func.func @transform_4(%arg0: i32, %arg1: i32) -> (i32, i32) {
    %c0_i32 = arith.constant 0 : i32
    return %arg0, %arg1 : i32, i32
  }
}

module attributes {stable_mosaic.version = 11 : i64} {
  func.func @_conv_kernel(%arg0: i32, %arg1: i32, %arg2: memref<128x128xbf16, #tpu.memory_space<vmem>>, %arg3: memref<1x128x256xbf16, #tpu.memory_space<vmem>>, %arg4: memref<1x256xf32, #tpu.memory_space<vmem>>, %arg5: memref<1x256xf32, #tpu.memory_space<vmem>>, %arg6: memref<128x256xbf16, #tpu.memory_space<vmem>>) attributes {dimension_semantics = [#tpu.dimension_semantics<parallel>, #tpu.dimension_semantics<parallel>], iteration_bounds = array<i64: 1, 1>, scalar_prefetch = 0 : i64, scratch_operands = 0 : i64, tpu.core_type = #tpu.core_type<tc>, window_params = [{transform_indices = @transform_0, window_bounds = array<i64: 128, 128>}, {transform_indices = @transform_1, window_bounds = array<i64: 1, 128, 256>}, {transform_indices = @transform_2, window_bounds = array<i64: 1, 256>}, {transform_indices = @transform_3, window_bounds = array<i64: 1, 256>}, {transform_indices = @transform_4, window_bounds = array<i64: 128, 256>}]} {
    %c0 = arith.constant 0 : index
    %c0_0 = arith.constant 0 : index
    %0 = vector.load %arg2[%c0, %c0_0] : memref<128x128xbf16, #tpu.memory_space<vmem>>, vector<128x128xbf16>
    %c0_1 = arith.constant 0 : index
    %c0_2 = arith.constant 0 : index
    %c0_3 = arith.constant 0 : index
    %1 = vector.load %arg3[%c0_1, %c0_2, %c0_3] : memref<1x128x256xbf16, #tpu.memory_space<vmem>>, vector<1x128x256xbf16>
    %2 = vector.shape_cast %1 : vector<1x128x256xbf16> to vector<128x256xbf16>
    %cst = arith.constant dense<0.000000e+00> : vector<128x256xf32>
    %3 = tpu.matmul %0, %2, %cst {dimension_numbers = #tpu.dot_dimension_numbers<[1], [0], [0], [1], [0, 0, 1, 1], [], []>} : vector<128x128xbf16>, vector<128x256xbf16>, vector<128x256xf32> -> vector<128x256xf32>
    %c0_4 = arith.constant 0 : index
    %c0_5 = arith.constant 0 : index
    %4 = vector.load %arg4[%c0_4, %c0_5] : memref<1x256xf32, #tpu.memory_space<vmem>>, vector<1x256xf32>
    %5 = vector.broadcast %4 : vector<1x256xf32> to vector<128x256xf32>
    %6 = arith.mulf %3, %5 : vector<128x256xf32>
    %c0_6 = arith.constant 0 : index
    %c0_7 = arith.constant 0 : index
    %7 = vector.load %arg5[%c0_6, %c0_7] : memref<1x256xf32, #tpu.memory_space<vmem>>, vector<1x256xf32>
    %8 = vector.broadcast %7 : vector<1x256xf32> to vector<128x256xf32>
    %9 = arith.addf %6, %8 : vector<128x256xf32>
    %10 = arith.truncf %9 : vector<128x256xf32> to vector<128x256xbf16>
    %c0_8 = arith.constant 0 : index
    %c0_9 = arith.constant 0 : index
    %11 = vector.load %arg6[%c0_8, %c0_9] : memref<128x256xbf16, #tpu.memory_space<vmem>>, vector<128x256xbf16>
    tpu.vector_store %arg6[%c0_8, %c0_9], %10 {strides = array<i32>} : memref<128x256xbf16, #tpu.memory_space<vmem>>, vector<128x256xbf16>,
    return
  }
  func.func @transform_0(%arg0: i32, %arg1: i32) -> (i32, i32) {
    %c0_i32 = arith.constant 0 : i32
    %c0_i32_0 = arith.constant 0 : i32
    return %arg0, %c0_i32 : i32, i32
  }
  func.func @transform_1(%arg0: i32, %arg1: i32) -> (i32, i32, i32) {
    %c0_i32 = arith.constant 0 : i32
    %c0_i32_0 = arith.constant 0 : i32
    %c0_i32_1 = arith.constant 0 : i32
    return %c0_i32, %c0_i32_0, %arg1 : i32, i32, i32
  }
  func.func @transform_2(%arg0: i32, %arg1: i32) -> (i32, i32) {
    %c0_i32 = arith.constant 0 : i32
    %c0_i32_0 = arith.constant 0 : i32
    return %c0_i32, %arg1 : i32, i32
  }
  func.func @transform_3(%arg0: i32, %arg1: i32) -> (i32, i32) {
    %c0_i32 = arith.constant 0 : i32
    %c0_i32_0 = arith.constant 0 : i32
    return %c0_i32, %arg1 : i32, i32
  }
  func.func @transform_4(%arg0: i32, %arg1: i32) -> (i32, i32) {
    %c0_i32 = arith.constant 0 : i32
    return %arg0, %arg1 : i32, i32
  }
}

module attributes {stable_mosaic.version = 11 : i64} {
  func.func @_conv_kernel(%arg0: i32, %arg1: i32, %arg2: memref<128x128xbf16, #tpu.memory_space<vmem>>, %arg3: memref<1x128x128xbf16, #tpu.memory_space<vmem>>, %arg4: memref<1x128xf32, #tpu.memory_space<vmem>>, %arg5: memref<1x128xf32, #tpu.memory_space<vmem>>, %arg6: memref<128x128xbf16, #tpu.memory_space<vmem>>) attributes {dimension_semantics = [#tpu.dimension_semantics<parallel>, #tpu.dimension_semantics<parallel>], iteration_bounds = array<i64: 1, 1>, scalar_prefetch = 0 : i64, scratch_operands = 0 : i64, tpu.core_type = #tpu.core_type<tc>, window_params = [{transform_indices = @transform_0, window_bounds = array<i64: 128, 128>}, {transform_indices = @transform_1, window_bounds = array<i64: 1, 128, 128>}, {transform_indices = @transform_2, window_bounds = array<i64: 1, 128>}, {transform_indices = @transform_3, window_bounds = array<i64: 1, 128>}, {transform_indices = @transform_4, window_bounds = array<i64: 128, 128>}]} {
    %c0 = arith.constant 0 : index
    %c0_0 = arith.constant 0 : index
    %0 = vector.load %arg2[%c0, %c0_0] : memref<128x128xbf16, #tpu.memory_space<vmem>>, vector<128x128xbf16>
    %c0_1 = arith.constant 0 : index
    %c0_2 = arith.constant 0 : index
    %c0_3 = arith.constant 0 : index
    %1 = vector.load %arg3[%c0_1, %c0_2, %c0_3] : memref<1x128x128xbf16, #tpu.memory_space<vmem>>, vector<1x128x128xbf16>
    %2 = vector.shape_cast %1 : vector<1x128x128xbf16> to vector<128x128xbf16>
    %cst = arith.constant dense<0.000000e+00> : vector<128x128xf32>
    %3 = tpu.matmul %0, %2, %cst {dimension_numbers = #tpu.dot_dimension_numbers<[1], [0], [0], [1], [0, 0, 1, 1], [], []>} : vector<128x128xbf16>, vector<128x128xbf16>, vector<128x128xf32> -> vector<128x128xf32>
    %c0_4 = arith.constant 0 : index
    %c0_5 = arith.constant 0 : index
    %4 = vector.load %arg4[%c0_4, %c0_5] : memref<1x128xf32, #tpu.memory_space<vmem>>, vector<1x128xf32>
    %5 = vector.broadcast %4 : vector<1x128xf32> to vector<128x128xf32>
    %6 = arith.mulf %3, %5 : vector<128x128xf32>
    %c0_6 = arith.constant 0 : index
    %c0_7 = arith.constant 0 : index
    %7 = vector.load %arg5[%c0_6, %c0_7] : memref<1x128xf32, #tpu.memory_space<vmem>>, vector<1x128xf32>
    %8 = vector.broadcast %7 : vector<1x128xf32> to vector<128x128xf32>
    %9 = arith.addf %6, %8 : vector<128x128xf32>
    %cst_8 = arith.constant 0.000000e+00 : f32
    %10 = vector.broadcast %cst_8 : f32 to vector<128x128xf32>
    %11 = arith.maximumf %9, %10 : vector<128x128xf32>
    %12 = arith.truncf %11 : vector<128x128xf32> to vector<128x128xbf16>
    %c0_9 = arith.constant 0 : index
    %c0_10 = arith.constant 0 : index
    %13 = vector.load %arg6[%c0_9, %c0_10] : memref<128x128xbf16, #tpu.memory_space<vmem>>, vector<128x128xbf16>
    tpu.vector_store %arg6[%c0_9, %c0_10], %12 {strides = array<i32>} : memref<128x128xbf16, #tpu.memory_space<vmem>>, vector<128x128xbf16>,
    return
  }
  func.func @transform_0(%arg0: i32, %arg1: i32) -> (i32, i32) {
    %c0_i32 = arith.constant 0 : i32
    %c0_i32_0 = arith.constant 0 : i32
    return %arg0, %c0_i32 : i32, i32
  }
  func.func @transform_1(%arg0: i32, %arg1: i32) -> (i32, i32, i32) {
    %c0_i32 = arith.constant 0 : i32
    %c0_i32_0 = arith.constant 0 : i32
    %c0_i32_1 = arith.constant 0 : i32
    return %c0_i32, %c0_i32_0, %arg1 : i32, i32, i32
  }
  func.func @transform_2(%arg0: i32, %arg1: i32) -> (i32, i32) {
    %c0_i32 = arith.constant 0 : i32
    %c0_i32_0 = arith.constant 0 : i32
    return %c0_i32, %arg1 : i32, i32
  }
  func.func @transform_3(%arg0: i32, %arg1: i32) -> (i32, i32) {
    %c0_i32 = arith.constant 0 : i32
    %c0_i32_0 = arith.constant 0 : i32
    return %c0_i32, %arg1 : i32, i32
  }
  func.func @transform_4(%arg0: i32, %arg1: i32) -> (i32, i32) {
    %c0_i32 = arith.constant 0 : i32
    return %arg0, %arg1 : i32, i32
  }
}

module attributes {stable_mosaic.version = 11 : i64} {
  func.func @_conv_kernel(%arg0: i32, %arg1: i32, %arg2: memref<128x128xbf16, #tpu.memory_space<vmem>>, %arg3: memref<128x128xbf16, #tpu.memory_space<vmem>>, %arg4: memref<128x128xbf16, #tpu.memory_space<vmem>>, %arg5: memref<128x128xbf16, #tpu.memory_space<vmem>>, %arg6: memref<128x128xbf16, #tpu.memory_space<vmem>>, %arg7: memref<128x128xbf16, #tpu.memory_space<vmem>>, %arg8: memref<128x128xbf16, #tpu.memory_space<vmem>>, %arg9: memref<128x128xbf16, #tpu.memory_space<vmem>>, %arg10: memref<128x128xbf16, #tpu.memory_space<vmem>>, %arg11: memref<9x128x128xbf16, #tpu.memory_space<vmem>>, %arg12: memref<1x128xf32, #tpu.memory_space<vmem>>, %arg13: memref<1x128xf32, #tpu.memory_space<vmem>>, %arg14: memref<128x128xbf16, #tpu.memory_space<vmem>>) attributes {dimension_semantics = [#tpu.dimension_semantics<parallel>, #tpu.dimension_semantics<parallel>], iteration_bounds = array<i64: 1, 1>, scalar_prefetch = 0 : i64, scratch_operands = 0 : i64, tpu.core_type = #tpu.core_type<tc>, window_params = [{transform_indices = @transform_0, window_bounds = array<i64: 128, 128>}, {transform_indices = @transform_1, window_bounds = array<i64: 128, 128>}, {transform_indices = @transform_2, window_bounds = array<i64: 128, 128>}, {transform_indices = @transform_3, window_bounds = array<i64: 128, 128>}, {transform_indices = @transform_4, window_bounds = array<i64: 128, 128>}, {transform_indices = @transform_5, window_bounds = array<i64: 128, 128>}, {transform_indices = @transform_6, window_bounds = array<i64: 128, 128>}, {transform_indices = @transform_7, window_bounds = array<i64: 128, 128>}, {transform_indices = @transform_8, window_bounds = array<i64: 128, 128>}, {transform_indices = @transform_9, window_bounds = array<i64: 9, 128, 128>}, {transform_indices = @transform_10, window_bounds = array<i64: 1, 128>}, {transform_indices = @transform_11, window_bounds = array<i64: 1, 128>}, {transform_indices = @transform_12, window_bounds = array<i64: 128, 128>}]} {
    %c0 = arith.constant 0 : index
    %c0_0 = arith.constant 0 : index
    %0 = vector.load %arg2[%c0, %c0_0] : memref<128x128xbf16, #tpu.memory_space<vmem>>, vector<128x128xbf16>
    %c0_1 = arith.constant 0 : index
    %c0_2 = arith.constant 0 : index
    %c0_3 = arith.constant 0 : index
    %1 = vector.load %arg11[%c0_1, %c0_2, %c0_3] : memref<9x128x128xbf16, #tpu.memory_space<vmem>>, vector<1x128x128xbf16>
    %2 = vector.shape_cast %1 : vector<1x128x128xbf16> to vector<128x128xbf16>
    %cst = arith.constant dense<0.000000e+00> : vector<128x128xf32>
    %3 = tpu.matmul %0, %2, %cst {dimension_numbers = #tpu.dot_dimension_numbers<[1], [0], [0], [1], [0, 0, 1, 1], [], []>} : vector<128x128xbf16>, vector<128x128xbf16>, vector<128x128xf32> -> vector<128x128xf32>
    %c0_4 = arith.constant 0 : index
    %c0_5 = arith.constant 0 : index
    %4 = vector.load %arg3[%c0_4, %c0_5] : memref<128x128xbf16, #tpu.memory_space<vmem>>, vector<128x128xbf16>
    %c1 = arith.constant 1 : index
    %c0_6 = arith.constant 0 : index
    %c0_7 = arith.constant 0 : index
    %5 = vector.load %arg11[%c1, %c0_6, %c0_7] : memref<9x128x128xbf16, #tpu.memory_space<vmem>>, vector<1x128x128xbf16>
    %6 = vector.shape_cast %5 : vector<1x128x128xbf16> to vector<128x128xbf16>
    %cst_8 = arith.constant dense<0.000000e+00> : vector<128x128xf32>
    %7 = tpu.matmul %4, %6, %cst_8 {dimension_numbers = #tpu.dot_dimension_numbers<[1], [0], [0], [1], [0, 0, 1, 1], [], []>} : vector<128x128xbf16>, vector<128x128xbf16>, vector<128x128xf32> -> vector<128x128xf32>
    %8 = arith.addf %3, %7 : vector<128x128xf32>
    %c0_9 = arith.constant 0 : index
    %c0_10 = arith.constant 0 : index
    %9 = vector.load %arg4[%c0_9, %c0_10] : memref<128x128xbf16, #tpu.memory_space<vmem>>, vector<128x128xbf16>
    %c2 = arith.constant 2 : index
    %c0_11 = arith.constant 0 : index
    %c0_12 = arith.constant 0 : index
    %10 = vector.load %arg11[%c2, %c0_11, %c0_12] : memref<9x128x128xbf16, #tpu.memory_space<vmem>>, vector<1x128x128xbf16>
    %11 = vector.shape_cast %10 : vector<1x128x128xbf16> to vector<128x128xbf16>
    %cst_13 = arith.constant dense<0.000000e+00> : vector<128x128xf32>
    %12 = tpu.matmul %9, %11, %cst_13 {dimension_numbers = #tpu.dot_dimension_numbers<[1], [0], [0], [1], [0, 0, 1, 1], [], []>} : vector<128x128xbf16>, vector<128x128xbf16>, vector<128x128xf32> -> vector<128x128xf32>
    %13 = arith.addf %8, %12 : vector<128x128xf32>
    %c0_14 = arith.constant 0 : index
    %c0_15 = arith.constant 0 : index
    %14 = vector.load %arg5[%c0_14, %c0_15] : memref<128x128xbf16, #tpu.memory_space<vmem>>, vector<128x128xbf16>
    %c3 = arith.constant 3 : index
    %c0_16 = arith.constant 0 : index
    %c0_17 = arith.constant 0 : index
    %15 = vector.load %arg11[%c3, %c0_16, %c0_17] : memref<9x128x128xbf16, #tpu.memory_space<vmem>>, vector<1x128x128xbf16>
    %16 = vector.shape_cast %15 : vector<1x128x128xbf16> to vector<128x128xbf16>
    %cst_18 = arith.constant dense<0.000000e+00> : vector<128x128xf32>
    %17 = tpu.matmul %14, %16, %cst_18 {dimension_numbers = #tpu.dot_dimension_numbers<[1], [0], [0], [1], [0, 0, 1, 1], [], []>} : vector<128x128xbf16>, vector<128x128xbf16>, vector<128x128xf32> -> vector<128x128xf32>
    %18 = arith.addf %13, %17 : vector<128x128xf32>
    %c0_19 = arith.constant 0 : index
    %c0_20 = arith.constant 0 : index
    %19 = vector.load %arg6[%c0_19, %c0_20] : memref<128x128xbf16, #tpu.memory_space<vmem>>, vector<128x128xbf16>
    %c4 = arith.constant 4 : index
    %c0_21 = arith.constant 0 : index
    %c0_22 = arith.constant 0 : index
    %20 = vector.load %arg11[%c4, %c0_21, %c0_22] : memref<9x128x128xbf16, #tpu.memory_space<vmem>>, vector<1x128x128xbf16>
    %21 = vector.shape_cast %20 : vector<1x128x128xbf16> to vector<128x128xbf16>
    %cst_23 = arith.constant dense<0.000000e+00> : vector<128x128xf32>
    %22 = tpu.matmul %19, %21, %cst_23 {dimension_numbers = #tpu.dot_dimension_numbers<[1], [0], [0], [1], [0, 0, 1, 1], [], []>} : vector<128x128xbf16>, vector<128x128xbf16>, vector<128x128xf32> -> vector<128x128xf32>
    %23 = arith.addf %18, %22 : vector<128x128xf32>
    %c0_24 = arith.constant 0 : index
    %c0_25 = arith.constant 0 : index
    %24 = vector.load %arg7[%c0_24, %c0_25] : memref<128x128xbf16, #tpu.memory_space<vmem>>, vector<128x128xbf16>
    %c5 = arith.constant 5 : index
    %c0_26 = arith.constant 0 : index
    %c0_27 = arith.constant 0 : index
    %25 = vector.load %arg11[%c5, %c0_26, %c0_27] : memref<9x128x128xbf16, #tpu.memory_space<vmem>>, vector<1x128x128xbf16>
    %26 = vector.shape_cast %25 : vector<1x128x128xbf16> to vector<128x128xbf16>
    %cst_28 = arith.constant dense<0.000000e+00> : vector<128x128xf32>
    %27 = tpu.matmul %24, %26, %cst_28 {dimension_numbers = #tpu.dot_dimension_numbers<[1], [0], [0], [1], [0, 0, 1, 1], [], []>} : vector<128x128xbf16>, vector<128x128xbf16>, vector<128x128xf32> -> vector<128x128xf32>
    %28 = arith.addf %23, %27 : vector<128x128xf32>
    %c0_29 = arith.constant 0 : index
    %c0_30 = arith.constant 0 : index
    %29 = vector.load %arg8[%c0_29, %c0_30] : memref<128x128xbf16, #tpu.memory_space<vmem>>, vector<128x128xbf16>
    %c6 = arith.constant 6 : index
    %c0_31 = arith.constant 0 : index
    %c0_32 = arith.constant 0 : index
    %30 = vector.load %arg11[%c6, %c0_31, %c0_32] : memref<9x128x128xbf16, #tpu.memory_space<vmem>>, vector<1x128x128xbf16>
    %31 = vector.shape_cast %30 : vector<1x128x128xbf16> to vector<128x128xbf16>
    %cst_33 = arith.constant dense<0.000000e+00> : vector<128x128xf32>
    %32 = tpu.matmul %29, %31, %cst_33 {dimension_numbers = #tpu.dot_dimension_numbers<[1], [0], [0], [1], [0, 0, 1, 1], [], []>} : vector<128x128xbf16>, vector<128x128xbf16>, vector<128x128xf32> -> vector<128x128xf32>
    %33 = arith.addf %28, %32 : vector<128x128xf32>
    %c0_34 = arith.constant 0 : index
    %c0_35 = arith.constant 0 : index
    %34 = vector.load %arg9[%c0_34, %c0_35] : memref<128x128xbf16, #tpu.memory_space<vmem>>, vector<128x128xbf16>
    %c7 = arith.constant 7 : index
    %c0_36 = arith.constant 0 : index
    %c0_37 = arith.constant 0 : index
    %35 = vector.load %arg11[%c7, %c0_36, %c0_37] : memref<9x128x128xbf16, #tpu.memory_space<vmem>>, vector<1x128x128xbf16>
    %36 = vector.shape_cast %35 : vector<1x128x128xbf16> to vector<128x128xbf16>
    %cst_38 = arith.constant dense<0.000000e+00> : vector<128x128xf32>
    %37 = tpu.matmul %34, %36, %cst_38 {dimension_numbers = #tpu.dot_dimension_numbers<[1], [0], [0], [1], [0, 0, 1, 1], [], []>} : vector<128x128xbf16>, vector<128x128xbf16>, vector<128x128xf32> -> vector<128x128xf32>
    %38 = arith.addf %33, %37 : vector<128x128xf32>
    %c0_39 = arith.constant 0 : index
    %c0_40 = arith.constant 0 : index
    %39 = vector.load %arg10[%c0_39, %c0_40] : memref<128x128xbf16, #tpu.memory_space<vmem>>, vector<128x128xbf16>
    %c8 = arith.constant 8 : index
    %c0_41 = arith.constant 0 : index
    %c0_42 = arith.constant 0 : index
    %40 = vector.load %arg11[%c8, %c0_41, %c0_42] : memref<9x128x128xbf16, #tpu.memory_space<vmem>>, vector<1x128x128xbf16>
    %41 = vector.shape_cast %40 : vector<1x128x128xbf16> to vector<128x128xbf16>
    %cst_43 = arith.constant dense<0.000000e+00> : vector<128x128xf32>
    %42 = tpu.matmul %39, %41, %cst_43 {dimension_numbers = #tpu.dot_dimension_numbers<[1], [0], [0], [1], [0, 0, 1, 1], [], []>} : vector<128x128xbf16>, vector<128x128xbf16>, vector<128x128xf32> -> vector<128x128xf32>
    %43 = arith.addf %38, %42 : vector<128x128xf32>
    %c0_44 = arith.constant 0 : index
    %c0_45 = arith.constant 0 : index
    %44 = vector.load %arg12[%c0_44, %c0_45] : memref<1x128xf32, #tpu.memory_space<vmem>>, vector<1x128xf32>
    %45 = vector.broadcast %44 : vector<1x128xf32> to vector<128x128xf32>
    %46 = arith.mulf %43, %45 : vector<128x128xf32>
    %c0_46 = arith.constant 0 : index
    %c0_47 = arith.constant 0 : index
    %47 = vector.load %arg13[%c0_46, %c0_47] : memref<1x128xf32, #tpu.memory_space<vmem>>, vector<1x128xf32>
    %48 = vector.broadcast %47 : vector<1x128xf32> to vector<128x128xf32>
    %49 = arith.addf %46, %48 : vector<128x128xf32>
    %cst_48 = arith.constant 0.000000e+00 : f32
    %50 = vector.broadcast %cst_48 : f32 to vector<128x128xf32>
    %51 = arith.maximumf %49, %50 : vector<128x128xf32>
    %52 = arith.truncf %51 : vector<128x128xf32> to vector<128x128xbf16>
    %c0_49 = arith.constant 0 : index
    %c0_50 = arith.constant 0 : index
    %53 = vector.load %arg14[%c0_49, %c0_50] : memref<128x128xbf16, #tpu.memory_space<vmem>>, vector<128x128xbf16>
    tpu.vector_store %arg14[%c0_49, %c0_50], %52 {strides = array<i32>} : memref<128x128xbf16, #tpu.memory_space<vmem>>, vector<128x128xbf16>,
    return
  }
  func.func @transform_0(%arg0: i32, %arg1: i32) -> (i32, i32) {
    %c0_i32 = arith.constant 0 : i32
    %c0_i32_0 = arith.constant 0 : i32
    return %arg0, %c0_i32 : i32, i32
  }
  func.func @transform_1(%arg0: i32, %arg1: i32) -> (i32, i32) {
    %c0_i32 = arith.constant 0 : i32
    %c0_i32_0 = arith.constant 0 : i32
    return %arg0, %c0_i32 : i32, i32
  }
  func.func @transform_2(%arg0: i32, %arg1: i32) -> (i32, i32) {
    %c0_i32 = arith.constant 0 : i32
    %c0_i32_0 = arith.constant 0 : i32
    return %arg0, %c0_i32 : i32, i32
  }
  func.func @transform_3(%arg0: i32, %arg1: i32) -> (i32, i32) {
    %c0_i32 = arith.constant 0 : i32
    %c0_i32_0 = arith.constant 0 : i32
    return %arg0, %c0_i32 : i32, i32
  }
  func.func @transform_4(%arg0: i32, %arg1: i32) -> (i32, i32) {
    %c0_i32 = arith.constant 0 : i32
    %c0_i32_0 = arith.constant 0 : i32
    return %arg0, %c0_i32 : i32, i32
  }
  func.func @transform_5(%arg0: i32, %arg1: i32) -> (i32, i32) {
    %c0_i32 = arith.constant 0 : i32
    %c0_i32_0 = arith.constant 0 : i32
    return %arg0, %c0_i32 : i32, i32
  }
  func.func @transform_6(%arg0: i32, %arg1: i32) -> (i32, i32) {
    %c0_i32 = arith.constant 0 : i32
    %c0_i32_0 = arith.constant 0 : i32
    return %arg0, %c0_i32 : i32, i32
  }
  func.func @transform_7(%arg0: i32, %arg1: i32) -> (i32, i32) {
    %c0_i32 = arith.constant 0 : i32
    %c0_i32_0 = arith.constant 0 : i32
    return %arg0, %c0_i32 : i32, i32
  }
  func.func @transform_8(%arg0: i32, %arg1: i32) -> (i32, i32) {
    %c0_i32 = arith.constant 0 : i32
    %c0_i32_0 = arith.constant 0 : i32
    return %arg0, %c0_i32 : i32, i32
  }
  func.func @transform_9(%arg0: i32, %arg1: i32) -> (i32, i32, i32) {
    %c0_i32 = arith.constant 0 : i32
    %c0_i32_0 = arith.constant 0 : i32
    %c0_i32_1 = arith.constant 0 : i32
    return %c0_i32, %c0_i32_0, %arg1 : i32, i32, i32
  }
  func.func @transform_10(%arg0: i32, %arg1: i32) -> (i32, i32) {
    %c0_i32 = arith.constant 0 : i32
    %c0_i32_0 = arith.constant 0 : i32
    return %c0_i32, %arg1 : i32, i32
  }
  func.func @transform_11(%arg0: i32, %arg1: i32) -> (i32, i32) {
    %c0_i32 = arith.constant 0 : i32
    %c0_i32_0 = arith.constant 0 : i32
    return %c0_i32, %arg1 : i32, i32
  }
  func.func @transform_12(%arg0: i32, %arg1: i32) -> (i32, i32) {
    %c0_i32 = arith.constant 0 : i32
    return %arg0, %arg1 : i32, i32
  }
}

module attributes {stable_mosaic.version = 11 : i64} {
  func.func @_conv_kernel(%arg0: i32, %arg1: i32, %arg2: memref<128x128xbf16, #tpu.memory_space<vmem>>, %arg3: memref<1x128x256xbf16, #tpu.memory_space<vmem>>, %arg4: memref<1x256xf32, #tpu.memory_space<vmem>>, %arg5: memref<1x256xf32, #tpu.memory_space<vmem>>, %arg6: memref<128x256xbf16, #tpu.memory_space<vmem>>, %arg7: memref<128x256xbf16, #tpu.memory_space<vmem>>) attributes {dimension_semantics = [#tpu.dimension_semantics<parallel>, #tpu.dimension_semantics<parallel>], iteration_bounds = array<i64: 1, 1>, scalar_prefetch = 0 : i64, scratch_operands = 0 : i64, tpu.core_type = #tpu.core_type<tc>, window_params = [{transform_indices = @transform_0, window_bounds = array<i64: 128, 128>}, {transform_indices = @transform_1, window_bounds = array<i64: 1, 128, 256>}, {transform_indices = @transform_2, window_bounds = array<i64: 1, 256>}, {transform_indices = @transform_3, window_bounds = array<i64: 1, 256>}, {transform_indices = @transform_4, window_bounds = array<i64: 128, 256>}, {transform_indices = @transform_5, window_bounds = array<i64: 128, 256>}]} {
    %c0 = arith.constant 0 : index
    %c0_0 = arith.constant 0 : index
    %0 = vector.load %arg2[%c0, %c0_0] : memref<128x128xbf16, #tpu.memory_space<vmem>>, vector<128x128xbf16>
    %c0_1 = arith.constant 0 : index
    %c0_2 = arith.constant 0 : index
    %c0_3 = arith.constant 0 : index
    %1 = vector.load %arg3[%c0_1, %c0_2, %c0_3] : memref<1x128x256xbf16, #tpu.memory_space<vmem>>, vector<1x128x256xbf16>
    %2 = vector.shape_cast %1 : vector<1x128x256xbf16> to vector<128x256xbf16>
    %cst = arith.constant dense<0.000000e+00> : vector<128x256xf32>
    %3 = tpu.matmul %0, %2, %cst {dimension_numbers = #tpu.dot_dimension_numbers<[1], [0], [0], [1], [0, 0, 1, 1], [], []>} : vector<128x128xbf16>, vector<128x256xbf16>, vector<128x256xf32> -> vector<128x256xf32>
    %c0_4 = arith.constant 0 : index
    %c0_5 = arith.constant 0 : index
    %4 = vector.load %arg4[%c0_4, %c0_5] : memref<1x256xf32, #tpu.memory_space<vmem>>, vector<1x256xf32>
    %5 = vector.broadcast %4 : vector<1x256xf32> to vector<128x256xf32>
    %6 = arith.mulf %3, %5 : vector<128x256xf32>
    %c0_6 = arith.constant 0 : index
    %c0_7 = arith.constant 0 : index
    %7 = vector.load %arg5[%c0_6, %c0_7] : memref<1x256xf32, #tpu.memory_space<vmem>>, vector<1x256xf32>
    %8 = vector.broadcast %7 : vector<1x256xf32> to vector<128x256xf32>
    %9 = arith.addf %6, %8 : vector<128x256xf32>
    %c0_8 = arith.constant 0 : index
    %c0_9 = arith.constant 0 : index
    %10 = vector.load %arg6[%c0_8, %c0_9] : memref<128x256xbf16, #tpu.memory_space<vmem>>, vector<128x256xbf16>
    %11 = arith.extf %10 : vector<128x256xbf16> to vector<128x256xf32>
    %12 = arith.addf %9, %11 : vector<128x256xf32>
    %cst_10 = arith.constant 0.000000e+00 : f32
    %13 = vector.broadcast %cst_10 : f32 to vector<128x256xf32>
    %14 = arith.maximumf %12, %13 : vector<128x256xf32>
    %15 = arith.truncf %14 : vector<128x256xf32> to vector<128x256xbf16>
    %c0_11 = arith.constant 0 : index
    %c0_12 = arith.constant 0 : index
    %16 = vector.load %arg7[%c0_11, %c0_12] : memref<128x256xbf16, #tpu.memory_space<vmem>>, vector<128x256xbf16>
    tpu.vector_store %arg7[%c0_11, %c0_12], %15 {strides = array<i32>} : memref<128x256xbf16, #tpu.memory_space<vmem>>, vector<128x256xbf16>,
    return
  }
  func.func @transform_0(%arg0: i32, %arg1: i32) -> (i32, i32) {
    %c0_i32 = arith.constant 0 : i32
    %c0_i32_0 = arith.constant 0 : i32
    return %arg0, %c0_i32 : i32, i32
  }
  func.func @transform_1(%arg0: i32, %arg1: i32) -> (i32, i32, i32) {
    %c0_i32 = arith.constant 0 : i32
    %c0_i32_0 = arith.constant 0 : i32
    %c0_i32_1 = arith.constant 0 : i32
    return %c0_i32, %c0_i32_0, %arg1 : i32, i32, i32
  }
  func.func @transform_2(%arg0: i32, %arg1: i32) -> (i32, i32) {
    %c0_i32 = arith.constant 0 : i32
    %c0_i32_0 = arith.constant 0 : i32
    return %c0_i32, %arg1 : i32, i32
  }
  func.func @transform_3(%arg0: i32, %arg1: i32) -> (i32, i32) {
    %c0_i32 = arith.constant 0 : i32
    %c0_i32_0 = arith.constant 0 : i32
    return %c0_i32, %arg1 : i32, i32
  }
  func.func @transform_4(%arg0: i32, %arg1: i32) -> (i32, i32) {
    %c0_i32 = arith.constant 0 : i32
    return %arg0, %arg1 : i32, i32
  }
  func.func @transform_5(%arg0: i32, %arg1: i32) -> (i32, i32) {
    %c0_i32 = arith.constant 0 : i32
    return %arg0, %arg1 : i32, i32
  }
}

module attributes {stable_mosaic.version = 11 : i64} {
  func.func @_conv_kernel(%arg0: i32, %arg1: i32, %arg2: memref<128x256xbf16, #tpu.memory_space<vmem>>, %arg3: memref<1x256x128xbf16, #tpu.memory_space<vmem>>, %arg4: memref<1x128xf32, #tpu.memory_space<vmem>>, %arg5: memref<1x128xf32, #tpu.memory_space<vmem>>, %arg6: memref<128x128xbf16, #tpu.memory_space<vmem>>) attributes {dimension_semantics = [#tpu.dimension_semantics<parallel>, #tpu.dimension_semantics<parallel>], iteration_bounds = array<i64: 1, 1>, scalar_prefetch = 0 : i64, scratch_operands = 0 : i64, tpu.core_type = #tpu.core_type<tc>, window_params = [{transform_indices = @transform_0, window_bounds = array<i64: 128, 256>}, {transform_indices = @transform_1, window_bounds = array<i64: 1, 256, 128>}, {transform_indices = @transform_2, window_bounds = array<i64: 1, 128>}, {transform_indices = @transform_3, window_bounds = array<i64: 1, 128>}, {transform_indices = @transform_4, window_bounds = array<i64: 128, 128>}]} {
    %c0 = arith.constant 0 : index
    %c0_0 = arith.constant 0 : index
    %0 = vector.load %arg2[%c0, %c0_0] : memref<128x256xbf16, #tpu.memory_space<vmem>>, vector<128x256xbf16>
    %c0_1 = arith.constant 0 : index
    %c0_2 = arith.constant 0 : index
    %c0_3 = arith.constant 0 : index
    %1 = vector.load %arg3[%c0_1, %c0_2, %c0_3] : memref<1x256x128xbf16, #tpu.memory_space<vmem>>, vector<1x256x128xbf16>
    %2 = vector.shape_cast %1 : vector<1x256x128xbf16> to vector<256x128xbf16>
    %cst = arith.constant dense<0.000000e+00> : vector<128x128xf32>
    %3 = tpu.matmul %0, %2, %cst {dimension_numbers = #tpu.dot_dimension_numbers<[1], [0], [0], [1], [0, 0, 1, 1], [], []>} : vector<128x256xbf16>, vector<256x128xbf16>, vector<128x128xf32> -> vector<128x128xf32>
    %c0_4 = arith.constant 0 : index
    %c0_5 = arith.constant 0 : index
    %4 = vector.load %arg4[%c0_4, %c0_5] : memref<1x128xf32, #tpu.memory_space<vmem>>, vector<1x128xf32>
    %5 = vector.broadcast %4 : vector<1x128xf32> to vector<128x128xf32>
    %6 = arith.mulf %3, %5 : vector<128x128xf32>
    %c0_6 = arith.constant 0 : index
    %c0_7 = arith.constant 0 : index
    %7 = vector.load %arg5[%c0_6, %c0_7] : memref<1x128xf32, #tpu.memory_space<vmem>>, vector<1x128xf32>
    %8 = vector.broadcast %7 : vector<1x128xf32> to vector<128x128xf32>
    %9 = arith.addf %6, %8 : vector<128x128xf32>
    %cst_8 = arith.constant 0.000000e+00 : f32
    %10 = vector.broadcast %cst_8 : f32 to vector<128x128xf32>
    %11 = arith.maximumf %9, %10 : vector<128x128xf32>
    %12 = arith.truncf %11 : vector<128x128xf32> to vector<128x128xbf16>
    %c0_9 = arith.constant 0 : index
    %c0_10 = arith.constant 0 : index
    %13 = vector.load %arg6[%c0_9, %c0_10] : memref<128x128xbf16, #tpu.memory_space<vmem>>, vector<128x128xbf16>
    tpu.vector_store %arg6[%c0_9, %c0_10], %12 {strides = array<i32>} : memref<128x128xbf16, #tpu.memory_space<vmem>>, vector<128x128xbf16>,
    return
  }
  func.func @transform_0(%arg0: i32, %arg1: i32) -> (i32, i32) {
    %c0_i32 = arith.constant 0 : i32
    %c0_i32_0 = arith.constant 0 : i32
    return %arg0, %c0_i32 : i32, i32
  }
  func.func @transform_1(%arg0: i32, %arg1: i32) -> (i32, i32, i32) {
    %c0_i32 = arith.constant 0 : i32
    %c0_i32_0 = arith.constant 0 : i32
    %c0_i32_1 = arith.constant 0 : i32
    return %c0_i32, %c0_i32_0, %arg1 : i32, i32, i32
  }
  func.func @transform_2(%arg0: i32, %arg1: i32) -> (i32, i32) {
    %c0_i32 = arith.constant 0 : i32
    %c0_i32_0 = arith.constant 0 : i32
    return %c0_i32, %arg1 : i32, i32
  }
  func.func @transform_3(%arg0: i32, %arg1: i32) -> (i32, i32) {
    %c0_i32 = arith.constant 0 : i32
    %c0_i32_0 = arith.constant 0 : i32
    return %c0_i32, %arg1 : i32, i32
  }
  func.func @transform_4(%arg0: i32, %arg1: i32) -> (i32, i32) {
    %c0_i32 = arith.constant 0 : i32
    return %arg0, %arg1 : i32, i32
  }
}

module attributes {stable_mosaic.version = 11 : i64} {
  func.func @_conv_kernel(%arg0: i32, %arg1: i32, %arg2: memref<32x256xbf16, #tpu.memory_space<vmem>>, %arg3: memref<1x256x512xbf16, #tpu.memory_space<vmem>>, %arg4: memref<1x512xf32, #tpu.memory_space<vmem>>, %arg5: memref<1x512xf32, #tpu.memory_space<vmem>>, %arg6: memref<32x512xbf16, #tpu.memory_space<vmem>>) attributes {dimension_semantics = [#tpu.dimension_semantics<parallel>, #tpu.dimension_semantics<parallel>], iteration_bounds = array<i64: 1, 1>, scalar_prefetch = 0 : i64, scratch_operands = 0 : i64, tpu.core_type = #tpu.core_type<tc>, window_params = [{transform_indices = @transform_0, window_bounds = array<i64: 32, 256>}, {transform_indices = @transform_1, window_bounds = array<i64: 1, 256, 512>}, {transform_indices = @transform_2, window_bounds = array<i64: 1, 512>}, {transform_indices = @transform_3, window_bounds = array<i64: 1, 512>}, {transform_indices = @transform_4, window_bounds = array<i64: 32, 512>}]} {
    %c0 = arith.constant 0 : index
    %c0_0 = arith.constant 0 : index
    %0 = vector.load %arg2[%c0, %c0_0] : memref<32x256xbf16, #tpu.memory_space<vmem>>, vector<32x256xbf16>
    %c0_1 = arith.constant 0 : index
    %c0_2 = arith.constant 0 : index
    %c0_3 = arith.constant 0 : index
    %1 = vector.load %arg3[%c0_1, %c0_2, %c0_3] : memref<1x256x512xbf16, #tpu.memory_space<vmem>>, vector<1x256x512xbf16>
    %2 = vector.shape_cast %1 : vector<1x256x512xbf16> to vector<256x512xbf16>
    %cst = arith.constant dense<0.000000e+00> : vector<32x512xf32>
    %3 = tpu.matmul %0, %2, %cst {dimension_numbers = #tpu.dot_dimension_numbers<[1], [0], [0], [1], [0, 0, 1, 1], [], []>} : vector<32x256xbf16>, vector<256x512xbf16>, vector<32x512xf32> -> vector<32x512xf32>
    %c0_4 = arith.constant 0 : index
    %c0_5 = arith.constant 0 : index
    %4 = vector.load %arg4[%c0_4, %c0_5] : memref<1x512xf32, #tpu.memory_space<vmem>>, vector<1x512xf32>
    %5 = vector.broadcast %4 : vector<1x512xf32> to vector<32x512xf32>
    %6 = arith.mulf %3, %5 : vector<32x512xf32>
    %c0_6 = arith.constant 0 : index
    %c0_7 = arith.constant 0 : index
    %7 = vector.load %arg5[%c0_6, %c0_7] : memref<1x512xf32, #tpu.memory_space<vmem>>, vector<1x512xf32>
    %8 = vector.broadcast %7 : vector<1x512xf32> to vector<32x512xf32>
    %9 = arith.addf %6, %8 : vector<32x512xf32>
    %10 = arith.truncf %9 : vector<32x512xf32> to vector<32x512xbf16>
    %c0_8 = arith.constant 0 : index
    %c0_9 = arith.constant 0 : index
    %11 = vector.load %arg6[%c0_8, %c0_9] : memref<32x512xbf16, #tpu.memory_space<vmem>>, vector<32x512xbf16>
    tpu.vector_store %arg6[%c0_8, %c0_9], %10 {strides = array<i32>} : memref<32x512xbf16, #tpu.memory_space<vmem>>, vector<32x512xbf16>,
    return
  }
  func.func @transform_0(%arg0: i32, %arg1: i32) -> (i32, i32) {
    %c0_i32 = arith.constant 0 : i32
    %c0_i32_0 = arith.constant 0 : i32
    return %arg0, %c0_i32 : i32, i32
  }
  func.func @transform_1(%arg0: i32, %arg1: i32) -> (i32, i32, i32) {
    %c0_i32 = arith.constant 0 : i32
    %c0_i32_0 = arith.constant 0 : i32
    %c0_i32_1 = arith.constant 0 : i32
    return %c0_i32, %c0_i32_0, %arg1 : i32, i32, i32
  }
  func.func @transform_2(%arg0: i32, %arg1: i32) -> (i32, i32) {
    %c0_i32 = arith.constant 0 : i32
    %c0_i32_0 = arith.constant 0 : i32
    return %c0_i32, %arg1 : i32, i32
  }
  func.func @transform_3(%arg0: i32, %arg1: i32) -> (i32, i32) {
    %c0_i32 = arith.constant 0 : i32
    %c0_i32_0 = arith.constant 0 : i32
    return %c0_i32, %arg1 : i32, i32
  }
  func.func @transform_4(%arg0: i32, %arg1: i32) -> (i32, i32) {
    %c0_i32 = arith.constant 0 : i32
    return %arg0, %arg1 : i32, i32
  }
}

module attributes {stable_mosaic.version = 11 : i64} {
  func.func @_conv_kernel(%arg0: i32, %arg1: i32, %arg2: memref<32x128xbf16, #tpu.memory_space<vmem>>, %arg3: memref<1x128x512xbf16, #tpu.memory_space<vmem>>, %arg4: memref<1x512xf32, #tpu.memory_space<vmem>>, %arg5: memref<1x512xf32, #tpu.memory_space<vmem>>, %arg6: memref<32x512xbf16, #tpu.memory_space<vmem>>, %arg7: memref<32x512xbf16, #tpu.memory_space<vmem>>) attributes {dimension_semantics = [#tpu.dimension_semantics<parallel>, #tpu.dimension_semantics<parallel>], iteration_bounds = array<i64: 1, 1>, scalar_prefetch = 0 : i64, scratch_operands = 0 : i64, tpu.core_type = #tpu.core_type<tc>, window_params = [{transform_indices = @transform_0, window_bounds = array<i64: 32, 128>}, {transform_indices = @transform_1, window_bounds = array<i64: 1, 128, 512>}, {transform_indices = @transform_2, window_bounds = array<i64: 1, 512>}, {transform_indices = @transform_3, window_bounds = array<i64: 1, 512>}, {transform_indices = @transform_4, window_bounds = array<i64: 32, 512>}, {transform_indices = @transform_5, window_bounds = array<i64: 32, 512>}]} {
    %c0 = arith.constant 0 : index
    %c0_0 = arith.constant 0 : index
    %0 = vector.load %arg2[%c0, %c0_0] : memref<32x128xbf16, #tpu.memory_space<vmem>>, vector<32x128xbf16>
    %c0_1 = arith.constant 0 : index
    %c0_2 = arith.constant 0 : index
    %c0_3 = arith.constant 0 : index
    %1 = vector.load %arg3[%c0_1, %c0_2, %c0_3] : memref<1x128x512xbf16, #tpu.memory_space<vmem>>, vector<1x128x512xbf16>
    %2 = vector.shape_cast %1 : vector<1x128x512xbf16> to vector<128x512xbf16>
    %cst = arith.constant dense<0.000000e+00> : vector<32x512xf32>
    %3 = tpu.matmul %0, %2, %cst {dimension_numbers = #tpu.dot_dimension_numbers<[1], [0], [0], [1], [0, 0, 1, 1], [], []>} : vector<32x128xbf16>, vector<128x512xbf16>, vector<32x512xf32> -> vector<32x512xf32>
    %c0_4 = arith.constant 0 : index
    %c0_5 = arith.constant 0 : index
    %4 = vector.load %arg4[%c0_4, %c0_5] : memref<1x512xf32, #tpu.memory_space<vmem>>, vector<1x512xf32>
    %5 = vector.broadcast %4 : vector<1x512xf32> to vector<32x512xf32>
    %6 = arith.mulf %3, %5 : vector<32x512xf32>
    %c0_6 = arith.constant 0 : index
    %c0_7 = arith.constant 0 : index
    %7 = vector.load %arg5[%c0_6, %c0_7] : memref<1x512xf32, #tpu.memory_space<vmem>>, vector<1x512xf32>
    %8 = vector.broadcast %7 : vector<1x512xf32> to vector<32x512xf32>
    %9 = arith.addf %6, %8 : vector<32x512xf32>
    %c0_8 = arith.constant 0 : index
    %c0_9 = arith.constant 0 : index
    %10 = vector.load %arg6[%c0_8, %c0_9] : memref<32x512xbf16, #tpu.memory_space<vmem>>, vector<32x512xbf16>
    %11 = arith.extf %10 : vector<32x512xbf16> to vector<32x512xf32>
    %12 = arith.addf %9, %11 : vector<32x512xf32>
    %cst_10 = arith.constant 0.000000e+00 : f32
    %13 = vector.broadcast %cst_10 : f32 to vector<32x512xf32>
    %14 = arith.maximumf %12, %13 : vector<32x512xf32>
    %15 = arith.truncf %14 : vector<32x512xf32> to vector<32x512xbf16>
    %c0_11 = arith.constant 0 : index
    %c0_12 = arith.constant 0 : index
    %16 = vector.load %arg7[%c0_11, %c0_12] : memref<32x512xbf16, #tpu.memory_space<vmem>>, vector<32x512xbf16>
    tpu.vector_store %arg7[%c0_11, %c0_12], %15 {strides = array<i32>} : memref<32x512xbf16, #tpu.memory_space<vmem>>, vector<32x512xbf16>,
    return
  }
  func.func @transform_0(%arg0: i32, %arg1: i32) -> (i32, i32) {
    %c0_i32 = arith.constant 0 : i32
    %c0_i32_0 = arith.constant 0 : i32
    return %arg0, %c0_i32 : i32, i32
  }
  func.func @transform_1(%arg0: i32, %arg1: i32) -> (i32, i32, i32) {
    %c0_i32 = arith.constant 0 : i32
    %c0_i32_0 = arith.constant 0 : i32
    %c0_i32_1 = arith.constant 0 : i32
    return %c0_i32, %c0_i32_0, %arg1 : i32, i32, i32
  }
  func.func @transform_2(%arg0: i32, %arg1: i32) -> (i32, i32) {
    %c0_i32 = arith.constant 0 : i32
    %c0_i32_0 = arith.constant 0 : i32
    return %c0_i32, %arg1 : i32, i32
  }
  func.func @transform_3(%arg0: i32, %arg1: i32) -> (i32, i32) {
    %c0_i32 = arith.constant 0 : i32
    %c0_i32_0 = arith.constant 0 : i32
    return %c0_i32, %arg1 : i32, i32
  }
  func.func @transform_4(%arg0: i32, %arg1: i32) -> (i32, i32) {
    %c0_i32 = arith.constant 0 : i32
    return %arg0, %arg1 : i32, i32
  }
  func.func @transform_5(%arg0: i32, %arg1: i32) -> (i32, i32) {
    %c0_i32 = arith.constant 0 : i32
    return %arg0, %arg1 : i32, i32
  }
}

module attributes {stable_mosaic.version = 11 : i64} {
  func.func @_conv_kernel(%arg0: i32, %arg1: i32, %arg2: memref<32x512xbf16, #tpu.memory_space<vmem>>, %arg3: memref<1x512x128xbf16, #tpu.memory_space<vmem>>, %arg4: memref<1x128xf32, #tpu.memory_space<vmem>>, %arg5: memref<1x128xf32, #tpu.memory_space<vmem>>, %arg6: memref<32x128xbf16, #tpu.memory_space<vmem>>) attributes {dimension_semantics = [#tpu.dimension_semantics<parallel>, #tpu.dimension_semantics<parallel>], iteration_bounds = array<i64: 1, 1>, scalar_prefetch = 0 : i64, scratch_operands = 0 : i64, tpu.core_type = #tpu.core_type<tc>, window_params = [{transform_indices = @transform_0, window_bounds = array<i64: 32, 512>}, {transform_indices = @transform_1, window_bounds = array<i64: 1, 512, 128>}, {transform_indices = @transform_2, window_bounds = array<i64: 1, 128>}, {transform_indices = @transform_3, window_bounds = array<i64: 1, 128>}, {transform_indices = @transform_4, window_bounds = array<i64: 32, 128>}]} {
    %c0 = arith.constant 0 : index
    %c0_0 = arith.constant 0 : index
    %0 = vector.load %arg2[%c0, %c0_0] : memref<32x512xbf16, #tpu.memory_space<vmem>>, vector<32x512xbf16>
    %c0_1 = arith.constant 0 : index
    %c0_2 = arith.constant 0 : index
    %c0_3 = arith.constant 0 : index
    %1 = vector.load %arg3[%c0_1, %c0_2, %c0_3] : memref<1x512x128xbf16, #tpu.memory_space<vmem>>, vector<1x512x128xbf16>
    %2 = vector.shape_cast %1 : vector<1x512x128xbf16> to vector<512x128xbf16>
    %cst = arith.constant dense<0.000000e+00> : vector<32x128xf32>
    %3 = tpu.matmul %0, %2, %cst {dimension_numbers = #tpu.dot_dimension_numbers<[1], [0], [0], [1], [0, 0, 1, 1], [], []>} : vector<32x512xbf16>, vector<512x128xbf16>, vector<32x128xf32> -> vector<32x128xf32>
    %c0_4 = arith.constant 0 : index
    %c0_5 = arith.constant 0 : index
    %4 = vector.load %arg4[%c0_4, %c0_5] : memref<1x128xf32, #tpu.memory_space<vmem>>, vector<1x128xf32>
    %5 = vector.broadcast %4 : vector<1x128xf32> to vector<32x128xf32>
    %6 = arith.mulf %3, %5 : vector<32x128xf32>
    %c0_6 = arith.constant 0 : index
    %c0_7 = arith.constant 0 : index
    %7 = vector.load %arg5[%c0_6, %c0_7] : memref<1x128xf32, #tpu.memory_space<vmem>>, vector<1x128xf32>
    %8 = vector.broadcast %7 : vector<1x128xf32> to vector<32x128xf32>
    %9 = arith.addf %6, %8 : vector<32x128xf32>
    %cst_8 = arith.constant 0.000000e+00 : f32
    %10 = vector.broadcast %cst_8 : f32 to vector<32x128xf32>
    %11 = arith.maximumf %9, %10 : vector<32x128xf32>
    %12 = arith.truncf %11 : vector<32x128xf32> to vector<32x128xbf16>
    %c0_9 = arith.constant 0 : index
    %c0_10 = arith.constant 0 : index
    %13 = vector.load %arg6[%c0_9, %c0_10] : memref<32x128xbf16, #tpu.memory_space<vmem>>, vector<32x128xbf16>
    tpu.vector_store %arg6[%c0_9, %c0_10], %12 {strides = array<i32>} : memref<32x128xbf16, #tpu.memory_space<vmem>>, vector<32x128xbf16>,
    return
  }
  func.func @transform_0(%arg0: i32, %arg1: i32) -> (i32, i32) {
    %c0_i32 = arith.constant 0 : i32
    %c0_i32_0 = arith.constant 0 : i32
    return %arg0, %c0_i32 : i32, i32
  }
  func.func @transform_1(%arg0: i32, %arg1: i32) -> (i32, i32, i32) {
    %c0_i32 = arith.constant 0 : i32
    %c0_i32_0 = arith.constant 0 : i32
    %c0_i32_1 = arith.constant 0 : i32
    return %c0_i32, %c0_i32_0, %arg1 : i32, i32, i32
  }
  func.func @transform_2(%arg0: i32, %arg1: i32) -> (i32, i32) {
    %c0_i32 = arith.constant 0 : i32
    %c0_i32_0 = arith.constant 0 : i32
    return %c0_i32, %arg1 : i32, i32
  }
  func.func @transform_3(%arg0: i32, %arg1: i32) -> (i32, i32) {
    %c0_i32 = arith.constant 0 : i32
    %c0_i32_0 = arith.constant 0 : i32
    return %c0_i32, %arg1 : i32, i32
  }
  func.func @transform_4(%arg0: i32, %arg1: i32) -> (i32, i32) {
    %c0_i32 = arith.constant 0 : i32
    return %arg0, %arg1 : i32, i32
  }
}

module attributes {stable_mosaic.version = 11 : i64} {
  func.func @_conv_kernel(%arg0: i32, %arg1: i32, %arg2: memref<32x128xbf16, #tpu.memory_space<vmem>>, %arg3: memref<32x128xbf16, #tpu.memory_space<vmem>>, %arg4: memref<32x128xbf16, #tpu.memory_space<vmem>>, %arg5: memref<32x128xbf16, #tpu.memory_space<vmem>>, %arg6: memref<32x128xbf16, #tpu.memory_space<vmem>>, %arg7: memref<32x128xbf16, #tpu.memory_space<vmem>>, %arg8: memref<32x128xbf16, #tpu.memory_space<vmem>>, %arg9: memref<32x128xbf16, #tpu.memory_space<vmem>>, %arg10: memref<32x128xbf16, #tpu.memory_space<vmem>>, %arg11: memref<9x128x128xbf16, #tpu.memory_space<vmem>>, %arg12: memref<1x128xf32, #tpu.memory_space<vmem>>, %arg13: memref<1x128xf32, #tpu.memory_space<vmem>>, %arg14: memref<32x128xbf16, #tpu.memory_space<vmem>>) attributes {dimension_semantics = [#tpu.dimension_semantics<parallel>, #tpu.dimension_semantics<parallel>], iteration_bounds = array<i64: 1, 1>, scalar_prefetch = 0 : i64, scratch_operands = 0 : i64, tpu.core_type = #tpu.core_type<tc>, window_params = [{transform_indices = @transform_0, window_bounds = array<i64: 32, 128>}, {transform_indices = @transform_1, window_bounds = array<i64: 32, 128>}, {transform_indices = @transform_2, window_bounds = array<i64: 32, 128>}, {transform_indices = @transform_3, window_bounds = array<i64: 32, 128>}, {transform_indices = @transform_4, window_bounds = array<i64: 32, 128>}, {transform_indices = @transform_5, window_bounds = array<i64: 32, 128>}, {transform_indices = @transform_6, window_bounds = array<i64: 32, 128>}, {transform_indices = @transform_7, window_bounds = array<i64: 32, 128>}, {transform_indices = @transform_8, window_bounds = array<i64: 32, 128>}, {transform_indices = @transform_9, window_bounds = array<i64: 9, 128, 128>}, {transform_indices = @transform_10, window_bounds = array<i64: 1, 128>}, {transform_indices = @transform_11, window_bounds = array<i64: 1, 128>}, {transform_indices = @transform_12, window_bounds = array<i64: 32, 128>}]} {
    %c0 = arith.constant 0 : index
    %c0_0 = arith.constant 0 : index
    %0 = vector.load %arg2[%c0, %c0_0] : memref<32x128xbf16, #tpu.memory_space<vmem>>, vector<32x128xbf16>
    %c0_1 = arith.constant 0 : index
    %c0_2 = arith.constant 0 : index
    %c0_3 = arith.constant 0 : index
    %1 = vector.load %arg11[%c0_1, %c0_2, %c0_3] : memref<9x128x128xbf16, #tpu.memory_space<vmem>>, vector<1x128x128xbf16>
    %2 = vector.shape_cast %1 : vector<1x128x128xbf16> to vector<128x128xbf16>
    %cst = arith.constant dense<0.000000e+00> : vector<32x128xf32>
    %3 = tpu.matmul %0, %2, %cst {dimension_numbers = #tpu.dot_dimension_numbers<[1], [0], [0], [1], [0, 0, 1, 1], [], []>} : vector<32x128xbf16>, vector<128x128xbf16>, vector<32x128xf32> -> vector<32x128xf32>
    %c0_4 = arith.constant 0 : index
    %c0_5 = arith.constant 0 : index
    %4 = vector.load %arg3[%c0_4, %c0_5] : memref<32x128xbf16, #tpu.memory_space<vmem>>, vector<32x128xbf16>
    %c1 = arith.constant 1 : index
    %c0_6 = arith.constant 0 : index
    %c0_7 = arith.constant 0 : index
    %5 = vector.load %arg11[%c1, %c0_6, %c0_7] : memref<9x128x128xbf16, #tpu.memory_space<vmem>>, vector<1x128x128xbf16>
    %6 = vector.shape_cast %5 : vector<1x128x128xbf16> to vector<128x128xbf16>
    %cst_8 = arith.constant dense<0.000000e+00> : vector<32x128xf32>
    %7 = tpu.matmul %4, %6, %cst_8 {dimension_numbers = #tpu.dot_dimension_numbers<[1], [0], [0], [1], [0, 0, 1, 1], [], []>} : vector<32x128xbf16>, vector<128x128xbf16>, vector<32x128xf32> -> vector<32x128xf32>
    %8 = arith.addf %3, %7 : vector<32x128xf32>
    %c0_9 = arith.constant 0 : index
    %c0_10 = arith.constant 0 : index
    %9 = vector.load %arg4[%c0_9, %c0_10] : memref<32x128xbf16, #tpu.memory_space<vmem>>, vector<32x128xbf16>
    %c2 = arith.constant 2 : index
    %c0_11 = arith.constant 0 : index
    %c0_12 = arith.constant 0 : index
    %10 = vector.load %arg11[%c2, %c0_11, %c0_12] : memref<9x128x128xbf16, #tpu.memory_space<vmem>>, vector<1x128x128xbf16>
    %11 = vector.shape_cast %10 : vector<1x128x128xbf16> to vector<128x128xbf16>
    %cst_13 = arith.constant dense<0.000000e+00> : vector<32x128xf32>
    %12 = tpu.matmul %9, %11, %cst_13 {dimension_numbers = #tpu.dot_dimension_numbers<[1], [0], [0], [1], [0, 0, 1, 1], [], []>} : vector<32x128xbf16>, vector<128x128xbf16>, vector<32x128xf32> -> vector<32x128xf32>
    %13 = arith.addf %8, %12 : vector<32x128xf32>
    %c0_14 = arith.constant 0 : index
    %c0_15 = arith.constant 0 : index
    %14 = vector.load %arg5[%c0_14, %c0_15] : memref<32x128xbf16, #tpu.memory_space<vmem>>, vector<32x128xbf16>
    %c3 = arith.constant 3 : index
    %c0_16 = arith.constant 0 : index
    %c0_17 = arith.constant 0 : index
    %15 = vector.load %arg11[%c3, %c0_16, %c0_17] : memref<9x128x128xbf16, #tpu.memory_space<vmem>>, vector<1x128x128xbf16>
    %16 = vector.shape_cast %15 : vector<1x128x128xbf16> to vector<128x128xbf16>
    %cst_18 = arith.constant dense<0.000000e+00> : vector<32x128xf32>
    %17 = tpu.matmul %14, %16, %cst_18 {dimension_numbers = #tpu.dot_dimension_numbers<[1], [0], [0], [1], [0, 0, 1, 1], [], []>} : vector<32x128xbf16>, vector<128x128xbf16>, vector<32x128xf32> -> vector<32x128xf32>
    %18 = arith.addf %13, %17 : vector<32x128xf32>
    %c0_19 = arith.constant 0 : index
    %c0_20 = arith.constant 0 : index
    %19 = vector.load %arg6[%c0_19, %c0_20] : memref<32x128xbf16, #tpu.memory_space<vmem>>, vector<32x128xbf16>
    %c4 = arith.constant 4 : index
    %c0_21 = arith.constant 0 : index
    %c0_22 = arith.constant 0 : index
    %20 = vector.load %arg11[%c4, %c0_21, %c0_22] : memref<9x128x128xbf16, #tpu.memory_space<vmem>>, vector<1x128x128xbf16>
    %21 = vector.shape_cast %20 : vector<1x128x128xbf16> to vector<128x128xbf16>
    %cst_23 = arith.constant dense<0.000000e+00> : vector<32x128xf32>
    %22 = tpu.matmul %19, %21, %cst_23 {dimension_numbers = #tpu.dot_dimension_numbers<[1], [0], [0], [1], [0, 0, 1, 1], [], []>} : vector<32x128xbf16>, vector<128x128xbf16>, vector<32x128xf32> -> vector<32x128xf32>
    %23 = arith.addf %18, %22 : vector<32x128xf32>
    %c0_24 = arith.constant 0 : index
    %c0_25 = arith.constant 0 : index
    %24 = vector.load %arg7[%c0_24, %c0_25] : memref<32x128xbf16, #tpu.memory_space<vmem>>, vector<32x128xbf16>
    %c5 = arith.constant 5 : index
    %c0_26 = arith.constant 0 : index
    %c0_27 = arith.constant 0 : index
    %25 = vector.load %arg11[%c5, %c0_26, %c0_27] : memref<9x128x128xbf16, #tpu.memory_space<vmem>>, vector<1x128x128xbf16>
    %26 = vector.shape_cast %25 : vector<1x128x128xbf16> to vector<128x128xbf16>
    %cst_28 = arith.constant dense<0.000000e+00> : vector<32x128xf32>
    %27 = tpu.matmul %24, %26, %cst_28 {dimension_numbers = #tpu.dot_dimension_numbers<[1], [0], [0], [1], [0, 0, 1, 1], [], []>} : vector<32x128xbf16>, vector<128x128xbf16>, vector<32x128xf32> -> vector<32x128xf32>
    %28 = arith.addf %23, %27 : vector<32x128xf32>
    %c0_29 = arith.constant 0 : index
    %c0_30 = arith.constant 0 : index
    %29 = vector.load %arg8[%c0_29, %c0_30] : memref<32x128xbf16, #tpu.memory_space<vmem>>, vector<32x128xbf16>
    %c6 = arith.constant 6 : index
    %c0_31 = arith.constant 0 : index
    %c0_32 = arith.constant 0 : index
    %30 = vector.load %arg11[%c6, %c0_31, %c0_32] : memref<9x128x128xbf16, #tpu.memory_space<vmem>>, vector<1x128x128xbf16>
    %31 = vector.shape_cast %30 : vector<1x128x128xbf16> to vector<128x128xbf16>
    %cst_33 = arith.constant dense<0.000000e+00> : vector<32x128xf32>
    %32 = tpu.matmul %29, %31, %cst_33 {dimension_numbers = #tpu.dot_dimension_numbers<[1], [0], [0], [1], [0, 0, 1, 1], [], []>} : vector<32x128xbf16>, vector<128x128xbf16>, vector<32x128xf32> -> vector<32x128xf32>
    %33 = arith.addf %28, %32 : vector<32x128xf32>
    %c0_34 = arith.constant 0 : index
    %c0_35 = arith.constant 0 : index
    %34 = vector.load %arg9[%c0_34, %c0_35] : memref<32x128xbf16, #tpu.memory_space<vmem>>, vector<32x128xbf16>
    %c7 = arith.constant 7 : index
    %c0_36 = arith.constant 0 : index
    %c0_37 = arith.constant 0 : index
    %35 = vector.load %arg11[%c7, %c0_36, %c0_37] : memref<9x128x128xbf16, #tpu.memory_space<vmem>>, vector<1x128x128xbf16>
    %36 = vector.shape_cast %35 : vector<1x128x128xbf16> to vector<128x128xbf16>
    %cst_38 = arith.constant dense<0.000000e+00> : vector<32x128xf32>
    %37 = tpu.matmul %34, %36, %cst_38 {dimension_numbers = #tpu.dot_dimension_numbers<[1], [0], [0], [1], [0, 0, 1, 1], [], []>} : vector<32x128xbf16>, vector<128x128xbf16>, vector<32x128xf32> -> vector<32x128xf32>
    %38 = arith.addf %33, %37 : vector<32x128xf32>
    %c0_39 = arith.constant 0 : index
    %c0_40 = arith.constant 0 : index
    %39 = vector.load %arg10[%c0_39, %c0_40] : memref<32x128xbf16, #tpu.memory_space<vmem>>, vector<32x128xbf16>
    %c8 = arith.constant 8 : index
    %c0_41 = arith.constant 0 : index
    %c0_42 = arith.constant 0 : index
    %40 = vector.load %arg11[%c8, %c0_41, %c0_42] : memref<9x128x128xbf16, #tpu.memory_space<vmem>>, vector<1x128x128xbf16>
    %41 = vector.shape_cast %40 : vector<1x128x128xbf16> to vector<128x128xbf16>
    %cst_43 = arith.constant dense<0.000000e+00> : vector<32x128xf32>
    %42 = tpu.matmul %39, %41, %cst_43 {dimension_numbers = #tpu.dot_dimension_numbers<[1], [0], [0], [1], [0, 0, 1, 1], [], []>} : vector<32x128xbf16>, vector<128x128xbf16>, vector<32x128xf32> -> vector<32x128xf32>
    %43 = arith.addf %38, %42 : vector<32x128xf32>
    %c0_44 = arith.constant 0 : index
    %c0_45 = arith.constant 0 : index
    %44 = vector.load %arg12[%c0_44, %c0_45] : memref<1x128xf32, #tpu.memory_space<vmem>>, vector<1x128xf32>
    %45 = vector.broadcast %44 : vector<1x128xf32> to vector<32x128xf32>
    %46 = arith.mulf %43, %45 : vector<32x128xf32>
    %c0_46 = arith.constant 0 : index
    %c0_47 = arith.constant 0 : index
    %47 = vector.load %arg13[%c0_46, %c0_47] : memref<1x128xf32, #tpu.memory_space<vmem>>, vector<1x128xf32>
    %48 = vector.broadcast %47 : vector<1x128xf32> to vector<32x128xf32>
    %49 = arith.addf %46, %48 : vector<32x128xf32>
    %cst_48 = arith.constant 0.000000e+00 : f32
    %50 = vector.broadcast %cst_48 : f32 to vector<32x128xf32>
    %51 = arith.maximumf %49, %50 : vector<32x128xf32>
    %52 = arith.truncf %51 : vector<32x128xf32> to vector<32x128xbf16>
    %c0_49 = arith.constant 0 : index
    %c0_50 = arith.constant 0 : index
    %53 = vector.load %arg14[%c0_49, %c0_50] : memref<32x128xbf16, #tpu.memory_space<vmem>>, vector<32x128xbf16>
    tpu.vector_store %arg14[%c0_49, %c0_50], %52 {strides = array<i32>} : memref<32x128xbf16, #tpu.memory_space<vmem>>, vector<32x128xbf16>,
    return
  }
  func.func @transform_0(%arg0: i32, %arg1: i32) -> (i32, i32) {
    %c0_i32 = arith.constant 0 : i32
    %c0_i32_0 = arith.constant 0 : i32
    return %arg0, %c0_i32 : i32, i32
  }
  func.func @transform_1(%arg0: i32, %arg1: i32) -> (i32, i32) {
    %c0_i32 = arith.constant 0 : i32
    %c0_i32_0 = arith.constant 0 : i32
    return %arg0, %c0_i32 : i32, i32
  }
  func.func @transform_2(%arg0: i32, %arg1: i32) -> (i32, i32) {
    %c0_i32 = arith.constant 0 : i32
    %c0_i32_0 = arith.constant 0 : i32
    return %arg0, %c0_i32 : i32, i32
  }
  func.func @transform_3(%arg0: i32, %arg1: i32) -> (i32, i32) {
    %c0_i32 = arith.constant 0 : i32
    %c0_i32_0 = arith.constant 0 : i32
    return %arg0, %c0_i32 : i32, i32
  }
  func.func @transform_4(%arg0: i32, %arg1: i32) -> (i32, i32) {
    %c0_i32 = arith.constant 0 : i32
    %c0_i32_0 = arith.constant 0 : i32
    return %arg0, %c0_i32 : i32, i32
  }
  func.func @transform_5(%arg0: i32, %arg1: i32) -> (i32, i32) {
    %c0_i32 = arith.constant 0 : i32
    %c0_i32_0 = arith.constant 0 : i32
    return %arg0, %c0_i32 : i32, i32
  }
  func.func @transform_6(%arg0: i32, %arg1: i32) -> (i32, i32) {
    %c0_i32 = arith.constant 0 : i32
    %c0_i32_0 = arith.constant 0 : i32
    return %arg0, %c0_i32 : i32, i32
  }
  func.func @transform_7(%arg0: i32, %arg1: i32) -> (i32, i32) {
    %c0_i32 = arith.constant 0 : i32
    %c0_i32_0 = arith.constant 0 : i32
    return %arg0, %c0_i32 : i32, i32
  }
  func.func @transform_8(%arg0: i32, %arg1: i32) -> (i32, i32) {
    %c0_i32 = arith.constant 0 : i32
    %c0_i32_0 = arith.constant 0 : i32
    return %arg0, %c0_i32 : i32, i32
  }
  func.func @transform_9(%arg0: i32, %arg1: i32) -> (i32, i32, i32) {
    %c0_i32 = arith.constant 0 : i32
    %c0_i32_0 = arith.constant 0 : i32
    %c0_i32_1 = arith.constant 0 : i32
    return %c0_i32, %c0_i32_0, %arg1 : i32, i32, i32
  }
  func.func @transform_10(%arg0: i32, %arg1: i32) -> (i32, i32) {
    %c0_i32 = arith.constant 0 : i32
    %c0_i32_0 = arith.constant 0 : i32
    return %c0_i32, %arg1 : i32, i32
  }
  func.func @transform_11(%arg0: i32, %arg1: i32) -> (i32, i32) {
    %c0_i32 = arith.constant 0 : i32
    %c0_i32_0 = arith.constant 0 : i32
    return %c0_i32, %arg1 : i32, i32
  }
  func.func @transform_12(%arg0: i32, %arg1: i32) -> (i32, i32) {
    %c0_i32 = arith.constant 0 : i32
    return %arg0, %arg1 : i32, i32
  }
}

module attributes {stable_mosaic.version = 11 : i64} {
  func.func @_conv_kernel(%arg0: i32, %arg1: i32, %arg2: memref<32x512xbf16, #tpu.memory_space<vmem>>, %arg3: memref<1x512x256xbf16, #tpu.memory_space<vmem>>, %arg4: memref<1x256xf32, #tpu.memory_space<vmem>>, %arg5: memref<1x256xf32, #tpu.memory_space<vmem>>, %arg6: memref<32x256xbf16, #tpu.memory_space<vmem>>) attributes {dimension_semantics = [#tpu.dimension_semantics<parallel>, #tpu.dimension_semantics<parallel>], iteration_bounds = array<i64: 1, 1>, scalar_prefetch = 0 : i64, scratch_operands = 0 : i64, tpu.core_type = #tpu.core_type<tc>, window_params = [{transform_indices = @transform_0, window_bounds = array<i64: 32, 512>}, {transform_indices = @transform_1, window_bounds = array<i64: 1, 512, 256>}, {transform_indices = @transform_2, window_bounds = array<i64: 1, 256>}, {transform_indices = @transform_3, window_bounds = array<i64: 1, 256>}, {transform_indices = @transform_4, window_bounds = array<i64: 32, 256>}]} {
    %c0 = arith.constant 0 : index
    %c0_0 = arith.constant 0 : index
    %0 = vector.load %arg2[%c0, %c0_0] : memref<32x512xbf16, #tpu.memory_space<vmem>>, vector<32x512xbf16>
    %c0_1 = arith.constant 0 : index
    %c0_2 = arith.constant 0 : index
    %c0_3 = arith.constant 0 : index
    %1 = vector.load %arg3[%c0_1, %c0_2, %c0_3] : memref<1x512x256xbf16, #tpu.memory_space<vmem>>, vector<1x512x256xbf16>
    %2 = vector.shape_cast %1 : vector<1x512x256xbf16> to vector<512x256xbf16>
    %cst = arith.constant dense<0.000000e+00> : vector<32x256xf32>
    %3 = tpu.matmul %0, %2, %cst {dimension_numbers = #tpu.dot_dimension_numbers<[1], [0], [0], [1], [0, 0, 1, 1], [], []>} : vector<32x512xbf16>, vector<512x256xbf16>, vector<32x256xf32> -> vector<32x256xf32>
    %c0_4 = arith.constant 0 : index
    %c0_5 = arith.constant 0 : index
    %4 = vector.load %arg4[%c0_4, %c0_5] : memref<1x256xf32, #tpu.memory_space<vmem>>, vector<1x256xf32>
    %5 = vector.broadcast %4 : vector<1x256xf32> to vector<32x256xf32>
    %6 = arith.mulf %3, %5 : vector<32x256xf32>
    %c0_6 = arith.constant 0 : index
    %c0_7 = arith.constant 0 : index
    %7 = vector.load %arg5[%c0_6, %c0_7] : memref<1x256xf32, #tpu.memory_space<vmem>>, vector<1x256xf32>
    %8 = vector.broadcast %7 : vector<1x256xf32> to vector<32x256xf32>
    %9 = arith.addf %6, %8 : vector<32x256xf32>
    %cst_8 = arith.constant 0.000000e+00 : f32
    %10 = vector.broadcast %cst_8 : f32 to vector<32x256xf32>
    %11 = arith.maximumf %9, %10 : vector<32x256xf32>
    %12 = arith.truncf %11 : vector<32x256xf32> to vector<32x256xbf16>
    %c0_9 = arith.constant 0 : index
    %c0_10 = arith.constant 0 : index
    %13 = vector.load %arg6[%c0_9, %c0_10] : memref<32x256xbf16, #tpu.memory_space<vmem>>, vector<32x256xbf16>
    tpu.vector_store %arg6[%c0_9, %c0_10], %12 {strides = array<i32>} : memref<32x256xbf16, #tpu.memory_space<vmem>>, vector<32x256xbf16>,
    return
  }
  func.func @transform_0(%arg0: i32, %arg1: i32) -> (i32, i32) {
    %c0_i32 = arith.constant 0 : i32
    %c0_i32_0 = arith.constant 0 : i32
    return %arg0, %c0_i32 : i32, i32
  }
  func.func @transform_1(%arg0: i32, %arg1: i32) -> (i32, i32, i32) {
    %c0_i32 = arith.constant 0 : i32
    %c0_i32_0 = arith.constant 0 : i32
    %c0_i32_1 = arith.constant 0 : i32
    return %c0_i32, %c0_i32_0, %arg1 : i32, i32, i32
  }
  func.func @transform_2(%arg0: i32, %arg1: i32) -> (i32, i32) {
    %c0_i32 = arith.constant 0 : i32
    %c0_i32_0 = arith.constant 0 : i32
    return %c0_i32, %arg1 : i32, i32
  }
  func.func @transform_3(%arg0: i32, %arg1: i32) -> (i32, i32) {
    %c0_i32 = arith.constant 0 : i32
    %c0_i32_0 = arith.constant 0 : i32
    return %c0_i32, %arg1 : i32, i32
  }
  func.func @transform_4(%arg0: i32, %arg1: i32) -> (i32, i32) {
    %c0_i32 = arith.constant 0 : i32
    return %arg0, %arg1 : i32, i32
  }
}

module attributes {stable_mosaic.version = 11 : i64} {
  func.func @_conv_kernel(%arg0: i32, %arg1: i32, %arg2: memref<8x512xbf16, #tpu.memory_space<vmem>>, %arg3: memref<1x512x512xbf16, #tpu.memory_space<vmem>>, %arg4: memref<1x512xf32, #tpu.memory_space<vmem>>, %arg5: memref<1x512xf32, #tpu.memory_space<vmem>>, %arg6: memref<8x512xbf16, #tpu.memory_space<vmem>>) attributes {dimension_semantics = [#tpu.dimension_semantics<parallel>, #tpu.dimension_semantics<parallel>], iteration_bounds = array<i64: 1, 2>, scalar_prefetch = 0 : i64, scratch_operands = 0 : i64, tpu.core_type = #tpu.core_type<tc>, window_params = [{transform_indices = @transform_0, window_bounds = array<i64: 8, 512>}, {transform_indices = @transform_1, window_bounds = array<i64: 1, 512, 512>}, {transform_indices = @transform_2, window_bounds = array<i64: 1, 512>}, {transform_indices = @transform_3, window_bounds = array<i64: 1, 512>}, {transform_indices = @transform_4, window_bounds = array<i64: 8, 512>}]} {
    %c0 = arith.constant 0 : index
    %c0_0 = arith.constant 0 : index
    %0 = vector.load %arg2[%c0, %c0_0] : memref<8x512xbf16, #tpu.memory_space<vmem>>, vector<8x512xbf16>
    %c0_1 = arith.constant 0 : index
    %c0_2 = arith.constant 0 : index
    %c0_3 = arith.constant 0 : index
    %1 = vector.load %arg3[%c0_1, %c0_2, %c0_3] : memref<1x512x512xbf16, #tpu.memory_space<vmem>>, vector<1x512x512xbf16>
    %2 = vector.shape_cast %1 : vector<1x512x512xbf16> to vector<512x512xbf16>
    %cst = arith.constant dense<0.000000e+00> : vector<8x512xf32>
    %3 = tpu.matmul %0, %2, %cst {dimension_numbers = #tpu.dot_dimension_numbers<[1], [0], [0], [1], [0, 0, 1, 1], [], []>} : vector<8x512xbf16>, vector<512x512xbf16>, vector<8x512xf32> -> vector<8x512xf32>
    %c0_4 = arith.constant 0 : index
    %c0_5 = arith.constant 0 : index
    %4 = vector.load %arg4[%c0_4, %c0_5] : memref<1x512xf32, #tpu.memory_space<vmem>>, vector<1x512xf32>
    %5 = vector.broadcast %4 : vector<1x512xf32> to vector<8x512xf32>
    %6 = arith.mulf %3, %5 : vector<8x512xf32>
    %c0_6 = arith.constant 0 : index
    %c0_7 = arith.constant 0 : index
    %7 = vector.load %arg5[%c0_6, %c0_7] : memref<1x512xf32, #tpu.memory_space<vmem>>, vector<1x512xf32>
    %8 = vector.broadcast %7 : vector<1x512xf32> to vector<8x512xf32>
    %9 = arith.addf %6, %8 : vector<8x512xf32>
    %10 = arith.truncf %9 : vector<8x512xf32> to vector<8x512xbf16>
    %c0_8 = arith.constant 0 : index
    %c0_9 = arith.constant 0 : index
    %11 = vector.load %arg6[%c0_8, %c0_9] : memref<8x512xbf16, #tpu.memory_space<vmem>>, vector<8x512xbf16>
    tpu.vector_store %arg6[%c0_8, %c0_9], %10 {strides = array<i32>} : memref<8x512xbf16, #tpu.memory_space<vmem>>, vector<8x512xbf16>,
    return
  }
  func.func @transform_0(%arg0: i32, %arg1: i32) -> (i32, i32) {
    %c0_i32 = arith.constant 0 : i32
    %c0_i32_0 = arith.constant 0 : i32
    return %arg0, %c0_i32 : i32, i32
  }
  func.func @transform_1(%arg0: i32, %arg1: i32) -> (i32, i32, i32) {
    %c0_i32 = arith.constant 0 : i32
    %c0_i32_0 = arith.constant 0 : i32
    %c0_i32_1 = arith.constant 0 : i32
    return %c0_i32, %c0_i32_0, %arg1 : i32, i32, i32
  }
  func.func @transform_2(%arg0: i32, %arg1: i32) -> (i32, i32) {
    %c0_i32 = arith.constant 0 : i32
    %c0_i32_0 = arith.constant 0 : i32
    return %c0_i32, %arg1 : i32, i32
  }
  func.func @transform_3(%arg0: i32, %arg1: i32) -> (i32, i32) {
    %c0_i32 = arith.constant 0 : i32
    %c0_i32_0 = arith.constant 0 : i32
    return %c0_i32, %arg1 : i32, i32
  }
  func.func @transform_4(%arg0: i32, %arg1: i32) -> (i32, i32) {
    %c0_i32 = arith.constant 0 : i32
    return %arg0, %arg1 : i32, i32
  }
}

module attributes {stable_mosaic.version = 11 : i64} {
  func.func @_conv_kernel(%arg0: i32, %arg1: i32, %arg2: memref<8x256xbf16, #tpu.memory_space<vmem>>, %arg3: memref<1x256x512xbf16, #tpu.memory_space<vmem>>, %arg4: memref<1x512xf32, #tpu.memory_space<vmem>>, %arg5: memref<1x512xf32, #tpu.memory_space<vmem>>, %arg6: memref<8x512xbf16, #tpu.memory_space<vmem>>, %arg7: memref<8x512xbf16, #tpu.memory_space<vmem>>) attributes {dimension_semantics = [#tpu.dimension_semantics<parallel>, #tpu.dimension_semantics<parallel>], iteration_bounds = array<i64: 1, 2>, scalar_prefetch = 0 : i64, scratch_operands = 0 : i64, tpu.core_type = #tpu.core_type<tc>, window_params = [{transform_indices = @transform_0, window_bounds = array<i64: 8, 256>}, {transform_indices = @transform_1, window_bounds = array<i64: 1, 256, 512>}, {transform_indices = @transform_2, window_bounds = array<i64: 1, 512>}, {transform_indices = @transform_3, window_bounds = array<i64: 1, 512>}, {transform_indices = @transform_4, window_bounds = array<i64: 8, 512>}, {transform_indices = @transform_5, window_bounds = array<i64: 8, 512>}]} {
    %c0 = arith.constant 0 : index
    %c0_0 = arith.constant 0 : index
    %0 = vector.load %arg2[%c0, %c0_0] : memref<8x256xbf16, #tpu.memory_space<vmem>>, vector<8x256xbf16>
    %c0_1 = arith.constant 0 : index
    %c0_2 = arith.constant 0 : index
    %c0_3 = arith.constant 0 : index
    %1 = vector.load %arg3[%c0_1, %c0_2, %c0_3] : memref<1x256x512xbf16, #tpu.memory_space<vmem>>, vector<1x256x512xbf16>
    %2 = vector.shape_cast %1 : vector<1x256x512xbf16> to vector<256x512xbf16>
    %cst = arith.constant dense<0.000000e+00> : vector<8x512xf32>
    %3 = tpu.matmul %0, %2, %cst {dimension_numbers = #tpu.dot_dimension_numbers<[1], [0], [0], [1], [0, 0, 1, 1], [], []>} : vector<8x256xbf16>, vector<256x512xbf16>, vector<8x512xf32> -> vector<8x512xf32>
    %c0_4 = arith.constant 0 : index
    %c0_5 = arith.constant 0 : index
    %4 = vector.load %arg4[%c0_4, %c0_5] : memref<1x512xf32, #tpu.memory_space<vmem>>, vector<1x512xf32>
    %5 = vector.broadcast %4 : vector<1x512xf32> to vector<8x512xf32>
    %6 = arith.mulf %3, %5 : vector<8x512xf32>
    %c0_6 = arith.constant 0 : index
    %c0_7 = arith.constant 0 : index
    %7 = vector.load %arg5[%c0_6, %c0_7] : memref<1x512xf32, #tpu.memory_space<vmem>>, vector<1x512xf32>
    %8 = vector.broadcast %7 : vector<1x512xf32> to vector<8x512xf32>
    %9 = arith.addf %6, %8 : vector<8x512xf32>
    %c0_8 = arith.constant 0 : index
    %c0_9 = arith.constant 0 : index
    %10 = vector.load %arg6[%c0_8, %c0_9] : memref<8x512xbf16, #tpu.memory_space<vmem>>, vector<8x512xbf16>
    %11 = arith.extf %10 : vector<8x512xbf16> to vector<8x512xf32>
    %12 = arith.addf %9, %11 : vector<8x512xf32>
    %cst_10 = arith.constant 0.000000e+00 : f32
    %13 = vector.broadcast %cst_10 : f32 to vector<8x512xf32>
    %14 = arith.maximumf %12, %13 : vector<8x512xf32>
    %15 = arith.truncf %14 : vector<8x512xf32> to vector<8x512xbf16>
    %c0_11 = arith.constant 0 : index
    %c0_12 = arith.constant 0 : index
    %16 = vector.load %arg7[%c0_11, %c0_12] : memref<8x512xbf16, #tpu.memory_space<vmem>>, vector<8x512xbf16>
    tpu.vector_store %arg7[%c0_11, %c0_12], %15 {strides = array<i32>} : memref<8x512xbf16, #tpu.memory_space<vmem>>, vector<8x512xbf16>,
    return
  }
  func.func @transform_0(%arg0: i32, %arg1: i32) -> (i32, i32) {
    %c0_i32 = arith.constant 0 : i32
    %c0_i32_0 = arith.constant 0 : i32
    return %arg0, %c0_i32 : i32, i32
  }
  func.func @transform_1(%arg0: i32, %arg1: i32) -> (i32, i32, i32) {
    %c0_i32 = arith.constant 0 : i32
    %c0_i32_0 = arith.constant 0 : i32
    %c0_i32_1 = arith.constant 0 : i32
    return %c0_i32, %c0_i32_0, %arg1 : i32, i32, i32
  }
  func.func @transform_2(%arg0: i32, %arg1: i32) -> (i32, i32) {
    %c0_i32 = arith.constant 0 : i32
    %c0_i32_0 = arith.constant 0 : i32
    return %c0_i32, %arg1 : i32, i32
  }
  func.func @transform_3(%arg0: i32, %arg1: i32) -> (i32, i32) {
    %c0_i32 = arith.constant 0 : i32
    %c0_i32_0 = arith.constant 0 : i32
    return %c0_i32, %arg1 : i32, i32
  }
  func.func @transform_4(%arg0: i32, %arg1: i32) -> (i32, i32) {
    %c0_i32 = arith.constant 0 : i32
    return %arg0, %arg1 : i32, i32
  }
  func.func @transform_5(%arg0: i32, %arg1: i32) -> (i32, i32) {
    %c0_i32 = arith.constant 0 : i32
    return %arg0, %arg1 : i32, i32
  }
}

module attributes {stable_mosaic.version = 11 : i64} {
  func.func @_conv_kernel(%arg0: i32, %arg1: i32, %arg2: memref<8x1024xbf16, #tpu.memory_space<vmem>>, %arg3: memref<1x1024x256xbf16, #tpu.memory_space<vmem>>, %arg4: memref<1x256xf32, #tpu.memory_space<vmem>>, %arg5: memref<1x256xf32, #tpu.memory_space<vmem>>, %arg6: memref<8x256xbf16, #tpu.memory_space<vmem>>) attributes {dimension_semantics = [#tpu.dimension_semantics<parallel>, #tpu.dimension_semantics<parallel>], iteration_bounds = array<i64: 1, 1>, scalar_prefetch = 0 : i64, scratch_operands = 0 : i64, tpu.core_type = #tpu.core_type<tc>, window_params = [{transform_indices = @transform_0, window_bounds = array<i64: 8, 1024>}, {transform_indices = @transform_1, window_bounds = array<i64: 1, 1024, 256>}, {transform_indices = @transform_2, window_bounds = array<i64: 1, 256>}, {transform_indices = @transform_3, window_bounds = array<i64: 1, 256>}, {transform_indices = @transform_4, window_bounds = array<i64: 8, 256>}]} {
    %c0 = arith.constant 0 : index
    %c0_0 = arith.constant 0 : index
    %0 = vector.load %arg2[%c0, %c0_0] : memref<8x1024xbf16, #tpu.memory_space<vmem>>, vector<8x1024xbf16>
    %c0_1 = arith.constant 0 : index
    %c0_2 = arith.constant 0 : index
    %c0_3 = arith.constant 0 : index
    %1 = vector.load %arg3[%c0_1, %c0_2, %c0_3] : memref<1x1024x256xbf16, #tpu.memory_space<vmem>>, vector<1x1024x256xbf16>
    %2 = vector.shape_cast %1 : vector<1x1024x256xbf16> to vector<1024x256xbf16>
    %cst = arith.constant dense<0.000000e+00> : vector<8x256xf32>
    %3 = tpu.matmul %0, %2, %cst {dimension_numbers = #tpu.dot_dimension_numbers<[1], [0], [0], [1], [0, 0, 1, 1], [], []>} : vector<8x1024xbf16>, vector<1024x256xbf16>, vector<8x256xf32> -> vector<8x256xf32>
    %c0_4 = arith.constant 0 : index
    %c0_5 = arith.constant 0 : index
    %4 = vector.load %arg4[%c0_4, %c0_5] : memref<1x256xf32, #tpu.memory_space<vmem>>, vector<1x256xf32>
    %5 = vector.broadcast %4 : vector<1x256xf32> to vector<8x256xf32>
    %6 = arith.mulf %3, %5 : vector<8x256xf32>
    %c0_6 = arith.constant 0 : index
    %c0_7 = arith.constant 0 : index
    %7 = vector.load %arg5[%c0_6, %c0_7] : memref<1x256xf32, #tpu.memory_space<vmem>>, vector<1x256xf32>
    %8 = vector.broadcast %7 : vector<1x256xf32> to vector<8x256xf32>
    %9 = arith.addf %6, %8 : vector<8x256xf32>
    %cst_8 = arith.constant 0.000000e+00 : f32
    %10 = vector.broadcast %cst_8 : f32 to vector<8x256xf32>
    %11 = arith.maximumf %9, %10 : vector<8x256xf32>
    %12 = arith.truncf %11 : vector<8x256xf32> to vector<8x256xbf16>
    %c0_9 = arith.constant 0 : index
    %c0_10 = arith.constant 0 : index
    %13 = vector.load %arg6[%c0_9, %c0_10] : memref<8x256xbf16, #tpu.memory_space<vmem>>, vector<8x256xbf16>
    tpu.vector_store %arg6[%c0_9, %c0_10], %12 {strides = array<i32>} : memref<8x256xbf16, #tpu.memory_space<vmem>>, vector<8x256xbf16>,
    return
  }
  func.func @transform_0(%arg0: i32, %arg1: i32) -> (i32, i32) {
    %c0_i32 = arith.constant 0 : i32
    %c0_i32_0 = arith.constant 0 : i32
    return %arg0, %c0_i32 : i32, i32
  }
  func.func @transform_1(%arg0: i32, %arg1: i32) -> (i32, i32, i32) {
    %c0_i32 = arith.constant 0 : i32
    %c0_i32_0 = arith.constant 0 : i32
    %c0_i32_1 = arith.constant 0 : i32
    return %c0_i32, %c0_i32_0, %arg1 : i32, i32, i32
  }
  func.func @transform_2(%arg0: i32, %arg1: i32) -> (i32, i32) {
    %c0_i32 = arith.constant 0 : i32
    %c0_i32_0 = arith.constant 0 : i32
    return %c0_i32, %arg1 : i32, i32
  }
  func.func @transform_3(%arg0: i32, %arg1: i32) -> (i32, i32) {
    %c0_i32 = arith.constant 0 : i32
    %c0_i32_0 = arith.constant 0 : i32
    return %c0_i32, %arg1 : i32, i32
  }
  func.func @transform_4(%arg0: i32, %arg1: i32) -> (i32, i32) {
    %c0_i32 = arith.constant 0 : i32
    return %arg0, %arg1 : i32, i32
  }
}

module attributes {stable_mosaic.version = 11 : i64} {
  func.func @_conv_kernel(%arg0: i32, %arg1: i32, %arg2: memref<8x256xbf16, #tpu.memory_space<vmem>>, %arg3: memref<8x256xbf16, #tpu.memory_space<vmem>>, %arg4: memref<8x256xbf16, #tpu.memory_space<vmem>>, %arg5: memref<8x256xbf16, #tpu.memory_space<vmem>>, %arg6: memref<8x256xbf16, #tpu.memory_space<vmem>>, %arg7: memref<8x256xbf16, #tpu.memory_space<vmem>>, %arg8: memref<8x256xbf16, #tpu.memory_space<vmem>>, %arg9: memref<8x256xbf16, #tpu.memory_space<vmem>>, %arg10: memref<8x256xbf16, #tpu.memory_space<vmem>>, %arg11: memref<9x256x256xbf16, #tpu.memory_space<vmem>>, %arg12: memref<1x256xf32, #tpu.memory_space<vmem>>, %arg13: memref<1x256xf32, #tpu.memory_space<vmem>>, %arg14: memref<8x256xbf16, #tpu.memory_space<vmem>>) attributes {dimension_semantics = [#tpu.dimension_semantics<parallel>, #tpu.dimension_semantics<parallel>], iteration_bounds = array<i64: 1, 1>, scalar_prefetch = 0 : i64, scratch_operands = 0 : i64, tpu.core_type = #tpu.core_type<tc>, window_params = [{transform_indices = @transform_0, window_bounds = array<i64: 8, 256>}, {transform_indices = @transform_1, window_bounds = array<i64: 8, 256>}, {transform_indices = @transform_2, window_bounds = array<i64: 8, 256>}, {transform_indices = @transform_3, window_bounds = array<i64: 8, 256>}, {transform_indices = @transform_4, window_bounds = array<i64: 8, 256>}, {transform_indices = @transform_5, window_bounds = array<i64: 8, 256>}, {transform_indices = @transform_6, window_bounds = array<i64: 8, 256>}, {transform_indices = @transform_7, window_bounds = array<i64: 8, 256>}, {transform_indices = @transform_8, window_bounds = array<i64: 8, 256>}, {transform_indices = @transform_9, window_bounds = array<i64: 9, 256, 256>}, {transform_indices = @transform_10, window_bounds = array<i64: 1, 256>}, {transform_indices = @transform_11, window_bounds = array<i64: 1, 256>}, {transform_indices = @transform_12, window_bounds = array<i64: 8, 256>}]} {
    %c0 = arith.constant 0 : index
    %c0_0 = arith.constant 0 : index
    %0 = vector.load %arg2[%c0, %c0_0] : memref<8x256xbf16, #tpu.memory_space<vmem>>, vector<8x256xbf16>
    %c0_1 = arith.constant 0 : index
    %c0_2 = arith.constant 0 : index
    %c0_3 = arith.constant 0 : index
    %1 = vector.load %arg11[%c0_1, %c0_2, %c0_3] : memref<9x256x256xbf16, #tpu.memory_space<vmem>>, vector<1x256x256xbf16>
    %2 = vector.shape_cast %1 : vector<1x256x256xbf16> to vector<256x256xbf16>
    %cst = arith.constant dense<0.000000e+00> : vector<8x256xf32>
    %3 = tpu.matmul %0, %2, %cst {dimension_numbers = #tpu.dot_dimension_numbers<[1], [0], [0], [1], [0, 0, 1, 1], [], []>} : vector<8x256xbf16>, vector<256x256xbf16>, vector<8x256xf32> -> vector<8x256xf32>
    %c0_4 = arith.constant 0 : index
    %c0_5 = arith.constant 0 : index
    %4 = vector.load %arg3[%c0_4, %c0_5] : memref<8x256xbf16, #tpu.memory_space<vmem>>, vector<8x256xbf16>
    %c1 = arith.constant 1 : index
    %c0_6 = arith.constant 0 : index
    %c0_7 = arith.constant 0 : index
    %5 = vector.load %arg11[%c1, %c0_6, %c0_7] : memref<9x256x256xbf16, #tpu.memory_space<vmem>>, vector<1x256x256xbf16>
    %6 = vector.shape_cast %5 : vector<1x256x256xbf16> to vector<256x256xbf16>
    %cst_8 = arith.constant dense<0.000000e+00> : vector<8x256xf32>
    %7 = tpu.matmul %4, %6, %cst_8 {dimension_numbers = #tpu.dot_dimension_numbers<[1], [0], [0], [1], [0, 0, 1, 1], [], []>} : vector<8x256xbf16>, vector<256x256xbf16>, vector<8x256xf32> -> vector<8x256xf32>
    %8 = arith.addf %3, %7 : vector<8x256xf32>
    %c0_9 = arith.constant 0 : index
    %c0_10 = arith.constant 0 : index
    %9 = vector.load %arg4[%c0_9, %c0_10] : memref<8x256xbf16, #tpu.memory_space<vmem>>, vector<8x256xbf16>
    %c2 = arith.constant 2 : index
    %c0_11 = arith.constant 0 : index
    %c0_12 = arith.constant 0 : index
    %10 = vector.load %arg11[%c2, %c0_11, %c0_12] : memref<9x256x256xbf16, #tpu.memory_space<vmem>>, vector<1x256x256xbf16>
    %11 = vector.shape_cast %10 : vector<1x256x256xbf16> to vector<256x256xbf16>
    %cst_13 = arith.constant dense<0.000000e+00> : vector<8x256xf32>
    %12 = tpu.matmul %9, %11, %cst_13 {dimension_numbers = #tpu.dot_dimension_numbers<[1], [0], [0], [1], [0, 0, 1, 1], [], []>} : vector<8x256xbf16>, vector<256x256xbf16>, vector<8x256xf32> -> vector<8x256xf32>
    %13 = arith.addf %8, %12 : vector<8x256xf32>
    %c0_14 = arith.constant 0 : index
    %c0_15 = arith.constant 0 : index
    %14 = vector.load %arg5[%c0_14, %c0_15] : memref<8x256xbf16, #tpu.memory_space<vmem>>, vector<8x256xbf16>
    %c3 = arith.constant 3 : index
    %c0_16 = arith.constant 0 : index
    %c0_17 = arith.constant 0 : index
    %15 = vector.load %arg11[%c3, %c0_16, %c0_17] : memref<9x256x256xbf16, #tpu.memory_space<vmem>>, vector<1x256x256xbf16>
    %16 = vector.shape_cast %15 : vector<1x256x256xbf16> to vector<256x256xbf16>
    %cst_18 = arith.constant dense<0.000000e+00> : vector<8x256xf32>
    %17 = tpu.matmul %14, %16, %cst_18 {dimension_numbers = #tpu.dot_dimension_numbers<[1], [0], [0], [1], [0, 0, 1, 1], [], []>} : vector<8x256xbf16>, vector<256x256xbf16>, vector<8x256xf32> -> vector<8x256xf32>
    %18 = arith.addf %13, %17 : vector<8x256xf32>
    %c0_19 = arith.constant 0 : index
    %c0_20 = arith.constant 0 : index
    %19 = vector.load %arg6[%c0_19, %c0_20] : memref<8x256xbf16, #tpu.memory_space<vmem>>, vector<8x256xbf16>
    %c4 = arith.constant 4 : index
    %c0_21 = arith.constant 0 : index
    %c0_22 = arith.constant 0 : index
    %20 = vector.load %arg11[%c4, %c0_21, %c0_22] : memref<9x256x256xbf16, #tpu.memory_space<vmem>>, vector<1x256x256xbf16>
    %21 = vector.shape_cast %20 : vector<1x256x256xbf16> to vector<256x256xbf16>
    %cst_23 = arith.constant dense<0.000000e+00> : vector<8x256xf32>
    %22 = tpu.matmul %19, %21, %cst_23 {dimension_numbers = #tpu.dot_dimension_numbers<[1], [0], [0], [1], [0, 0, 1, 1], [], []>} : vector<8x256xbf16>, vector<256x256xbf16>, vector<8x256xf32> -> vector<8x256xf32>
    %23 = arith.addf %18, %22 : vector<8x256xf32>
    %c0_24 = arith.constant 0 : index
    %c0_25 = arith.constant 0 : index
    %24 = vector.load %arg7[%c0_24, %c0_25] : memref<8x256xbf16, #tpu.memory_space<vmem>>, vector<8x256xbf16>
    %c5 = arith.constant 5 : index
    %c0_26 = arith.constant 0 : index
    %c0_27 = arith.constant 0 : index
    %25 = vector.load %arg11[%c5, %c0_26, %c0_27] : memref<9x256x256xbf16, #tpu.memory_space<vmem>>, vector<1x256x256xbf16>
    %26 = vector.shape_cast %25 : vector<1x256x256xbf16> to vector<256x256xbf16>
    %cst_28 = arith.constant dense<0.000000e+00> : vector<8x256xf32>
    %27 = tpu.matmul %24, %26, %cst_28 {dimension_numbers = #tpu.dot_dimension_numbers<[1], [0], [0], [1], [0, 0, 1, 1], [], []>} : vector<8x256xbf16>, vector<256x256xbf16>, vector<8x256xf32> -> vector<8x256xf32>
    %28 = arith.addf %23, %27 : vector<8x256xf32>
    %c0_29 = arith.constant 0 : index
    %c0_30 = arith.constant 0 : index
    %29 = vector.load %arg8[%c0_29, %c0_30] : memref<8x256xbf16, #tpu.memory_space<vmem>>, vector<8x256xbf16>
    %c6 = arith.constant 6 : index
    %c0_31 = arith.constant 0 : index
    %c0_32 = arith.constant 0 : index
    %30 = vector.load %arg11[%c6, %c0_31, %c0_32] : memref<9x256x256xbf16, #tpu.memory_space<vmem>>, vector<1x256x256xbf16>
    %31 = vector.shape_cast %30 : vector<1x256x256xbf16> to vector<256x256xbf16>
    %cst_33 = arith.constant dense<0.000000e+00> : vector<8x256xf32>
    %32 = tpu.matmul %29, %31, %cst_33 {dimension_numbers = #tpu.dot_dimension_numbers<[1], [0], [0], [1], [0, 0, 1, 1], [], []>} : vector<8x256xbf16>, vector<256x256xbf16>, vector<8x256xf32> -> vector<8x256xf32>
    %33 = arith.addf %28, %32 : vector<8x256xf32>
    %c0_34 = arith.constant 0 : index
    %c0_35 = arith.constant 0 : index
    %34 = vector.load %arg9[%c0_34, %c0_35] : memref<8x256xbf16, #tpu.memory_space<vmem>>, vector<8x256xbf16>
    %c7 = arith.constant 7 : index
    %c0_36 = arith.constant 0 : index
    %c0_37 = arith.constant 0 : index
    %35 = vector.load %arg11[%c7, %c0_36, %c0_37] : memref<9x256x256xbf16, #tpu.memory_space<vmem>>, vector<1x256x256xbf16>
    %36 = vector.shape_cast %35 : vector<1x256x256xbf16> to vector<256x256xbf16>
    %cst_38 = arith.constant dense<0.000000e+00> : vector<8x256xf32>
    %37 = tpu.matmul %34, %36, %cst_38 {dimension_numbers = #tpu.dot_dimension_numbers<[1], [0], [0], [1], [0, 0, 1, 1], [], []>} : vector<8x256xbf16>, vector<256x256xbf16>, vector<8x256xf32> -> vector<8x256xf32>
    %38 = arith.addf %33, %37 : vector<8x256xf32>
    %c0_39 = arith.constant 0 : index
    %c0_40 = arith.constant 0 : index
    %39 = vector.load %arg10[%c0_39, %c0_40] : memref<8x256xbf16, #tpu.memory_space<vmem>>, vector<8x256xbf16>
    %c8 = arith.constant 8 : index
    %c0_41 = arith.constant 0 : index
    %c0_42 = arith.constant 0 : index
    %40 = vector.load %arg11[%c8, %c0_41, %c0_42] : memref<9x256x256xbf16, #tpu.memory_space<vmem>>, vector<1x256x256xbf16>
    %41 = vector.shape_cast %40 : vector<1x256x256xbf16> to vector<256x256xbf16>
    %cst_43 = arith.constant dense<0.000000e+00> : vector<8x256xf32>
    %42 = tpu.matmul %39, %41, %cst_43 {dimension_numbers = #tpu.dot_dimension_numbers<[1], [0], [0], [1], [0, 0, 1, 1], [], []>} : vector<8x256xbf16>, vector<256x256xbf16>, vector<8x256xf32> -> vector<8x256xf32>
    %43 = arith.addf %38, %42 : vector<8x256xf32>
    %c0_44 = arith.constant 0 : index
    %c0_45 = arith.constant 0 : index
    %44 = vector.load %arg12[%c0_44, %c0_45] : memref<1x256xf32, #tpu.memory_space<vmem>>, vector<1x256xf32>
    %45 = vector.broadcast %44 : vector<1x256xf32> to vector<8x256xf32>
    %46 = arith.mulf %43, %45 : vector<8x256xf32>
    %c0_46 = arith.constant 0 : index
    %c0_47 = arith.constant 0 : index
    %47 = vector.load %arg13[%c0_46, %c0_47] : memref<1x256xf32, #tpu.memory_space<vmem>>, vector<1x256xf32>
    %48 = vector.broadcast %47 : vector<1x256xf32> to vector<8x256xf32>
    %49 = arith.addf %46, %48 : vector<8x256xf32>
    %cst_48 = arith.constant 0.000000e+00 : f32
    %50 = vector.broadcast %cst_48 : f32 to vector<8x256xf32>
    %51 = arith.maximumf %49, %50 : vector<8x256xf32>
    %52 = arith.truncf %51 : vector<8x256xf32> to vector<8x256xbf16>
    %c0_49 = arith.constant 0 : index
    %c0_50 = arith.constant 0 : index
    %53 = vector.load %arg14[%c0_49, %c0_50] : memref<8x256xbf16, #tpu.memory_space<vmem>>, vector<8x256xbf16>
    tpu.vector_store %arg14[%c0_49, %c0_50], %52 {strides = array<i32>} : memref<8x256xbf16, #tpu.memory_space<vmem>>, vector<8x256xbf16>,
    return
  }
  func.func @transform_0(%arg0: i32, %arg1: i32) -> (i32, i32) {
    %c0_i32 = arith.constant 0 : i32
    %c0_i32_0 = arith.constant 0 : i32
    return %arg0, %c0_i32 : i32, i32
  }
  func.func @transform_1(%arg0: i32, %arg1: i32) -> (i32, i32) {
    %c0_i32 = arith.constant 0 : i32
    %c0_i32_0 = arith.constant 0 : i32
    return %arg0, %c0_i32 : i32, i32
  }
  func.func @transform_2(%arg0: i32, %arg1: i32) -> (i32, i32) {
    %c0_i32 = arith.constant 0 : i32
    %c0_i32_0 = arith.constant 0 : i32
    return %arg0, %c0_i32 : i32, i32
  }
  func.func @transform_3(%arg0: i32, %arg1: i32) -> (i32, i32) {
    %c0_i32 = arith.constant 0 : i32
    %c0_i32_0 = arith.constant 0 : i32
    return %arg0, %c0_i32 : i32, i32
  }
  func.func @transform_4(%arg0: i32, %arg1: i32) -> (i32, i32) {
    %c0_i32 = arith.constant 0 : i32
    %c0_i32_0 = arith.constant 0 : i32
    return %arg0, %c0_i32 : i32, i32
  }
  func.func @transform_5(%arg0: i32, %arg1: i32) -> (i32, i32) {
    %c0_i32 = arith.constant 0 : i32
    %c0_i32_0 = arith.constant 0 : i32
    return %arg0, %c0_i32 : i32, i32
  }
  func.func @transform_6(%arg0: i32, %arg1: i32) -> (i32, i32) {
    %c0_i32 = arith.constant 0 : i32
    %c0_i32_0 = arith.constant 0 : i32
    return %arg0, %c0_i32 : i32, i32
  }
  func.func @transform_7(%arg0: i32, %arg1: i32) -> (i32, i32) {
    %c0_i32 = arith.constant 0 : i32
    %c0_i32_0 = arith.constant 0 : i32
    return %arg0, %c0_i32 : i32, i32
  }
  func.func @transform_8(%arg0: i32, %arg1: i32) -> (i32, i32) {
    %c0_i32 = arith.constant 0 : i32
    %c0_i32_0 = arith.constant 0 : i32
    return %arg0, %c0_i32 : i32, i32
  }
  func.func @transform_9(%arg0: i32, %arg1: i32) -> (i32, i32, i32) {
    %c0_i32 = arith.constant 0 : i32
    %c0_i32_0 = arith.constant 0 : i32
    %c0_i32_1 = arith.constant 0 : i32
    return %c0_i32, %c0_i32_0, %arg1 : i32, i32, i32
  }
  func.func @transform_10(%arg0: i32, %arg1: i32) -> (i32, i32) {
    %c0_i32 = arith.constant 0 : i32
    %c0_i32_0 = arith.constant 0 : i32
    return %c0_i32, %arg1 : i32, i32
  }
  func.func @transform_11(%arg0: i32, %arg1: i32) -> (i32, i32) {
    %c0_i32 = arith.constant 0 : i32
    %c0_i32_0 = arith.constant 0 : i32
    return %c0_i32, %arg1 : i32, i32
  }
  func.func @transform_12(%arg0: i32, %arg1: i32) -> (i32, i32) {
    %c0_i32 = arith.constant 0 : i32
    return %arg0, %arg1 : i32, i32
  }
}

</mosaic_0001>

<bundles_post_ra>
// kernel: resnet101_forward.95
= control target key start
LH: loop header
LB: loop body
LE: loop exit
PB: predicated region body
PF: predicated region fallthrough
CT: control target
= control target key end

     0   :  { %s687_s1 = inlined_call_operand.vmem [shape: bf16[1,128,128], index: 1, kind: input, shape index: {}]   ;;  %s688_s0 = inlined_call_operand.vmem [shape: bf16[128,128], index: 0, kind: input, shape index: {}]   ;;  %s689_s2 = inlined_call_operand.vmem [shape: f32[1,128], index: 2, kind: input, shape index: {}]   ;;  %s690_s3 = inlined_call_operand.vmem [shape: f32[1,128], index: 3, kind: input, shape index: {}]   ;;  %s691_s4 = inlined_call_operand.vmem [shape: bf16[128,128], index: 4, kind: output, shape index: {}]  }
   0x1   :  { %v550_v0 = vld [vmem:[%s687_s1 + $0x38] sm:$0xff]   ;;  %v551_v1 = vld [vmem:[%s687_s1 + $0x30] sm:$0xff]   ;;  %v552_v2 = vld [vmem:[%s687_s1 + $0x28] sm:$0xff]  }
   0x2   :  { %502 = vmatprep.subr.bf16.mxu0 %v550_v0  ;;  %534 = vmatprep.subr.bf16.mxu1 %v550_v0  ;;  %v553_v3 = vld [vmem:[%s687_s1 + $0x20] sm:$0xff]   ;;  %v554_v6 = vld [vmem:[%s687_s1 + $0x18] sm:$0xff]   ;;  %v555_v7 = vld [vmem:[%s687_s1 + $0x10] sm:$0xff]  }
   0x3   :  { %503 = vmatpush3.bf16.msra.mxu0 %v550_v0  ;;  %542 = vmatpush3.bf16.msra.mxu1 %v550_v0  ;;  %v558_v4 = vld [vmem:[%s688_s0] sm:$0xff]   ;;  %v556_v8 = vld [vmem:[%s687_s1 + $0x8] sm:$0xff]   ;;  %v562_v12 = vld [vmem:[%s688_s0 + $0x10] sm:$0xff]  }
   0x4   :  { %504 = vmatprep.subr.bf16.mxu0 %v551_v1  ;;  %535 = vmatprep.subr.bf16.mxu1 %v551_v1  ;;  %v559_v5 = vld [vmem:[%s688_s0 + $0x20] sm:$0xff]   ;;  %v560_v10 = vld [vmem:[%s688_s0 + $0x8] sm:$0xff]   ;;  %v563_v13 = vld [vmem:[%s688_s0 + $0x30] sm:$0xff]  }
   0x5   :  { %518 = vmatprep.mubr.bf16.mxu0 %v558_v4  ;;  %526 = vmatprep.mubr.bf16.mxu1 %v559_v5  ;;  %v557_v9 = vld [vmem:[%s687_s1] sm:$0xff]   ;;  %v561_v11 = vld [vmem:[%s688_s0 + $0x28] sm:$0xff]   ;;  %v564_v14 = vld [vmem:[%s688_s0 + $0x18] sm:$0xff]  }
   0x6   :  { %v565_v15 = vld [vmem:[%s688_s0 + $0x38] sm:$0xff]   ;;  %v642_v16 = vld [vmem:[%s689_s2] ss:$0 sm:$0xff] }
   0x7   :  { %505 = vmatpush3.bf16.msra.mxu0 %v551_v1  ;;  %543 = vmatpush3.bf16.msra.mxu1 %v551_v1  ;;  %v406_v21 = vld [vmem:[%s690_s3] ss:$0 sm:$0xff] }
   0x8   :  { %506 = vmatprep.subr.bf16.mxu0 %v552_v2  ;;  %536 = vmatprep.subr.bf16.mxu1 %v552_v2 }
   0xb   :  { %507 = vmatpush3.bf16.msra.mxu0 %v552_v2  ;;  %544 = vmatpush3.bf16.msra.mxu1 %v552_v2 }
   0xc   :  { %508 = vmatprep.subr.bf16.mxu0 %v553_v3  ;;  %537 = vmatprep.subr.bf16.mxu1 %v553_v3 }
   0xf   :  { %509 = vmatpush3.bf16.msra.mxu0 %v553_v3  ;;  %545 = vmatpush3.bf16.msra.mxu1 %v553_v3 }
  0x10   :  { %510 = vmatprep.subr.bf16.mxu0 %v554_v6  ;;  %538 = vmatprep.subr.bf16.mxu1 %v554_v6 }
  0x13   :  { %511 = vmatpush3.bf16.msra.mxu0 %v554_v6  ;;  %546 = vmatpush3.bf16.msra.mxu1 %v554_v6 }
  0x14   :  { %512 = vmatprep.subr.bf16.mxu0 %v555_v7  ;;  %539 = vmatprep.subr.bf16.mxu1 %v555_v7 }
  0x17   :  { %513 = vmatpush3.bf16.msra.mxu0 %v555_v7  ;;  %547 = vmatpush3.bf16.msra.mxu1 %v555_v7 }
  0x18   :  { %514 = vmatprep.subr.bf16.mxu0 %v556_v8  ;;  %540 = vmatprep.subr.bf16.mxu1 %v556_v8 }
  0x1b   :  { %515 = vmatpush3.bf16.msra.mxu0 %v556_v8  ;;  %548 = vmatpush3.bf16.msra.mxu1 %v556_v8 }
  0x1c   :  { %516 = vmatprep.subr.bf16.mxu0 %v557_v9  ;;  %541 = vmatprep.subr.bf16.mxu1 %v557_v9 }
  0x1f   :  { %517 = vmatpush3.bf16.msra.mxu0 %v557_v9  ;;  %549 = vmatpush3.bf16.msra.mxu1 %v557_v9 }
  0x22   :  { %519 = vmatmul.mubr.bf16.vlgmr.msra.gmra.mxu0 %v560_v10  ;;  %527 = vmatmul.mubr.bf16.vlgmr.msra.gmra.mxu1 %v561_v11 }
  0x23   :  { %522 = vmatprep.mubr.bf16.mxu0 %v562_v12  ;;  %530 = vmatprep.mubr.bf16.mxu1 %v563_v13 }
  0x2a   :  { %523 = vmatmul.mubr.bf16.gmra.mxu0 %v564_v14  ;;  %531 = vmatmul.mubr.bf16.gmra.mxu1 %v565_v15 }
  0xe2   :  { %v520_v17 = vpop.f32.mrf.mxu0  ;;  %v528_v18 = vpop.f32.mrf.mxu1 }
  0xe3   :  { %v252_v19 = vmul.f32 %v520_v17, %v642_v16  ;;  %v260_v20 = vmul.f32 %v528_v18, %v642_v16 }
  0xe4   :  { %v180_v22 = vpop.f32.mrf.mxu0  ;;  %v212_v23 = vpop.f32.mrf.mxu1 }
  0xe5   :  { %v250_v24 = vmul.f32 %v642_v16, %v180_v22  ;;  %v258_v25 = vmul.f32 %v642_v16, %v212_v23  ;;  %v275_v28 = vadd.f32 %v406_v21, %v252_v19  ;;  %v283_v29 = vadd.f32 %v406_v21, %v260_v20 }
  0xe6   :  { %v521_v26 = vpop.f32.mrf.mxu0  ;;  %v529_v27 = vpop.f32.mrf.mxu1 }
  0xe7   :  { %v253_v30 = vmul.f32 %v521_v26, %v642_v16  ;;  %v261_v31 = vmul.f32 %v529_v27, %v642_v16  ;;  %v273_v34 = vadd.f32 %v406_v21, %v250_v24  ;;  %v281_v35 = vadd.f32 %v406_v21, %v258_v25 }
  0xe8   :  { %v183_v32 = vpop.f32.mrf.mxu0  ;;  %v215_v33 = vpop.f32.mrf.mxu1  ;;  %v291_v42 = vmax.f32 %v275_v28, 0.0  ;;  %v299_v43 = vmax.f32 %v283_v29, 0.0 }
  0xe9   :  { %v251_v36 = vmul.f32 %v642_v16, %v183_v32  ;;  %v259_v37 = vmul.f32 %v642_v16, %v215_v33  ;;  %v276_v38 = vadd.f32 %v406_v21, %v253_v30  ;;  %v284_v39 = vadd.f32 %v406_v21, %v261_v31 }
  0xea   :  { %v524_v40 = vpop.f32.mrf.mxu0  ;;  %v532_v41 = vpop.f32.mrf.mxu1  ;;  %v289_v52 = vmax.f32 %v273_v34, 0.0  ;;  %v297_v53 = vmax.f32 %v281_v35, 0.0 }
  0xeb   :  { %v274_v44 = vadd.f32 %v406_v21, %v251_v36  ;;  %v282_v45 = vadd.f32 %v406_v21, %v259_v37  ;;  %v292_v46 = vmax.f32 %v276_v38, 0.0  ;;  %v300_v47 = vmax.f32 %v284_v39, 0.0 }
  0xec   :  { %v256_v48 = vmul.f32 %v524_v40, %v642_v16  ;;  %v264_v49 = vmul.f32 %v532_v41, %v642_v16  ;;  %v196_v50 = vpop.f32.mrf.mxu0  ;;  %v228_v51 = vpop.f32.mrf.mxu1 }
  0xed   :  { %v290_v54 = vmax.f32 %v274_v44, 0.0  ;;  %v298_v55 = vmax.f32 %v282_v45, 0.0  ;;  %v447_v56 = vpack.c.bf16 %v292_v46, %v291_v42  ;;  %v467_v57 = vpack.c.bf16 %v300_v47, %v299_v43 }
  0xee   :  { %v254_v58 = vmul.f32 %v642_v16, %v196_v50  ;;  %v262_v59 = vmul.f32 %v642_v16, %v228_v51  ;;  %v525_v60 = vpop.f32.mrf.mxu0  ;;  %v533_v61 = vpop.f32.mrf.mxu1  ;;  %v279_v0 = vadd.f32 %v406_v21, %v256_v48  ;;  %v287_v1 = vadd.f32 %v406_v21, %v264_v49 }
  0xef   :  { %v442_v62 = vpack.c.bf16 %v290_v54, %v289_v52  ;;  %v462_v63 = vpack.c.bf16 %v298_v55, %v297_v53  ;;  %479 = vst [vmem:[%s691_s4 + $0x8] sm:$0xff] %v447_v56   ;;  %483 = vst [vmem:[%s691_s4 + $0x28] sm:$0xff] %v467_v57   ;;  %v257_v2 = vmul.f32 %v525_v60, %v642_v16 }
  0xf0   :  { %v265_v3 = vmul.f32 %v533_v61, %v642_v16  ;;  %v199_v4 = vpop.f32.mrf.mxu0  ;;  %v231_v5 = vpop.f32.mrf.mxu1  ;;  %v277_v6 = vadd.f32 %v406_v21, %v254_v58  ;;  %v285_v7 = vadd.f32 %v406_v21, %v262_v59  ;;  %v295_v14 = vmax.f32 %v279_v0, 0.0 }
  0xf1   :  { %443 = vst [vmem:[%s691_s4] sm:$0xff] %v442_v62   ;;  %482 = vst [vmem:[%s691_s4 + $0x20] sm:$0xff] %v462_v63   ;;  %v255_v8 = vmul.f32 %v642_v16, %v199_v4  ;;  %v263_v9 = vmul.f32 %v642_v16, %v231_v5  ;;  %v280_v10 = vadd.f32 %v406_v21, %v257_v2  ;;  %v303_v15 = vmax.f32 %v287_v1, 0.0 }
  0xf2   :  { %v288_v11 = vadd.f32 %v406_v21, %v265_v3  ;;  %v293_v19 = vmax.f32 %v277_v6, 0.0  ;;  %v301_v20 = vmax.f32 %v285_v7, 0.0 }
  0xf3   :  { %v278_v12 = vadd.f32 %v406_v21, %v255_v8  ;;  %v286_v13 = vadd.f32 %v406_v21, %v263_v9  ;;  %v296_v17 = vmax.f32 %v280_v10, 0.0 }
  0xf4   :  { %v304_v18 = vmax.f32 %v288_v11, 0.0 }
  0xf5   :  { %v294_v22 = vmax.f32 %v278_v12, 0.0  ;;  %v302_v23 = vmax.f32 %v286_v13, 0.0  ;;  %v457_v24 = vpack.c.bf16 %v296_v17, %v295_v14 }
  0xf6   :  { %v477_v25 = vpack.c.bf16 %v304_v18, %v303_v15 }
  0xf7   :  { %v452_v26 = vpack.c.bf16 %v294_v22, %v293_v19  ;;  %v472_v27 = vpack.c.bf16 %v302_v23, %v301_v20  ;;  %481 = vst [vmem:[%s691_s4 + $0x18] sm:$0xff] %v457_v24  }
  0xf8   :  { %485 = vst [vmem:[%s691_s4 + $0x38] sm:$0xff] %v477_v25  }
  0xf9   :  { %480 = vst [vmem:[%s691_s4 + $0x10] sm:$0xff] %v452_v26   ;;  %484 = vst [vmem:[%s691_s4 + $0x30] sm:$0xff] %v472_v27  }

// kernel: resnet101_forward.97
= control target key start
LH: loop header
LB: loop body
LE: loop exit
PB: predicated region body
PF: predicated region fallthrough
CT: control target
= control target key end

     0   :  { %v600_v1 = vmov 0   ;;  %v293_v25 = vlaneseq  ;;  %s832_s1 = inlined_call_operand.vmem [shape: bf16[1,128,256], index: 1, kind: input, shape index: {}]   ;;  %s833_s0 = inlined_call_operand.vmem [shape: bf16[128,128], index: 0, kind: input, shape index: {}]   ;;  %s834_s2 = inlined_call_operand.vmem [shape: f32[1,256], index: 2, kind: input, shape index: {}]   ;;  %s835_s3 = inlined_call_operand.vmem [shape: f32[1,256], index: 3, kind: input, shape index: {}]   ;;  %s836_s4 = inlined_call_operand.vmem [shape: bf16[128,256], index: 4, kind: output, shape index: {}]  }
   0x1   :  { %v568_v0 = vld [vmem:[%s832_s1 + $0x74] ss:$8 sps:$4 sm:$0xff]   ;;  %210 = vmatprep.mubr.bf16.mxu0 %v600_v1  ;;  %250 = vmatprep.mubr.bf16.mxu1 %v600_v1  ;;  %v570_v2 = vld [vmem:[%s832_s1 + $0x70] ss:$8 sps:$4 sm:$0xff]   ;;  %v571_v3 = vld [vmem:[%s832_s1 + $0x64] ss:$8 sps:$4 sm:$0xff]  }
   0x2   :  { %178 = vmatprep.subr.bf16.mxu0 %v568_v0  ;;  %551 = vmatprep.subr.bf16.mxu1 %v568_v0  ;;  %v573_v4 = vld [vmem:[%s832_s1 + $0x60] ss:$8 sps:$4 sm:$0xff]   ;;  %v574_v5 = vld [vmem:[%s832_s1 + $0x54] ss:$8 sps:$4 sm:$0xff]   ;;  %v576_v6 = vld [vmem:[%s832_s1 + $0x50] ss:$8 sps:$4 sm:$0xff]  }
   0x3   :  { %179 = vmatpush1.bf16.msra.mxu0 %v570_v2  ;;  %559 = vmatpush1.bf16.msra.mxu1 %v570_v2  ;;  %v577_v7 = vld [vmem:[%s832_s1 + $0x44] ss:$8 sps:$4 sm:$0xff]   ;;  %v579_v8 = vld [vmem:[%s832_s1 + $0x40] ss:$8 sps:$4 sm:$0xff]   ;;  %v580_v9 = vld [vmem:[%s832_s1 + $0x34] ss:$8 sps:$4 sm:$0xff]  }
   0x4   :  { %180 = vmatprep.subr.bf16.mxu0 %v571_v3  ;;  %552 = vmatprep.subr.bf16.mxu1 %v571_v3  ;;  %v582_v10 = vld [vmem:[%s832_s1 + $0x30] ss:$8 sps:$4 sm:$0xff]   ;;  %v583_v11 = vld [vmem:[%s832_s1 + $0x24] ss:$8 sps:$4 sm:$0xff]   ;;  %v585_v12 = vld [vmem:[%s832_s1 + $0x20] ss:$8 sps:$4 sm:$0xff]  }
   0x5   :  { %v586_v13 = vld [vmem:[%s832_s1 + $0x14] ss:$8 sps:$4 sm:$0xff]   ;;  %v588_v14 = vld [vmem:[%s832_s1 + $0x10] ss:$8 sps:$4 sm:$0xff]   ;;  %v589_v15 = vld [vmem:[%s832_s1 + $0x4] ss:$8 sps:$4 sm:$0xff]  }
   0x6   :  { %v591_v16 = vld [vmem:[%s832_s1] ss:$8 sps:$4 sm:$0xff]   ;;  %v596_v21 = vld [vmem:[%s833_s0 + $0x10] sm:$0xff]   ;;  %v598_v23 = vld [vmem:[%s833_s0 + $0x18] sm:$0xff]   ;;  %v294_v26 = vshrl.u32 %v293_v25, 7 }
   0x7   :  { %181 = vmatpush1.bf16.msra.mxu0 %v573_v4  ;;  %560 = vmatpush1.bf16.msra.mxu1 %v573_v4  ;;  %v592_v17 = vld [vmem:[%s833_s0] sm:$0xff]   ;;  %v594_v19 = vld [vmem:[%s833_s0 + $0x8] sm:$0xff]   ;;  %v597_v22 = vld [vmem:[%s833_s0 + $0x30] sm:$0xff]  }
   0x8   :  { %182 = vmatprep.subr.bf16.mxu0 %v574_v5  ;;  %553 = vmatprep.subr.bf16.mxu1 %v574_v5  ;;  %v593_v18 = vld [vmem:[%s833_s0 + $0x20] sm:$0xff]   ;;  %v595_v20 = vld [vmem:[%s833_s0 + $0x28] sm:$0xff]   ;;  %v599_v24 = vld [vmem:[%s833_s0 + $0x38] sm:$0xff]   ;;  %v295_v27 = vsub.s32 0, %v294_v26  ;;  %v299_v29 = vsub.s32 1, %v294_v26 }
   0x9   :  { %v291_v28 = vld [vmem:[%s834_s2] sm:$0x3] }
   0xa   :  { %v709_v30 = vrot.slane %v291_v28, %v295_v27  ;;  %v335_v31 = vld [vmem:[%s835_s3] sm:$0x3]  ;;  %v714_v32 = vrot.slane %v291_v28, %v299_v29 }
   0xb   :  { %183 = vmatpush1.bf16.msra.mxu0 %v576_v6  ;;  %561 = vmatpush1.bf16.msra.mxu1 %v576_v6  ;;  %v717_v36 = vrot.slane %v335_v31, %v295_v27  ;;  %v720_v38 = vrot.slane %v335_v31, %v299_v29 }
   0xc   :  { %184 = vmatprep.subr.bf16.mxu0 %v577_v7  ;;  %554 = vmatprep.subr.bf16.mxu1 %v577_v7 }
   0xf   :  { %185 = vmatpush1.bf16.msra.mxu0 %v579_v8  ;;  %562 = vmatpush1.bf16.msra.mxu1 %v579_v8 }
  0x10   :  { %186 = vmatprep.subr.bf16.mxu0 %v580_v9  ;;  %555 = vmatprep.subr.bf16.mxu1 %v580_v9 }
  0x13   :  { %187 = vmatpush1.bf16.msra.mxu0 %v582_v10  ;;  %563 = vmatpush1.bf16.msra.mxu1 %v582_v10 }
  0x14   :  { %188 = vmatprep.subr.bf16.mxu0 %v583_v11  ;;  %556 = vmatprep.subr.bf16.mxu1 %v583_v11 }
  0x17   :  { %189 = vmatpush1.bf16.msra.mxu0 %v585_v12  ;;  %564 = vmatpush1.bf16.msra.mxu1 %v585_v12 }
  0x18   :  { %190 = vmatprep.subr.bf16.mxu0 %v586_v13  ;;  %557 = vmatprep.subr.bf16.mxu1 %v586_v13 }
  0x1b   :  { %191 = vmatpush1.bf16.msra.mxu0 %v588_v14  ;;  %565 = vmatpush1.bf16.msra.mxu1 %v588_v14 }
  0x1c   :  { %192 = vmatprep.subr.bf16.mxu0 %v589_v15  ;;  %558 = vmatprep.subr.bf16.mxu1 %v589_v15 }
  0x1f   :  { %193 = vmatpush1.bf16.msra.mxu0 %v591_v16  ;;  %566 = vmatpush1.bf16.msra.mxu1 %v591_v16 }
  0x22   :  { %211 = vmatmul.mubr.bf16.vlgmr.msra.gmra.mxu0 %v592_v17  ;;  %251 = vmatmul.mubr.bf16.vlgmr.msra.gmra.mxu1 %v593_v18 }
  0x23   :  { %220 = vmatprep.mubr.bf16.mxu0 %v600_v1  ;;  %260 = vmatprep.mubr.bf16.mxu1 %v600_v1 }
  0x2a   :  { %221 = vmatmul.mubr.bf16.gmra.mxu0 %v594_v19  ;;  %261 = vmatmul.mubr.bf16.gmra.mxu1 %v595_v20 }
  0x2b   :  { %230 = vmatprep.mubr.bf16.mxu0 %v600_v1  ;;  %270 = vmatprep.mubr.bf16.mxu1 %v600_v1 }
  0x32   :  { %231 = vmatmul.mubr.bf16.gmra.mxu0 %v596_v21  ;;  %271 = vmatmul.mubr.bf16.gmra.mxu1 %v597_v22 }
  0x33   :  { %240 = vmatprep.mubr.bf16.mxu0 %v600_v1  ;;  %280 = vmatprep.mubr.bf16.mxu1 %v600_v1 }
  0x3a   :  { %241 = vmatmul.mubr.bf16.gmra.mxu0 %v598_v23  ;;  %281 = vmatmul.mubr.bf16.gmra.mxu1 %v599_v24 }
  0xe2   :  { %v212_v33 = vpop.f32.mrf.mxu0  ;;  %v252_v34 = vpop.f32.mrf.mxu1 }
  0xe3   :  { %v303_v35 = vmul.f32 %v709_v30, %v212_v33  ;;  %v319_v37 = vmul.f32 %v709_v30, %v252_v34 }
  0xe4   :  { %v214_v39 = vpop.f32.mrf.mxu0  ;;  %v254_v40 = vpop.f32.mrf.mxu1 }
  0xe5   :  { %v304_v41 = vmul.f32 %v714_v32, %v214_v39  ;;  %v320_v42 = vmul.f32 %v714_v32, %v254_v40  ;;  %v347_v45 = vadd.f32 %v717_v36, %v303_v35  ;;  %v363_v46 = vadd.f32 %v717_v36, %v319_v37 }
  0xe6   :  { %v216_v43 = vpop.f32.mrf.mxu0  ;;  %v256_v44 = vpop.f32.mrf.mxu1 }
  0xe7   :  { %v348_v47 = vadd.f32 %v720_v38, %v304_v41  ;;  %v364_v48 = vadd.f32 %v720_v38, %v320_v42  ;;  %v305_v49 = vmul.f32 %v709_v30, %v216_v43  ;;  %v321_v50 = vmul.f32 %v709_v30, %v256_v44 }
  0xe8   :  { %v218_v51 = vpop.f32.mrf.mxu0  ;;  %v258_v52 = vpop.f32.mrf.mxu1 }
  0xe9   :  { %v535_v53 = vpack.c.bf16 %v348_v47, %v347_v45  ;;  %v543_v54 = vpack.c.bf16 %v364_v48, %v363_v46  ;;  %v306_v55 = vmul.f32 %v714_v32, %v218_v51  ;;  %v322_v56 = vmul.f32 %v714_v32, %v258_v52 }
  0xea   :  { %v222_v57 = vpop.f32.mrf.mxu0  ;;  %v262_v58 = vpop.f32.mrf.mxu1  ;;  %v349_v61 = vadd.f32 %v717_v36, %v305_v49  ;;  %v365_v62 = vadd.f32 %v717_v36, %v321_v50 }
  0xeb   :  { %475 = vst [vmem:[%s836_s4] sm:$0xff] %v535_v53  ;;  %483 = vst [vmem:[%s836_s4 + $0x40] sm:$0xff] %v543_v54  ;;  %v307_v59 = vmul.f32 %v709_v30, %v222_v57  ;;  %v323_v60 = vmul.f32 %v709_v30, %v262_v58  ;;  %v350_v63 = vadd.f32 %v720_v38, %v306_v55 }
  0xec   :  { %v366_v0 = vadd.f32 %v720_v38, %v322_v56  ;;  %v224_v1 = vpop.f32.mrf.mxu0  ;;  %v264_v2 = vpop.f32.mrf.mxu1 }
  0xed   :  { %v308_v3 = vmul.f32 %v714_v32, %v224_v1  ;;  %v324_v4 = vmul.f32 %v714_v32, %v264_v2  ;;  %v536_v5 = vpack.c.bf16 %v350_v63, %v349_v61  ;;  %v351_v9 = vadd.f32 %v717_v36, %v307_v59 }
  0xee   :  { %v544_v6 = vpack.c.bf16 %v366_v0, %v365_v62  ;;  %v226_v7 = vpop.f32.mrf.mxu0  ;;  %v266_v8 = vpop.f32.mrf.mxu1  ;;  %v367_v10 = vadd.f32 %v717_v36, %v323_v60 }
  0xef   :  { %v352_v11 = vadd.f32 %v720_v38, %v308_v3  ;;  %v368_v12 = vadd.f32 %v720_v38, %v324_v4  ;;  %476 = vst [vmem:[%s836_s4 + $0x8] sm:$0xff] %v536_v5  ;;  %v309_v13 = vmul.f32 %v709_v30, %v226_v7  ;;  %v325_v14 = vmul.f32 %v709_v30, %v266_v8 }
  0xf0   :  { %484 = vst [vmem:[%s836_s4 + $0x48] sm:$0xff] %v544_v6  ;;  %v228_v15 = vpop.f32.mrf.mxu0  ;;  %v268_v16 = vpop.f32.mrf.mxu1 }
  0xf1   :  { %v537_v17 = vpack.c.bf16 %v352_v11, %v351_v9  ;;  %v545_v18 = vpack.c.bf16 %v368_v12, %v367_v10  ;;  %v310_v19 = vmul.f32 %v714_v32, %v228_v15  ;;  %v326_v20 = vmul.f32 %v714_v32, %v268_v16 }
  0xf2   :  { %v232_v21 = vpop.f32.mrf.mxu0  ;;  %v272_v22 = vpop.f32.mrf.mxu1  ;;  %v353_v25 = vadd.f32 %v717_v36, %v309_v13  ;;  %v369_v26 = vadd.f32 %v717_v36, %v325_v14 }
  0xf3   :  { %477 = vst [vmem:[%s836_s4 + $0x10] sm:$0xff] %v537_v17  ;;  %485 = vst [vmem:[%s836_s4 + $0x50] sm:$0xff] %v545_v18  ;;  %v311_v23 = vmul.f32 %v709_v30, %v232_v21  ;;  %v327_v24 = vmul.f32 %v709_v30, %v272_v22  ;;  %v354_v27 = vadd.f32 %v720_v38, %v310_v19 }
  0xf4   :  { %v370_v28 = vadd.f32 %v720_v38, %v326_v20  ;;  %v234_v29 = vpop.f32.mrf.mxu0  ;;  %v274_v31 = vpop.f32.mrf.mxu1 }
  0xf5   :  { %v312_v33 = vmul.f32 %v714_v32, %v234_v29  ;;  %v328_v34 = vmul.f32 %v714_v32, %v274_v31  ;;  %v538_v35 = vpack.c.bf16 %v354_v27, %v353_v25  ;;  %v355_v41 = vadd.f32 %v717_v36, %v311_v23 }
  0xf6   :  { %v546_v37 = vpack.c.bf16 %v370_v28, %v369_v26  ;;  %v236_v39 = vpop.f32.mrf.mxu0  ;;  %v276_v40 = vpop.f32.mrf.mxu1  ;;  %v371_v42 = vadd.f32 %v717_v36, %v327_v24 }
  0xf7   :  { %v356_v43 = vadd.f32 %v720_v38, %v312_v33  ;;  %v372_v44 = vadd.f32 %v720_v38, %v328_v34  ;;  %478 = vst [vmem:[%s836_s4 + $0x18] sm:$0xff] %v538_v35  ;;  %v313_v45 = vmul.f32 %v709_v30, %v236_v39  ;;  %v329_v46 = vmul.f32 %v709_v30, %v276_v40 }
  0xf8   :  { %486 = vst [vmem:[%s836_s4 + $0x58] sm:$0xff] %v546_v37  ;;  %v238_v47 = vpop.f32.mrf.mxu0  ;;  %v278_v48 = vpop.f32.mrf.mxu1 }
  0xf9   :  { %v539_v49 = vpack.c.bf16 %v356_v43, %v355_v41  ;;  %v547_v50 = vpack.c.bf16 %v372_v44, %v371_v42  ;;  %v314_v51 = vmul.f32 %v714_v32, %v238_v47  ;;  %v330_v52 = vmul.f32 %v714_v32, %v278_v48 }
  0xfa   :  { %v242_v53 = vpop.f32.mrf.mxu0  ;;  %v282_v54 = vpop.f32.mrf.mxu1  ;;  %v357_v57 = vadd.f32 %v717_v36, %v313_v45  ;;  %v373_v58 = vadd.f32 %v717_v36, %v329_v46 }
  0xfb   :  { %479 = vst [vmem:[%s836_s4 + $0x20] sm:$0xff] %v539_v49  ;;  %487 = vst [vmem:[%s836_s4 + $0x60] sm:$0xff] %v547_v50  ;;  %v315_v55 = vmul.f32 %v709_v30, %v242_v53  ;;  %v331_v56 = vmul.f32 %v709_v30, %v282_v54  ;;  %v358_v59 = vadd.f32 %v720_v38, %v314_v51 }
  0xfc   :  { %v374_v60 = vadd.f32 %v720_v38, %v330_v52  ;;  %v244_v61 = vpop.f32.mrf.mxu0  ;;  %v284_v62 = vpop.f32.mrf.mxu1 }
  0xfd   :  { %v316_v63 = vmul.f32 %v714_v32, %v244_v61  ;;  %v332_v0 = vmul.f32 %v714_v32, %v284_v62  ;;  %v540_v1 = vpack.c.bf16 %v358_v59, %v357_v57  ;;  %v359_v5 = vadd.f32 %v717_v36, %v315_v55 }
  0xfe   :  { %v548_v2 = vpack.c.bf16 %v374_v60, %v373_v58  ;;  %v246_v3 = vpop.f32.mrf.mxu0  ;;  %v286_v4 = vpop.f32.mrf.mxu1  ;;  %v375_v6 = vadd.f32 %v717_v36, %v331_v56 }
  0xff   :  { %v360_v7 = vadd.f32 %v720_v38, %v316_v63  ;;  %v376_v8 = vadd.f32 %v720_v38, %v332_v0  ;;  %480 = vst [vmem:[%s836_s4 + $0x28] sm:$0xff] %v540_v1  ;;  %v317_v9 = vmul.f32 %v709_v30, %v246_v3  ;;  %v333_v10 = vmul.f32 %v709_v30, %v286_v4 }
 0x100   :  { %488 = vst [vmem:[%s836_s4 + $0x68] sm:$0xff] %v548_v2  ;;  %v248_v11 = vpop.f32.mrf.mxu0  ;;  %v288_v12 = vpop.f32.mrf.mxu1 }
 0x101   :  { %v541_v13 = vpack.c.bf16 %v360_v7, %v359_v5  ;;  %v549_v14 = vpack.c.bf16 %v376_v8, %v375_v6  ;;  %v318_v15 = vmul.f32 %v714_v32, %v248_v11  ;;  %v334_v16 = vmul.f32 %v714_v32, %v288_v12 }
 0x102   :  { %v361_v17 = vadd.f32 %v717_v36, %v317_v9  ;;  %v377_v30 = vadd.f32 %v717_v36, %v333_v10 }
 0x103   :  { %481 = vst [vmem:[%s836_s4 + $0x30] sm:$0xff] %v541_v13  ;;  %489 = vst [vmem:[%s836_s4 + $0x70] sm:$0xff] %v549_v14  ;;  %v362_v18 = vadd.f32 %v720_v38, %v318_v15  ;;  %v378_v19 = vadd.f32 %v720_v38, %v334_v16 }
 0x105   :  { %v542_v20 = vpack.c.bf16 %v362_v18, %v361_v17  ;;  %v550_v21 = vpack.c.bf16 %v378_v19, %v377_v30 }
 0x107   :  { %482 = vst [vmem:[%s836_s4 + $0x38] sm:$0xff] %v542_v20  ;;  %490 = vst [vmem:[%s836_s4 + $0x78] sm:$0xff] %v550_v21 }

// kernel: resnet101_forward.94
= control target key start
LH: loop header
LB: loop body
LE: loop exit
PB: predicated region body
PF: predicated region fallthrough
CT: control target
= control target key end

     0   :  { %s1508_s15 = smov 0   ;;  %s1510_s16 = smov 0   ;;  %s1717_s0 = inlined_call_operand.vmem [shape: bf16[512,160], index: 0, kind: input, shape index: {}]   ;;  %s1718_s1 = inlined_call_operand.vmem [shape: bf16[1,160,128], index: 1, kind: input, shape index: {}]   ;;  %s1719_s2 = inlined_call_operand.vmem [shape: f32[1,128], index: 2, kind: input, shape index: {}]   ;;  %s1720_s3 = inlined_call_operand.vmem [shape: f32[1,128], index: 3, kind: input, shape index: {}]   ;;  %s1721_s4 = inlined_call_operand.vmem [shape: bf16[512,128], index: 4, kind: output, shape index: {}]  }
   0x1   :  { %s1512_s17 = smov 0  }
   0x2 LB: > { %s26_s18 = sadd.s32 1, %s1476_s16  ;;  %p1127_p0 = scmp.ge.s32.totalorder %s1480_s17, 1  ;;  %s1480_s17 = sphi %s1512_s17, %s14_s17   ;;  %s1476_s16 = sphi %s1510_s16, %s1723_s16   ;;  %s1472_s15 = sphi %s1508_s15, %s1722_s15  }
   0x3   : > { %p28_p1 = scmp.ge.s32.totalorder %s26_s18, 2  ;;  %p203_p2 = scmp.lt.s32.totalorder %s1480_s17, 3 }
   0x5   : > { %s1725_s18 = smov (%p28_p1, %s26_s18), 0  ;;  %p204_p3 = pnand %p1127_p0, %p203_p2 }
   0x6   : > { %s1128_s21 = sshll.u32 (!%p204_p3), %s1472_s15, 5 }
   0x7   : > { %207 = sbr.rel (%p204_p3) target bundleno = 315 (0x13b), region = 36  ;;  %p244_p4 = scmp.lt.s32.totalorder (!%p204_p3), %s1128_s21, 63 }
   0xc   : > { %v1400_v0 = vld [vmem:[%s1718_s1 + $0x38] sm:$0xff]   ;;  %v1482_v1 = vmov 0   ;;  %v1401_v2 = vld [vmem:[%s1718_s1 + $0x30] sm:$0xff]   ;;  %s1727_s21 = smov (!%p244_p4, %s1128_s21), 63  ;;  %v1402_v3 = vld [vmem:[%s1718_s1 + $0x28] sm:$0xff]   ;;  %vm526_vm0 = vcmask 261120  }
   0xd   : > { %575 = vmatprep.subr.bf16.mxu0 %v1482_v1  ;;  %1355 = vmatprep.subr.bf16.mxu1 %v1482_v1  ;;  %s1227_s26 = sshll.u32 %s1727_s21, 3  ;;  %v1403_v4 = vld [vmem:[%s1718_s1 + $0x20] sm:$0xff]   ;;  %v1404_v7 = vld [vmem:[%s1718_s1 + $0x18] sm:$0xff]   ;;  %v1405_v8 = vld [vmem:[%s1718_s1 + $0x10] sm:$0xff]  }
   0xe   : > { %576 = vmatpush1.bf16.msra.mxu0 %v1400_v0  ;;  %1365 = vmatpush1.bf16.msra.mxu1 %v1400_v0  ;;  %s1541_s29 = scalar_lea.vmem %s1717_s0, %s1227_s26  ;;  %v1406_v9 = vld [vmem:[%s1718_s1 + $0x8] sm:$0xff]   ;;  %v1407_v10 = vld [vmem:[%s1718_s1] sm:$0xff]   ;;  %s1132_s26 = sshll.u32 %s1727_s21, 2 }
   0xf   : > { %577 = vmatprep.subr.bf16.mxu0 %v1482_v1  ;;  %1356 = vmatprep.subr.bf16.mxu1 %v1482_v1  ;;  %v1412_v5 = vld [vmem:[%s1541_s29 + $0x4] ss:$8 sps:$4 sm:$0xff]   ;;  %v1410_v13 = vld [vmem:[%s1541_s29] ss:$8 sps:$4 sm:$0xff]   ;;  %v1416_v15 = vld [vmem:[%s1541_s29 + $0x14] ss:$8 sps:$4 sm:$0xff]  }
  0x10   : > { %v1415_v6 = vld [vmem:[%s1541_s29 + $0x84] ss:$8 sps:$4 sm:$0xff]   ;;  %1175 = vmatprep.mubr.msk.bf16.mxu0 %vm526_vm0, %v1412_v5  ;;  %v1413_v14 = vld [vmem:[%s1541_s29 + $0x80] ss:$8 sps:$4 sm:$0xff]   ;;  %v1418_v16 = vld [vmem:[%s1541_s29 + $0x94] ss:$8 sps:$4 sm:$0xff]  }
  0x11   : > { %1183 = vmatprep.mubr.msk.bf16.mxu1 %vm526_vm0, %v1415_v6  ;;  %v1408_v11 = vld [vmem:[%s1718_s1 + $0x48] sm:$0xff]   ;;  %v1409_v12 = vld [vmem:[%s1718_s1 + $0x40] sm:$0xff]   ;;  %v1420_v17 = vld [vmem:[%s1541_s29 + $0x10] ss:$8 sps:$4 sm:$0xff]  }
  0x12   : > { %578 = vmatpush1.bf16.msra.mxu0 %v1401_v2  ;;  %1366 = vmatpush1.bf16.msra.mxu1 %v1401_v2  ;;  %v1421_v18 = vld [vmem:[%s1541_s29 + $0x90] ss:$8 sps:$4 sm:$0xff]   ;;  %v1422_v19 = vld [vmem:[%s1541_s29 + $0x24] ss:$8 sps:$4 sm:$0xff]   ;;  %v1426_v21 = vld [vmem:[%s1541_s29 + $0x20] ss:$8 sps:$4 sm:$0xff]  }
  0x13   : > { %579 = vmatprep.subr.bf16.mxu0 %v1482_v1  ;;  %1357 = vmatprep.subr.bf16.mxu1 %v1482_v1  ;;  %v1424_v20 = vld [vmem:[%s1541_s29 + $0xa4] ss:$8 sps:$4 sm:$0xff]   ;;  %v1427_v22 = vld [vmem:[%s1541_s29 + $0xa0] ss:$8 sps:$4 sm:$0xff]   ;;  %v1428_v23 = vld [vmem:[%s1541_s29 + $0x34] ss:$8 sps:$4 sm:$0xff]  }
  0x14   : > { %v1430_v24 = vld [vmem:[%s1541_s29 + $0xb4] ss:$8 sps:$4 sm:$0xff]   ;;  %v1432_v25 = vld [vmem:[%s1541_s29 + $0x30] ss:$8 sps:$4 sm:$0xff]   ;;  %v1434_v27 = vld [vmem:[%s1541_s29 + $0x44] ss:$8 sps:$4 sm:$0xff]  }
  0x15   : > { %v1433_v26 = vld [vmem:[%s1541_s29 + $0xb0] ss:$8 sps:$4 sm:$0xff]   ;;  %v1436_v28 = vld [vmem:[%s1541_s29 + $0xc4] ss:$8 sps:$4 sm:$0xff]   ;;  %v1438_v29 = vld [vmem:[%s1541_s29 + $0x40] ss:$8 sps:$4 sm:$0xff]  }
  0x16   : > { %580 = vmatpush1.bf16.msra.mxu0 %v1402_v3  ;;  %1367 = vmatpush1.bf16.msra.mxu1 %v1402_v3  ;;  %v1439_v30 = vld [vmem:[%s1541_s29 + $0xc0] ss:$8 sps:$4 sm:$0xff]   ;;  %v1440_v31 = vld [vmem:[%s1541_s29 + $0x54] ss:$8 sps:$4 sm:$0xff]   ;;  %v1444_v33 = vld [vmem:[%s1541_s29 + $0x50] ss:$8 sps:$4 sm:$0xff]  }
  0x17   : > { %581 = vmatprep.subr.bf16.mxu0 %v1482_v1  ;;  %1358 = vmatprep.subr.bf16.mxu1 %v1482_v1  ;;  %v1442_v32 = vld [vmem:[%s1541_s29 + $0xd4] ss:$8 sps:$4 sm:$0xff]   ;;  %v1445_v34 = vld [vmem:[%s1541_s29 + $0xd0] ss:$8 sps:$4 sm:$0xff]   ;;  %v1446_v35 = vld [vmem:[%s1541_s29 + $0x64] ss:$8 sps:$4 sm:$0xff]  }
  0x18   : > { %v1448_v36 = vld [vmem:[%s1541_s29 + $0xe4] ss:$8 sps:$4 sm:$0xff]   ;;  %v1450_v37 = vld [vmem:[%s1541_s29 + $0x60] ss:$8 sps:$4 sm:$0xff]   ;;  %v1452_v39 = vld [vmem:[%s1541_s29 + $0x74] ss:$8 sps:$4 sm:$0xff]  }
  0x19   : > { %v1451_v38 = vld [vmem:[%s1541_s29 + $0xe0] ss:$8 sps:$4 sm:$0xff]   ;;  %v1454_v40 = vld [vmem:[%s1541_s29 + $0xf4] ss:$8 sps:$4 sm:$0xff]   ;;  %v1456_v41 = vld [vmem:[%s1541_s29 + $0x70] ss:$8 sps:$4 sm:$0xff]  }
  0x1a   : > { %582 = vmatpush1.bf16.msra.mxu0 %v1403_v4  ;;  %1368 = vmatpush1.bf16.msra.mxu1 %v1403_v4  ;;  %v1457_v42 = vld [vmem:[%s1541_s29 + $0xf0] ss:$8 sps:$4 sm:$0xff]   ;;  %v1615_v43 = vld [vmem:[%s1719_s2] ss:$0 sm:$0xff]  ;;  %s1636_s29 = scalar_lea.vmem %s1721_s4, %s1132_s26 }
  0x1b   : > { %583 = vmatprep.subr.bf16.mxu0 %v1482_v1  ;;  %1359 = vmatprep.subr.bf16.mxu1 %v1482_v1  ;;  %v1621_v47 = vld [vmem:[%s1720_s3] ss:$0 sm:$0xff] }
  0x1e   : > { %584 = vmatpush1.bf16.msra.mxu0 %v1404_v7  ;;  %1369 = vmatpush1.bf16.msra.mxu1 %v1404_v7 }
  0x1f   : > { %585 = vmatprep.subr.bf16.mxu0 %v1482_v1  ;;  %1360 = vmatprep.subr.bf16.mxu1 %v1482_v1 }
  0x22   : > { %586 = vmatpush1.bf16.msra.mxu0 %v1405_v8  ;;  %1370 = vmatpush1.bf16.msra.mxu1 %v1405_v8 }
  0x23   : > { %587 = vmatprep.subr.bf16.mxu0 %v1482_v1  ;;  %1361 = vmatprep.subr.bf16.mxu1 %v1482_v1 }
  0x26   : > { %588 = vmatpush1.bf16.msra.mxu0 %v1406_v9  ;;  %1371 = vmatpush1.bf16.msra.mxu1 %v1406_v9 }
  0x27   : > { %589 = vmatprep.subr.bf16.mxu0 %v1482_v1  ;;  %1362 = vmatprep.subr.bf16.mxu1 %v1482_v1 }
  0x2a   : > { %590 = vmatpush1.bf16.msra.mxu0 %v1407_v10  ;;  %1372 = vmatpush1.bf16.msra.mxu1 %v1407_v10 }
  0x2b   : > { %603 = vmatprep.subr.bf16.mxu0 %v1482_v1  ;;  %1363 = vmatprep.subr.bf16.mxu1 %v1482_v1 }
  0x2e   : > { %604 = vmatpush2.bf16.msra.mxu0 %v1408_v11  ;;  %1373 = vmatpush2.bf16.msra.mxu1 %v1408_v11 }
  0x2f   : > { %605 = vmatprep.subr.bf16.mxu0 %v1482_v1  ;;  %1364 = vmatprep.subr.bf16.mxu1 %v1482_v1 }
  0x32   : > { %606 = vmatpush2.bf16.msra.mxu0 %v1409_v12  ;;  %1374 = vmatpush2.bf16.msra.mxu1 %v1409_v12 }
  0x35   : > { %608 = vmatmul.mubr.bf16.vlgmr.msra.gmra.mxu0 %v1410_v13  ;;  %672 = vmatmul.mubr.bf16.vlgmr.msra.gmra.mxu1 %v1413_v14 }
  0x36   : > { %1176 = vmatprep.mubr.msk.bf16.mxu0 %vm526_vm0, %v1416_v15  ;;  %1184 = vmatprep.mubr.msk.bf16.mxu1 %vm526_vm0, %v1418_v16 }
  0x3d   : > { %616 = vmatmul.mubr.bf16.gmra.mxu0 %v1420_v17  ;;  %680 = vmatmul.mubr.bf16.gmra.mxu1 %v1421_v18 }
  0x3e   : > { %1177 = vmatprep.mubr.msk.bf16.mxu0 %vm526_vm0, %v1422_v19  ;;  %1185 = vmatprep.mubr.msk.bf16.mxu1 %vm526_vm0, %v1424_v20 }
  0x45   : > { %624 = vmatmul.mubr.bf16.gmra.mxu0 %v1426_v21  ;;  %688 = vmatmul.mubr.bf16.gmra.mxu1 %v1427_v22 }
  0x46   : > { %1178 = vmatprep.mubr.msk.bf16.mxu0 %vm526_vm0, %v1428_v23  ;;  %1186 = vmatprep.mubr.msk.bf16.mxu1 %vm526_vm0, %v1430_v24 }
  0x4d   : > { %632 = vmatmul.mubr.bf16.gmra.mxu0 %v1432_v25  ;;  %696 = vmatmul.mubr.bf16.gmra.mxu1 %v1433_v26 }
  0x4e   : > { %1179 = vmatprep.mubr.msk.bf16.mxu0 %vm526_vm0, %v1434_v27  ;;  %1187 = vmatprep.mubr.msk.bf16.mxu1 %vm526_vm0, %v1436_v28 }
  0x55   : > { %640 = vmatmul.mubr.bf16.gmra.mxu0 %v1438_v29  ;;  %704 = vmatmul.mubr.bf16.gmra.mxu1 %v1439_v30 }
  0x56   : > { %1180 = vmatprep.mubr.msk.bf16.mxu0 %vm526_vm0, %v1440_v31  ;;  %1188 = vmatprep.mubr.msk.bf16.mxu1 %vm526_vm0, %v1442_v32 }
  0x5d   : > { %648 = vmatmul.mubr.bf16.gmra.mxu0 %v1444_v33  ;;  %712 = vmatmul.mubr.bf16.gmra.mxu1 %v1445_v34 }
  0x5e   : > { %1181 = vmatprep.mubr.msk.bf16.mxu0 %vm526_vm0, %v1446_v35  ;;  %1189 = vmatprep.mubr.msk.bf16.mxu1 %vm526_vm0, %v1448_v36 }
  0x65   : > { %656 = vmatmul.mubr.bf16.gmra.mxu0 %v1450_v37  ;;  %720 = vmatmul.mubr.bf16.gmra.mxu1 %v1451_v38 }
  0x66   : > { %1182 = vmatprep.mubr.msk.bf16.mxu0 %vm526_vm0, %v1452_v39  ;;  %1190 = vmatprep.mubr.msk.bf16.mxu1 %vm526_vm0, %v1454_v40 }
  0x6d   : > { %664 = vmatmul.mubr.bf16.gmra.mxu0 %v1456_v41  ;;  %728 = vmatmul.mubr.bf16.gmra.mxu1 %v1457_v42 }
  0xf5   : > { %v609_v44 = vpop.f32.mrf.mxu0  ;;  %v673_v45 = vpop.f32.mrf.mxu1 }
  0xf6   : > { %v743_v46 = vmul.f32 %v1615_v43, %v609_v44  ;;  %v759_v48 = vmul.f32 %v1615_v43, %v673_v45 }
  0xf7   : > { %v611_v49 = vpop.f32.mrf.mxu0  ;;  %v675_v50 = vpop.f32.mrf.mxu1 }
  0xf8   : > { %v782_v51 = vadd.f32 %v1621_v47, %v743_v46  ;;  %v798_v52 = vadd.f32 %v1621_v47, %v759_v48 }
  0xf9   : > { %v612_v53 = vpop.f32.mrf.mxu0  ;;  %v676_v54 = vpop.f32.mrf.mxu1 }
  0xfa   : > { %v744_v55 = vmul.f32 %v1615_v43, %v612_v53  ;;  %v760_v56 = vmul.f32 %v1615_v43, %v676_v54  ;;  %v814_v61 = vmax.f32 %v782_v51, 0.0  ;;  %v830_v62 = vmax.f32 %v798_v52, 0.0 }
  0xfb   : > { %v614_v57 = vpop.f32.mrf.mxu0  ;;  %v678_v58 = vpop.f32.mrf.mxu1 }
  0xfc   : > { %v783_v59 = vadd.f32 %v1621_v47, %v744_v55  ;;  %v799_v60 = vadd.f32 %v1621_v47, %v760_v56 }
  0xfd   : > { %v617_v63 = vpop.f32.mrf.mxu0  ;;  %v681_v0 = vpop.f32.mrf.mxu1 }
  0xfe   : > { %v815_v1 = vmax.f32 %v783_v59, 0.0  ;;  %v831_v2 = vmax.f32 %v799_v60, 0.0  ;;  %v745_v3 = vmul.f32 %v1615_v43, %v617_v63  ;;  %v761_v4 = vmul.f32 %v1615_v43, %v681_v0 }
  0xff   : > { %v619_v5 = vpop.f32.mrf.mxu0  ;;  %v683_v6 = vpop.f32.mrf.mxu1 }
 0x100   : > { %v1263_v7 = vpack.c.bf16 %v815_v1, %v814_v61  ;;  %v1303_v8 = vpack.c.bf16 %v831_v2, %v830_v62  ;;  %v784_v9 = vadd.f32 %v1621_v47, %v745_v3  ;;  %v800_v10 = vadd.f32 %v1621_v47, %v761_v4 }
 0x101   : > { %v620_v11 = vpop.f32.mrf.mxu0  ;;  %v684_v12 = vpop.f32.mrf.mxu1 }
 0x102   : > { %1264 = vst [vmem:[%s1636_s29] sm:$0xff] %v1263_v7   ;;  %1347 = vst [vmem:[%s1636_s29 + $0x40] sm:$0xff] %v1303_v8   ;;  %v746_v13 = vmul.f32 %v1615_v43, %v620_v11  ;;  %v762_v14 = vmul.f32 %v1615_v43, %v684_v12  ;;  %v816_v19 = vmax.f32 %v784_v9, 0.0  ;;  %v832_v20 = vmax.f32 %v800_v10, 0.0 }
 0x103   : > { %v622_v15 = vpop.f32.mrf.mxu0  ;;  %v686_v16 = vpop.f32.mrf.mxu1 }
 0x104   : > { %v785_v17 = vadd.f32 %v1621_v47, %v746_v13  ;;  %v801_v18 = vadd.f32 %v1621_v47, %v762_v14 }
 0x105   : > { %v625_v21 = vpop.f32.mrf.mxu0  ;;  %v689_v22 = vpop.f32.mrf.mxu1 }
 0x106   : > { %v817_v23 = vmax.f32 %v785_v17, 0.0  ;;  %v833_v24 = vmax.f32 %v801_v18, 0.0  ;;  %v747_v25 = vmul.f32 %v1615_v43, %v625_v21  ;;  %v763_v26 = vmul.f32 %v1615_v43, %v689_v22 }
 0x107   : > { %v627_v27 = vpop.f32.mrf.mxu0  ;;  %v691_v28 = vpop.f32.mrf.mxu1 }
 0x108   : > { %v1268_v29 = vpack.c.bf16 %v817_v23, %v816_v19  ;;  %v1308_v30 = vpack.c.bf16 %v833_v24, %v832_v20  ;;  %v786_v31 = vadd.f32 %v1621_v47, %v747_v25  ;;  %v802_v32 = vadd.f32 %v1621_v47, %v763_v26 }
 0x109   : > { %v628_v33 = vpop.f32.mrf.mxu0  ;;  %v692_v34 = vpop.f32.mrf.mxu1 }
 0x10a   : > { %1340 = vst [vmem:[%s1636_s29 + $0x8] sm:$0xff] %v1268_v29   ;;  %1348 = vst [vmem:[%s1636_s29 + $0x48] sm:$0xff] %v1308_v30   ;;  %v748_v35 = vmul.f32 %v1615_v43, %v628_v33  ;;  %v764_v36 = vmul.f32 %v1615_v43, %v692_v34  ;;  %v818_v41 = vmax.f32 %v786_v31, 0.0  ;;  %v834_v42 = vmax.f32 %v802_v32, 0.0 }
 0x10b   : > { %v630_v37 = vpop.f32.mrf.mxu0  ;;  %v694_v38 = vpop.f32.mrf.mxu1 }
 0x10c   : > { %v787_v39 = vadd.f32 %v1621_v47, %v748_v35  ;;  %v803_v40 = vadd.f32 %v1621_v47, %v764_v36 }
 0x10d   : > { %v633_v44 = vpop.f32.mrf.mxu0  ;;  %v697_v45 = vpop.f32.mrf.mxu1 }
 0x10e   : > { %v819_v46 = vmax.f32 %v787_v39, 0.0  ;;  %v835_v48 = vmax.f32 %v803_v40, 0.0  ;;  %v749_v49 = vmul.f32 %v1615_v43, %v633_v44  ;;  %v765_v50 = vmul.f32 %v1615_v43, %v697_v45 }
 0x10f   : > { %v635_v51 = vpop.f32.mrf.mxu0  ;;  %v699_v52 = vpop.f32.mrf.mxu1 }
 0x110   : > { %v1273_v53 = vpack.c.bf16 %v819_v46, %v818_v41  ;;  %v1313_v54 = vpack.c.bf16 %v835_v48, %v834_v42  ;;  %v788_v55 = vadd.f32 %v1621_v47, %v749_v49  ;;  %v804_v56 = vadd.f32 %v1621_v47, %v765_v50 }
 0x111   : > { %v636_v57 = vpop.f32.mrf.mxu0  ;;  %v700_v58 = vpop.f32.mrf.mxu1 }
 0x112   : > { %1341 = vst [vmem:[%s1636_s29 + $0x10] sm:$0xff] %v1273_v53   ;;  %1349 = vst [vmem:[%s1636_s29 + $0x50] sm:$0xff] %v1313_v54   ;;  %v750_v59 = vmul.f32 %v1615_v43, %v636_v57  ;;  %v766_v60 = vmul.f32 %v1615_v43, %v700_v58  ;;  %v820_v1 = vmax.f32 %v788_v55, 0.0  ;;  %v836_v2 = vmax.f32 %v804_v56, 0.0 }
 0x113   : > { %v638_v61 = vpop.f32.mrf.mxu0  ;;  %v702_v62 = vpop.f32.mrf.mxu1 }
 0x114   : > { %v789_v63 = vadd.f32 %v1621_v47, %v750_v59  ;;  %v805_v0 = vadd.f32 %v1621_v47, %v766_v60 }
 0x115   : > { %v641_v3 = vpop.f32.mrf.mxu0  ;;  %v705_v4 = vpop.f32.mrf.mxu1 }
 0x116   : > { %v821_v5 = vmax.f32 %v789_v63, 0.0  ;;  %v837_v6 = vmax.f32 %v805_v0, 0.0  ;;  %v751_v7 = vmul.f32 %v1615_v43, %v641_v3  ;;  %v767_v8 = vmul.f32 %v1615_v43, %v705_v4 }
 0x117   : > { %v643_v9 = vpop.f32.mrf.mxu0  ;;  %v707_v10 = vpop.f32.mrf.mxu1 }
 0x118   : > { %v1278_v11 = vpack.c.bf16 %v821_v5, %v820_v1  ;;  %v1318_v12 = vpack.c.bf16 %v837_v6, %v836_v2  ;;  %v790_v13 = vadd.f32 %v1621_v47, %v751_v7  ;;  %v806_v14 = vadd.f32 %v1621_v47, %v767_v8 }
 0x119   : > { %v644_v15 = vpop.f32.mrf.mxu0  ;;  %v708_v16 = vpop.f32.mrf.mxu1 }
 0x11a   : > { %1342 = vst [vmem:[%s1636_s29 + $0x18] sm:$0xff] %v1278_v11   ;;  %1350 = vst [vmem:[%s1636_s29 + $0x58] sm:$0xff] %v1318_v12   ;;  %v752_v17 = vmul.f32 %v1615_v43, %v644_v15  ;;  %v768_v18 = vmul.f32 %v1615_v43, %v708_v16  ;;  %v822_v23 = vmax.f32 %v790_v13, 0.0  ;;  %v838_v24 = vmax.f32 %v806_v14, 0.0 }
 0x11b   : > { %v646_v19 = vpop.f32.mrf.mxu0  ;;  %v710_v20 = vpop.f32.mrf.mxu1 }
 0x11c   : > { %v791_v21 = vadd.f32 %v1621_v47, %v752_v17  ;;  %v807_v22 = vadd.f32 %v1621_v47, %v768_v18 }
 0x11d   : > { %v649_v25 = vpop.f32.mrf.mxu0  ;;  %v713_v26 = vpop.f32.mrf.mxu1 }
 0x11e   : > { %v823_v27 = vmax.f32 %v791_v21, 0.0  ;;  %v839_v28 = vmax.f32 %v807_v22, 0.0  ;;  %v753_v29 = vmul.f32 %v1615_v43, %v649_v25  ;;  %v769_v30 = vmul.f32 %v1615_v43, %v713_v26 }
 0x11f   : > { %v651_v31 = vpop.f32.mrf.mxu0  ;;  %v715_v32 = vpop.f32.mrf.mxu1 }
 0x120   : > { %v1283_v33 = vpack.c.bf16 %v823_v27, %v822_v23  ;;  %v1323_v34 = vpack.c.bf16 %v839_v28, %v838_v24  ;;  %v792_v35 = vadd.f32 %v1621_v47, %v753_v29  ;;  %v808_v36 = vadd.f32 %v1621_v47, %v769_v30 }
 0x121   : > { %v652_v37 = vpop.f32.mrf.mxu0  ;;  %v716_v38 = vpop.f32.mrf.mxu1 }
 0x122   : > { %1343 = vst [vmem:[%s1636_s29 + $0x20] sm:$0xff] %v1283_v33   ;;  %1351 = vst [vmem:[%s1636_s29 + $0x60] sm:$0xff] %v1323_v34   ;;  %v754_v39 = vmul.f32 %v1615_v43, %v652_v37  ;;  %v770_v40 = vmul.f32 %v1615_v43, %v716_v38  ;;  %v824_v46 = vmax.f32 %v792_v35, 0.0  ;;  %v840_v48 = vmax.f32 %v808_v36, 0.0 }
 0x123   : > { %v654_v41 = vpop.f32.mrf.mxu0  ;;  %v718_v42 = vpop.f32.mrf.mxu1 }
 0x124   : > { %v793_v44 = vadd.f32 %v1621_v47, %v754_v39  ;;  %v809_v45 = vadd.f32 %v1621_v47, %v770_v40 }
 0x125   : > { %v657_v49 = vpop.f32.mrf.mxu0  ;;  %v721_v50 = vpop.f32.mrf.mxu1 }
 0x126   : > { %v825_v51 = vmax.f32 %v793_v44, 0.0  ;;  %v841_v52 = vmax.f32 %v809_v45, 0.0  ;;  %v755_v53 = vmul.f32 %v1615_v43, %v657_v49  ;;  %v771_v54 = vmul.f32 %v1615_v43, %v721_v50 }
 0x127   : > { %v659_v55 = vpop.f32.mrf.mxu0  ;;  %v723_v56 = vpop.f32.mrf.mxu1 }
 0x128   : > { %v1288_v57 = vpack.c.bf16 %v825_v51, %v824_v46  ;;  %v1328_v58 = vpack.c.bf16 %v841_v52, %v840_v48  ;;  %v794_v59 = vadd.f32 %v1621_v47, %v755_v53  ;;  %v810_v60 = vadd.f32 %v1621_v47, %v771_v54 }
 0x129   : > { %v660_v61 = vpop.f32.mrf.mxu0  ;;  %v724_v62 = vpop.f32.mrf.mxu1 }
 0x12a   : > { %1344 = vst [vmem:[%s1636_s29 + $0x28] sm:$0xff] %v1288_v57   ;;  %1352 = vst [vmem:[%s1636_s29 + $0x68] sm:$0xff] %v1328_v58   ;;  %v756_v63 = vmul.f32 %v1615_v43, %v660_v61  ;;  %v772_v0 = vmul.f32 %v1615_v43, %v724_v62  ;;  %v826_v5 = vmax.f32 %v794_v59, 0.0  ;;  %v842_v6 = vmax.f32 %v810_v60, 0.0 }
 0x12b   : > { %v662_v1 = vpop.f32.mrf.mxu0  ;;  %v726_v2 = vpop.f32.mrf.mxu1 }
 0x12c   : > { %v795_v3 = vadd.f32 %v1621_v47, %v756_v63  ;;  %v811_v4 = vadd.f32 %v1621_v47, %v772_v0 }
 0x12d   : > { %v665_v7 = vpop.f32.mrf.mxu0  ;;  %v729_v8 = vpop.f32.mrf.mxu1 }
 0x12e   : > { %v827_v9 = vmax.f32 %v795_v3, 0.0  ;;  %v843_v10 = vmax.f32 %v811_v4, 0.0  ;;  %v757_v11 = vmul.f32 %v1615_v43, %v665_v7  ;;  %v773_v12 = vmul.f32 %v1615_v43, %v729_v8 }
 0x12f   : > { %v667_v13 = vpop.f32.mrf.mxu0  ;;  %v731_v14 = vpop.f32.mrf.mxu1 }
 0x130   : > { %v1293_v15 = vpack.c.bf16 %v827_v9, %v826_v5  ;;  %v1333_v16 = vpack.c.bf16 %v843_v10, %v842_v6  ;;  %v796_v19 = vadd.f32 %v1621_v47, %v757_v11  ;;  %v812_v20 = vadd.f32 %v1621_v47, %v773_v12 }
 0x131   : > { %v668_v17 = vpop.f32.mrf.mxu0  ;;  %v732_v18 = vpop.f32.mrf.mxu1 }
 0x132   : > { %1345 = vst [vmem:[%s1636_s29 + $0x30] sm:$0xff] %v1293_v15   ;;  %1353 = vst [vmem:[%s1636_s29 + $0x70] sm:$0xff] %v1333_v16   ;;  %v758_v21 = vmul.f32 %v1615_v43, %v668_v17  ;;  %v774_v22 = vmul.f32 %v1615_v43, %v732_v18  ;;  %v828_v27 = vmax.f32 %v796_v19, 0.0  ;;  %v844_v28 = vmax.f32 %v812_v20, 0.0 }
 0x133   : > { %v670_v23 = vpop.f32.mrf.mxu0  ;;  %v734_v24 = vpop.f32.mrf.mxu1 }
 0x134   : > { %v797_v25 = vadd.f32 %v1621_v47, %v758_v21  ;;  %v813_v26 = vadd.f32 %v1621_v47, %v774_v22 }
 0x136   : > { %v829_v29 = vmax.f32 %v797_v25, 0.0  ;;  %v845_v30 = vmax.f32 %v813_v26, 0.0 }
 0x138   : > { %v1298_v31 = vpack.c.bf16 %v829_v29, %v828_v27  ;;  %v1338_v32 = vpack.c.bf16 %v845_v30, %v844_v28 }
 0x13a   : > { %1346 = vst [vmem:[%s1636_s29 + $0x38] sm:$0xff] %v1298_v31   ;;  %1354 = vst [vmem:[%s1636_s29 + $0x78] sm:$0xff] %v1338_v32  }
 0x13b PF: > { %s14_s17 = sadd.s32 1, %s1480_s17   ;;  %s1722_s15 = smov %s1476_s16 }
 0x13c   : > { %p11_p5 = scmp.ge.s32.totalorder %s14_s17, 4   ;;  %s1723_s16 = smov %s1725_s18 }
 0x13e   :  { %13 = sbr.rel (!%p11_p5) target bundleno = 2 (0x2), region = 75 }

// kernel: resnet101_forward.98
= control target key start
LH: loop header
LB: loop body
LE: loop exit
PB: predicated region body
PF: predicated region fallthrough
CT: control target
= control target key end

     0   :  { %v715_v1 = vmov 0   ;;  %v296_v25 = vlaneseq  ;;  %s1116_s1 = inlined_call_operand.vmem [shape: bf16[1,128,256], index: 1, kind: input, shape index: {}]   ;;  %s1117_s0 = inlined_call_operand.vmem [shape: bf16[128,128], index: 0, kind: input, shape index: {}]   ;;  %s1118_s2 = inlined_call_operand.vmem [shape: f32[1,256], index: 2, kind: input, shape index: {}]   ;;  %s1119_s3 = inlined_call_operand.vmem [shape: f32[1,256], index: 3, kind: input, shape index: {}]   ;;  %s1120_s4 = inlined_call_operand.vmem [shape: bf16[128,256], index: 4, kind: input, shape index: {}]   ;;  %s1121_s5 = inlined_call_operand.vmem [shape: bf16[128,256], index: 5, kind: output, shape index: {}]  }
   0x1   :  { %v683_v0 = vld [vmem:[%s1116_s1 + $0x74] ss:$8 sps:$4 sm:$0xff]   ;;  %213 = vmatprep.mubr.bf16.mxu0 %v715_v1  ;;  %253 = vmatprep.mubr.bf16.mxu1 %v715_v1  ;;  %v685_v2 = vld [vmem:[%s1116_s1 + $0x70] ss:$8 sps:$4 sm:$0xff]   ;;  %v686_v3 = vld [vmem:[%s1116_s1 + $0x64] ss:$8 sps:$4 sm:$0xff]  }
   0x2   :  { %181 = vmatprep.subr.bf16.mxu0 %v683_v0  ;;  %666 = vmatprep.subr.bf16.mxu1 %v683_v0  ;;  %v688_v4 = vld [vmem:[%s1116_s1 + $0x60] ss:$8 sps:$4 sm:$0xff]   ;;  %v689_v5 = vld [vmem:[%s1116_s1 + $0x54] ss:$8 sps:$4 sm:$0xff]   ;;  %v691_v6 = vld [vmem:[%s1116_s1 + $0x50] ss:$8 sps:$4 sm:$0xff]  }
   0x3   :  { %182 = vmatpush1.bf16.msra.mxu0 %v685_v2  ;;  %674 = vmatpush1.bf16.msra.mxu1 %v685_v2  ;;  %v692_v7 = vld [vmem:[%s1116_s1 + $0x44] ss:$8 sps:$4 sm:$0xff]   ;;  %v694_v8 = vld [vmem:[%s1116_s1 + $0x40] ss:$8 sps:$4 sm:$0xff]   ;;  %v695_v9 = vld [vmem:[%s1116_s1 + $0x34] ss:$8 sps:$4 sm:$0xff]  }
   0x4   :  { %183 = vmatprep.subr.bf16.mxu0 %v686_v3  ;;  %667 = vmatprep.subr.bf16.mxu1 %v686_v3  ;;  %v697_v10 = vld [vmem:[%s1116_s1 + $0x30] ss:$8 sps:$4 sm:$0xff]   ;;  %v698_v11 = vld [vmem:[%s1116_s1 + $0x24] ss:$8 sps:$4 sm:$0xff]   ;;  %v700_v12 = vld [vmem:[%s1116_s1 + $0x20] ss:$8 sps:$4 sm:$0xff]  }
   0x5   :  { %v701_v13 = vld [vmem:[%s1116_s1 + $0x14] ss:$8 sps:$4 sm:$0xff]   ;;  %v703_v14 = vld [vmem:[%s1116_s1 + $0x10] ss:$8 sps:$4 sm:$0xff]   ;;  %v704_v15 = vld [vmem:[%s1116_s1 + $0x4] ss:$8 sps:$4 sm:$0xff]  }
   0x6   :  { %v706_v16 = vld [vmem:[%s1116_s1] ss:$8 sps:$4 sm:$0xff]   ;;  %v711_v21 = vld [vmem:[%s1117_s0 + $0x10] sm:$0xff]   ;;  %v713_v23 = vld [vmem:[%s1117_s0 + $0x18] sm:$0xff]   ;;  %v297_v26 = vshrl.u32 %v296_v25, 7 }
   0x7   :  { %184 = vmatpush1.bf16.msra.mxu0 %v688_v4  ;;  %675 = vmatpush1.bf16.msra.mxu1 %v688_v4  ;;  %v707_v17 = vld [vmem:[%s1117_s0] sm:$0xff]   ;;  %v709_v19 = vld [vmem:[%s1117_s0 + $0x8] sm:$0xff]   ;;  %v712_v22 = vld [vmem:[%s1117_s0 + $0x30] sm:$0xff]  }
   0x8   :  { %185 = vmatprep.subr.bf16.mxu0 %v689_v5  ;;  %668 = vmatprep.subr.bf16.mxu1 %v689_v5  ;;  %v708_v18 = vld [vmem:[%s1117_s0 + $0x20] sm:$0xff]   ;;  %v710_v20 = vld [vmem:[%s1117_s0 + $0x28] sm:$0xff]   ;;  %v714_v24 = vld [vmem:[%s1117_s0 + $0x38] sm:$0xff]   ;;  %v298_v27 = vsub.s32 0, %v297_v26  ;;  %v302_v30 = vsub.s32 1, %v297_v26 }
   0x9   :  { %v294_v28 = vld [vmem:[%s1118_s2] sm:$0x3]  ;;  %v845_v33 = vld [vmem:[%s1120_s4 + $0x8] sm:$0xff]  ;;  %v859_v37 = vld [vmem:[%s1120_s4 + $0x10] sm:$0xff] }
   0xa   :  { %v338_v29 = vld [vmem:[%s1119_s3] sm:$0x3]  ;;  %v850_v34 = vld [vmem:[%s1120_s4 + $0x48] sm:$0xff]  ;;  %v852_v35 = vrot.slane %v294_v28, %v298_v27  ;;  %v864_v38 = vld [vmem:[%s1120_s4 + $0x50] sm:$0xff]  ;;  %v868_v41 = vrot.slane %v294_v28, %v302_v30  ;;  %v400_v47 = vunpack.c.l.bf16 %v845_v33  ;;  %v401_v51 = vunpack.c.h.bf16 %v845_v33 }
   0xb   :  { %186 = vmatpush1.bf16.msra.mxu0 %v691_v6  ;;  %676 = vmatpush1.bf16.msra.mxu1 %v691_v6  ;;  %v835_v31 = vld [vmem:[%s1120_s4] sm:$0xff]  ;;  %v854_v36 = vrot.slane %v338_v29, %v298_v27  ;;  %v870_v42 = vrot.slane %v338_v29, %v302_v30  ;;  %v875_v43 = vld [vmem:[%s1120_s4 + $0x18] sm:$0xff]  ;;  %v416_v48 = vunpack.c.l.bf16 %v850_v34  ;;  %v417_v52 = vunpack.c.h.bf16 %v850_v34  ;;  %v907_v59 = vld [vmem:[%s1120_s4 + $0x28] sm:$0xff] }
   0xc   :  { %187 = vmatprep.subr.bf16.mxu0 %v692_v7  ;;  %669 = vmatprep.subr.bf16.mxu1 %v692_v7  ;;  %v840_v32 = vld [vmem:[%s1120_s4 + $0x40] sm:$0xff]  ;;  %v398_v39 = vunpack.c.l.bf16 %v835_v31  ;;  %v880_v44 = vld [vmem:[%s1120_s4 + $0x58] sm:$0xff]  ;;  %v399_v45 = vunpack.c.h.bf16 %v835_v31  ;;  %v402_v53 = vunpack.c.l.bf16 %v859_v37  ;;  %v418_v54 = vunpack.c.l.bf16 %v864_v38  ;;  %v912_v60 = vld [vmem:[%s1120_s4 + $0x68] sm:$0xff] }
   0xd   :  { %v414_v40 = vunpack.c.l.bf16 %v840_v32  ;;  %v415_v46 = vunpack.c.h.bf16 %v840_v32  ;;  %v889_v49 = vld [vmem:[%s1120_s4 + $0x20] sm:$0xff]  ;;  %v403_v55 = vunpack.c.h.bf16 %v859_v37  ;;  %v419_v56 = vunpack.c.h.bf16 %v864_v38  ;;  %v925_v7 = vld [vmem:[%s1120_s4 + $0x30] sm:$0xff] }
   0xe   :  { %v894_v50 = vld [vmem:[%s1120_s4 + $0x60] sm:$0xff]  ;;  %v404_v57 = vunpack.c.l.bf16 %v875_v43  ;;  %v420_v58 = vunpack.c.l.bf16 %v880_v44  ;;  %v405_v63 = vunpack.c.h.bf16 %v875_v43  ;;  %v421_v0 = vunpack.c.h.bf16 %v880_v44 }
   0xf   :  { %188 = vmatpush1.bf16.msra.mxu0 %v694_v8  ;;  %677 = vmatpush1.bf16.msra.mxu1 %v694_v8  ;;  %v422_v2 = vunpack.c.l.bf16 %v894_v50  ;;  %v407_v5 = vunpack.c.h.bf16 %v889_v49  ;;  %v423_v6 = vunpack.c.h.bf16 %v894_v50  ;;  %v930_v8 = vld [vmem:[%s1120_s4 + $0x70] sm:$0xff] }
  0x10   :  { %189 = vmatprep.subr.bf16.mxu0 %v695_v9  ;;  %670 = vmatprep.subr.bf16.mxu1 %v695_v9 }
  0x13   :  { %190 = vmatpush1.bf16.msra.mxu0 %v697_v10  ;;  %678 = vmatpush1.bf16.msra.mxu1 %v697_v10 }
  0x14   :  { %191 = vmatprep.subr.bf16.mxu0 %v698_v11  ;;  %671 = vmatprep.subr.bf16.mxu1 %v698_v11  ;;  %v408_v11 = vunpack.c.l.bf16 %v907_v59 }
  0x17   :  { %192 = vmatpush1.bf16.msra.mxu0 %v700_v12  ;;  %679 = vmatpush1.bf16.msra.mxu1 %v700_v12  ;;  %v424_v12 = vunpack.c.l.bf16 %v912_v60 }
  0x18   :  { %193 = vmatprep.subr.bf16.mxu0 %v701_v13  ;;  %672 = vmatprep.subr.bf16.mxu1 %v701_v13  ;;  %v409_v13 = vunpack.c.h.bf16 %v907_v59 }
  0x1b   :  { %194 = vmatpush1.bf16.msra.mxu0 %v703_v14  ;;  %680 = vmatpush1.bf16.msra.mxu1 %v703_v14  ;;  %v425_v14 = vunpack.c.h.bf16 %v912_v60 }
  0x1c   :  { %195 = vmatprep.subr.bf16.mxu0 %v704_v15  ;;  %673 = vmatprep.subr.bf16.mxu1 %v704_v15 }
  0x1f   :  { %196 = vmatpush1.bf16.msra.mxu0 %v706_v16  ;;  %681 = vmatpush1.bf16.msra.mxu1 %v706_v16 }
  0x22   :  { %214 = vmatmul.mubr.bf16.vlgmr.msra.gmra.mxu0 %v707_v17  ;;  %254 = vmatmul.mubr.bf16.vlgmr.msra.gmra.mxu1 %v708_v18 }
  0x23   :  { %223 = vmatprep.mubr.bf16.mxu0 %v715_v1  ;;  %263 = vmatprep.mubr.bf16.mxu1 %v715_v1 }
  0x2a   :  { %224 = vmatmul.mubr.bf16.gmra.mxu0 %v709_v19  ;;  %264 = vmatmul.mubr.bf16.gmra.mxu1 %v710_v20  ;;  %v943_v19 = vld [vmem:[%s1120_s4 + $0x38] sm:$0xff] }
  0x2b   :  { %233 = vmatprep.mubr.bf16.mxu0 %v715_v1  ;;  %273 = vmatprep.mubr.bf16.mxu1 %v715_v1  ;;  %v948_v20 = vld [vmem:[%s1120_s4 + $0x78] sm:$0xff] }
  0x32   :  { %234 = vmatmul.mubr.bf16.gmra.mxu0 %v711_v21  ;;  %274 = vmatmul.mubr.bf16.gmra.mxu1 %v712_v22 }
  0x33   :  { %243 = vmatprep.mubr.bf16.mxu0 %v715_v1  ;;  %283 = vmatprep.mubr.bf16.mxu1 %v715_v1  ;;  %v406_v1 = vunpack.c.l.bf16 %v889_v49 }
  0x3a   :  { %244 = vmatmul.mubr.bf16.gmra.mxu0 %v713_v23  ;;  %284 = vmatmul.mubr.bf16.gmra.mxu1 %v714_v24  ;;  %v410_v23 = vunpack.c.l.bf16 %v925_v7  ;;  %v426_v24 = vunpack.c.l.bf16 %v930_v8 }
  0xe2   :  { %v215_v61 = vpop.f32.mrf.mxu0  ;;  %v255_v62 = vpop.f32.mrf.mxu1 }
  0xe3   :  { %v306_v3 = vmul.f32 %v852_v35, %v215_v61  ;;  %v322_v4 = vmul.f32 %v852_v35, %v255_v62 }
  0xe4   :  { %v217_v9 = vpop.f32.mrf.mxu0  ;;  %v257_v10 = vpop.f32.mrf.mxu1 }
  0xe5   :  { %v350_v15 = vadd.f32 %v854_v36, %v306_v3  ;;  %v366_v16 = vadd.f32 %v854_v36, %v322_v4  ;;  %v307_v17 = vmul.f32 %v868_v41, %v217_v9  ;;  %v323_v18 = vmul.f32 %v868_v41, %v257_v10 }
  0xe6   :  { %v219_v21 = vpop.f32.mrf.mxu0  ;;  %v259_v22 = vpop.f32.mrf.mxu1 }
  0xe7   :  { %v430_v27 = vadd.f32 %v398_v39, %v350_v15  ;;  %v446_v28 = vadd.f32 %v414_v40, %v366_v16  ;;  %v351_v29 = vadd.f32 %v870_v42, %v307_v17  ;;  %v367_v30 = vadd.f32 %v870_v42, %v323_v18 }
  0xe8   :  { %v308_v31 = vmul.f32 %v852_v35, %v219_v21  ;;  %v324_v32 = vmul.f32 %v852_v35, %v259_v22  ;;  %v221_v61 = vpop.f32.mrf.mxu0  ;;  %v261_v62 = vpop.f32.mrf.mxu1 }
  0xe9   :  { %v462_v9 = vmax.f32 %v430_v27, 0.0  ;;  %v478_v10 = vmax.f32 %v446_v28, 0.0  ;;  %v431_v25 = vadd.f32 %v399_v45, %v351_v29  ;;  %v447_v26 = vadd.f32 %v415_v46, %v367_v30 }
  0xea   :  { %v352_v39 = vadd.f32 %v854_v36, %v308_v31  ;;  %v368_v40 = vadd.f32 %v854_v36, %v324_v32  ;;  %v309_v15 = vmul.f32 %v868_v41, %v221_v61  ;;  %v325_v16 = vmul.f32 %v868_v41, %v261_v62  ;;  %v225_v17 = vpop.f32.mrf.mxu0  ;;  %v265_v18 = vpop.f32.mrf.mxu1 }
  0xeb   :  { %v463_v21 = vmax.f32 %v431_v25, 0.0  ;;  %v479_v22 = vmax.f32 %v447_v26, 0.0  ;;  %v310_v3 = vmul.f32 %v852_v35, %v225_v17  ;;  %v326_v4 = vmul.f32 %v852_v35, %v265_v18 }
  0xec   :  { %v432_v45 = vadd.f32 %v400_v47, %v352_v39  ;;  %v448_v46 = vadd.f32 %v416_v48, %v368_v40  ;;  %v353_v27 = vadd.f32 %v870_v42, %v309_v15  ;;  %v369_v28 = vadd.f32 %v870_v42, %v325_v16  ;;  %v227_v29 = vpop.f32.mrf.mxu0  ;;  %v267_v30 = vpop.f32.mrf.mxu1 }
  0xed   :  { %v650_v31 = vpack.c.bf16 %v463_v21, %v462_v9  ;;  %v658_v32 = vpack.c.bf16 %v479_v22, %v478_v10  ;;  %v354_v25 = vadd.f32 %v854_v36, %v310_v3  ;;  %v370_v26 = vadd.f32 %v854_v36, %v326_v4 }
  0xee   :  { %v464_v61 = vmax.f32 %v432_v45, 0.0  ;;  %v480_v62 = vmax.f32 %v448_v46, 0.0  ;;  %v433_v47 = vadd.f32 %v401_v51, %v353_v27  ;;  %v449_v48 = vadd.f32 %v417_v52, %v369_v28  ;;  %v229_v39 = vpop.f32.mrf.mxu0  ;;  %v269_v40 = vpop.f32.mrf.mxu1 }
  0xef   :  { %590 = vst [vmem:[%s1121_s5] sm:$0xff] %v650_v31  ;;  %598 = vst [vmem:[%s1121_s5 + $0x40] sm:$0xff] %v658_v32  ;;  %v434_v3 = vadd.f32 %v402_v53, %v354_v25  ;;  %v450_v33 = vadd.f32 %v418_v54, %v370_v26  ;;  %v311_v51 = vmul.f32 %v868_v41, %v227_v29 }
  0xf0   :  { %v327_v34 = vmul.f32 %v868_v41, %v267_v30  ;;  %v465_v52 = vmax.f32 %v433_v47, 0.0  ;;  %v481_v4 = vmax.f32 %v449_v48, 0.0  ;;  %v312_v9 = vmul.f32 %v852_v35, %v229_v39  ;;  %v231_v15 = vpop.f32.mrf.mxu0  ;;  %v271_v16 = vpop.f32.mrf.mxu1 }
  0xf1   :  { %v328_v10 = vmul.f32 %v852_v35, %v269_v40  ;;  %v466_v17 = vmax.f32 %v434_v3, 0.0  ;;  %v482_v18 = vmax.f32 %v450_v33, 0.0  ;;  %v355_v21 = vadd.f32 %v870_v42, %v311_v51 }
  0xf2   :  { %v371_v53 = vadd.f32 %v870_v42, %v327_v34  ;;  %v651_v22 = vpack.c.bf16 %v465_v52, %v464_v61  ;;  %v659_v54 = vpack.c.bf16 %v481_v4, %v480_v62  ;;  %v356_v45 = vadd.f32 %v854_v36, %v312_v9  ;;  %v235_v27 = vpop.f32.mrf.mxu0  ;;  %v275_v28 = vpop.f32.mrf.mxu1 }
  0xf3   :  { %v372_v46 = vadd.f32 %v854_v36, %v328_v10  ;;  %v435_v29 = vadd.f32 %v403_v55, %v355_v21  ;;  %v313_v31 = vmul.f32 %v868_v41, %v231_v15  ;;  %v329_v32 = vmul.f32 %v868_v41, %v271_v16 }
  0xf4   :  { %v451_v30 = vadd.f32 %v419_v56, %v371_v53  ;;  %591 = vst [vmem:[%s1121_s5 + $0x8] sm:$0xff] %v651_v22  ;;  %599 = vst [vmem:[%s1121_s5 + $0x48] sm:$0xff] %v659_v54  ;;  %v436_v25 = vadd.f32 %v404_v57, %v356_v45  ;;  %v314_v38 = vmul.f32 %v852_v35, %v235_v27  ;;  %v237_v56 = vpop.f32.mrf.mxu0  ;;  %v277_v26 = vpop.f32.mrf.mxu1 }
  0xf5   :  { %v452_v37 = vadd.f32 %v420_v58, %v372_v46  ;;  %v330_v55 = vmul.f32 %v852_v35, %v275_v28  ;;  %v467_v61 = vmax.f32 %v435_v29, 0.0  ;;  %v357_v47 = vadd.f32 %v870_v42, %v313_v31 }
  0xf6   :  { %v483_v62 = vmax.f32 %v451_v30, 0.0  ;;  %v373_v48 = vadd.f32 %v870_v42, %v329_v32  ;;  %v468_v39 = vmax.f32 %v436_v25, 0.0  ;;  %v358_v3 = vadd.f32 %v854_v36, %v314_v38  ;;  %v239_v33 = vpop.f32.mrf.mxu0  ;;  %v279_v58 = vpop.f32.mrf.mxu1 }
  0xf7   :  { %v484_v40 = vmax.f32 %v452_v37, 0.0  ;;  %v374_v57 = vadd.f32 %v854_v36, %v330_v55  ;;  %v652_v51 = vpack.c.bf16 %v467_v61, %v466_v17  ;;  %v437_v52 = vadd.f32 %v405_v63, %v357_v47 }
  0xf8   :  { %v660_v34 = vpack.c.bf16 %v483_v62, %v482_v18  ;;  %v453_v4 = vadd.f32 %v421_v0, %v373_v48  ;;  %v438_v9 = vadd.f32 %v406_v1, %v358_v3  ;;  %v315_v15 = vmul.f32 %v868_v41, %v237_v56  ;;  %v241_v21 = vpop.f32.mrf.mxu0  ;;  %v281_v53 = vpop.f32.mrf.mxu1 }
  0xf9   :  { %v454_v10 = vadd.f32 %v422_v2, %v374_v57  ;;  %v331_v16 = vmul.f32 %v868_v41, %v277_v26  ;;  %592 = vst [vmem:[%s1121_s5 + $0x10] sm:$0xff] %v652_v51  ;;  %v469_v43 = vmax.f32 %v437_v52, 0.0  ;;  %v316_v63 = vmul.f32 %v852_v35, %v239_v33 }
  0xfa   :  { %600 = vst [vmem:[%s1121_s5 + $0x50] sm:$0xff] %v660_v34  ;;  %v485_v44 = vmax.f32 %v453_v4, 0.0  ;;  %v332_v0 = vmul.f32 %v852_v35, %v279_v58  ;;  %v470_v1 = vmax.f32 %v438_v9, 0.0  ;;  %v359_v17 = vadd.f32 %v870_v42, %v315_v15  ;;  %v245_v22 = vpop.f32.mrf.mxu0  ;;  %v285_v54 = vpop.f32.mrf.mxu1 }
  0xfb   :  { %v486_v2 = vmax.f32 %v454_v10, 0.0  ;;  %v375_v18 = vadd.f32 %v870_v42, %v331_v16  ;;  %v653_v45 = vpack.c.bf16 %v469_v43, %v468_v39  ;;  %v360_v27 = vadd.f32 %v854_v36, %v316_v63 }
  0xfc   :  { %v661_v46 = vpack.c.bf16 %v485_v44, %v484_v40  ;;  %v376_v28 = vadd.f32 %v854_v36, %v332_v0  ;;  %v439_v29 = vadd.f32 %v407_v5, %v359_v17  ;;  %v317_v31 = vmul.f32 %v868_v41, %v241_v21  ;;  %v247_v25 = vpop.f32.mrf.mxu0  ;;  %v287_v37 = vpop.f32.mrf.mxu1 }
  0xfd   :  { %v455_v30 = vadd.f32 %v423_v6, %v375_v18  ;;  %v333_v32 = vmul.f32 %v868_v41, %v281_v53  ;;  %593 = vst [vmem:[%s1121_s5 + $0x18] sm:$0xff] %v653_v45  ;;  %v440_v49 = vadd.f32 %v408_v11, %v360_v27  ;;  %v318_v5 = vmul.f32 %v852_v35, %v245_v22 }
  0xfe   :  { %601 = vst [vmem:[%s1121_s5 + $0x58] sm:$0xff] %v661_v46  ;;  %v456_v50 = vadd.f32 %v424_v12, %v376_v28  ;;  %v334_v6 = vmul.f32 %v852_v35, %v285_v54  ;;  %v471_v38 = vmax.f32 %v439_v29, 0.0  ;;  %v361_v56 = vadd.f32 %v870_v42, %v317_v31  ;;  %v249_v61 = vpop.f32.mrf.mxu0  ;;  %v289_v62 = vpop.f32.mrf.mxu1 }
  0xff   :  { %v487_v55 = vmax.f32 %v455_v30, 0.0  ;;  %v377_v26 = vadd.f32 %v870_v42, %v333_v32  ;;  %v472_v47 = vmax.f32 %v440_v49, 0.0  ;;  %v362_v39 = vadd.f32 %v854_v36, %v318_v5 }
 0x100   :  { %v488_v48 = vmax.f32 %v456_v50, 0.0  ;;  %v378_v11 = vadd.f32 %v854_v36, %v334_v6  ;;  %v654_v40 = vpack.c.bf16 %v471_v38, %v470_v1  ;;  %v441_v3 = vadd.f32 %v409_v13, %v361_v56 }
 0x101   :  { %v662_v12 = vpack.c.bf16 %v487_v55, %v486_v2  ;;  %v457_v57 = vadd.f32 %v425_v14, %v377_v26  ;;  %v442_v33 = vadd.f32 %v410_v23, %v362_v39  ;;  %v319_v51 = vmul.f32 %v868_v41, %v247_v25  ;;  %v251_v23 = vpop.f32.mrf.mxu0 }
 0x102   :  { %v458_v58 = vadd.f32 %v426_v24, %v378_v11  ;;  %v335_v34 = vmul.f32 %v868_v41, %v287_v37  ;;  %594 = vst [vmem:[%s1121_s5 + $0x20] sm:$0xff] %v654_v40  ;;  %v473_v59 = vmax.f32 %v441_v3, 0.0  ;;  %v320_v13 = vmul.f32 %v852_v35, %v249_v61  ;;  %v291_v24 = vpop.f32.mrf.mxu1 }
 0x103   :  { %602 = vst [vmem:[%s1121_s5 + $0x60] sm:$0xff] %v662_v12  ;;  %v489_v60 = vmax.f32 %v457_v57, 0.0  ;;  %v336_v14 = vmul.f32 %v852_v35, %v289_v62  ;;  %v363_v52 = vadd.f32 %v870_v42, %v319_v51  ;;  %v413_v9 = vunpack.c.h.bf16 %v943_v19 }
 0x104   :  { %v379_v4 = vadd.f32 %v870_v42, %v335_v34  ;;  %v429_v10 = vunpack.c.h.bf16 %v948_v20  ;;  %v655_v15 = vpack.c.bf16 %v473_v59, %v472_v47  ;;  %v364_v21 = vadd.f32 %v854_v36, %v320_v13 }
 0x105   :  { %v663_v16 = vpack.c.bf16 %v489_v60, %v488_v48  ;;  %v380_v53 = vadd.f32 %v854_v36, %v336_v14  ;;  %v1122_v43 = vunpack.c.h.bf16 %v925_v7  ;;  %v1123_v35 = vunpack.c.h.bf16 %v930_v8 }
 0x106   :  { %v321_v0 = vmul.f32 %v868_v41, %v251_v23  ;;  %v337_v1 = vmul.f32 %v868_v41, %v291_v24  ;;  %595 = vst [vmem:[%s1121_s5 + $0x28] sm:$0xff] %v655_v15  ;;  %v474_v2 = vmax.f32 %v442_v33, 0.0  ;;  %v490_v36 = vmax.f32 %v458_v58, 0.0 }
 0x107   :  { %v443_v44 = vadd.f32 %v1122_v43, %v363_v52  ;;  %v459_v63 = vadd.f32 %v1123_v35, %v379_v4  ;;  %603 = vst [vmem:[%s1121_s5 + $0x68] sm:$0xff] %v663_v16  ;;  %v1124_v7 = vunpack.c.l.bf16 %v943_v19  ;;  %v1125_v8 = vunpack.c.l.bf16 %v948_v20 }
 0x108   :  { %v365_v41 = vadd.f32 %v870_v42, %v321_v0  ;;  %v381_v45 = vadd.f32 %v870_v42, %v337_v1 }
 0x109   :  { %v444_v17 = vadd.f32 %v1124_v7, %v364_v21  ;;  %v460_v18 = vadd.f32 %v1125_v8, %v380_v53  ;;  %v475_v22 = vmax.f32 %v443_v44, 0.0  ;;  %v491_v54 = vmax.f32 %v459_v63, 0.0 }
 0x10a   :  { %v445_v28 = vadd.f32 %v413_v9, %v365_v41  ;;  %v461_v29 = vadd.f32 %v429_v10, %v381_v45 }
 0x10b   :  { %v656_v46 = vpack.c.bf16 %v475_v22, %v474_v2  ;;  %v664_v27 = vpack.c.bf16 %v491_v54, %v490_v36  ;;  %v476_v19 = vmax.f32 %v444_v17, 0.0  ;;  %v492_v20 = vmax.f32 %v460_v18, 0.0 }
 0x10c   :  { %v477_v30 = vmax.f32 %v445_v28, 0.0  ;;  %v493_v31 = vmax.f32 %v461_v29, 0.0 }
 0x10d   :  { %596 = vst [vmem:[%s1121_s5 + $0x30] sm:$0xff] %v656_v46  ;;  %604 = vst [vmem:[%s1121_s5 + $0x70] sm:$0xff] %v664_v27 }
 0x10e   :  { %v657_v32 = vpack.c.bf16 %v477_v30, %v476_v19  ;;  %v665_v25 = vpack.c.bf16 %v493_v31, %v492_v20 }
 0x110   :  { %597 = vst [vmem:[%s1121_s5 + $0x38] sm:$0xff] %v657_v32  ;;  %605 = vst [vmem:[%s1121_s5 + $0x78] sm:$0xff] %v665_v25 }

// kernel: resnet101_forward.99
= control target key start
LH: loop header
LB: loop body
LE: loop exit
PB: predicated region body
PF: predicated region fallthrough
CT: control target
= control target key end

     0   :  { %s905_s1 = inlined_call_operand.vmem [shape: bf16[1,256,128], index: 1, kind: input, shape index: {}]   ;;  %s906_s0 = inlined_call_operand.vmem [shape: bf16[128,256], index: 0, kind: input, shape index: {}]   ;;  %s907_s2 = inlined_call_operand.vmem [shape: f32[1,128], index: 2, kind: input, shape index: {}]   ;;  %s908_s3 = inlined_call_operand.vmem [shape: f32[1,128], index: 3, kind: input, shape index: {}]   ;;  %s909_s4 = inlined_call_operand.vmem [shape: bf16[128,128], index: 4, kind: output, shape index: {}]  }
   0x1   :  { %v678_v0 = vld [vmem:[%s905_s1 + $0x78] sm:$0xff]   ;;  %v680_v2 = vld [vmem:[%s905_s1 + $0x70] sm:$0xff]   ;;  %v682_v4 = vld [vmem:[%s905_s1 + $0x68] sm:$0xff]  }
   0x2   :  { %v679_v1 = vld [vmem:[%s905_s1 + $0x38] sm:$0xff]   ;;  %598 = vmatprep.subr.bf16.mxu0 %v678_v0  ;;  %662 = vmatprep.subr.bf16.mxu1 %v678_v0  ;;  %v681_v3 = vld [vmem:[%s905_s1 + $0x30] sm:$0xff]   ;;  %v683_v5 = vld [vmem:[%s905_s1 + $0x28] sm:$0xff]  }
   0x3   :  { %599 = vmatpush3.bf16.msra.mxu0 %v679_v1  ;;  %670 = vmatpush3.bf16.msra.mxu1 %v679_v1  ;;  %v684_v6 = vld [vmem:[%s905_s1 + $0x60] sm:$0xff]   ;;  %v686_v8 = vld [vmem:[%s905_s1 + $0x58] sm:$0xff]   ;;  %v688_v10 = vld [vmem:[%s905_s1 + $0x50] sm:$0xff]  }
   0x4   :  { %600 = vmatprep.subr.bf16.mxu0 %v680_v2  ;;  %663 = vmatprep.subr.bf16.mxu1 %v680_v2  ;;  %v685_v7 = vld [vmem:[%s905_s1 + $0x20] sm:$0xff]   ;;  %v687_v9 = vld [vmem:[%s905_s1 + $0x18] sm:$0xff]   ;;  %v689_v13 = vld [vmem:[%s905_s1 + $0x10] sm:$0xff]  }
   0x5   :  { %v696_v11 = vld [vmem:[%s906_s0 + $0x4] ss:$8 sps:$4 sm:$0xff]   ;;  %v694_v18 = vld [vmem:[%s906_s0] ss:$8 sps:$4 sm:$0xff]   ;;  %v700_v20 = vld [vmem:[%s906_s0 + $0x14] ss:$8 sps:$4 sm:$0xff]  }
   0x6   :  { %v699_v12 = vld [vmem:[%s906_s0 + $0x44] ss:$8 sps:$4 sm:$0xff]   ;;  %274 = vmatprep.mubr.bf16.mxu0 %v696_v11  ;;  %v697_v19 = vld [vmem:[%s906_s0 + $0x40] ss:$8 sps:$4 sm:$0xff]   ;;  %v702_v21 = vld [vmem:[%s906_s0 + $0x54] ss:$8 sps:$4 sm:$0xff]  }
   0x7   :  { %601 = vmatpush3.bf16.msra.mxu0 %v681_v3  ;;  %671 = vmatpush3.bf16.msra.mxu1 %v681_v3  ;;  %v690_v14 = vld [vmem:[%s905_s1 + $0x48] sm:$0xff]   ;;  %v692_v16 = vld [vmem:[%s905_s1 + $0x40] sm:$0xff]   ;;  %v704_v22 = vld [vmem:[%s906_s0 + $0x10] ss:$8 sps:$4 sm:$0xff]  }
   0x8   :  { %602 = vmatprep.subr.bf16.mxu0 %v682_v4  ;;  %664 = vmatprep.subr.bf16.mxu1 %v682_v4  ;;  %v691_v15 = vld [vmem:[%s905_s1 + $0x8] sm:$0xff]   ;;  %v693_v17 = vld [vmem:[%s905_s1] sm:$0xff]   ;;  %v705_v23 = vld [vmem:[%s906_s0 + $0x50] ss:$8 sps:$4 sm:$0xff]  }
   0x9   :  { %306 = vmatprep.mubr.bf16.mxu1 %v699_v12  ;;  %v706_v24 = vld [vmem:[%s906_s0 + $0x24] ss:$8 sps:$4 sm:$0xff]   ;;  %v710_v26 = vld [vmem:[%s906_s0 + $0x20] ss:$8 sps:$4 sm:$0xff]   ;;  %v712_v28 = vld [vmem:[%s906_s0 + $0x34] ss:$8 sps:$4 sm:$0xff]  }
   0xa   :  { %v708_v25 = vld [vmem:[%s906_s0 + $0x64] ss:$8 sps:$4 sm:$0xff]   ;;  %v711_v27 = vld [vmem:[%s906_s0 + $0x60] ss:$8 sps:$4 sm:$0xff]   ;;  %v714_v29 = vld [vmem:[%s906_s0 + $0x74] ss:$8 sps:$4 sm:$0xff]  }
   0xb   :  { %603 = vmatpush3.bf16.msra.mxu0 %v683_v5  ;;  %672 = vmatpush3.bf16.msra.mxu1 %v683_v5  ;;  %v716_v30 = vld [vmem:[%s906_s0 + $0x30] ss:$8 sps:$4 sm:$0xff]   ;;  %v842_v35 = vld [vmem:[%s907_s2] ss:$0 sm:$0xff] }
   0xc   :  { %604 = vmatprep.subr.bf16.mxu0 %v684_v6  ;;  %665 = vmatprep.subr.bf16.mxu1 %v684_v6  ;;  %v717_v31 = vld [vmem:[%s906_s0 + $0x70] ss:$8 sps:$4 sm:$0xff]   ;;  %v849_v43 = vld [vmem:[%s908_s3] ss:$0 sm:$0xff] }
   0xf   :  { %605 = vmatpush3.bf16.msra.mxu0 %v685_v7  ;;  %673 = vmatpush3.bf16.msra.mxu1 %v685_v7 }
  0x10   :  { %606 = vmatprep.subr.bf16.mxu0 %v686_v8  ;;  %666 = vmatprep.subr.bf16.mxu1 %v686_v8 }
  0x13   :  { %607 = vmatpush3.bf16.msra.mxu0 %v687_v9  ;;  %674 = vmatpush3.bf16.msra.mxu1 %v687_v9 }
  0x14   :  { %608 = vmatprep.subr.bf16.mxu0 %v688_v10  ;;  %667 = vmatprep.subr.bf16.mxu1 %v688_v10 }
  0x17   :  { %609 = vmatpush3.bf16.msra.mxu0 %v689_v13  ;;  %675 = vmatpush3.bf16.msra.mxu1 %v689_v13 }
  0x18   :  { %610 = vmatprep.subr.bf16.mxu0 %v690_v14  ;;  %668 = vmatprep.subr.bf16.mxu1 %v690_v14 }
  0x1b   :  { %611 = vmatpush3.bf16.msra.mxu0 %v691_v15  ;;  %676 = vmatpush3.bf16.msra.mxu1 %v691_v15 }
  0x1c   :  { %612 = vmatprep.subr.bf16.mxu0 %v692_v16  ;;  %669 = vmatprep.subr.bf16.mxu1 %v692_v16 }
  0x1f   :  { %613 = vmatpush3.bf16.msra.mxu0 %v693_v17  ;;  %677 = vmatpush3.bf16.msra.mxu1 %v693_v17 }
  0x22   :  { %275 = vmatmul.mubr.bf16.vlgmr.msra.gmra.mxu0 %v694_v18  ;;  %307 = vmatmul.mubr.bf16.vlgmr.msra.gmra.mxu1 %v697_v19 }
  0x23   :  { %282 = vmatprep.mubr.bf16.mxu0 %v700_v20  ;;  %314 = vmatprep.mubr.bf16.mxu1 %v702_v21 }
  0x2a   :  { %283 = vmatmul.mubr.bf16.gmra.mxu0 %v704_v22  ;;  %315 = vmatmul.mubr.bf16.gmra.mxu1 %v705_v23 }
  0x2b   :  { %290 = vmatprep.mubr.bf16.mxu0 %v706_v24  ;;  %322 = vmatprep.mubr.bf16.mxu1 %v708_v25 }
  0x32   :  { %291 = vmatmul.mubr.bf16.gmra.mxu0 %v710_v26  ;;  %323 = vmatmul.mubr.bf16.gmra.mxu1 %v711_v27 }
  0x33   :  { %298 = vmatprep.mubr.bf16.mxu0 %v712_v28  ;;  %330 = vmatprep.mubr.bf16.mxu1 %v714_v29 }
  0x3a   :  { %299 = vmatmul.mubr.bf16.gmra.mxu0 %v716_v30  ;;  %331 = vmatmul.mubr.bf16.gmra.mxu1 %v717_v31 }
  0xe2   :  { %v614_v32 = vpop.f32.mrf.mxu0  ;;  %v638_v33 = vpop.f32.mrf.mxu1 }
  0xe4   :  { %v615_v34 = vpop.f32.mrf.mxu0  ;;  %v639_v36 = vpop.f32.mrf.mxu1 }
  0xe5   :  { %v616_v37 = vadd.f32 %v615_v34, %v614_v32  ;;  %v640_v38 = vadd.f32 %v639_v36, %v638_v33 }
  0xe6   :  { %v617_v39 = vpop.f32.mrf.mxu0  ;;  %v641_v40 = vpop.f32.mrf.mxu1 }
  0xe7   :  { %v346_v41 = vmul.f32 %v616_v37, %v842_v35  ;;  %v354_v42 = vmul.f32 %v640_v38, %v842_v35 }
  0xe8   :  { %v618_v44 = vpop.f32.mrf.mxu0  ;;  %v642_v45 = vpop.f32.mrf.mxu1 }
  0xe9   :  { %v619_v46 = vadd.f32 %v618_v44, %v617_v39  ;;  %v643_v47 = vadd.f32 %v642_v45, %v641_v40  ;;  %v369_v50 = vadd.f32 %v849_v43, %v346_v41  ;;  %v377_v51 = vadd.f32 %v849_v43, %v354_v42 }
  0xea   :  { %v620_v48 = vpop.f32.mrf.mxu0  ;;  %v644_v49 = vpop.f32.mrf.mxu1 }
  0xeb   :  { %v347_v52 = vmul.f32 %v619_v46, %v842_v35  ;;  %v355_v53 = vmul.f32 %v643_v47, %v842_v35  ;;  %v385_v62 = vmax.f32 %v369_v50, 0.0  ;;  %v393_v63 = vmax.f32 %v377_v51, 0.0 }
  0xec   :  { %v621_v54 = vpop.f32.mrf.mxu0  ;;  %v645_v55 = vpop.f32.mrf.mxu1 }
  0xed   :  { %v370_v56 = vadd.f32 %v849_v43, %v347_v52  ;;  %v378_v57 = vadd.f32 %v849_v43, %v355_v53  ;;  %v622_v58 = vadd.f32 %v621_v54, %v620_v48  ;;  %v646_v59 = vadd.f32 %v645_v55, %v644_v49 }
  0xee   :  { %v623_v60 = vpop.f32.mrf.mxu0  ;;  %v647_v61 = vpop.f32.mrf.mxu1 }
  0xef   :  { %v386_v0 = vmax.f32 %v370_v56, 0.0  ;;  %v394_v1 = vmax.f32 %v378_v57, 0.0  ;;  %v348_v2 = vmul.f32 %v622_v58, %v842_v35  ;;  %v356_v3 = vmul.f32 %v646_v59, %v842_v35 }
  0xf0   :  { %v624_v4 = vpop.f32.mrf.mxu0  ;;  %v648_v5 = vpop.f32.mrf.mxu1 }
  0xf1   :  { %v554_v6 = vpack.c.bf16 %v386_v0, %v385_v62  ;;  %v574_v7 = vpack.c.bf16 %v394_v1, %v393_v63  ;;  %v625_v8 = vadd.f32 %v624_v4, %v623_v60  ;;  %v649_v9 = vadd.f32 %v648_v5, %v647_v61 }
  0xf2   :  { %v626_v10 = vpop.f32.mrf.mxu0  ;;  %v650_v11 = vpop.f32.mrf.mxu1  ;;  %v371_v12 = vadd.f32 %v849_v43, %v348_v2  ;;  %v379_v13 = vadd.f32 %v849_v43, %v356_v3 }
  0xf3   :  { %555 = vst [vmem:[%s909_s4] sm:$0xff] %v554_v6   ;;  %594 = vst [vmem:[%s909_s4 + $0x20] sm:$0xff] %v574_v7   ;;  %v349_v14 = vmul.f32 %v625_v8, %v842_v35  ;;  %v357_v15 = vmul.f32 %v649_v9, %v842_v35 }
  0xf4   :  { %v627_v16 = vpop.f32.mrf.mxu0  ;;  %v651_v17 = vpop.f32.mrf.mxu1  ;;  %v387_v26 = vmax.f32 %v371_v12, 0.0  ;;  %v395_v27 = vmax.f32 %v379_v13, 0.0 }
  0xf5   :  { %v628_v18 = vadd.f32 %v627_v16, %v626_v10  ;;  %v652_v19 = vadd.f32 %v651_v17, %v650_v11  ;;  %v372_v20 = vadd.f32 %v849_v43, %v349_v14  ;;  %v380_v21 = vadd.f32 %v849_v43, %v357_v15 }
  0xf6   :  { %v629_v22 = vpop.f32.mrf.mxu0  ;;  %v653_v23 = vpop.f32.mrf.mxu1 }
  0xf7   :  { %v350_v24 = vmul.f32 %v628_v18, %v842_v35  ;;  %v358_v25 = vmul.f32 %v652_v19, %v842_v35  ;;  %v388_v28 = vmax.f32 %v372_v20, 0.0  ;;  %v396_v29 = vmax.f32 %v380_v21, 0.0 }
  0xf8   :  { %v630_v30 = vpop.f32.mrf.mxu0  ;;  %v654_v31 = vpop.f32.mrf.mxu1 }
  0xf9   :  { %v631_v32 = vadd.f32 %v630_v30, %v629_v22  ;;  %v655_v33 = vadd.f32 %v654_v31, %v653_v23  ;;  %v559_v34 = vpack.c.bf16 %v388_v28, %v387_v26  ;;  %v579_v36 = vpack.c.bf16 %v396_v29, %v395_v27 }
  0xfa   :  { %v632_v37 = vpop.f32.mrf.mxu0  ;;  %v656_v38 = vpop.f32.mrf.mxu1  ;;  %v373_v39 = vadd.f32 %v849_v43, %v350_v24  ;;  %v381_v40 = vadd.f32 %v849_v43, %v358_v25 }
  0xfb   :  { %v351_v41 = vmul.f32 %v631_v32, %v842_v35  ;;  %v359_v42 = vmul.f32 %v655_v33, %v842_v35  ;;  %591 = vst [vmem:[%s909_s4 + $0x8] sm:$0xff] %v559_v34   ;;  %595 = vst [vmem:[%s909_s4 + $0x28] sm:$0xff] %v579_v36  }
  0xfc   :  { %v633_v44 = vpop.f32.mrf.mxu0  ;;  %v657_v45 = vpop.f32.mrf.mxu1  ;;  %v389_v52 = vmax.f32 %v373_v39, 0.0  ;;  %v397_v53 = vmax.f32 %v381_v40, 0.0 }
  0xfd   :  { %v374_v46 = vadd.f32 %v849_v43, %v351_v41  ;;  %v382_v47 = vadd.f32 %v849_v43, %v359_v42  ;;  %v634_v48 = vadd.f32 %v633_v44, %v632_v37  ;;  %v658_v49 = vadd.f32 %v657_v45, %v656_v38 }
  0xfe   :  { %v635_v50 = vpop.f32.mrf.mxu0  ;;  %v659_v51 = vpop.f32.mrf.mxu1 }
  0xff   :  { %v390_v54 = vmax.f32 %v374_v46, 0.0  ;;  %v398_v55 = vmax.f32 %v382_v47, 0.0  ;;  %v352_v56 = vmul.f32 %v634_v48, %v842_v35  ;;  %v360_v57 = vmul.f32 %v658_v49, %v842_v35 }
 0x100   :  { %v636_v58 = vpop.f32.mrf.mxu0  ;;  %v660_v59 = vpop.f32.mrf.mxu1 }
 0x101   :  { %v564_v60 = vpack.c.bf16 %v390_v54, %v389_v52  ;;  %v584_v61 = vpack.c.bf16 %v398_v55, %v397_v53  ;;  %v637_v62 = vadd.f32 %v636_v58, %v635_v50  ;;  %v661_v63 = vadd.f32 %v660_v59, %v659_v51 }
 0x102   :  { %v375_v0 = vadd.f32 %v849_v43, %v352_v56  ;;  %v383_v1 = vadd.f32 %v849_v43, %v360_v57 }
 0x103   :  { %592 = vst [vmem:[%s909_s4 + $0x10] sm:$0xff] %v564_v60   ;;  %596 = vst [vmem:[%s909_s4 + $0x30] sm:$0xff] %v584_v61   ;;  %v353_v2 = vmul.f32 %v637_v62, %v842_v35  ;;  %v361_v3 = vmul.f32 %v661_v63, %v842_v35 }
 0x104   :  { %v391_v6 = vmax.f32 %v375_v0, 0.0  ;;  %v399_v7 = vmax.f32 %v383_v1, 0.0 }
 0x105   :  { %v376_v4 = vadd.f32 %v849_v43, %v353_v2  ;;  %v384_v5 = vadd.f32 %v849_v43, %v361_v3 }
 0x107   :  { %v392_v8 = vmax.f32 %v376_v4, 0.0  ;;  %v400_v9 = vmax.f32 %v384_v5, 0.0 }
 0x109   :  { %v569_v10 = vpack.c.bf16 %v392_v8, %v391_v6  ;;  %v589_v11 = vpack.c.bf16 %v400_v9, %v399_v7 }
 0x10b   :  { %593 = vst [vmem:[%s909_s4 + $0x18] sm:$0xff] %v569_v10   ;;  %597 = vst [vmem:[%s909_s4 + $0x38] sm:$0xff] %v589_v11  }

// kernel: resnet101_forward.107
= control target key start
LH: loop header
LB: loop body
LE: loop exit
PB: predicated region body
PF: predicated region fallthrough
CT: control target
= control target key end

     0   :  { %s1112_s1 = inlined_call_operand.vmem [shape: bf16[1,256,512], index: 1, kind: input, shape index: {}]   ;;  %s1113_s0 = inlined_call_operand.vmem [shape: bf16[32,256], index: 0, kind: input, shape index: {}]   ;;  %s1114_s2 = inlined_call_operand.vmem [shape: f32[1,512], index: 2, kind: input, shape index: {}]   ;;  %s1115_s3 = inlined_call_operand.vmem [shape: f32[1,512], index: 3, kind: input, shape index: {}]   ;;  %s1116_s4 = inlined_call_operand.vmem [shape: bf16[32,512], index: 4, kind: output, shape index: {}]  }
   0x1   :  { %v751_v0 = vld [vmem:[%s1112_s1 + $0xe4] ss:$16 sps:$4 sm:$0xff]   ;;  %v753_v1 = vld [vmem:[%s1112_s1 + $0xec] ss:$16 sps:$4 sm:$0xff]   ;;  %v755_v2 = vld [vmem:[%s1112_s1 + $0xe0] ss:$16 sps:$4 sm:$0xff]  }
   0x2   :  { %425 = vmatprep.subr.bf16.mxu0 %v751_v0  ;;  %v756_v3 = vld [vmem:[%s1112_s1 + $0xe8] ss:$16 sps:$4 sm:$0xff]   ;;  %478 = vmatprep.subr.bf16.mxu1 %v753_v1  ;;  %v757_v4 = vld [vmem:[%s1112_s1 + $0xc4] ss:$16 sps:$4 sm:$0xff]   ;;  %v759_v5 = vld [vmem:[%s1112_s1 + $0xcc] ss:$16 sps:$4 sm:$0xff]  }
   0x3   :  { %426 = vmatpush1.bf16.msra.mxu0 %v755_v2  ;;  %479 = vmatpush1.bf16.msra.mxu1 %v756_v3  ;;  %v761_v6 = vld [vmem:[%s1112_s1 + $0xc0] ss:$16 sps:$4 sm:$0xff]   ;;  %v762_v7 = vld [vmem:[%s1112_s1 + $0xc8] ss:$16 sps:$4 sm:$0xff]   ;;  %v763_v8 = vld [vmem:[%s1112_s1 + $0xa4] ss:$16 sps:$4 sm:$0xff]  }
   0x4   :  { %427 = vmatprep.subr.bf16.mxu0 %v757_v4  ;;  %480 = vmatprep.subr.bf16.mxu1 %v759_v5  ;;  %v765_v9 = vld [vmem:[%s1112_s1 + $0xac] ss:$16 sps:$4 sm:$0xff]   ;;  %v767_v10 = vld [vmem:[%s1112_s1 + $0xa0] ss:$16 sps:$4 sm:$0xff]   ;;  %v768_v11 = vld [vmem:[%s1112_s1 + $0xa8] ss:$16 sps:$4 sm:$0xff]   ;;  %v533_v4 = vlaneseq }
   0x5   :  { %v769_v12 = vld [vmem:[%s1112_s1 + $0x84] ss:$16 sps:$4 sm:$0xff]   ;;  %v771_v13 = vld [vmem:[%s1112_s1 + $0x8c] ss:$16 sps:$4 sm:$0xff]   ;;  %v773_v14 = vld [vmem:[%s1112_s1 + $0x80] ss:$16 sps:$4 sm:$0xff]  }
   0x6   :  { %v774_v15 = vld [vmem:[%s1112_s1 + $0x88] ss:$16 sps:$4 sm:$0xff]   ;;  %v775_v16 = vld [vmem:[%s1112_s1 + $0x64] ss:$16 sps:$4 sm:$0xff]   ;;  %v777_v17 = vld [vmem:[%s1112_s1 + $0x6c] ss:$16 sps:$4 sm:$0xff]  }
   0x7   :  { %428 = vmatpush1.bf16.msra.mxu0 %v761_v6  ;;  %481 = vmatpush1.bf16.msra.mxu1 %v762_v7  ;;  %v779_v18 = vld [vmem:[%s1112_s1 + $0x60] ss:$16 sps:$4 sm:$0xff]   ;;  %v780_v19 = vld [vmem:[%s1112_s1 + $0x68] ss:$16 sps:$4 sm:$0xff]   ;;  %v781_v20 = vld [vmem:[%s1112_s1 + $0x44] ss:$16 sps:$4 sm:$0xff]  }
   0x8   :  { %429 = vmatprep.subr.bf16.mxu0 %v763_v8  ;;  %482 = vmatprep.subr.bf16.mxu1 %v765_v9  ;;  %v783_v21 = vld [vmem:[%s1112_s1 + $0x4c] ss:$16 sps:$4 sm:$0xff]   ;;  %v785_v22 = vld [vmem:[%s1112_s1 + $0x40] ss:$16 sps:$4 sm:$0xff]   ;;  %v786_v23 = vld [vmem:[%s1112_s1 + $0x48] ss:$16 sps:$4 sm:$0xff]  }
   0x9   :  { %v787_v24 = vld [vmem:[%s1112_s1 + $0x24] ss:$16 sps:$4 sm:$0xff]   ;;  %v789_v25 = vld [vmem:[%s1112_s1 + $0x2c] ss:$16 sps:$4 sm:$0xff]   ;;  %v791_v26 = vld [vmem:[%s1112_s1 + $0x20] ss:$16 sps:$4 sm:$0xff]  }
   0xa   :  { %v792_v27 = vld [vmem:[%s1112_s1 + $0x28] ss:$16 sps:$4 sm:$0xff]   ;;  %v793_v28 = vld [vmem:[%s1112_s1 + $0x4] ss:$16 sps:$4 sm:$0xff]   ;;  %v795_v29 = vld [vmem:[%s1112_s1 + $0xc] ss:$16 sps:$4 sm:$0xff]  }
   0xb   :  { %430 = vmatpush1.bf16.msra.mxu0 %v767_v10  ;;  %483 = vmatpush1.bf16.msra.mxu1 %v768_v11  ;;  %v797_v30 = vld [vmem:[%s1112_s1] ss:$16 sps:$4 sm:$0xff]   ;;  %v798_v31 = vld [vmem:[%s1112_s1 + $0x8] ss:$16 sps:$4 sm:$0xff]   ;;  %v799_v32 = vld [vmem:[%s1112_s1 + $0x1e4] ss:$16 sps:$4 sm:$0xff]  }
   0xc   :  { %431 = vmatprep.subr.bf16.mxu0 %v769_v12  ;;  %484 = vmatprep.subr.bf16.mxu1 %v771_v13  ;;  %v801_v33 = vld [vmem:[%s1112_s1 + $0x1ec] ss:$16 sps:$4 sm:$0xff]   ;;  %v803_v34 = vld [vmem:[%s1112_s1 + $0x1e0] ss:$16 sps:$4 sm:$0xff]   ;;  %v804_v35 = vld [vmem:[%s1112_s1 + $0x1e8] ss:$16 sps:$4 sm:$0xff]  }
   0xd   :  { %v805_v36 = vld [vmem:[%s1112_s1 + $0x1c4] ss:$16 sps:$4 sm:$0xff]   ;;  %v807_v37 = vld [vmem:[%s1112_s1 + $0x1cc] ss:$16 sps:$4 sm:$0xff]   ;;  %v809_v38 = vld [vmem:[%s1112_s1 + $0x1c0] ss:$16 sps:$4 sm:$0xff]  }
   0xe   :  { %v810_v39 = vld [vmem:[%s1112_s1 + $0x1c8] ss:$16 sps:$4 sm:$0xff]   ;;  %v811_v40 = vld [vmem:[%s1112_s1 + $0x1a4] ss:$16 sps:$4 sm:$0xff]   ;;  %v813_v41 = vld [vmem:[%s1112_s1 + $0x1ac] ss:$16 sps:$4 sm:$0xff]  }
   0xf   :  { %432 = vmatpush1.bf16.msra.mxu0 %v773_v14  ;;  %485 = vmatpush1.bf16.msra.mxu1 %v774_v15  ;;  %v815_v42 = vld [vmem:[%s1112_s1 + $0x1a0] ss:$16 sps:$4 sm:$0xff]   ;;  %v816_v43 = vld [vmem:[%s1112_s1 + $0x1a8] ss:$16 sps:$4 sm:$0xff]   ;;  %v817_v44 = vld [vmem:[%s1112_s1 + $0x184] ss:$16 sps:$4 sm:$0xff]  }
  0x10   :  { %433 = vmatprep.subr.bf16.mxu0 %v775_v16  ;;  %486 = vmatprep.subr.bf16.mxu1 %v777_v17  ;;  %v819_v45 = vld [vmem:[%s1112_s1 + $0x18c] ss:$16 sps:$4 sm:$0xff]   ;;  %v821_v46 = vld [vmem:[%s1112_s1 + $0x180] ss:$16 sps:$4 sm:$0xff]   ;;  %v822_v48 = vld [vmem:[%s1112_s1 + $0x188] ss:$16 sps:$4 sm:$0xff]  }
  0x11   :  { %v849_v47 = vld [vmem:[%s1113_s0 + $0x4] ss:$8 sps:$4 sm:$0xff]   ;;  %v827_v51 = vld [vmem:[%s1112_s1 + $0x160] ss:$16 sps:$4 sm:$0xff]   ;;  %v828_v52 = vld [vmem:[%s1112_s1 + $0x168] ss:$16 sps:$4 sm:$0xff]  }
  0x12   :  { %v823_v49 = vld [vmem:[%s1112_s1 + $0x164] ss:$16 sps:$4 sm:$0xff]   ;;  %v825_v50 = vld [vmem:[%s1112_s1 + $0x16c] ss:$16 sps:$4 sm:$0xff]   ;;  %457 = vmatprep.mubr.bf16.mxu0 %v849_v47  ;;  %510 = vmatprep.mubr.bf16.mxu1 %v849_v47  ;;  %v833_v55 = vld [vmem:[%s1112_s1 + $0x140] ss:$16 sps:$4 sm:$0xff]  }
  0x13   :  { %434 = vmatpush1.bf16.msra.mxu0 %v779_v18  ;;  %487 = vmatpush1.bf16.msra.mxu1 %v780_v19  ;;  %v829_v53 = vld [vmem:[%s1112_s1 + $0x144] ss:$16 sps:$4 sm:$0xff]   ;;  %v831_v54 = vld [vmem:[%s1112_s1 + $0x14c] ss:$16 sps:$4 sm:$0xff]   ;;  %v834_v56 = vld [vmem:[%s1112_s1 + $0x148] ss:$16 sps:$4 sm:$0xff]  }
  0x14   :  { %435 = vmatprep.subr.bf16.mxu0 %v781_v20  ;;  %488 = vmatprep.subr.bf16.mxu1 %v783_v21  ;;  %v835_v57 = vld [vmem:[%s1112_s1 + $0x124] ss:$16 sps:$4 sm:$0xff]   ;;  %v837_v58 = vld [vmem:[%s1112_s1 + $0x12c] ss:$16 sps:$4 sm:$0xff]   ;;  %v839_v59 = vld [vmem:[%s1112_s1 + $0x120] ss:$16 sps:$4 sm:$0xff]  }
  0x15   :  { %v840_v60 = vld [vmem:[%s1112_s1 + $0x128] ss:$16 sps:$4 sm:$0xff]   ;;  %v841_v61 = vld [vmem:[%s1112_s1 + $0x104] ss:$16 sps:$4 sm:$0xff]   ;;  %v843_v62 = vld [vmem:[%s1112_s1 + $0x10c] ss:$16 sps:$4 sm:$0xff]  }
  0x16   :  { %v845_v63 = vld [vmem:[%s1112_s1 + $0x100] ss:$16 sps:$4 sm:$0xff]   ;;  %v846_v0 = vld [vmem:[%s1112_s1 + $0x108] ss:$16 sps:$4 sm:$0xff]   ;;  %v850_v2 = vld [vmem:[%s1113_s0 + $0x14] ss:$8 sps:$4 sm:$0xff]  }
  0x17   :  { %436 = vmatpush1.bf16.msra.mxu0 %v785_v22  ;;  %489 = vmatpush1.bf16.msra.mxu1 %v786_v23  ;;  %v847_v1 = vld [vmem:[%s1113_s0] ss:$8 sps:$4 sm:$0xff]   ;;  %v852_v3 = vld [vmem:[%s1113_s0 + $0x10] ss:$8 sps:$4 sm:$0xff]   ;;  %v534_v5 = vshrl.u32 %v533_v4, 7 }
  0x18   :  { %437 = vmatprep.subr.bf16.mxu0 %v787_v24  ;;  %490 = vmatprep.subr.bf16.mxu1 %v789_v25  ;;  %v531_v8 = vld [vmem:[%s1114_s2] sm:$0xf] }
  0x19   :  { %v535_v6 = vsub.s32 0, %v534_v5  ;;  %v543_v7 = vsub.s32 2, %v534_v5  ;;  %v539_v9 = vsub.s32 1, %v534_v5  ;;  %v547_v10 = vsub.s32 3, %v534_v5  ;;  %v569_v12 = vld [vmem:[%s1115_s3] sm:$0xf] }
  0x1b   :  { %438 = vmatpush1.bf16.msra.mxu0 %v791_v26  ;;  %491 = vmatpush1.bf16.msra.mxu1 %v792_v27  ;;  %v536_v11 = vrot.slane %v531_v8, %v535_v6  ;;  %v544_v13 = vrot.slane %v531_v8, %v543_v7  ;;  %v540_v14 = vrot.slane %v531_v8, %v539_v9 }
  0x1c   :  { %439 = vmatprep.subr.bf16.mxu0 %v793_v28  ;;  %492 = vmatprep.subr.bf16.mxu1 %v795_v29  ;;  %v548_v15 = vrot.slane %v531_v8, %v547_v10  ;;  %v574_v17 = vrot.slane %v569_v12, %v535_v6  ;;  %v582_v19 = vrot.slane %v569_v12, %v543_v7 }
  0x1d   :  { %v578_v22 = vrot.slane %v569_v12, %v539_v9  ;;  %v586_v23 = vrot.slane %v569_v12, %v547_v10 }
  0x1f   :  { %440 = vmatpush1.bf16.msra.mxu0 %v797_v30  ;;  %493 = vmatpush1.bf16.msra.mxu1 %v798_v31 }
  0x20   :  { %441 = vmatprep.subr.bf16.mxu0 %v799_v32  ;;  %494 = vmatprep.subr.bf16.mxu1 %v801_v33 }
  0x23   :  { %442 = vmatpush2.bf16.msra.mxu0 %v803_v34  ;;  %495 = vmatpush2.bf16.msra.mxu1 %v804_v35 }
  0x24   :  { %443 = vmatprep.subr.bf16.mxu0 %v805_v36  ;;  %496 = vmatprep.subr.bf16.mxu1 %v807_v37 }
  0x27   :  { %444 = vmatpush2.bf16.msra.mxu0 %v809_v38  ;;  %497 = vmatpush2.bf16.msra.mxu1 %v810_v39 }
  0x28   :  { %445 = vmatprep.subr.bf16.mxu0 %v811_v40  ;;  %498 = vmatprep.subr.bf16.mxu1 %v813_v41 }
  0x2b   :  { %446 = vmatpush2.bf16.msra.mxu0 %v815_v42  ;;  %499 = vmatpush2.bf16.msra.mxu1 %v816_v43 }
  0x2c   :  { %447 = vmatprep.subr.bf16.mxu0 %v817_v44  ;;  %500 = vmatprep.subr.bf16.mxu1 %v819_v45 }
  0x2f   :  { %448 = vmatpush2.bf16.msra.mxu0 %v821_v46  ;;  %501 = vmatpush2.bf16.msra.mxu1 %v822_v48 }
  0x30   :  { %449 = vmatprep.subr.bf16.mxu0 %v823_v49  ;;  %502 = vmatprep.subr.bf16.mxu1 %v825_v50 }
  0x33   :  { %450 = vmatpush2.bf16.msra.mxu0 %v827_v51  ;;  %503 = vmatpush2.bf16.msra.mxu1 %v828_v52 }
  0x34   :  { %451 = vmatprep.subr.bf16.mxu0 %v829_v53  ;;  %504 = vmatprep.subr.bf16.mxu1 %v831_v54 }
  0x37   :  { %452 = vmatpush2.bf16.msra.mxu0 %v833_v55  ;;  %505 = vmatpush2.bf16.msra.mxu1 %v834_v56 }
  0x38   :  { %453 = vmatprep.subr.bf16.mxu0 %v835_v57  ;;  %506 = vmatprep.subr.bf16.mxu1 %v837_v58 }
  0x3b   :  { %454 = vmatpush2.bf16.msra.mxu0 %v839_v59  ;;  %507 = vmatpush2.bf16.msra.mxu1 %v840_v60 }
  0x3c   :  { %455 = vmatprep.subr.bf16.mxu0 %v841_v61  ;;  %508 = vmatprep.subr.bf16.mxu1 %v843_v62 }
  0x3f   :  { %456 = vmatpush2.bf16.msra.mxu0 %v845_v63  ;;  %509 = vmatpush2.bf16.msra.mxu1 %v846_v0 }
  0x42   :  { %458 = vmatmul.mubr.bf16.vlgmr.msra.gmra.mxu0 %v847_v1  ;;  %511 = vmatmul.mubr.bf16.vlgmr.msra.gmra.mxu1 %v847_v1 }
  0x43   :  { %467 = vmatprep.mubr.bf16.mxu0 %v850_v2  ;;  %520 = vmatprep.mubr.bf16.mxu1 %v850_v2 }
  0x4a   :  { %468 = vmatmul.mubr.bf16.gmra.mxu0 %v852_v3  ;;  %521 = vmatmul.mubr.bf16.gmra.mxu1 %v852_v3 }
 0x102   :  { %v459_v16 = vpop.f32.mrf.mxu0  ;;  %v512_v18 = vpop.f32.mrf.mxu1 }
 0x103   :  { %v553_v20 = vmul.f32 %v536_v11, %v459_v16  ;;  %v555_v21 = vmul.f32 %v544_v13, %v512_v18 }
 0x104   :  { %v461_v24 = vpop.f32.mrf.mxu0  ;;  %v514_v25 = vpop.f32.mrf.mxu1 }
 0x105   :  { %v554_v26 = vmul.f32 %v540_v14, %v461_v24  ;;  %v556_v27 = vmul.f32 %v548_v15, %v514_v25  ;;  %v591_v30 = vadd.f32 %v574_v17, %v553_v20  ;;  %v593_v31 = vadd.f32 %v582_v19, %v555_v21 }
 0x106   :  { %v463_v28 = vpop.f32.mrf.mxu0  ;;  %v516_v29 = vpop.f32.mrf.mxu1 }
 0x107   :  { %v592_v32 = vadd.f32 %v578_v22, %v554_v26  ;;  %v594_v33 = vadd.f32 %v586_v23, %v556_v27  ;;  %v557_v34 = vmul.f32 %v536_v11, %v463_v28  ;;  %v559_v35 = vmul.f32 %v544_v13, %v516_v29 }
 0x108   :  { %v465_v36 = vpop.f32.mrf.mxu0  ;;  %v518_v37 = vpop.f32.mrf.mxu1 }
 0x109   :  { %v743_v38 = vpack.c.bf16 %v592_v32, %v591_v30  ;;  %v744_v39 = vpack.c.bf16 %v594_v33, %v593_v31  ;;  %v558_v40 = vmul.f32 %v540_v14, %v465_v36  ;;  %v560_v41 = vmul.f32 %v548_v15, %v518_v37 }
 0x10a   :  { %v469_v42 = vpop.f32.mrf.mxu0  ;;  %v522_v43 = vpop.f32.mrf.mxu1  ;;  %v595_v46 = vadd.f32 %v574_v17, %v557_v34  ;;  %v597_v47 = vadd.f32 %v582_v19, %v559_v35 }
 0x10b   :  { %655 = vst [vmem:[%s1116_s4] sm:$0xff] %v743_v38  ;;  %656 = vst [vmem:[%s1116_s4 + $0x8] sm:$0xff] %v744_v39  ;;  %v561_v44 = vmul.f32 %v536_v11, %v469_v42  ;;  %v563_v45 = vmul.f32 %v544_v13, %v522_v43  ;;  %v596_v48 = vadd.f32 %v578_v22, %v558_v40 }
 0x10c   :  { %v598_v49 = vadd.f32 %v586_v23, %v560_v41  ;;  %v471_v50 = vpop.f32.mrf.mxu0  ;;  %v524_v51 = vpop.f32.mrf.mxu1 }
 0x10d   :  { %v562_v52 = vmul.f32 %v540_v14, %v471_v50  ;;  %v564_v53 = vmul.f32 %v548_v15, %v524_v51  ;;  %v745_v54 = vpack.c.bf16 %v596_v48, %v595_v46  ;;  %v599_v58 = vadd.f32 %v574_v17, %v561_v44 }
 0x10e   :  { %v746_v55 = vpack.c.bf16 %v598_v49, %v597_v47  ;;  %v473_v56 = vpop.f32.mrf.mxu0  ;;  %v526_v57 = vpop.f32.mrf.mxu1  ;;  %v601_v59 = vadd.f32 %v582_v19, %v563_v45 }
 0x10f   :  { %v600_v60 = vadd.f32 %v578_v22, %v562_v52  ;;  %v602_v61 = vadd.f32 %v586_v23, %v564_v53  ;;  %657 = vst [vmem:[%s1116_s4 + $0x10] sm:$0xff] %v745_v54  ;;  %v565_v62 = vmul.f32 %v536_v11, %v473_v56  ;;  %v567_v63 = vmul.f32 %v544_v13, %v526_v57 }
 0x110   :  { %658 = vst [vmem:[%s1116_s4 + $0x18] sm:$0xff] %v746_v55  ;;  %v475_v0 = vpop.f32.mrf.mxu0  ;;  %v528_v1 = vpop.f32.mrf.mxu1 }
 0x111   :  { %v747_v2 = vpack.c.bf16 %v600_v60, %v599_v58  ;;  %v748_v3 = vpack.c.bf16 %v602_v61, %v601_v59  ;;  %v566_v4 = vmul.f32 %v540_v14, %v475_v0  ;;  %v568_v5 = vmul.f32 %v548_v15, %v528_v1 }
 0x112   :  { %v603_v6 = vadd.f32 %v574_v17, %v565_v62  ;;  %v605_v7 = vadd.f32 %v582_v19, %v567_v63 }
 0x113   :  { %659 = vst [vmem:[%s1116_s4 + $0x20] sm:$0xff] %v747_v2  ;;  %660 = vst [vmem:[%s1116_s4 + $0x28] sm:$0xff] %v748_v3  ;;  %v604_v8 = vadd.f32 %v578_v22, %v566_v4  ;;  %v606_v9 = vadd.f32 %v586_v23, %v568_v5 }
 0x115   :  { %v749_v10 = vpack.c.bf16 %v604_v8, %v603_v6  ;;  %v750_v11 = vpack.c.bf16 %v606_v9, %v605_v7 }
 0x117   :  { %661 = vst [vmem:[%s1116_s4 + $0x30] sm:$0xff] %v749_v10  ;;  %662 = vst [vmem:[%s1116_s4 + $0x38] sm:$0xff] %v750_v11 }

// kernel: resnet101_forward.96
= control target key start
LH: loop header
LB: loop body
LE: loop exit
PB: predicated region body
PF: predicated region fallthrough
CT: control target
= control target key end

     0   :  { %s3964_s9 = inlined_call_operand.vmem [shape: bf16[9,128,128], index: 9, kind: input, shape index: {}]   ;;  %s3965_s1 = inlined_call_operand.vmem [shape: bf16[128,128], index: 1, kind: input, shape index: {}]   ;;  %s3966_s0 = inlined_call_operand.vmem [shape: bf16[128,128], index: 0, kind: input, shape index: {}]   ;;  %s3967_s2 = inlined_call_operand.vmem [shape: bf16[128,128], index: 2, kind: input, shape index: {}]   ;;  %s3968_s3 = inlined_call_operand.vmem [shape: bf16[128,128], index: 3, kind: input, shape index: {}]   ;;  %s3969_s4 = inlined_call_operand.vmem [shape: bf16[128,128], index: 4, kind: input, shape index: {}]   ;;  %s3970_s5 = inlined_call_operand.vmem [shape: bf16[128,128], index: 5, kind: input, shape index: {}]   ;;  %s3971_s6 = inlined_call_operand.vmem [shape: bf16[128,128], index: 6, kind: input, shape index: {}]   ;;  %s3972_s7 = inlined_call_operand.vmem [shape: bf16[128,128], index: 7, kind: input, shape index: {}]   ;;  %s3973_s8 = inlined_call_operand.vmem [shape: bf16[128,128], index: 8, kind: input, shape index: {}]   ;;  %s3974_s10 = inlined_call_operand.vmem [shape: f32[1,128], index: 10, kind: input, shape index: {}]   ;;  %s3975_s11 = inlined_call_operand.vmem [shape: f32[1,128], index: 11, kind: input, shape index: {}]   ;;  %s3976_s12 = inlined_call_operand.vmem [shape: bf16[128,128], index: 12, kind: output, shape index: {}]  }
   0x1   :  { %v3134_v0 = vld [vmem:[%s3964_s9 + $0x78] sm:$0xff]   ;;  %v3136_v2 = vld [vmem:[%s3964_s9 + $0x70] sm:$0xff]   ;;  %v3138_v4 = vld [vmem:[%s3964_s9 + $0x68] sm:$0xff]  }
   0x2   :  { %v3135_v1 = vld [vmem:[%s3964_s9 + $0x38] sm:$0xff]   ;;  %2830 = vmatprep.subr.bf16.mxu0 %v3134_v0  ;;  %v3137_v3 = vld [vmem:[%s3964_s9 + $0x30] sm:$0xff]   ;;  %v3139_v5 = vld [vmem:[%s3964_s9 + $0x28] sm:$0xff]  }
   0x3   :  { %2862 = vmatprep.subr.bf16.mxu1 %v3135_v1  ;;  %2831 = vmatpush3.bf16.msra.mxu0 %v3134_v0  ;;  %v3140_v6 = vld [vmem:[%s3964_s9 + $0x60] sm:$0xff]   ;;  %v3142_v8 = vld [vmem:[%s3964_s9 + $0x58] sm:$0xff]   ;;  %v3144_v10 = vld [vmem:[%s3964_s9 + $0x50] sm:$0xff]  }
   0x4   :  { %2863 = vmatpush3.bf16.msra.mxu1 %v3135_v1  ;;  %2832 = vmatprep.subr.bf16.mxu0 %v3136_v2  ;;  %v3141_v7 = vld [vmem:[%s3964_s9 + $0x20] sm:$0xff]   ;;  %v3143_v9 = vld [vmem:[%s3964_s9 + $0x18] sm:$0xff]   ;;  %v3145_v11 = vld [vmem:[%s3964_s9 + $0x10] sm:$0xff]  }
   0x5   :  { %2864 = vmatprep.subr.bf16.mxu1 %v3137_v3  ;;  %v3150_v12 = vld [vmem:[%s3965_s1] sm:$0xff]   ;;  %v3146_v14 = vld [vmem:[%s3964_s9 + $0x48] sm:$0xff]   ;;  %v3154_v19 = vld [vmem:[%s3964_s9 + $0xb8] sm:$0xff]  }
   0x6   :  { %v3151_v13 = vld [vmem:[%s3966_s0] sm:$0xff]   ;;  %2846 = vmatprep.mubr.bf16.mxu0 %v3150_v12  ;;  %v3147_v15 = vld [vmem:[%s3964_s9 + $0x8] sm:$0xff]   ;;  %v3155_v20 = vld [vmem:[%s3964_s9 + $0xf8] sm:$0xff]  }
   0x7   :  { %2833 = vmatpush3.bf16.msra.mxu0 %v3136_v2  ;;  %2878 = vmatprep.mubr.bf16.mxu1 %v3151_v13  ;;  %v3148_v16 = vld [vmem:[%s3964_s9 + $0x40] sm:$0xff]   ;;  %v3152_v18 = vld [vmem:[%s3965_s1 + $0x8] sm:$0xff]   ;;  %v3156_v22 = vld [vmem:[%s3964_s9 + $0xb0] sm:$0xff]  }
   0x8   :  { %2865 = vmatpush3.bf16.msra.mxu1 %v3137_v3  ;;  %2834 = vmatprep.subr.bf16.mxu0 %v3138_v4  ;;  %v3149_v17 = vld [vmem:[%s3964_s9] sm:$0xff]   ;;  %v3153_v21 = vld [vmem:[%s3966_s0 + $0x8] sm:$0xff]   ;;  %v3157_v23 = vld [vmem:[%s3964_s9 + $0xf0] sm:$0xff]  }
   0x9   :  { %2866 = vmatprep.subr.bf16.mxu1 %v3139_v5  ;;  %v3158_v24 = vld [vmem:[%s3965_s1 + $0x10] sm:$0xff]   ;;  %v3160_v26 = vld [vmem:[%s3965_s1 + $0x18] sm:$0xff]   ;;  %v3162_v27 = vld [vmem:[%s3964_s9 + $0xa8] sm:$0xff]  }
   0xa   :  { %v3159_v25 = vld [vmem:[%s3966_s0 + $0x10] sm:$0xff]   ;;  %v3163_v28 = vld [vmem:[%s3964_s9 + $0xe8] sm:$0xff]   ;;  %v3161_v29 = vld [vmem:[%s3966_s0 + $0x18] sm:$0xff]  }
   0xb   :  { %2835 = vmatpush3.bf16.msra.mxu0 %v3138_v4  ;;  %v3164_v30 = vld [vmem:[%s3964_s9 + $0xa0] sm:$0xff]   ;;  %v3168_v34 = vld [vmem:[%s3965_s1 + $0x28] sm:$0xff]   ;;  %v3170_v35 = vld [vmem:[%s3964_s9 + $0x98] sm:$0xff]  }
   0xc   :  { %2867 = vmatpush3.bf16.msra.mxu1 %v3139_v5  ;;  %2836 = vmatprep.subr.bf16.mxu0 %v3140_v6  ;;  %v3165_v31 = vld [vmem:[%s3964_s9 + $0xe0] sm:$0xff]   ;;  %v3171_v36 = vld [vmem:[%s3964_s9 + $0xd8] sm:$0xff]   ;;  %v3169_v37 = vld [vmem:[%s3966_s0 + $0x28] sm:$0xff]  }
   0xd   :  { %2868 = vmatprep.subr.bf16.mxu1 %v3141_v7  ;;  %v3166_v32 = vld [vmem:[%s3965_s1 + $0x20] sm:$0xff]   ;;  %v3172_v38 = vld [vmem:[%s3964_s9 + $0x90] sm:$0xff]   ;;  %v3176_v42 = vld [vmem:[%s3965_s1 + $0x38] sm:$0xff]  }
   0xe   :  { %v3167_v33 = vld [vmem:[%s3966_s0 + $0x20] sm:$0xff]   ;;  %v3173_v39 = vld [vmem:[%s3964_s9 + $0xd0] sm:$0xff]   ;;  %v3178_v43 = vld [vmem:[%s3964_s9 + $0x88] sm:$0xff]  }
   0xf   :  { %2837 = vmatpush3.bf16.msra.mxu0 %v3140_v6  ;;  %v3174_v40 = vld [vmem:[%s3965_s1 + $0x30] sm:$0xff]   ;;  %v3179_v44 = vld [vmem:[%s3964_s9 + $0xc8] sm:$0xff]   ;;  %v3177_v45 = vld [vmem:[%s3966_s0 + $0x38] sm:$0xff]  }
  0x10   :  { %2869 = vmatpush3.bf16.msra.mxu1 %v3141_v7  ;;  %2838 = vmatprep.subr.bf16.mxu0 %v3142_v8  ;;  %v3175_v41 = vld [vmem:[%s3966_s0 + $0x30] sm:$0xff]   ;;  %v3180_v46 = vld [vmem:[%s3964_s9 + $0x80] sm:$0xff]   ;;  %v3184_v50 = vld [vmem:[%s3967_s2 + $0x8] sm:$0xff]  }
  0x11   :  { %2870 = vmatprep.subr.bf16.mxu1 %v3143_v9  ;;  %v3181_v47 = vld [vmem:[%s3964_s9 + $0xc0] sm:$0xff]   ;;  %v3186_v51 = vld [vmem:[%s3964_s9 + $0x138] sm:$0xff]   ;;  %v3185_v53 = vld [vmem:[%s3968_s3 + $0x8] sm:$0xff]  }
  0x12   :  { %v3182_v48 = vld [vmem:[%s3967_s2] sm:$0xff]   ;;  %v3187_v52 = vld [vmem:[%s3964_s9 + $0x178] sm:$0xff]   ;;  %v3188_v54 = vld [vmem:[%s3964_s9 + $0x130] sm:$0xff]  }
  0x13   :  { %2839 = vmatpush3.bf16.msra.mxu0 %v3142_v8  ;;  %v3183_v49 = vld [vmem:[%s3968_s3] sm:$0xff]   ;;  %v3189_v55 = vld [vmem:[%s3964_s9 + $0x170] sm:$0xff]   ;;  %v3192_v58 = vld [vmem:[%s3967_s2 + $0x18] sm:$0xff]  }
  0x14   :  { %2871 = vmatpush3.bf16.msra.mxu1 %v3143_v9  ;;  %2840 = vmatprep.subr.bf16.mxu0 %v3144_v10  ;;  %v3190_v56 = vld [vmem:[%s3967_s2 + $0x10] sm:$0xff]   ;;  %v3194_v59 = vld [vmem:[%s3964_s9 + $0x128] sm:$0xff]   ;;  %v3193_v61 = vld [vmem:[%s3968_s3 + $0x18] sm:$0xff]  }
  0x15   :  { %2872 = vmatprep.subr.bf16.mxu1 %v3145_v11  ;;  %v3191_v57 = vld [vmem:[%s3968_s3 + $0x10] sm:$0xff]   ;;  %v3195_v60 = vld [vmem:[%s3964_s9 + $0x168] sm:$0xff]   ;;  %v3196_v62 = vld [vmem:[%s3964_s9 + $0x120] sm:$0xff]  }
  0x16   :  { %v3197_v63 = vld [vmem:[%s3964_s9 + $0x160] sm:$0xff]   ;;  %v3200_v2 = vld [vmem:[%s3967_s2 + $0x28] sm:$0xff]   ;;  %v3202_v3 = vld [vmem:[%s3964_s9 + $0x118] sm:$0xff]  }
  0x17   :  { %2841 = vmatpush3.bf16.msra.mxu0 %v3144_v10  ;;  %v3198_v0 = vld [vmem:[%s3967_s2 + $0x20] sm:$0xff]   ;;  %v3203_v4 = vld [vmem:[%s3964_s9 + $0x158] sm:$0xff]   ;;  %v3201_v5 = vld [vmem:[%s3968_s3 + $0x28] sm:$0xff]  }
  0x18   :  { %2873 = vmatpush3.bf16.msra.mxu1 %v3145_v11  ;;  %2842 = vmatprep.subr.bf16.mxu0 %v3146_v14  ;;  %v3199_v1 = vld [vmem:[%s3968_s3 + $0x20] sm:$0xff]   ;;  %v3204_v6 = vld [vmem:[%s3964_s9 + $0x110] sm:$0xff]   ;;  %v3208_v10 = vld [vmem:[%s3967_s2 + $0x38] sm:$0xff]  }
  0x19   :  { %2874 = vmatprep.subr.bf16.mxu1 %v3147_v15  ;;  %v3205_v7 = vld [vmem:[%s3964_s9 + $0x150] sm:$0xff]   ;;  %v3210_v11 = vld [vmem:[%s3964_s9 + $0x108] sm:$0xff]   ;;  %v3209_v13 = vld [vmem:[%s3968_s3 + $0x38] sm:$0xff]  }
  0x1a   :  { %v3206_v8 = vld [vmem:[%s3967_s2 + $0x30] sm:$0xff]   ;;  %v3211_v12 = vld [vmem:[%s3964_s9 + $0x148] sm:$0xff]  }
  0x1b   :  { %2843 = vmatpush3.bf16.msra.mxu0 %v3146_v14  ;;  %v3207_v9 = vld [vmem:[%s3968_s3 + $0x30] sm:$0xff]   ;;  %v3212_v14 = vld [vmem:[%s3964_s9 + $0x100] sm:$0xff]  }
  0x1c   :  { %2875 = vmatpush3.bf16.msra.mxu1 %v3147_v15  ;;  %2844 = vmatprep.subr.bf16.mxu0 %v3148_v16  ;;  %v3213_v15 = vld [vmem:[%s3964_s9 + $0x140] sm:$0xff]  }
  0x1d   :  { %2876 = vmatprep.subr.bf16.mxu1 %v3149_v17 }
  0x1f   :  { %2845 = vmatpush3.bf16.msra.mxu0 %v3148_v16  ;;  %v3214_v16 = vld [vmem:[%s3969_s4] sm:$0xff]  }
  0x20   :  { %2877 = vmatpush3.bf16.msra.mxu1 %v3149_v17  ;;  %2894 = vmatprep.subr.bf16.mxu0 %v3154_v19  ;;  %v3215_v17 = vld [vmem:[%s3970_s5] sm:$0xff]  }
  0x21   :  { %2926 = vmatprep.subr.bf16.mxu1 %v3155_v20 }
  0x22   :  { %2847 = vmatmul.mubr.bf16.vlgmr.msra.gmra.mxu0 %v3152_v18  ;;  %v3216_v18 = vld [vmem:[%s3969_s4 + $0x8] sm:$0xff]  }
  0x23   :  { %2879 = vmatmul.mubr.bf16.vlgmr.msra.gmra.mxu1 %v3153_v21  ;;  %2895 = vmatpush3.bf16.msra.mxu0 %v3154_v19  ;;  %v3218_v19 = vld [vmem:[%s3964_s9 + $0x1b8] sm:$0xff]   ;;  %v3217_v21 = vld [vmem:[%s3970_s5 + $0x8] sm:$0xff]  }
  0x24   :  { %2927 = vmatpush3.bf16.msra.mxu1 %v3155_v20  ;;  %2896 = vmatprep.subr.bf16.mxu0 %v3156_v22  ;;  %v3219_v20 = vld [vmem:[%s3964_s9 + $0x1f8] sm:$0xff]  }
  0x25   :  { %2928 = vmatprep.subr.bf16.mxu1 %v3157_v23  ;;  %2850 = vmatprep.mubr.bf16.mxu0 %v3158_v24  ;;  %v3222_v24 = vld [vmem:[%s3969_s4 + $0x10] sm:$0xff]  }
  0x26   :  { %2882 = vmatprep.mubr.bf16.mxu1 %v3159_v25  ;;  %v3223_v25 = vld [vmem:[%s3970_s5 + $0x10] sm:$0xff]  }
  0x27   :  { %2897 = vmatpush3.bf16.msra.mxu0 %v3156_v22  ;;  %v3220_v22 = vld [vmem:[%s3964_s9 + $0x1b0] sm:$0xff]  }
  0x28   :  { %2929 = vmatpush3.bf16.msra.mxu1 %v3157_v23  ;;  %2898 = vmatprep.subr.bf16.mxu0 %v3162_v27  ;;  %v3221_v23 = vld [vmem:[%s3964_s9 + $0x1f0] sm:$0xff]  }
  0x29   :  { %2930 = vmatprep.subr.bf16.mxu1 %v3163_v28 }
  0x2a   :  { %2851 = vmatmul.mubr.bf16.gmra.mxu0 %v3160_v26  ;;  %v3224_v26 = vld [vmem:[%s3969_s4 + $0x18] sm:$0xff]  }
  0x2b   :  { %2883 = vmatmul.mubr.bf16.gmra.mxu1 %v3161_v29  ;;  %2899 = vmatpush3.bf16.msra.mxu0 %v3162_v27  ;;  %v3226_v27 = vld [vmem:[%s3964_s9 + $0x1a8] sm:$0xff]   ;;  %v3225_v29 = vld [vmem:[%s3970_s5 + $0x18] sm:$0xff]  }
  0x2c   :  { %2931 = vmatpush3.bf16.msra.mxu1 %v3163_v28  ;;  %2900 = vmatprep.subr.bf16.mxu0 %v3164_v30  ;;  %v3227_v28 = vld [vmem:[%s3964_s9 + $0x1e8] sm:$0xff]  }
  0x2d   :  { %2932 = vmatprep.subr.bf16.mxu1 %v3165_v31  ;;  %2854 = vmatprep.mubr.bf16.mxu0 %v3166_v32  ;;  %v3230_v32 = vld [vmem:[%s3969_s4 + $0x20] sm:$0xff]  }
  0x2e   :  { %2886 = vmatprep.mubr.bf16.mxu1 %v3167_v33  ;;  %v3231_v33 = vld [vmem:[%s3970_s5 + $0x20] sm:$0xff]  }
  0x2f   :  { %2901 = vmatpush3.bf16.msra.mxu0 %v3164_v30  ;;  %v3228_v30 = vld [vmem:[%s3964_s9 + $0x1a0] sm:$0xff]  }
  0x30   :  { %2933 = vmatpush3.bf16.msra.mxu1 %v3165_v31  ;;  %2902 = vmatprep.subr.bf16.mxu0 %v3170_v35  ;;  %v3229_v31 = vld [vmem:[%s3964_s9 + $0x1e0] sm:$0xff]  }
  0x31   :  { %2934 = vmatprep.subr.bf16.mxu1 %v3171_v36 }
  0x32   :  { %2855 = vmatmul.mubr.bf16.gmra.mxu0 %v3168_v34  ;;  %v3232_v34 = vld [vmem:[%s3969_s4 + $0x28] sm:$0xff]  }
  0x33   :  { %2887 = vmatmul.mubr.bf16.gmra.mxu1 %v3169_v37  ;;  %2903 = vmatpush3.bf16.msra.mxu0 %v3170_v35  ;;  %v3234_v35 = vld [vmem:[%s3964_s9 + $0x198] sm:$0xff]   ;;  %v3233_v37 = vld [vmem:[%s3970_s5 + $0x28] sm:$0xff]  }
  0x34   :  { %2935 = vmatpush3.bf16.msra.mxu1 %v3171_v36  ;;  %2904 = vmatprep.subr.bf16.mxu0 %v3172_v38  ;;  %v3235_v36 = vld [vmem:[%s3964_s9 + $0x1d8] sm:$0xff]  }
  0x35   :  { %2936 = vmatprep.subr.bf16.mxu1 %v3173_v39  ;;  %2858 = vmatprep.mubr.bf16.mxu0 %v3174_v40  ;;  %v3238_v40 = vld [vmem:[%s3969_s4 + $0x30] sm:$0xff]  }
  0x36   :  { %2890 = vmatprep.mubr.bf16.mxu1 %v3175_v41  ;;  %v3239_v41 = vld [vmem:[%s3970_s5 + $0x30] sm:$0xff]  }
  0x37   :  { %2905 = vmatpush3.bf16.msra.mxu0 %v3172_v38  ;;  %v3236_v38 = vld [vmem:[%s3964_s9 + $0x190] sm:$0xff]  }
  0x38   :  { %2937 = vmatpush3.bf16.msra.mxu1 %v3173_v39  ;;  %2906 = vmatprep.subr.bf16.mxu0 %v3178_v43  ;;  %v3237_v39 = vld [vmem:[%s3964_s9 + $0x1d0] sm:$0xff]  }
  0x39   :  { %2938 = vmatprep.subr.bf16.mxu1 %v3179_v44 }
  0x3a   :  { %2859 = vmatmul.mubr.bf16.gmra.mxu0 %v3176_v42  ;;  %v3240_v42 = vld [vmem:[%s3969_s4 + $0x38] sm:$0xff]  }
  0x3b   :  { %2891 = vmatmul.mubr.bf16.gmra.mxu1 %v3177_v45  ;;  %2907 = vmatpush3.bf16.msra.mxu0 %v3178_v43  ;;  %v3242_v43 = vld [vmem:[%s3964_s9 + $0x188] sm:$0xff]   ;;  %v3241_v45 = vld [vmem:[%s3970_s5 + $0x38] sm:$0xff]  }
  0x3c   :  { %2939 = vmatpush3.bf16.msra.mxu1 %v3179_v44  ;;  %2908 = vmatprep.subr.bf16.mxu0 %v3180_v46  ;;  %v3243_v44 = vld [vmem:[%s3964_s9 + $0x1c8] sm:$0xff]  }
  0x3d   :  { %2940 = vmatprep.subr.bf16.mxu1 %v3181_v47  ;;  %2910 = vmatprep.mubr.bf16.mxu0 %v3182_v48  ;;  %v3246_v48 = vld [vmem:[%s3971_s6] sm:$0xff]  }
  0x3e   :  { %2942 = vmatprep.mubr.bf16.mxu1 %v3183_v49  ;;  %v3247_v49 = vld [vmem:[%s3972_s7] sm:$0xff]  }
  0x3f   :  { %2909 = vmatpush3.bf16.msra.mxu0 %v3180_v46  ;;  %v3244_v46 = vld [vmem:[%s3964_s9 + $0x180] sm:$0xff]  }
  0x40   :  { %2941 = vmatpush3.bf16.msra.mxu1 %v3181_v47  ;;  %2958 = vmatprep.subr.bf16.mxu0 %v3186_v51  ;;  %v3245_v47 = vld [vmem:[%s3964_s9 + $0x1c0] sm:$0xff]  }
  0x41   :  { %2990 = vmatprep.subr.bf16.mxu1 %v3187_v52 }
  0x42   :  { %2911 = vmatmul.mubr.bf16.vlgmr.msra.gmra.mxu0 %v3184_v50  ;;  %v3250_v50 = vld [vmem:[%s3964_s9 + $0x238] sm:$0xff]  }
  0x43   :  { %2943 = vmatmul.mubr.bf16.vlgmr.msra.gmra.mxu1 %v3185_v53  ;;  %2959 = vmatpush3.bf16.msra.mxu0 %v3186_v51  ;;  %v3248_v51 = vld [vmem:[%s3971_s6 + $0x8] sm:$0xff]   ;;  %v3251_v53 = vld [vmem:[%s3964_s9 + $0x230] sm:$0xff]  }
  0x44   :  { %2991 = vmatpush3.bf16.msra.mxu1 %v3187_v52  ;;  %2960 = vmatprep.subr.bf16.mxu0 %v3188_v54  ;;  %v3249_v52 = vld [vmem:[%s3972_s7 + $0x8] sm:$0xff]  }
  0x45   :  { %2992 = vmatprep.subr.bf16.mxu1 %v3189_v55  ;;  %2914 = vmatprep.mubr.bf16.mxu0 %v3190_v56  ;;  %v3256_v56 = vld [vmem:[%s3964_s9 + $0x228] sm:$0xff]  }
  0x46   :  { %2946 = vmatprep.mubr.bf16.mxu1 %v3191_v57  ;;  %v3254_v57 = vld [vmem:[%s3971_s6 + $0x18] sm:$0xff]  }
  0x47   :  { %2961 = vmatpush3.bf16.msra.mxu0 %v3188_v54  ;;  %v3252_v54 = vld [vmem:[%s3971_s6 + $0x10] sm:$0xff]  }
  0x48   :  { %2993 = vmatpush3.bf16.msra.mxu1 %v3189_v55  ;;  %2962 = vmatprep.subr.bf16.mxu0 %v3194_v59  ;;  %v3253_v55 = vld [vmem:[%s3972_s7 + $0x10] sm:$0xff]  }
  0x49   :  { %2994 = vmatprep.subr.bf16.mxu1 %v3195_v60 }
  0x4a   :  { %2915 = vmatmul.mubr.bf16.gmra.mxu0 %v3192_v58  ;;  %v3255_v58 = vld [vmem:[%s3972_s7 + $0x18] sm:$0xff]  }
  0x4b   :  { %2947 = vmatmul.mubr.bf16.gmra.mxu1 %v3193_v61  ;;  %2963 = vmatpush3.bf16.msra.mxu0 %v3194_v59  ;;  %v3257_v59 = vld [vmem:[%s3964_s9 + $0x220] sm:$0xff]  }
  0x4c   :  { %2995 = vmatpush3.bf16.msra.mxu1 %v3195_v60  ;;  %2964 = vmatprep.subr.bf16.mxu0 %v3196_v62  ;;  %v3258_v60 = vld [vmem:[%s3971_s6 + $0x20] sm:$0xff]  }
  0x4d   :  { %2996 = vmatprep.subr.bf16.mxu1 %v3197_v63  ;;  %2918 = vmatprep.mubr.bf16.mxu0 %v3198_v0  ;;  %v3259_v61 = vld [vmem:[%s3972_s7 + $0x20] sm:$0xff]   ;;  %v3261_v0 = vld [vmem:[%s3972_s7 + $0x28] sm:$0xff]  }
  0x4e   :  { %2950 = vmatprep.mubr.bf16.mxu1 %v3199_v1  ;;  %v3263_v1 = vld [vmem:[%s3964_s9 + $0x210] sm:$0xff]  }
  0x4f   :  { %2965 = vmatpush3.bf16.msra.mxu0 %v3196_v62  ;;  %v3262_v62 = vld [vmem:[%s3964_s9 + $0x218] sm:$0xff]  }
  0x50   :  { %2997 = vmatpush3.bf16.msra.mxu1 %v3197_v63  ;;  %2966 = vmatprep.subr.bf16.mxu0 %v3202_v3  ;;  %v3260_v63 = vld [vmem:[%s3971_s6 + $0x28] sm:$0xff]  }
  0x51   :  { %2998 = vmatprep.subr.bf16.mxu1 %v3203_v4 }
  0x52   :  { %2919 = vmatmul.mubr.bf16.gmra.mxu0 %v3200_v2  ;;  %v3264_v2 = vld [vmem:[%s3971_s6 + $0x30] sm:$0xff]  }
  0x53   :  { %2951 = vmatmul.mubr.bf16.gmra.mxu1 %v3201_v5  ;;  %2967 = vmatpush3.bf16.msra.mxu0 %v3202_v3  ;;  %v3265_v3 = vld [vmem:[%s3972_s7 + $0x30] sm:$0xff]   ;;  %v3266_v5 = vld [vmem:[%s3971_s6 + $0x38] sm:$0xff]  }
  0x54   :  { %2999 = vmatpush3.bf16.msra.mxu1 %v3203_v4  ;;  %2968 = vmatprep.subr.bf16.mxu0 %v3204_v6  ;;  %v3268_v4 = vld [vmem:[%s3964_s9 + $0x208] sm:$0xff]  }
  0x55   :  { %3000 = vmatprep.subr.bf16.mxu1 %v3205_v7  ;;  %2922 = vmatprep.mubr.bf16.mxu0 %v3206_v8  ;;  %v3270_v8 = vld [vmem:[%s3973_s8] sm:$0xff]  }
  0x56   :  { %2954 = vmatprep.mubr.bf16.mxu1 %v3207_v9  ;;  %v3271_v9 = vld [vmem:[%s3973_s8 + $0x20] sm:$0xff]  }
  0x57   :  { %2969 = vmatpush3.bf16.msra.mxu0 %v3204_v6  ;;  %v3267_v6 = vld [vmem:[%s3972_s7 + $0x38] sm:$0xff]  }
  0x58   :  { %3001 = vmatpush3.bf16.msra.mxu1 %v3205_v7  ;;  %2970 = vmatprep.subr.bf16.mxu0 %v3210_v11  ;;  %v3269_v7 = vld [vmem:[%s3964_s9 + $0x200] sm:$0xff]  }
  0x59   :  { %3002 = vmatprep.subr.bf16.mxu1 %v3211_v12 }
  0x5a   :  { %2923 = vmatmul.mubr.bf16.gmra.mxu0 %v3208_v10  ;;  %v3272_v10 = vld [vmem:[%s3973_s8 + $0x8] sm:$0xff]  }
  0x5b   :  { %2955 = vmatmul.mubr.bf16.gmra.mxu1 %v3209_v13  ;;  %2971 = vmatpush3.bf16.msra.mxu0 %v3210_v11  ;;  %v3273_v11 = vld [vmem:[%s3973_s8 + $0x28] sm:$0xff]   ;;  %v3275_v13 = vld [vmem:[%s3973_s8 + $0x30] sm:$0xff]  }
  0x5c   :  { %3003 = vmatpush3.bf16.msra.mxu1 %v3211_v12  ;;  %2972 = vmatprep.subr.bf16.mxu0 %v3212_v14  ;;  %v3274_v12 = vld [vmem:[%s3973_s8 + $0x10] sm:$0xff]  }
  0x5d   :  { %3004 = vmatprep.subr.bf16.mxu1 %v3213_v15  ;;  %2974 = vmatprep.mubr.bf16.mxu0 %v3214_v16 }
  0x5e   :  { %3006 = vmatprep.mubr.bf16.mxu1 %v3215_v17 }
  0x5f   :  { %2973 = vmatpush3.bf16.msra.mxu0 %v3212_v14  ;;  %v3276_v14 = vld [vmem:[%s3973_s8 + $0x18] sm:$0xff]  }
  0x60   :  { %3005 = vmatpush3.bf16.msra.mxu1 %v3213_v15  ;;  %3022 = vmatprep.subr.bf16.mxu0 %v3218_v19  ;;  %v3277_v15 = vld [vmem:[%s3973_s8 + $0x38] sm:$0xff]  }
  0x61   :  { %3054 = vmatprep.subr.bf16.mxu1 %v3219_v20 }
  0x62   :  { %2975 = vmatmul.mubr.bf16.vlgmr.msra.gmra.mxu0 %v3216_v18 }
  0x63   :  { %3007 = vmatmul.mubr.bf16.vlgmr.msra.gmra.mxu1 %v3217_v21  ;;  %3023 = vmatpush3.bf16.msra.mxu0 %v3218_v19 }
  0x64   :  { %3055 = vmatpush3.bf16.msra.mxu1 %v3219_v20  ;;  %3024 = vmatprep.subr.bf16.mxu0 %v3220_v22 }
  0x65   :  { %3056 = vmatprep.subr.bf16.mxu1 %v3221_v23  ;;  %2978 = vmatprep.mubr.bf16.mxu0 %v3222_v24 }
  0x66   :  { %3010 = vmatprep.mubr.bf16.mxu1 %v3223_v25 }
  0x67   :  { %3025 = vmatpush3.bf16.msra.mxu0 %v3220_v22 }
  0x68   :  { %3057 = vmatpush3.bf16.msra.mxu1 %v3221_v23  ;;  %3026 = vmatprep.subr.bf16.mxu0 %v3226_v27 }
  0x69   :  { %3058 = vmatprep.subr.bf16.mxu1 %v3227_v28 }
  0x6a   :  { %2979 = vmatmul.mubr.bf16.gmra.mxu0 %v3224_v26 }
  0x6b   :  { %3011 = vmatmul.mubr.bf16.gmra.mxu1 %v3225_v29  ;;  %3027 = vmatpush3.bf16.msra.mxu0 %v3226_v27 }
  0x6c   :  { %3059 = vmatpush3.bf16.msra.mxu1 %v3227_v28  ;;  %3028 = vmatprep.subr.bf16.mxu0 %v3228_v30 }
  0x6d   :  { %3060 = vmatprep.subr.bf16.mxu1 %v3229_v31  ;;  %2982 = vmatprep.mubr.bf16.mxu0 %v3230_v32 }
  0x6e   :  { %3014 = vmatprep.mubr.bf16.mxu1 %v3231_v33 }
  0x6f   :  { %3029 = vmatpush3.bf16.msra.mxu0 %v3228_v30 }
  0x70   :  { %3061 = vmatpush3.bf16.msra.mxu1 %v3229_v31  ;;  %3030 = vmatprep.subr.bf16.mxu0 %v3234_v35 }
  0x71   :  { %3062 = vmatprep.subr.bf16.mxu1 %v3235_v36 }
  0x72   :  { %2983 = vmatmul.mubr.bf16.gmra.mxu0 %v3232_v34 }
  0x73   :  { %3015 = vmatmul.mubr.bf16.gmra.mxu1 %v3233_v37  ;;  %3031 = vmatpush3.bf16.msra.mxu0 %v3234_v35 }
  0x74   :  { %3063 = vmatpush3.bf16.msra.mxu1 %v3235_v36  ;;  %3032 = vmatprep.subr.bf16.mxu0 %v3236_v38 }
  0x75   :  { %3064 = vmatprep.subr.bf16.mxu1 %v3237_v39  ;;  %2986 = vmatprep.mubr.bf16.mxu0 %v3238_v40 }
  0x76   :  { %3018 = vmatprep.mubr.bf16.mxu1 %v3239_v41 }
  0x77   :  { %3033 = vmatpush3.bf16.msra.mxu0 %v3236_v38 }
  0x78   :  { %3065 = vmatpush3.bf16.msra.mxu1 %v3237_v39  ;;  %3034 = vmatprep.subr.bf16.mxu0 %v3242_v43 }
  0x79   :  { %3066 = vmatprep.subr.bf16.mxu1 %v3243_v44 }
  0x7a   :  { %2987 = vmatmul.mubr.bf16.gmra.mxu0 %v3240_v42 }
  0x7b   :  { %3019 = vmatmul.mubr.bf16.gmra.mxu1 %v3241_v45  ;;  %3035 = vmatpush3.bf16.msra.mxu0 %v3242_v43 }
  0x7c   :  { %3067 = vmatpush3.bf16.msra.mxu1 %v3243_v44  ;;  %3036 = vmatprep.subr.bf16.mxu0 %v3244_v46 }
  0x7d   :  { %3068 = vmatprep.subr.bf16.mxu1 %v3245_v47  ;;  %3038 = vmatprep.mubr.bf16.mxu0 %v3246_v48 }
  0x7e   :  { %3070 = vmatprep.mubr.bf16.mxu1 %v3247_v49 }
  0x7f   :  { %3037 = vmatpush3.bf16.msra.mxu0 %v3244_v46 }
  0x80   :  { %3069 = vmatpush3.bf16.msra.mxu1 %v3245_v47  ;;  %3086 = vmatprep.subr.bf16.mxu0 %v3250_v50 }
  0x81   :  { %3118 = vmatprep.subr.bf16.mxu1 %v3250_v50 }
  0x82   :  { %3039 = vmatmul.mubr.bf16.vlgmr.msra.gmra.mxu0 %v3248_v51 }
  0x83   :  { %3071 = vmatmul.mubr.bf16.vlgmr.msra.gmra.mxu1 %v3249_v52  ;;  %3087 = vmatpush3.bf16.msra.mxu0 %v3250_v50 }
  0x84   :  { %3126 = vmatpush3.bf16.msra.mxu1 %v3250_v50  ;;  %3088 = vmatprep.subr.bf16.mxu0 %v3251_v53 }
  0x85   :  { %3119 = vmatprep.subr.bf16.mxu1 %v3251_v53  ;;  %3042 = vmatprep.mubr.bf16.mxu0 %v3252_v54 }
  0x86   :  { %3074 = vmatprep.mubr.bf16.mxu1 %v3253_v55 }
  0x87   :  { %3089 = vmatpush3.bf16.msra.mxu0 %v3251_v53 }
  0x88   :  { %3127 = vmatpush3.bf16.msra.mxu1 %v3251_v53  ;;  %3090 = vmatprep.subr.bf16.mxu0 %v3256_v56 }
  0x89   :  { %3120 = vmatprep.subr.bf16.mxu1 %v3256_v56 }
  0x8a   :  { %3043 = vmatmul.mubr.bf16.gmra.mxu0 %v3254_v57 }
  0x8b   :  { %3075 = vmatmul.mubr.bf16.gmra.mxu1 %v3255_v58  ;;  %3091 = vmatpush3.bf16.msra.mxu0 %v3256_v56 }
  0x8c   :  { %3128 = vmatpush3.bf16.msra.mxu1 %v3256_v56  ;;  %3092 = vmatprep.subr.bf16.mxu0 %v3257_v59 }
  0x8d   :  { %3121 = vmatprep.subr.bf16.mxu1 %v3257_v59  ;;  %3046 = vmatprep.mubr.bf16.mxu0 %v3258_v60 }
  0x8e   :  { %3078 = vmatprep.mubr.bf16.mxu1 %v3259_v61 }
  0x8f   :  { %3093 = vmatpush3.bf16.msra.mxu0 %v3257_v59 }
  0x90   :  { %3129 = vmatpush3.bf16.msra.mxu1 %v3257_v59  ;;  %3094 = vmatprep.subr.bf16.mxu0 %v3262_v62 }
  0x91   :  { %3122 = vmatprep.subr.bf16.mxu1 %v3262_v62 }
  0x92   :  { %3047 = vmatmul.mubr.bf16.gmra.mxu0 %v3260_v63 }
  0x93   :  { %3079 = vmatmul.mubr.bf16.gmra.mxu1 %v3261_v0  ;;  %3095 = vmatpush3.bf16.msra.mxu0 %v3262_v62 }
  0x94   :  { %3130 = vmatpush3.bf16.msra.mxu1 %v3262_v62  ;;  %3096 = vmatprep.subr.bf16.mxu0 %v3263_v1 }
  0x95   :  { %3123 = vmatprep.subr.bf16.mxu1 %v3263_v1  ;;  %3050 = vmatprep.mubr.bf16.mxu0 %v3264_v2 }
  0x96   :  { %3082 = vmatprep.mubr.bf16.mxu1 %v3265_v3 }
  0x97   :  { %3097 = vmatpush3.bf16.msra.mxu0 %v3263_v1 }
  0x98   :  { %3131 = vmatpush3.bf16.msra.mxu1 %v3263_v1  ;;  %3098 = vmatprep.subr.bf16.mxu0 %v3268_v4 }
  0x99   :  { %3124 = vmatprep.subr.bf16.mxu1 %v3268_v4 }
  0x9a   :  { %3051 = vmatmul.mubr.bf16.gmra.mxu0 %v3266_v5 }
  0x9b   :  { %3083 = vmatmul.mubr.bf16.gmra.mxu1 %v3267_v6  ;;  %3099 = vmatpush3.bf16.msra.mxu0 %v3268_v4 }
  0x9c   :  { %3132 = vmatpush3.bf16.msra.mxu1 %v3268_v4  ;;  %3100 = vmatprep.subr.bf16.mxu0 %v3269_v7 }
  0x9d   :  { %3125 = vmatprep.subr.bf16.mxu1 %v3269_v7  ;;  %3102 = vmatprep.mubr.bf16.mxu0 %v3270_v8 }
  0x9e   :  { %3110 = vmatprep.mubr.bf16.mxu1 %v3271_v9 }
  0x9f   :  { %3101 = vmatpush3.bf16.msra.mxu0 %v3269_v7 }
  0xa0   :  { %3133 = vmatpush3.bf16.msra.mxu1 %v3269_v7 }
  0xa2   :  { %3103 = vmatmul.mubr.bf16.vlgmr.msra.gmra.mxu0 %v3272_v10 }
  0xa3   :  { %3111 = vmatmul.mubr.bf16.vlgmr.msra.gmra.mxu1 %v3273_v11  ;;  %3106 = vmatprep.mubr.bf16.mxu0 %v3274_v12 }
  0xa4   :  { %3114 = vmatprep.mubr.bf16.mxu1 %v3275_v13 }
  0xaa   :  { %3107 = vmatmul.mubr.bf16.gmra.mxu0 %v3276_v14 }
  0xab   :  { %3115 = vmatmul.mubr.bf16.gmra.mxu1 %v3277_v15 }
  0xe2   :  { %v2848_v16 = vpop.f32.mrf.mxu0 }
  0xe3   :  { %v2880_v17 = vpop.f32.mrf.mxu1 }
  0xe4   :  { %v439_v18 = vadd.f32 %v2880_v17, %v2848_v16  ;;  %v237_v19 = vpop.f32.mrf.mxu0 }
  0xe5   :  { %v430_v20 = vpop.f32.mrf.mxu1 }
  0xe6   :  { %v431_v21 = vadd.f32 %v430_v20, %v237_v19  ;;  %v2849_v22 = vpop.f32.mrf.mxu0 }
  0xe7   :  { %v2881_v23 = vpop.f32.mrf.mxu1 }
  0xe8   :  { %v442_v24 = vadd.f32 %v2881_v23, %v2849_v22  ;;  %v240_v25 = vpop.f32.mrf.mxu0 }
  0xe9   :  { %v433_v26 = vpop.f32.mrf.mxu1 }
  0xea   :  { %v434_v27 = vadd.f32 %v433_v26, %v240_v25  ;;  %v2852_v28 = vpop.f32.mrf.mxu0 }
  0xeb   :  { %v2884_v29 = vpop.f32.mrf.mxu1 }
  0xec   :  { %v455_v30 = vadd.f32 %v2884_v29, %v2852_v28  ;;  %v253_v31 = vpop.f32.mrf.mxu0 }
  0xed   :  { %v446_v32 = vpop.f32.mrf.mxu1 }
  0xee   :  { %v447_v33 = vadd.f32 %v446_v32, %v253_v31  ;;  %v2853_v34 = vpop.f32.mrf.mxu0 }
  0xef   :  { %v2885_v35 = vpop.f32.mrf.mxu1 }
  0xf0   :  { %v458_v36 = vadd.f32 %v2885_v35, %v2853_v34  ;;  %v256_v37 = vpop.f32.mrf.mxu0 }
  0xf1   :  { %v449_v38 = vpop.f32.mrf.mxu1 }
  0xf2   :  { %v450_v39 = vadd.f32 %v449_v38, %v256_v37  ;;  %v2856_v40 = vpop.f32.mrf.mxu0 }
  0xf3   :  { %v2888_v41 = vpop.f32.mrf.mxu1 }
  0xf4   :  { %v471_v42 = vadd.f32 %v2888_v41, %v2856_v40  ;;  %v269_v43 = vpop.f32.mrf.mxu0 }
  0xf5   :  { %v462_v44 = vpop.f32.mrf.mxu1 }
  0xf6   :  { %v463_v45 = vadd.f32 %v462_v44, %v269_v43  ;;  %v2857_v46 = vpop.f32.mrf.mxu0 }
  0xf7   :  { %v2889_v47 = vpop.f32.mrf.mxu1 }
  0xf8   :  { %v474_v48 = vadd.f32 %v2889_v47, %v2857_v46  ;;  %v272_v49 = vpop.f32.mrf.mxu0 }
  0xf9   :  { %v465_v50 = vpop.f32.mrf.mxu1 }
  0xfa   :  { %v466_v51 = vadd.f32 %v465_v50, %v272_v49  ;;  %v2860_v52 = vpop.f32.mrf.mxu0 }
  0xfb   :  { %v2892_v53 = vpop.f32.mrf.mxu1 }
  0xfc   :  { %v487_v54 = vadd.f32 %v2892_v53, %v2860_v52  ;;  %v285_v55 = vpop.f32.mrf.mxu0 }
  0xfd   :  { %v478_v56 = vpop.f32.mrf.mxu1 }
  0xfe   :  { %v479_v57 = vadd.f32 %v478_v56, %v285_v55  ;;  %v2861_v58 = vpop.f32.mrf.mxu0 }
  0xff   :  { %v2893_v59 = vpop.f32.mrf.mxu1 }
 0x100   :  { %v490_v60 = vadd.f32 %v2893_v59, %v2861_v58  ;;  %v288_v61 = vpop.f32.mrf.mxu0 }
 0x101   :  { %v481_v62 = vpop.f32.mrf.mxu1 }
 0x102   :  { %v482_v63 = vadd.f32 %v481_v62, %v288_v61  ;;  %v2912_v0 = vpop.f32.mrf.mxu0 }
 0x103   :  { %v721_v1 = vadd.f32 %v2912_v0, %v439_v18  ;;  %v2944_v2 = vpop.f32.mrf.mxu1 }
 0x104   :  { %v656_v3 = vpop.f32.mrf.mxu0 }
 0x105   :  { %v3775_v4 = vadd.f32 %v2944_v2, %v721_v1  ;;  %v719_v5 = vadd.f32 %v656_v3, %v431_v21  ;;  %v898_v6 = vpop.f32.mrf.mxu1 }
 0x106   :  { %v2913_v7 = vpop.f32.mrf.mxu0 }
 0x107   :  { %v3777_v8 = vadd.f32 %v898_v6, %v719_v5  ;;  %v722_v9 = vadd.f32 %v2913_v7, %v442_v24  ;;  %v2945_v10 = vpop.f32.mrf.mxu1 }
 0x108   :  { %v659_v11 = vpop.f32.mrf.mxu0 }
 0x109   :  { %v3779_v12 = vadd.f32 %v2945_v10, %v722_v9  ;;  %v720_v13 = vadd.f32 %v659_v11, %v434_v27  ;;  %v901_v14 = vpop.f32.mrf.mxu1 }
 0x10a   :  { %v2916_v15 = vpop.f32.mrf.mxu0 }
 0x10b   :  { %v3781_v16 = vadd.f32 %v901_v14, %v720_v13  ;;  %v725_v17 = vadd.f32 %v2916_v15, %v455_v30  ;;  %v2948_v18 = vpop.f32.mrf.mxu1 }
 0x10c   :  { %v672_v19 = vpop.f32.mrf.mxu0 }
 0x10d   :  { %v3783_v20 = vadd.f32 %v2948_v18, %v725_v17  ;;  %v723_v21 = vadd.f32 %v672_v19, %v447_v33  ;;  %v914_v22 = vpop.f32.mrf.mxu1 }
 0x10e   :  { %v2917_v23 = vpop.f32.mrf.mxu0 }
 0x10f   :  { %v3785_v25 = vadd.f32 %v914_v22, %v723_v21  ;;  %v726_v24 = vadd.f32 %v2917_v23, %v458_v36  ;;  %v2949_v26 = vpop.f32.mrf.mxu1 }
 0x110   :  { %v675_v28 = vpop.f32.mrf.mxu0 }
 0x111   :  { %v3787_v29 = vadd.f32 %v2949_v26, %v726_v24  ;;  %v724_v27 = vadd.f32 %v675_v28, %v450_v39  ;;  %v917_v31 = vpop.f32.mrf.mxu1 }
 0x112   :  { %v2920_v32 = vpop.f32.mrf.mxu0 }
 0x113   :  { %v3789_v34 = vadd.f32 %v917_v31, %v724_v27  ;;  %v729_v30 = vadd.f32 %v2920_v32, %v471_v42  ;;  %v2952_v35 = vpop.f32.mrf.mxu1 }
 0x114   :  { %v688_v37 = vpop.f32.mrf.mxu0 }
 0x115   :  { %v3791_v38 = vadd.f32 %v2952_v35, %v729_v30  ;;  %v727_v33 = vadd.f32 %v688_v37, %v463_v45  ;;  %v930_v40 = vpop.f32.mrf.mxu1 }
 0x116   :  { %v2921_v41 = vpop.f32.mrf.mxu0 }
 0x117   :  { %v3793_v43 = vadd.f32 %v930_v40, %v727_v33  ;;  %v730_v36 = vadd.f32 %v2921_v41, %v474_v48  ;;  %v2953_v44 = vpop.f32.mrf.mxu1 }
 0x118   :  { %v691_v46 = vpop.f32.mrf.mxu0 }
 0x119   :  { %v3795_v47 = vadd.f32 %v2953_v44, %v730_v36  ;;  %v728_v39 = vadd.f32 %v691_v46, %v466_v51  ;;  %v933_v49 = vpop.f32.mrf.mxu1 }
 0x11a   :  { %v2924_v50 = vpop.f32.mrf.mxu0 }
 0x11b   :  { %v3797_v52 = vadd.f32 %v933_v49, %v728_v39  ;;  %v733_v42 = vadd.f32 %v2924_v50, %v487_v54  ;;  %v2956_v53 = vpop.f32.mrf.mxu1 }
 0x11c   :  { %v704_v55 = vpop.f32.mrf.mxu0 }
 0x11d   :  { %v3799_v56 = vadd.f32 %v2956_v53, %v733_v42  ;;  %v731_v45 = vadd.f32 %v704_v55, %v479_v57  ;;  %v946_v58 = vpop.f32.mrf.mxu1 }
 0x11e   :  { %v2925_v59 = vpop.f32.mrf.mxu0 }
 0x11f   :  { %v3801_v61 = vadd.f32 %v946_v58, %v731_v45  ;;  %v734_v48 = vadd.f32 %v2925_v59, %v490_v60  ;;  %v2957_v62 = vpop.f32.mrf.mxu1 }
 0x120   :  { %v707_v0 = vpop.f32.mrf.mxu0 }
 0x121   :  { %v3803_v1 = vadd.f32 %v2957_v62, %v734_v48  ;;  %v732_v51 = vadd.f32 %v707_v0, %v482_v63  ;;  %v949_v2 = vpop.f32.mrf.mxu1 }
 0x122   :  { %v2976_v3 = vpop.f32.mrf.mxu0 }
 0x123   :  { %v3805_v5 = vadd.f32 %v949_v2, %v732_v51  ;;  %v3008_v54 = vpop.f32.mrf.mxu1 }
 0x124   :  { %v1140_v6 = vpop.f32.mrf.mxu0 }
 0x125   :  { %v1382_v7 = vpop.f32.mrf.mxu1 }
 0x126   :  { %v2977_v9 = vpop.f32.mrf.mxu0 }
 0x127   :  { %v3009_v10 = vpop.f32.mrf.mxu1 }
 0x128   :  { %v1143_v57 = vpop.f32.mrf.mxu0 }
 0x129   :  { %v1385_v11 = vpop.f32.mrf.mxu1 }
 0x12a   :  { %v2980_v13 = vpop.f32.mrf.mxu0 }
 0x12b   :  { %v3012_v14 = vpop.f32.mrf.mxu1 }
 0x12c   :  { %v1156_v15 = vpop.f32.mrf.mxu0 }
 0x12d   :  { %v1398_v60 = vpop.f32.mrf.mxu1 }
 0x12e   :  { %v2981_v17 = vpop.f32.mrf.mxu0 }
 0x12f   :  { %v3807_v18 = vpop.f32.mrf.mxu1 }
 0x130   :  { %v1159_v19 = vpop.f32.mrf.mxu0 }
 0x131   :  { %v3809_v63 = vpop.f32.mrf.mxu1 }
 0x132   :  { %v2984_v21 = vpop.f32.mrf.mxu0 }
 0x133   :  { %v3016_v22 = vpop.f32.mrf.mxu1 }
 0x134   :  { %v1172_v23 = vpop.f32.mrf.mxu0 }
 0x135   :  { %v3811_v24 = vpop.f32.mrf.mxu1 }
 0x136   :  { %v2985_v26 = vpop.f32.mrf.mxu0 }
 0x137   :  { %v3813_v28 = vpop.f32.mrf.mxu1 }
 0x138   :  { %v1175_v27 = vpop.f32.mrf.mxu0 }
 0x139   :  { %v3815_v31 = vpop.f32.mrf.mxu1 }
 0x13a   :  { %v2988_v32 = vpop.f32.mrf.mxu0 }
 0x13b   :  { %v3817_v30 = vpop.f32.mrf.mxu1 }
 0x13c   :  { %3977 = vst [vmem:[#allocation2_spill] sm:$0xff] %v3817_v30  ;;  %v1188_v35 = vpop.f32.mrf.mxu0  ;;  %v1213_v30 = vadd.f32 %v2984_v21, %v3791_v38  ;;  %v1217_v38 = vadd.f32 %v2988_v32, %v3799_v56 }
 0x13d   :  { %v3819_v37 = vpop.f32.mrf.mxu1 }
 0x13e   :  { %3978 = vst [vmem:[#allocation3_spill] sm:$0xff] %v3819_v37  ;;  %v2989_v33 = vpop.f32.mrf.mxu0 }
 0x13f   :  { %v3821_v40 = vpop.f32.mrf.mxu1 }
 0x140   :  { %3979 = vst [vmem:[#allocation4_spill] sm:$0xff] %v3821_v40  ;;  %v1191_v41 = vpop.f32.mrf.mxu0 }
 0x141   :  { %v3823_v36 = vpop.f32.mrf.mxu1 }
 0x142   :  { %3980 = vst [vmem:[#allocation5_spill] sm:$0xff] %v3823_v36  ;;  %v3040_v44 = vpop.f32.mrf.mxu0  ;;  %v1205_v36 = vadd.f32 %v2976_v3, %v3775_v4 }
 0x143   :  { %v3825_v46 = vpop.f32.mrf.mxu1 }
 0x144   :  { %3981 = vst [vmem:[#allocation6_spill] sm:$0xff] %v3825_v46  ;;  %v1624_v39 = vpop.f32.mrf.mxu0  ;;  %v1447_v3 = vadd.f32 %v3008_v54, %v1205_v36  ;;  %v1215_v54 = vadd.f32 %v1188_v35, %v3801_v61 }
 0x145   :  { %v3827_v49 = vpop.f32.mrf.mxu1 }
 0x146   :  { %3982 = vst [vmem:[#allocation7_spill] sm:$0xff] %v3827_v49  ;;  %v3041_v50 = vpop.f32.mrf.mxu0 }
 0x147   :  { %v3829_v42 = vpop.f32.mrf.mxu1 }
 0x148   :  { %3983 = vst [vmem:[#allocation8_spill] sm:$0xff] %v3829_v42  ;;  %v1627_v53 = vpop.f32.mrf.mxu0 }
 0x149   :  { %v3831_v55 = vpop.f32.mrf.mxu1 }
 0x14a   :  { %3984 = vst [vmem:[#allocation9_spill] sm:$0xff] %v3831_v55  ;;  %v3044_v45 = vpop.f32.mrf.mxu0  ;;  %v1203_v55 = vadd.f32 %v1140_v6, %v3777_v8 }
 0x14b   :  { %v3833_v58 = vpop.f32.mrf.mxu1 }
 0x14c   :  { %3985 = vst [vmem:[#allocation10_spill] sm:$0xff] %v3833_v58  ;;  %v1640_v59 = vpop.f32.mrf.mxu0  ;;  %v1206_v58 = vadd.f32 %v2977_v9, %v3779_v12  ;;  %v1445_v8 = vadd.f32 %v1382_v7, %v1203_v55  ;;  %v1208_v12 = vadd.f32 %v1159_v19, %v3789_v34  ;;  %v1455_v34 = vadd.f32 %v3016_v22, %v1213_v30  ;;  %v3991_v22 = vld [vmem:[#allocation2_spill] sm:$0xff] }
 0x14d   :  { %v3835_v48 = vpop.f32.mrf.mxu1 }
 0x14e   :  { %3986 = vst [vmem:[#allocation11_spill] sm:$0xff] %v3835_v48  ;;  %v3837_v62 = vpop.f32.mrf.mxu0  ;;  %v1204_v48 = vadd.f32 %v1143_v57, %v3781_v16  ;;  %v1448_v6 = vadd.f32 %v3009_v10, %v1206_v58  ;;  %v1687_v19 = vadd.f32 %v1624_v39, %v1445_v8  ;;  %v3995_v39 = vld [vmem:[#allocation6_spill] sm:$0xff] }
 0x14f   :  { %3987 = vst [vmem:[#allocation12_spill] sm:$0xff] %v3837_v62  ;;  %v3839_v0 = vpop.f32.mrf.mxu1  ;;  %v1209_v62 = vadd.f32 %v2980_v13, %v3783_v20  ;;  %v1211_v20 = vadd.f32 %v1172_v23, %v3793_v43  ;;  %v1450_v43 = vadd.f32 %v3809_v63, %v1208_v12  ;;  %v3993_v63 = vld [vmem:[#allocation4_spill] sm:$0xff] }
 0x150   :  { %3988 = vst [vmem:[#allocation13_spill] sm:$0xff] %v3839_v0  ;;  %v3841_v51 = vpop.f32.mrf.mxu0  ;;  %v1446_v16 = vadd.f32 %v1385_v11, %v1204_v48  ;;  %v1216_v11 = vadd.f32 %v1191_v41, %v3805_v5 }
 0x151   :  { %3989 = vst [vmem:[#allocation14_spill] sm:$0xff] %v3841_v51  ;;  %v3843_v2 = vpop.f32.mrf.mxu1  ;;  %v1207_v51 = vadd.f32 %v1156_v15, %v3785_v25  ;;  %v1451_v57 = vadd.f32 %v3012_v14, %v1209_v62  ;;  %v1214_v25 = vadd.f32 %v2985_v26, %v3795_v47  ;;  %v1689_v47 = vadd.f32 %v3040_v44, %v1447_v3  ;;  %v3999_v62 = vld [vmem:[#allocation9_spill] sm:$0xff] }
 0x152   :  { %3990 = vst [vmem:[#allocation15_spill] sm:$0xff] %v3843_v2  ;;  %v3048_v49 = vpop.f32.mrf.mxu0  ;;  %v1210_v2 = vadd.f32 %v2981_v17, %v3787_v29  ;;  %v1212_v29 = vadd.f32 %v1175_v27, %v3797_v52  ;;  %v1218_v17 = vadd.f32 %v2989_v33, %v3803_v1  ;;  %v1453_v52 = vadd.f32 %v3811_v24, %v1211_v20  ;;  %v3992_v27 = vld [vmem:[#allocation3_spill] sm:$0xff]  ;;  %v3994_v33 = vld [vmem:[#allocation5_spill] sm:$0xff] }
 0x153   :  { %v3080_v46 = vpop.f32.mrf.mxu1  ;;  %v1449_v15 = vadd.f32 %v1398_v60, %v1207_v51  ;;  %v1690_v60 = vadd.f32 %v3041_v50, %v1448_v6  ;;  %v1456_v56 = vadd.f32 %v3813_v28, %v1214_v25  ;;  %v1688_v61 = vadd.f32 %v1627_v53, %v1446_v16  ;;  %v3996_v50 = vld [vmem:[#allocation7_spill] sm:$0xff]  ;;  %v3997_v53 = vld [vmem:[#allocation8_spill] sm:$0xff] }
 0x154   :  { %v1656_v42 = vpop.f32.mrf.mxu0  ;;  %v1452_v10 = vadd.f32 %v3807_v18, %v1210_v2  ;;  %v1697_v23 = vadd.f32 %v3048_v49, %v1455_v34  ;;  %v1454_v18 = vadd.f32 %v3815_v31, %v1212_v29  ;;  %v1459_v1 = vadd.f32 %v3991_v22, %v1217_v38 }
 0x155   :  { %v3848_v40 = vpop.f32.mrf.mxu1  ;;  %v1457_v5 = vadd.f32 %v3992_v27, %v1215_v54  ;;  %v1693_v32 = vadd.f32 %v3044_v45, %v1451_v57  ;;  %v1460_v35 = vadd.f32 %v3993_v63, %v1218_v17  ;;  %v1458_v41 = vadd.f32 %v3994_v33, %v1216_v11 }
 0x156   :  { %v3049_v0 = vpop.f32.mrf.mxu0  ;;  %v1691_v36 = vadd.f32 %v1640_v59, %v1449_v15  ;;  %v1695_v44 = vadd.f32 %v1656_v42, %v1453_v52  ;;  %v1931_v28 = vadd.f32 %v3995_v39, %v1689_v47  ;;  %v1929_v49 = vadd.f32 %v3996_v50, %v1687_v19  ;;  %v3998_v31 = vld [vmem:[#allocation12_spill] sm:$0xff]  ;;  %v3887_v42 = vld [vmem:[%s3974_s10] ss:$0 sm:$0xff]  ;;  %v4002_v15 = vld [vmem:[#allocation11_spill] sm:$0xff] }
 0x157   :  { %v3853_v37 = vpop.f32.mrf.mxu1  ;;  %v1932_v55 = vadd.f32 %v3997_v53, %v1690_v60  ;;  %v1694_v58 = vadd.f32 %v3998_v31, %v1452_v10  ;;  %v1930_v45 = vadd.f32 %v3999_v62, %v1688_v61  ;;  %v1939_v3 = vadd.f32 %v3080_v46, %v1697_v23  ;;  %v4001_v59 = vld [vmem:[#allocation10_spill] sm:$0xff] }
 0x158   :  { %v1659_v4 = vpop.f32.mrf.mxu0  ;;  %v4000_v51 = vld [vmem:[#allocation14_spill] sm:$0xff]  ;;  %v1698_v8 = vadd.f32 %v3049_v0, %v1456_v56  ;;  %v1935_v12 = vadd.f32 %v4001_v59, %v1693_v32  ;;  %v1933_v29 = vadd.f32 %v4002_v15, %v1691_v36  ;;  %v1937_v38 = vadd.f32 %v3848_v40, %v1695_v44  ;;  %v4003_v0 = vld [vmem:[#allocation13_spill] sm:$0xff] }
 0x159   :  { %v3858_v9 = vpop.f32.mrf.mxu1  ;;  %v1692_v2 = vadd.f32 %v4000_v51, %v1450_v43  ;;  %v1696_v16 = vadd.f32 %v1659_v4, %v1454_v18  ;;  %v3893_v34 = vadd.f32 %v4003_v0, %v1694_v58  ;;  %v3899_v4 = vld [vmem:[%s3975_s11] ss:$0 sm:$0xff]  ;;  %v4004_v47 = vld [vmem:[#allocation15_spill] sm:$0xff] }
 0x15a   :  { %v3052_v13 = vpop.f32.mrf.mxu0  ;;  %v1940_v40 = vadd.f32 %v3853_v37, %v1698_v8 }
 0x15b   :  { %v3084_v7 = vpop.f32.mrf.mxu1  ;;  %v1701_v57 = vadd.f32 %v3052_v13, %v1459_v1  ;;  %v3902_v19 = vadd.f32 %v4004_v47, %v1692_v2  ;;  %v1938_v56 = vadd.f32 %v3858_v9, %v1696_v16 }
 0x15c   :  { %v1672_v14 = vpop.f32.mrf.mxu0 }
 0x15d   :  { %v1914_v21 = vpop.f32.mrf.mxu1  ;;  %v1699_v54 = vadd.f32 %v1672_v14, %v1457_v5  ;;  %v1943_v61 = vadd.f32 %v3084_v7, %v1701_v57 }
 0x15e   :  { %v3053_v26 = vpop.f32.mrf.mxu0 }
 0x15f   :  { %v3085_v30 = vpop.f32.mrf.mxu1  ;;  %v1702_v17 = vadd.f32 %v3053_v26, %v1460_v35  ;;  %v1941_v22 = vadd.f32 %v1914_v21, %v1699_v54 }
 0x160   :  { %v1675_v24 = vpop.f32.mrf.mxu0 }
 0x161   :  { %v3880_v48 = vpop.f32.mrf.mxu1  ;;  %v1944_v63 = vadd.f32 %v3085_v30, %v1702_v17  ;;  %v1700_v9 = vadd.f32 %v1675_v24, %v1458_v41 }
 0x162   :  { %v3104_v6 = vpop.f32.mrf.mxu0 }
 0x163   :  { %v2173_v20 = vadd.f32 %v3104_v6, %v1931_v28  ;;  %v3112_v25 = vpop.f32.mrf.mxu1  ;;  %v1942_v17 = vadd.f32 %v3880_v48, %v1700_v9 }
 0x164   :  { %v2181_v10 = vadd.f32 %v3112_v25, %v1939_v3  ;;  %v2108_v46 = vpop.f32.mrf.mxu0 }
 0x165   :  { %v2196_v11 = vmul.f32 %v3887_v42, %v2173_v20  ;;  %v2171_v13 = vadd.f32 %v2108_v46, %v1929_v49  ;;  %v2140_v43 = vpop.f32.mrf.mxu1 }
 0x166   :  { %v2204_v14 = vmul.f32 %v3887_v42, %v2181_v10  ;;  %v2179_v60 = vadd.f32 %v2140_v43, %v1937_v38  ;;  %v3105_v52 = vpop.f32.mrf.mxu0 }
 0x167   :  { %v2194_v23 = vmul.f32 %v3887_v42, %v2171_v13  ;;  %v2174_v26 = vadd.f32 %v3105_v52, %v1932_v55  ;;  %v3113_v18 = vpop.f32.mrf.mxu1  ;;  %v2219_v1 = vadd.f32 %v3899_v4, %v2196_v11 }
 0x168   :  { %v2202_v27 = vmul.f32 %v3887_v42, %v2179_v60  ;;  %v2182_v5 = vadd.f32 %v3113_v18, %v1940_v40  ;;  %v2111_v32 = vpop.f32.mrf.mxu0  ;;  %v2227_v37 = vadd.f32 %v3899_v4, %v2204_v14 }
 0x169   :  { %v2197_v35 = vmul.f32 %v3887_v42, %v2174_v26  ;;  %v2172_v33 = vadd.f32 %v2111_v32, %v1930_v45  ;;  %v2143_v36 = vpop.f32.mrf.mxu1  ;;  %v2217_v7 = vadd.f32 %v3899_v4, %v2194_v23  ;;  %v2235_v55 = vmax.f32 %v2219_v1, 0.0 }
 0x16a   :  { %v2205_v44 = vmul.f32 %v3887_v42, %v2182_v5  ;;  %v2180_v39 = vadd.f32 %v2143_v36, %v1938_v56  ;;  %v3108_v21 = vpop.f32.mrf.mxu0  ;;  %v2225_v28 = vadd.f32 %v3899_v4, %v2202_v27  ;;  %v2243_v62 = vmax.f32 %v2227_v37, 0.0 }
 0x16b   :  { %v2220_v50 = vadd.f32 %v3899_v4, %v2197_v35  ;;  %v2195_v49 = vmul.f32 %v3887_v42, %v2172_v33  ;;  %v2177_v30 = vadd.f32 %v3108_v21, %v1935_v12  ;;  %v3116_v53 = vpop.f32.mrf.mxu1  ;;  %v2233_v8 = vmax.f32 %v2217_v7, 0.0 }
 0x16c   :  { %v2228_v31 = vadd.f32 %v3899_v4, %v2205_v44  ;;  %v2203_v58 = vmul.f32 %v3887_v42, %v2180_v39  ;;  %v2185_v41 = vadd.f32 %v3116_v53, %v1943_v61  ;;  %v2124_v24 = vpop.f32.mrf.mxu0  ;;  %v2241_v57 = vmax.f32 %v2225_v28, 0.0 }
 0x16d   :  { %v2236_v45 = vmax.f32 %v2220_v50, 0.0  ;;  %v2218_v51 = vadd.f32 %v3899_v4, %v2195_v49  ;;  %v2175_v2 = vadd.f32 %v2124_v24, %v1933_v29  ;;  %v2156_v3 = vpop.f32.mrf.mxu1  ;;  %v2200_v15 = vmul.f32 %v3887_v42, %v2177_v30 }
 0x16e   :  { %v2244_v6 = vmax.f32 %v2228_v31, 0.0  ;;  %v2226_v59 = vadd.f32 %v3899_v4, %v2203_v58  ;;  %v2183_v16 = vadd.f32 %v2156_v3, %v1941_v22  ;;  %v3109_v12 = vpop.f32.mrf.mxu0  ;;  %v2208_v46 = vmul.f32 %v3887_v42, %v2185_v41 }
 0x16f   :  { %v2647_v20 = vpack.c.bf16 %v2236_v45, %v2235_v55  ;;  %v2234_v25 = vmax.f32 %v2218_v51, 0.0  ;;  %v3117_v38 = vpop.f32.mrf.mxu1  ;;  %v2198_v0 = vmul.f32 %v3887_v42, %v2175_v2  ;;  %v2178_v43 = vadd.f32 %v3109_v12, %v3893_v34 }
 0x170   :  { %v2667_v54 = vpack.c.bf16 %v2244_v6, %v2243_v62  ;;  %v2242_v10 = vmax.f32 %v2226_v59, 0.0  ;;  %v2127_v29 = vpop.f32.mrf.mxu0  ;;  %v2206_v13 = vmul.f32 %v3887_v42, %v2183_v16  ;;  %v2186_v14 = vadd.f32 %v3117_v38, %v1944_v63 }
 0x171   :  { %2679 = vst [vmem:[%s3976_s12 + $0x8] sm:$0xff] %v2647_v20   ;;  %v2642_v11 = vpack.c.bf16 %v2234_v25, %v2233_v8  ;;  %v2159_v47 = vpop.f32.mrf.mxu1  ;;  %v2223_v48 = vadd.f32 %v3899_v4, %v2200_v15  ;;  %v2201_v60 = vmul.f32 %v3887_v42, %v2178_v43  ;;  %v2176_v52 = vadd.f32 %v2127_v29, %v3902_v19 }
 0x172   :  { %2683 = vst [vmem:[%s3976_s12 + $0x28] sm:$0xff] %v2667_v54   ;;  %v2662_v40 = vpack.c.bf16 %v2242_v10, %v2241_v57  ;;  %v2184_v56 = vadd.f32 %v2159_v47, %v1942_v17  ;;  %v2231_v34 = vadd.f32 %v3899_v4, %v2208_v46  ;;  %v2221_v61 = vadd.f32 %v3899_v4, %v2198_v0 }
 0x173   :  { %2643 = vst [vmem:[%s3976_s12] sm:$0xff] %v2642_v11   ;;  %v2209_v23 = vmul.f32 %v3887_v42, %v2186_v14  ;;  %v2229_v26 = vadd.f32 %v3899_v4, %v2206_v13  ;;  %v2224_v18 = vadd.f32 %v3899_v4, %v2201_v60  ;;  %v2199_v22 = vmul.f32 %v3887_v42, %v2176_v52 }
 0x174   :  { %2682 = vst [vmem:[%s3976_s12 + $0x20] sm:$0xff] %v2662_v40   ;;  %v2207_v1 = vmul.f32 %v3887_v42, %v2184_v56  ;;  %v2239_v27 = vmax.f32 %v2223_v48, 0.0  ;;  %v2247_v37 = vmax.f32 %v2231_v34, 0.0  ;;  %v2237_v35 = vmax.f32 %v2221_v61, 0.0 }
 0x175   :  { %v2232_v19 = vadd.f32 %v3899_v4, %v2209_v23  ;;  %v2240_v5 = vmax.f32 %v2224_v18, 0.0  ;;  %v2222_v32 = vadd.f32 %v3899_v4, %v2199_v22  ;;  %v2245_v36 = vmax.f32 %v2229_v26, 0.0 }
 0x176   :  { %v2230_v63 = vadd.f32 %v3899_v4, %v2207_v1 }
 0x177   :  { %v2248_v33 = vmax.f32 %v2232_v19, 0.0  ;;  %v2657_v9 = vpack.c.bf16 %v2240_v5, %v2239_v27  ;;  %v2238_v7 = vmax.f32 %v2222_v32, 0.0 }
 0x178   :  { %v2246_v44 = vmax.f32 %v2230_v63, 0.0 }
 0x179   :  { %v2677_v39 = vpack.c.bf16 %v2248_v33, %v2247_v37  ;;  %2681 = vst [vmem:[%s3976_s12 + $0x18] sm:$0xff] %v2657_v9   ;;  %v2652_v42 = vpack.c.bf16 %v2238_v7, %v2237_v35 }
 0x17a   :  { %v2672_v21 = vpack.c.bf16 %v2246_v44, %v2245_v36 }
 0x17b   :  { %2685 = vst [vmem:[%s3976_s12 + $0x38] sm:$0xff] %v2677_v39   ;;  %2680 = vst [vmem:[%s3976_s12 + $0x10] sm:$0xff] %v2652_v42  }
 0x17c   :  { %2684 = vst [vmem:[%s3976_s12 + $0x30] sm:$0xff] %v2672_v21  }

// kernel: resnet101_forward.108
= control target key start
LH: loop header
LB: loop body
LE: loop exit
PB: predicated region body
PF: predicated region fallthrough
CT: control target
= control target key end

     0   :  { %v628_v1 = vmov 0   ;;  %v337_v35 = vlaneseq  ;;  %s895_s1 = inlined_call_operand.vmem [shape: bf16[1,128,512], index: 1, kind: input, shape index: {}]   ;;  %s896_s0 = inlined_call_operand.vmem [shape: bf16[32,128], index: 0, kind: input, shape index: {}]   ;;  %s897_s2 = inlined_call_operand.vmem [shape: f32[1,512], index: 2, kind: input, shape index: {}]   ;;  %s898_s3 = inlined_call_operand.vmem [shape: f32[1,512], index: 3, kind: input, shape index: {}]   ;;  %s899_s4 = inlined_call_operand.vmem [shape: bf16[32,512], index: 4, kind: input, shape index: {}]   ;;  %s900_s5 = inlined_call_operand.vmem [shape: bf16[32,512], index: 5, kind: output, shape index: {}]  }
   0x1   :  { %v578_v0 = vld [vmem:[%s895_s1 + $0xe4] ss:$16 sps:$4 sm:$0xff]   ;;  %261 = vmatprep.mubr.bf16.mxu0 %v628_v1  ;;  %314 = vmatprep.mubr.bf16.mxu1 %v628_v1  ;;  %v580_v2 = vld [vmem:[%s895_s1 + $0xec] ss:$16 sps:$4 sm:$0xff]   ;;  %v582_v3 = vld [vmem:[%s895_s1 + $0xe0] ss:$16 sps:$4 sm:$0xff]  }
   0x2   :  { %229 = vmatprep.subr.bf16.mxu0 %v578_v0  ;;  %v583_v4 = vld [vmem:[%s895_s1 + $0xe8] ss:$16 sps:$4 sm:$0xff]   ;;  %282 = vmatprep.subr.bf16.mxu1 %v580_v2  ;;  %v584_v5 = vld [vmem:[%s895_s1 + $0xc4] ss:$16 sps:$4 sm:$0xff]   ;;  %v586_v6 = vld [vmem:[%s895_s1 + $0xcc] ss:$16 sps:$4 sm:$0xff]  }
   0x3   :  { %230 = vmatpush1.bf16.msra.mxu0 %v582_v3  ;;  %283 = vmatpush1.bf16.msra.mxu1 %v583_v4  ;;  %v588_v7 = vld [vmem:[%s895_s1 + $0xc0] ss:$16 sps:$4 sm:$0xff]   ;;  %v589_v8 = vld [vmem:[%s895_s1 + $0xc8] ss:$16 sps:$4 sm:$0xff]   ;;  %v590_v9 = vld [vmem:[%s895_s1 + $0xa4] ss:$16 sps:$4 sm:$0xff]  }
   0x4   :  { %231 = vmatprep.subr.bf16.mxu0 %v584_v5  ;;  %284 = vmatprep.subr.bf16.mxu1 %v586_v6  ;;  %v592_v10 = vld [vmem:[%s895_s1 + $0xac] ss:$16 sps:$4 sm:$0xff]   ;;  %v594_v11 = vld [vmem:[%s895_s1 + $0xa0] ss:$16 sps:$4 sm:$0xff]   ;;  %v595_v12 = vld [vmem:[%s895_s1 + $0xa8] ss:$16 sps:$4 sm:$0xff]  }
   0x5   :  { %v596_v13 = vld [vmem:[%s895_s1 + $0x84] ss:$16 sps:$4 sm:$0xff]   ;;  %v598_v14 = vld [vmem:[%s895_s1 + $0x8c] ss:$16 sps:$4 sm:$0xff]   ;;  %v600_v15 = vld [vmem:[%s895_s1 + $0x80] ss:$16 sps:$4 sm:$0xff]  }
   0x6   :  { %v601_v16 = vld [vmem:[%s895_s1 + $0x88] ss:$16 sps:$4 sm:$0xff]   ;;  %v602_v17 = vld [vmem:[%s895_s1 + $0x64] ss:$16 sps:$4 sm:$0xff]   ;;  %v604_v18 = vld [vmem:[%s895_s1 + $0x6c] ss:$16 sps:$4 sm:$0xff]  }
   0x7   :  { %232 = vmatpush1.bf16.msra.mxu0 %v588_v7  ;;  %285 = vmatpush1.bf16.msra.mxu1 %v589_v8  ;;  %v606_v19 = vld [vmem:[%s895_s1 + $0x60] ss:$16 sps:$4 sm:$0xff]   ;;  %v607_v20 = vld [vmem:[%s895_s1 + $0x68] ss:$16 sps:$4 sm:$0xff]   ;;  %v608_v21 = vld [vmem:[%s895_s1 + $0x44] ss:$16 sps:$4 sm:$0xff]  }
   0x8   :  { %233 = vmatprep.subr.bf16.mxu0 %v590_v9  ;;  %286 = vmatprep.subr.bf16.mxu1 %v592_v10  ;;  %v610_v22 = vld [vmem:[%s895_s1 + $0x4c] ss:$16 sps:$4 sm:$0xff]   ;;  %v612_v23 = vld [vmem:[%s895_s1 + $0x40] ss:$16 sps:$4 sm:$0xff]   ;;  %v613_v24 = vld [vmem:[%s895_s1 + $0x48] ss:$16 sps:$4 sm:$0xff]  }
   0x9   :  { %v614_v25 = vld [vmem:[%s895_s1 + $0x24] ss:$16 sps:$4 sm:$0xff]   ;;  %v616_v26 = vld [vmem:[%s895_s1 + $0x2c] ss:$16 sps:$4 sm:$0xff]   ;;  %v618_v27 = vld [vmem:[%s895_s1 + $0x20] ss:$16 sps:$4 sm:$0xff]  }
   0xa   :  { %v619_v28 = vld [vmem:[%s895_s1 + $0x28] ss:$16 sps:$4 sm:$0xff]   ;;  %v620_v29 = vld [vmem:[%s895_s1 + $0x4] ss:$16 sps:$4 sm:$0xff]   ;;  %v622_v30 = vld [vmem:[%s895_s1 + $0xc] ss:$16 sps:$4 sm:$0xff]  }
   0xb   :  { %234 = vmatpush1.bf16.msra.mxu0 %v594_v11  ;;  %287 = vmatpush1.bf16.msra.mxu1 %v595_v12  ;;  %v624_v31 = vld [vmem:[%s895_s1] ss:$16 sps:$4 sm:$0xff]   ;;  %v625_v32 = vld [vmem:[%s895_s1 + $0x8] ss:$16 sps:$4 sm:$0xff]   ;;  %v338_v36 = vshrl.u32 %v337_v35, 7 }
   0xc   :  { %235 = vmatprep.subr.bf16.mxu0 %v596_v13  ;;  %288 = vmatprep.subr.bf16.mxu1 %v598_v14  ;;  %v626_v33 = vld [vmem:[%s896_s0] sm:$0xff]   ;;  %v627_v34 = vld [vmem:[%s896_s0 + $0x8] sm:$0xff]   ;;  %v792_v51 = vld [vmem:[%s899_s4 + $0x10] sm:$0xff] }
   0xd   :  { %v339_v37 = vsub.s32 0, %v338_v36  ;;  %v347_v38 = vsub.s32 2, %v338_v36  ;;  %v335_v39 = vld [vmem:[%s897_s2] sm:$0xf]  ;;  %v343_v40 = vsub.s32 1, %v338_v36  ;;  %v351_v41 = vsub.s32 3, %v338_v36 }
   0xe   :  { %v373_v42 = vld [vmem:[%s898_s3] sm:$0xf]  ;;  %v412_v46 = vld [vmem:[%s899_s4 + $0x8] sm:$0xff]  ;;  %v797_v52 = vld [vmem:[%s899_s4 + $0x18] sm:$0xff]  ;;  %v423_v3 = vunpack.c.l.bf16 %v792_v51  ;;  %v424_v5 = vunpack.c.h.bf16 %v792_v51 }
   0xf   :  { %236 = vmatpush1.bf16.msra.mxu0 %v600_v15  ;;  %289 = vmatpush1.bf16.msra.mxu1 %v601_v16  ;;  %v771_v43 = vrot.slane %v335_v39, %v339_v37  ;;  %v411_v44 = vld [vmem:[%s899_s4] sm:$0xff]  ;;  %v776_v45 = vrot.slane %v335_v39, %v347_v38  ;;  %v781_v47 = vrot.slane %v373_v42, %v339_v37  ;;  %v421_v56 = vunpack.c.l.bf16 %v412_v46  ;;  %v813_v0 = vld [vmem:[%s899_s4 + $0x28] sm:$0xff]  ;;  %v826_v11 = vld [vmem:[%s899_s4 + $0x30] sm:$0xff] }
  0x10   :  { %237 = vmatprep.subr.bf16.mxu0 %v602_v17  ;;  %290 = vmatprep.subr.bf16.mxu1 %v604_v18  ;;  %v783_v48 = vrot.slane %v373_v42, %v347_v38  ;;  %v785_v49 = vrot.slane %v335_v39, %v343_v40  ;;  %v787_v50 = vrot.slane %v335_v39, %v351_v41  ;;  %v419_v54 = vunpack.c.l.bf16 %v411_v44  ;;  %v808_v63 = vld [vmem:[%s899_s4 + $0x20] sm:$0xff]  ;;  %v831_v12 = vld [vmem:[%s899_s4 + $0x38] sm:$0xff] }
  0x11   :  { %v799_v57 = vrot.slane %v373_v42, %v343_v40  ;;  %v801_v58 = vrot.slane %v373_v42, %v351_v41  ;;  %v420_v61 = vunpack.c.h.bf16 %v411_v44  ;;  %v422_v62 = vunpack.c.h.bf16 %v412_v46 }
  0x12   :  { %v425_v4 = vunpack.c.l.bf16 %v797_v52  ;;  %v426_v6 = vunpack.c.h.bf16 %v797_v52  ;;  %v427_v15 = vunpack.c.l.bf16 %v808_v63  ;;  %v429_v16 = vunpack.c.l.bf16 %v813_v0 }
  0x13   :  { %238 = vmatpush1.bf16.msra.mxu0 %v606_v19  ;;  %291 = vmatpush1.bf16.msra.mxu1 %v607_v20  ;;  %v428_v17 = vunpack.c.h.bf16 %v808_v63  ;;  %v430_v18 = vunpack.c.h.bf16 %v813_v0 }
  0x14   :  { %239 = vmatprep.subr.bf16.mxu0 %v608_v21  ;;  %292 = vmatprep.subr.bf16.mxu1 %v610_v22 }
  0x17   :  { %240 = vmatpush1.bf16.msra.mxu0 %v612_v23  ;;  %293 = vmatpush1.bf16.msra.mxu1 %v613_v24 }
  0x18   :  { %241 = vmatprep.subr.bf16.mxu0 %v614_v25  ;;  %294 = vmatprep.subr.bf16.mxu1 %v616_v26 }
  0x1b   :  { %242 = vmatpush1.bf16.msra.mxu0 %v618_v27  ;;  %295 = vmatpush1.bf16.msra.mxu1 %v619_v28  ;;  %v431_v27 = vunpack.c.l.bf16 %v826_v11  ;;  %v433_v28 = vunpack.c.l.bf16 %v831_v12 }
  0x1c   :  { %243 = vmatprep.subr.bf16.mxu0 %v620_v29  ;;  %296 = vmatprep.subr.bf16.mxu1 %v622_v30 }
  0x1f   :  { %244 = vmatpush1.bf16.msra.mxu0 %v624_v31  ;;  %297 = vmatpush1.bf16.msra.mxu1 %v625_v32 }
  0x22   :  { %262 = vmatmul.mubr.bf16.vlgmr.msra.gmra.mxu0 %v626_v33  ;;  %315 = vmatmul.mubr.bf16.vlgmr.msra.gmra.mxu1 %v626_v33 }
  0x23   :  { %271 = vmatprep.mubr.bf16.mxu0 %v628_v1  ;;  %324 = vmatprep.mubr.bf16.mxu1 %v628_v1 }
  0x2a   :  { %272 = vmatmul.mubr.bf16.gmra.mxu0 %v627_v34  ;;  %325 = vmatmul.mubr.bf16.gmra.mxu1 %v627_v34 }
  0xe2   :  { %v263_v53 = vpop.f32.mrf.mxu0  ;;  %v316_v55 = vpop.f32.mrf.mxu1 }
  0xe3   :  { %v357_v59 = vmul.f32 %v771_v43, %v263_v53  ;;  %v359_v60 = vmul.f32 %v776_v45, %v316_v55 }
  0xe4   :  { %v265_v1 = vpop.f32.mrf.mxu0  ;;  %v318_v2 = vpop.f32.mrf.mxu1 }
  0xe5   :  { %v395_v7 = vadd.f32 %v781_v47, %v357_v59  ;;  %v397_v8 = vadd.f32 %v783_v48, %v359_v60  ;;  %v358_v9 = vmul.f32 %v785_v49, %v265_v1  ;;  %v360_v10 = vmul.f32 %v787_v50, %v318_v2 }
  0xe6   :  { %v267_v13 = vpop.f32.mrf.mxu0  ;;  %v320_v14 = vpop.f32.mrf.mxu1 }
  0xe7   :  { %v435_v19 = vadd.f32 %v419_v54, %v395_v7  ;;  %v437_v20 = vadd.f32 %v421_v56, %v397_v8  ;;  %v396_v21 = vadd.f32 %v799_v57, %v358_v9  ;;  %v398_v22 = vadd.f32 %v801_v58, %v360_v10 }
  0xe8   :  { %v361_v23 = vmul.f32 %v771_v43, %v267_v13  ;;  %v363_v24 = vmul.f32 %v776_v45, %v320_v14  ;;  %v269_v25 = vpop.f32.mrf.mxu0  ;;  %v322_v26 = vpop.f32.mrf.mxu1 }
  0xe9   :  { %v451_v29 = vmax.f32 %v435_v19, 0.0  ;;  %v453_v30 = vmax.f32 %v437_v20, 0.0  ;;  %v436_v31 = vadd.f32 %v420_v61, %v396_v21  ;;  %v438_v32 = vadd.f32 %v422_v62, %v398_v22 }
  0xea   :  { %v399_v33 = vadd.f32 %v781_v47, %v361_v23  ;;  %v401_v34 = vadd.f32 %v783_v48, %v363_v24  ;;  %v362_v35 = vmul.f32 %v785_v49, %v269_v25  ;;  %v364_v36 = vmul.f32 %v787_v50, %v322_v26  ;;  %v273_v37 = vpop.f32.mrf.mxu0  ;;  %v326_v38 = vpop.f32.mrf.mxu1 }
  0xeb   :  { %v452_v39 = vmax.f32 %v436_v31, 0.0  ;;  %v454_v40 = vmax.f32 %v438_v32, 0.0  ;;  %v365_v41 = vmul.f32 %v771_v43, %v273_v37  ;;  %v367_v42 = vmul.f32 %v776_v45, %v326_v38 }
  0xec   :  { %v439_v44 = vadd.f32 %v423_v3, %v399_v33  ;;  %v441_v46 = vadd.f32 %v425_v4, %v401_v34  ;;  %v400_v51 = vadd.f32 %v799_v57, %v362_v35  ;;  %v402_v52 = vadd.f32 %v801_v58, %v364_v36  ;;  %v275_v53 = vpop.f32.mrf.mxu0  ;;  %v328_v54 = vpop.f32.mrf.mxu1 }
  0xed   :  { %v569_v55 = vpack.c.bf16 %v452_v39, %v451_v29  ;;  %v570_v56 = vpack.c.bf16 %v454_v40, %v453_v30  ;;  %v403_v59 = vadd.f32 %v781_v47, %v365_v41  ;;  %v405_v60 = vadd.f32 %v783_v48, %v367_v42 }
  0xee   :  { %v455_v61 = vmax.f32 %v439_v44, 0.0  ;;  %v457_v62 = vmax.f32 %v441_v46, 0.0  ;;  %v440_v1 = vadd.f32 %v424_v5, %v400_v51  ;;  %v442_v2 = vadd.f32 %v426_v6, %v402_v52  ;;  %v277_v7 = vpop.f32.mrf.mxu0  ;;  %v330_v8 = vpop.f32.mrf.mxu1 }
  0xef   :  { %515 = vst [vmem:[%s900_s5] sm:$0xff] %v569_v55  ;;  %516 = vst [vmem:[%s900_s5 + $0x8] sm:$0xff] %v570_v56  ;;  %v443_v3 = vadd.f32 %v427_v15, %v403_v59  ;;  %v445_v4 = vadd.f32 %v429_v16, %v405_v60  ;;  %v366_v9 = vmul.f32 %v785_v49, %v275_v53  ;;  %v432_v23 = vunpack.c.h.bf16 %v826_v11 }
  0xf0   :  { %v368_v10 = vmul.f32 %v787_v50, %v328_v54  ;;  %v456_v13 = vmax.f32 %v440_v1, 0.0  ;;  %v458_v14 = vmax.f32 %v442_v2, 0.0  ;;  %v369_v5 = vmul.f32 %v771_v43, %v277_v7  ;;  %v279_v19 = vpop.f32.mrf.mxu0  ;;  %v332_v20 = vpop.f32.mrf.mxu1 }
  0xf1   :  { %v371_v6 = vmul.f32 %v776_v45, %v330_v8  ;;  %v404_v21 = vadd.f32 %v799_v57, %v366_v9  ;;  %v434_v15 = vunpack.c.h.bf16 %v831_v12  ;;  %v370_v29 = vmul.f32 %v785_v49, %v279_v19 }
  0xf2   :  { %v406_v22 = vadd.f32 %v801_v58, %v368_v10  ;;  %v571_v16 = vpack.c.bf16 %v456_v13, %v455_v61  ;;  %v572_v24 = vpack.c.bf16 %v458_v14, %v457_v62  ;;  %v407_v25 = vadd.f32 %v781_v47, %v369_v5 }
  0xf3   :  { %v409_v26 = vadd.f32 %v783_v48, %v371_v6  ;;  %v444_v43 = vadd.f32 %v428_v17, %v404_v21  ;;  %v372_v30 = vmul.f32 %v787_v50, %v332_v20  ;;  %v459_v47 = vmax.f32 %v443_v3, 0.0 }
  0xf4   :  { %v446_v45 = vadd.f32 %v430_v18, %v406_v22  ;;  %517 = vst [vmem:[%s900_s5 + $0x10] sm:$0xff] %v571_v16  ;;  %518 = vst [vmem:[%s900_s5 + $0x18] sm:$0xff] %v572_v24  ;;  %v461_v48 = vmax.f32 %v445_v4, 0.0  ;;  %v447_v11 = vadd.f32 %v431_v27, %v407_v25  ;;  %v408_v0 = vadd.f32 %v799_v57, %v370_v29 }
  0xf5   :  { %v449_v63 = vadd.f32 %v433_v28, %v409_v26  ;;  %v460_v12 = vmax.f32 %v444_v43, 0.0  ;;  %v410_v49 = vadd.f32 %v801_v58, %v372_v30 }
  0xf6   :  { %v462_v17 = vmax.f32 %v446_v45, 0.0  ;;  %v448_v31 = vadd.f32 %v432_v23, %v408_v0  ;;  %v463_v27 = vmax.f32 %v447_v11, 0.0 }
  0xf7   :  { %v573_v18 = vpack.c.bf16 %v460_v12, %v459_v47  ;;  %v450_v32 = vadd.f32 %v434_v15, %v410_v49  ;;  %v465_v28 = vmax.f32 %v449_v63, 0.0 }
  0xf8   :  { %v574_v50 = vpack.c.bf16 %v462_v17, %v461_v48  ;;  %v464_v33 = vmax.f32 %v448_v31, 0.0 }
  0xf9   :  { %519 = vst [vmem:[%s900_s5 + $0x20] sm:$0xff] %v573_v18  ;;  %v466_v34 = vmax.f32 %v450_v32, 0.0 }
  0xfa   :  { %520 = vst [vmem:[%s900_s5 + $0x28] sm:$0xff] %v574_v50  ;;  %v575_v35 = vpack.c.bf16 %v464_v33, %v463_v27 }
  0xfb   :  { %v576_v57 = vpack.c.bf16 %v466_v34, %v465_v28 }
  0xfc   :  { %521 = vst [vmem:[%s900_s5 + $0x30] sm:$0xff] %v575_v35 }
  0xfd   :  { %522 = vst [vmem:[%s900_s5 + $0x38] sm:$0xff] %v576_v57 }

// kernel: resnet101_forward.109
= control target key start
LH: loop header
LB: loop body
LE: loop exit
PB: predicated region body
PF: predicated region fallthrough
CT: control target
= control target key end

     0   :  { %s788_s1 = inlined_call_operand.vmem [shape: bf16[1,512,128], index: 1, kind: input, shape index: {}]   ;;  %s789_s0 = inlined_call_operand.vmem [shape: bf16[32,512], index: 0, kind: input, shape index: {}]   ;;  %s790_s2 = inlined_call_operand.vmem [shape: f32[1,128], index: 2, kind: input, shape index: {}]   ;;  %s791_s3 = inlined_call_operand.vmem [shape: f32[1,128], index: 3, kind: input, shape index: {}]   ;;  %s792_s4 = inlined_call_operand.vmem [shape: bf16[32,128], index: 4, kind: output, shape index: {}]  }
   0x1   :  { %v587_v0 = vld [vmem:[%s788_s1 + $0x78] sm:$0xff]   ;;  %v591_v4 = vld [vmem:[%s788_s1 + $0x70] sm:$0xff]   ;;  %v595_v8 = vld [vmem:[%s788_s1 + $0x68] sm:$0xff]  }
   0x2   :  { %v588_v1 = vld [vmem:[%s788_s1 + $0xf8] sm:$0xff]   ;;  %531 = vmatprep.subr.bf16.mxu0 %v587_v0  ;;  %v592_v5 = vld [vmem:[%s788_s1 + $0xf0] sm:$0xff]   ;;  %v596_v9 = vld [vmem:[%s788_s1 + $0xe8] sm:$0xff]  }
   0x3   :  { %v589_v2 = vld [vmem:[%s788_s1 + $0x38] sm:$0xff]   ;;  %559 = vmatprep.subr.bf16.mxu1 %v588_v1  ;;  %v593_v6 = vld [vmem:[%s788_s1 + $0x30] sm:$0xff]   ;;  %v597_v10 = vld [vmem:[%s788_s1 + $0x28] sm:$0xff]  }
   0x4   :  { %v590_v3 = vld [vmem:[%s788_s1 + $0xb8] sm:$0xff]   ;;  %532 = vmatpush3.bf16.msra.mxu0 %v589_v2  ;;  %v594_v7 = vld [vmem:[%s788_s1 + $0xb0] sm:$0xff]   ;;  %v598_v11 = vld [vmem:[%s788_s1 + $0xa8] sm:$0xff]  }
   0x5   :  { %560 = vmatpush3.bf16.msra.mxu1 %v590_v3  ;;  %533 = vmatprep.subr.bf16.mxu0 %v591_v4  ;;  %v599_v12 = vld [vmem:[%s788_s1 + $0x60] sm:$0xff]   ;;  %v603_v16 = vld [vmem:[%s788_s1 + $0x58] sm:$0xff]   ;;  %v607_v20 = vld [vmem:[%s788_s1 + $0x50] sm:$0xff]  }
   0x6   :  { %561 = vmatprep.subr.bf16.mxu1 %v592_v5  ;;  %v600_v13 = vld [vmem:[%s788_s1 + $0xe0] sm:$0xff]   ;;  %v604_v17 = vld [vmem:[%s788_s1 + $0xd8] sm:$0xff]   ;;  %v608_v21 = vld [vmem:[%s788_s1 + $0xd0] sm:$0xff]  }
   0x7   :  { %v601_v14 = vld [vmem:[%s788_s1 + $0x20] sm:$0xff]   ;;  %v605_v18 = vld [vmem:[%s788_s1 + $0x18] sm:$0xff]   ;;  %v609_v22 = vld [vmem:[%s788_s1 + $0x10] sm:$0xff]  }
   0x8   :  { %534 = vmatpush3.bf16.msra.mxu0 %v593_v6  ;;  %v602_v15 = vld [vmem:[%s788_s1 + $0xa0] sm:$0xff]   ;;  %v606_v19 = vld [vmem:[%s788_s1 + $0x98] sm:$0xff]   ;;  %v610_v23 = vld [vmem:[%s788_s1 + $0x90] sm:$0xff]  }
   0x9   :  { %562 = vmatpush3.bf16.msra.mxu1 %v594_v7  ;;  %535 = vmatprep.subr.bf16.mxu0 %v595_v8  ;;  %v611_v24 = vld [vmem:[%s788_s1 + $0x48] sm:$0xff]   ;;  %v615_v28 = vld [vmem:[%s788_s1 + $0x40] sm:$0xff]  }
   0xa   :  { %563 = vmatprep.subr.bf16.mxu1 %v596_v9  ;;  %v612_v25 = vld [vmem:[%s788_s1 + $0xc8] sm:$0xff]   ;;  %v616_v29 = vld [vmem:[%s788_s1 + $0xc0] sm:$0xff]  }
   0xb   :  { %v613_v26 = vld [vmem:[%s788_s1 + $0x8] sm:$0xff]   ;;  %v617_v30 = vld [vmem:[%s788_s1] sm:$0xff]  }
   0xc   :  { %536 = vmatpush3.bf16.msra.mxu0 %v597_v10  ;;  %v614_v27 = vld [vmem:[%s788_s1 + $0x88] sm:$0xff]   ;;  %v618_v31 = vld [vmem:[%s788_s1 + $0x80] sm:$0xff]  }
   0xd   :  { %564 = vmatpush3.bf16.msra.mxu1 %v598_v11  ;;  %537 = vmatprep.subr.bf16.mxu0 %v599_v12  ;;  %v619_v32 = vld [vmem:[%s789_s0] ss:$16 sps:$4 sm:$0xff]   ;;  %v621_v33 = vld [vmem:[%s789_s0 + $0x4] ss:$16 sps:$4 sm:$0xff]   ;;  %v622_v34 = vld [vmem:[%s789_s0 + $0x8] ss:$16 sps:$4 sm:$0xff]  }
   0xe   :  { %565 = vmatprep.subr.bf16.mxu1 %v600_v13  ;;  %v624_v35 = vld [vmem:[%s789_s0 + $0xc] ss:$16 sps:$4 sm:$0xff]   ;;  %354 = vmatprep.mubr.bf16.mxu0 %v621_v33  ;;  %v625_v36 = vld [vmem:[%s789_s0 + $0x24] ss:$16 sps:$4 sm:$0xff]   ;;  %v629_v38 = vld [vmem:[%s789_s0 + $0x20] ss:$16 sps:$4 sm:$0xff]  }
   0xf   :  { %403 = vmatprep.mubr.bf16.mxu1 %v624_v35  ;;  %v627_v37 = vld [vmem:[%s789_s0 + $0x2c] ss:$16 sps:$4 sm:$0xff]   ;;  %v630_v39 = vld [vmem:[%s789_s0 + $0x28] ss:$16 sps:$4 sm:$0xff]   ;;  %v510_v47 = vld [vmem:[%s790_s2] ss:$0 sm:$0xff] }
  0x10   :  { %538 = vmatpush3.bf16.msra.mxu0 %v601_v14  ;;  %v511_v56 = vld [vmem:[%s791_s3] ss:$0 sm:$0xff] }
  0x11   :  { %566 = vmatpush3.bf16.msra.mxu1 %v602_v15  ;;  %539 = vmatprep.subr.bf16.mxu0 %v603_v16 }
  0x12   :  { %567 = vmatprep.subr.bf16.mxu1 %v604_v17 }
  0x14   :  { %540 = vmatpush3.bf16.msra.mxu0 %v605_v18 }
  0x15   :  { %568 = vmatpush3.bf16.msra.mxu1 %v606_v19  ;;  %541 = vmatprep.subr.bf16.mxu0 %v607_v20 }
  0x16   :  { %569 = vmatprep.subr.bf16.mxu1 %v608_v21 }
  0x18   :  { %542 = vmatpush3.bf16.msra.mxu0 %v609_v22 }
  0x19   :  { %570 = vmatpush3.bf16.msra.mxu1 %v610_v23  ;;  %543 = vmatprep.subr.bf16.mxu0 %v611_v24 }
  0x1a   :  { %571 = vmatprep.subr.bf16.mxu1 %v612_v25 }
  0x1c   :  { %544 = vmatpush3.bf16.msra.mxu0 %v613_v26 }
  0x1d   :  { %572 = vmatpush3.bf16.msra.mxu1 %v614_v27  ;;  %545 = vmatprep.subr.bf16.mxu0 %v615_v28 }
  0x1e   :  { %573 = vmatprep.subr.bf16.mxu1 %v616_v29 }
  0x20   :  { %546 = vmatpush3.bf16.msra.mxu0 %v617_v30 }
  0x21   :  { %574 = vmatpush3.bf16.msra.mxu1 %v618_v31 }
  0x23   :  { %355 = vmatmul.mubr.bf16.vlgmr.msra.gmra.mxu0 %v619_v32 }
  0x24   :  { %404 = vmatmul.mubr.bf16.vlgmr.msra.gmra.mxu1 %v622_v34  ;;  %362 = vmatprep.mubr.bf16.mxu0 %v625_v36 }
  0x25   :  { %411 = vmatprep.mubr.bf16.mxu1 %v627_v37 }
  0x2b   :  { %363 = vmatmul.mubr.bf16.gmra.mxu0 %v629_v38 }
  0x2c   :  { %412 = vmatmul.mubr.bf16.gmra.mxu1 %v630_v39 }
  0xe3   :  { %v547_v40 = vpop.f32.mrf.mxu0 }
  0xe4   :  { %v575_v41 = vpop.f32.mrf.mxu1 }
  0xe5   :  { %v548_v42 = vpop.f32.mrf.mxu0 }
  0xe6   :  { %v549_v43 = vadd.f32 %v548_v42, %v547_v40  ;;  %v576_v44 = vpop.f32.mrf.mxu1 }
  0xe7   :  { %v577_v45 = vadd.f32 %v576_v44, %v575_v41  ;;  %v550_v46 = vpop.f32.mrf.mxu0 }
  0xe8   :  { %v578_v48 = vpop.f32.mrf.mxu1 }
  0xe9   :  { %v406_v49 = vadd.f32 %v577_v45, %v549_v43  ;;  %v551_v50 = vpop.f32.mrf.mxu0 }
  0xea   :  { %v552_v51 = vadd.f32 %v551_v50, %v550_v46  ;;  %v579_v52 = vpop.f32.mrf.mxu1 }
  0xeb   :  { %v427_v53 = vmul.f32 %v510_v47, %v406_v49  ;;  %v580_v54 = vadd.f32 %v579_v52, %v578_v48  ;;  %v553_v55 = vpop.f32.mrf.mxu0 }
  0xec   :  { %v581_v57 = vpop.f32.mrf.mxu1 }
  0xed   :  { %v409_v58 = vadd.f32 %v580_v54, %v552_v51  ;;  %v554_v59 = vpop.f32.mrf.mxu0  ;;  %v438_v62 = vadd.f32 %v511_v56, %v427_v53 }
  0xee   :  { %v555_v60 = vadd.f32 %v554_v59, %v553_v55  ;;  %v582_v61 = vpop.f32.mrf.mxu1 }
  0xef   :  { %v428_v63 = vmul.f32 %v510_v47, %v409_v58  ;;  %v583_v0 = vadd.f32 %v582_v61, %v581_v57  ;;  %v556_v1 = vpop.f32.mrf.mxu0  ;;  %v442_v8 = vmax.f32 %v438_v62, 0.0 }
  0xf0   :  { %v584_v2 = vpop.f32.mrf.mxu1 }
  0xf1   :  { %v439_v3 = vadd.f32 %v511_v56, %v428_v63  ;;  %v414_v4 = vadd.f32 %v583_v0, %v555_v60  ;;  %v557_v5 = vpop.f32.mrf.mxu0 }
  0xf2   :  { %v558_v6 = vadd.f32 %v557_v5, %v556_v1  ;;  %v585_v7 = vpop.f32.mrf.mxu1 }
  0xf3   :  { %v443_v9 = vmax.f32 %v439_v3, 0.0  ;;  %v429_v10 = vmul.f32 %v510_v47, %v414_v4  ;;  %v586_v11 = vadd.f32 %v585_v7, %v584_v2 }
  0xf5   :  { %v523_v12 = vpack.c.bf16 %v443_v9, %v442_v8  ;;  %v417_v13 = vadd.f32 %v586_v11, %v558_v6  ;;  %v440_v14 = vadd.f32 %v511_v56, %v429_v10 }
  0xf7   :  { %524 = vst [vmem:[%s792_s4] sm:$0xff] %v523_v12   ;;  %v430_v15 = vmul.f32 %v510_v47, %v417_v13  ;;  %v444_v17 = vmax.f32 %v440_v14, 0.0 }
  0xf9   :  { %v441_v16 = vadd.f32 %v511_v56, %v430_v15 }
  0xfb   :  { %v445_v18 = vmax.f32 %v441_v16, 0.0 }
  0xfd   :  { %v528_v19 = vpack.c.bf16 %v445_v18, %v444_v17 }
  0xff   :  { %530 = vst [vmem:[%s792_s4 + $0x8] sm:$0xff] %v528_v19  }

// kernel: resnet101_forward.106
= control target key start
LH: loop header
LB: loop body
LE: loop exit
PB: predicated region body
PF: predicated region fallthrough
CT: control target
= control target key end

     0   :  { %s2235_s9 = inlined_call_operand.vmem [shape: bf16[9,128,128], index: 9, kind: input, shape index: {}]   ;;  %s2236_s1 = inlined_call_operand.vmem [shape: bf16[32,128], index: 1, kind: input, shape index: {}]   ;;  %s2237_s0 = inlined_call_operand.vmem [shape: bf16[32,128], index: 0, kind: input, shape index: {}]   ;;  %s2238_s2 = inlined_call_operand.vmem [shape: bf16[32,128], index: 2, kind: input, shape index: {}]   ;;  %s2239_s3 = inlined_call_operand.vmem [shape: bf16[32,128], index: 3, kind: input, shape index: {}]   ;;  %s2240_s4 = inlined_call_operand.vmem [shape: bf16[32,128], index: 4, kind: input, shape index: {}]   ;;  %s2241_s5 = inlined_call_operand.vmem [shape: bf16[32,128], index: 5, kind: input, shape index: {}]   ;;  %s2242_s6 = inlined_call_operand.vmem [shape: bf16[32,128], index: 6, kind: input, shape index: {}]   ;;  %s2243_s7 = inlined_call_operand.vmem [shape: bf16[32,128], index: 7, kind: input, shape index: {}]   ;;  %s2244_s8 = inlined_call_operand.vmem [shape: bf16[32,128], index: 8, kind: input, shape index: {}]   ;;  %s2245_s10 = inlined_call_operand.vmem [shape: f32[1,128], index: 10, kind: input, shape index: {}]   ;;  %s2246_s11 = inlined_call_operand.vmem [shape: f32[1,128], index: 11, kind: input, shape index: {}]   ;;  %s2247_s12 = inlined_call_operand.vmem [shape: bf16[32,128], index: 12, kind: output, shape index: {}]  }
   0x1   :  { %v1798_v0 = vld [vmem:[%s2235_s9 + $0x78] sm:$0xff]   ;;  %v1800_v2 = vld [vmem:[%s2235_s9 + $0x70] sm:$0xff]   ;;  %v1802_v4 = vld [vmem:[%s2235_s9 + $0x68] sm:$0xff]  }
   0x2   :  { %v1799_v1 = vld [vmem:[%s2235_s9 + $0x38] sm:$0xff]   ;;  %1618 = vmatprep.subr.bf16.mxu0 %v1798_v0  ;;  %v1801_v3 = vld [vmem:[%s2235_s9 + $0x30] sm:$0xff]   ;;  %v1803_v5 = vld [vmem:[%s2235_s9 + $0x28] sm:$0xff]  }
   0x3   :  { %1638 = vmatprep.subr.bf16.mxu1 %v1799_v1  ;;  %1619 = vmatpush3.bf16.msra.mxu0 %v1798_v0  ;;  %v1804_v6 = vld [vmem:[%s2235_s9 + $0x60] sm:$0xff]   ;;  %v1806_v8 = vld [vmem:[%s2235_s9 + $0x58] sm:$0xff]   ;;  %v1808_v10 = vld [vmem:[%s2235_s9 + $0x50] sm:$0xff]  }
   0x4   :  { %1639 = vmatpush3.bf16.msra.mxu1 %v1799_v1  ;;  %1620 = vmatprep.subr.bf16.mxu0 %v1800_v2  ;;  %v1805_v7 = vld [vmem:[%s2235_s9 + $0x20] sm:$0xff]   ;;  %v1807_v9 = vld [vmem:[%s2235_s9 + $0x18] sm:$0xff]   ;;  %v1809_v11 = vld [vmem:[%s2235_s9 + $0x10] sm:$0xff]  }
   0x5   :  { %1640 = vmatprep.subr.bf16.mxu1 %v1801_v3  ;;  %v1814_v12 = vld [vmem:[%s2236_s1] sm:$0xff]   ;;  %v1810_v14 = vld [vmem:[%s2235_s9 + $0x48] sm:$0xff]   ;;  %v1818_v18 = vld [vmem:[%s2235_s9 + $0xb8] sm:$0xff]  }
   0x6   :  { %v1815_v13 = vld [vmem:[%s2237_s0] sm:$0xff]   ;;  %1634 = vmatprep.mubr.bf16.mxu0 %v1814_v12  ;;  %v1811_v15 = vld [vmem:[%s2235_s9 + $0x8] sm:$0xff]   ;;  %v1819_v19 = vld [vmem:[%s2235_s9 + $0xf8] sm:$0xff]  }
   0x7   :  { %1621 = vmatpush3.bf16.msra.mxu0 %v1800_v2  ;;  %1654 = vmatprep.mubr.bf16.mxu1 %v1815_v13  ;;  %v1812_v16 = vld [vmem:[%s2235_s9 + $0x40] sm:$0xff]   ;;  %v1816_v20 = vld [vmem:[%s2236_s1 + $0x8] sm:$0xff]   ;;  %v1820_v22 = vld [vmem:[%s2235_s9 + $0xb0] sm:$0xff]  }
   0x8   :  { %1641 = vmatpush3.bf16.msra.mxu1 %v1801_v3  ;;  %1622 = vmatprep.subr.bf16.mxu0 %v1802_v4  ;;  %v1813_v17 = vld [vmem:[%s2235_s9] sm:$0xff]   ;;  %v1817_v21 = vld [vmem:[%s2237_s0 + $0x8] sm:$0xff]   ;;  %v1821_v23 = vld [vmem:[%s2235_s9 + $0xf0] sm:$0xff]  }
   0x9   :  { %1642 = vmatprep.subr.bf16.mxu1 %v1803_v5  ;;  %v1822_v24 = vld [vmem:[%s2235_s9 + $0xa8] sm:$0xff]   ;;  %v1834_v25 = vld [vmem:[%s2238_s2] sm:$0xff]   ;;  %v1826_v30 = vld [vmem:[%s2235_s9 + $0x98] sm:$0xff]  }
   0xa   :  { %v1823_v26 = vld [vmem:[%s2235_s9 + $0xe8] sm:$0xff]   ;;  %v1837_v27 = vld [vmem:[%s2239_s3] sm:$0xff]   ;;  %v1827_v31 = vld [vmem:[%s2235_s9 + $0xd8] sm:$0xff]  }
   0xb   :  { %1623 = vmatpush3.bf16.msra.mxu0 %v1802_v4  ;;  %v1824_v28 = vld [vmem:[%s2235_s9 + $0xa0] sm:$0xff]   ;;  %v1828_v32 = vld [vmem:[%s2235_s9 + $0x90] sm:$0xff]   ;;  %v1830_v34 = vld [vmem:[%s2235_s9 + $0x88] sm:$0xff]  }
   0xc   :  { %1643 = vmatpush3.bf16.msra.mxu1 %v1803_v5  ;;  %1624 = vmatprep.subr.bf16.mxu0 %v1804_v6  ;;  %v1825_v29 = vld [vmem:[%s2235_s9 + $0xe0] sm:$0xff]   ;;  %v1829_v33 = vld [vmem:[%s2235_s9 + $0xd0] sm:$0xff]   ;;  %v1831_v35 = vld [vmem:[%s2235_s9 + $0xc8] sm:$0xff]  }
   0xd   :  { %1644 = vmatprep.subr.bf16.mxu1 %v1805_v7  ;;  %v1832_v36 = vld [vmem:[%s2235_s9 + $0x80] sm:$0xff]   ;;  %v1835_v38 = vld [vmem:[%s2238_s2 + $0x8] sm:$0xff]   ;;  %v1836_v39 = vld [vmem:[%s2235_s9 + $0x138] sm:$0xff]  }
   0xe   :  { %v1833_v37 = vld [vmem:[%s2235_s9 + $0xc0] sm:$0xff]   ;;  %v1839_v40 = vld [vmem:[%s2235_s9 + $0x178] sm:$0xff]   ;;  %v1838_v41 = vld [vmem:[%s2239_s3 + $0x8] sm:$0xff]  }
   0xf   :  { %1625 = vmatpush3.bf16.msra.mxu0 %v1804_v6  ;;  %v1840_v42 = vld [vmem:[%s2235_s9 + $0x130] sm:$0xff]   ;;  %v1854_v44 = vld [vmem:[%s2240_s4] sm:$0xff]   ;;  %v1842_v46 = vld [vmem:[%s2235_s9 + $0x128] sm:$0xff]  }
  0x10   :  { %1645 = vmatpush3.bf16.msra.mxu1 %v1805_v7  ;;  %1626 = vmatprep.subr.bf16.mxu0 %v1806_v8  ;;  %v1841_v43 = vld [vmem:[%s2235_s9 + $0x170] sm:$0xff]   ;;  %v1857_v45 = vld [vmem:[%s2241_s5] sm:$0xff]   ;;  %v1843_v47 = vld [vmem:[%s2235_s9 + $0x168] sm:$0xff]  }
  0x11   :  { %1646 = vmatprep.subr.bf16.mxu1 %v1807_v9  ;;  %v1844_v48 = vld [vmem:[%s2235_s9 + $0x120] sm:$0xff]   ;;  %v1846_v50 = vld [vmem:[%s2235_s9 + $0x118] sm:$0xff]   ;;  %v1848_v52 = vld [vmem:[%s2235_s9 + $0x110] sm:$0xff]  }
  0x12   :  { %v1845_v49 = vld [vmem:[%s2235_s9 + $0x160] sm:$0xff]   ;;  %v1847_v51 = vld [vmem:[%s2235_s9 + $0x158] sm:$0xff]   ;;  %v1849_v53 = vld [vmem:[%s2235_s9 + $0x150] sm:$0xff]  }
  0x13   :  { %1627 = vmatpush3.bf16.msra.mxu0 %v1806_v8  ;;  %v1850_v54 = vld [vmem:[%s2235_s9 + $0x108] sm:$0xff]   ;;  %v1852_v56 = vld [vmem:[%s2235_s9 + $0x100] sm:$0xff]   ;;  %v1856_v58 = vld [vmem:[%s2235_s9 + $0x1b8] sm:$0xff]  }
  0x14   :  { %1647 = vmatpush3.bf16.msra.mxu1 %v1807_v9  ;;  %1628 = vmatprep.subr.bf16.mxu0 %v1808_v10  ;;  %v1851_v55 = vld [vmem:[%s2235_s9 + $0x148] sm:$0xff]   ;;  %v1853_v57 = vld [vmem:[%s2235_s9 + $0x140] sm:$0xff]   ;;  %v1859_v59 = vld [vmem:[%s2235_s9 + $0x1f8] sm:$0xff]  }
  0x15   :  { %1648 = vmatprep.subr.bf16.mxu1 %v1809_v11  ;;  %v1855_v60 = vld [vmem:[%s2240_s4 + $0x8] sm:$0xff]   ;;  %v1860_v62 = vld [vmem:[%s2235_s9 + $0x1b0] sm:$0xff]   ;;  %v1874_v0 = vld [vmem:[%s2242_s6] sm:$0xff]  }
  0x16   :  { %v1858_v61 = vld [vmem:[%s2241_s5 + $0x8] sm:$0xff]   ;;  %v1861_v63 = vld [vmem:[%s2235_s9 + $0x1f0] sm:$0xff]   ;;  %v1877_v1 = vld [vmem:[%s2243_s7] sm:$0xff]  }
  0x17   :  { %1629 = vmatpush3.bf16.msra.mxu0 %v1808_v10  ;;  %v1862_v2 = vld [vmem:[%s2235_s9 + $0x1a8] sm:$0xff]   ;;  %v1864_v4 = vld [vmem:[%s2235_s9 + $0x1a0] sm:$0xff]   ;;  %v1866_v6 = vld [vmem:[%s2235_s9 + $0x198] sm:$0xff]  }
  0x18   :  { %1649 = vmatpush3.bf16.msra.mxu1 %v1809_v11  ;;  %1630 = vmatprep.subr.bf16.mxu0 %v1810_v14  ;;  %v1863_v3 = vld [vmem:[%s2235_s9 + $0x1e8] sm:$0xff]   ;;  %v1865_v5 = vld [vmem:[%s2235_s9 + $0x1e0] sm:$0xff]   ;;  %v1867_v7 = vld [vmem:[%s2235_s9 + $0x1d8] sm:$0xff]  }
  0x19   :  { %1650 = vmatprep.subr.bf16.mxu1 %v1811_v15  ;;  %v1868_v8 = vld [vmem:[%s2235_s9 + $0x190] sm:$0xff]   ;;  %v1870_v10 = vld [vmem:[%s2235_s9 + $0x188] sm:$0xff]   ;;  %v1872_v12 = vld [vmem:[%s2235_s9 + $0x180] sm:$0xff]  }
  0x1a   :  { %v1869_v9 = vld [vmem:[%s2235_s9 + $0x1d0] sm:$0xff]   ;;  %v1871_v11 = vld [vmem:[%s2235_s9 + $0x1c8] sm:$0xff]   ;;  %v1873_v13 = vld [vmem:[%s2235_s9 + $0x1c0] sm:$0xff]  }
  0x1b   :  { %1631 = vmatpush3.bf16.msra.mxu0 %v1810_v14  ;;  %v1876_v14 = vld [vmem:[%s2235_s9 + $0x238] sm:$0xff]  }
  0x1c   :  { %1651 = vmatpush3.bf16.msra.mxu1 %v1811_v15  ;;  %1632 = vmatprep.subr.bf16.mxu0 %v1812_v16  ;;  %v1875_v15 = vld [vmem:[%s2242_s6 + $0x8] sm:$0xff]  }
  0x1d   :  { %1652 = vmatprep.subr.bf16.mxu1 %v1813_v17 }
  0x1f   :  { %1633 = vmatpush3.bf16.msra.mxu0 %v1812_v16  ;;  %v1878_v16 = vld [vmem:[%s2243_s7 + $0x8] sm:$0xff]  }
  0x20   :  { %1653 = vmatpush3.bf16.msra.mxu1 %v1813_v17  ;;  %1658 = vmatprep.subr.bf16.mxu0 %v1818_v18  ;;  %v1879_v17 = vld [vmem:[%s2235_s9 + $0x230] sm:$0xff]  }
  0x21   :  { %1678 = vmatprep.subr.bf16.mxu1 %v1819_v19 }
  0x22   :  { %1635 = vmatmul.mubr.bf16.vlgmr.msra.gmra.mxu0 %v1816_v20  ;;  %v1881_v20 = vld [vmem:[%s2235_s9 + $0x220] sm:$0xff]  }
  0x23   :  { %1655 = vmatmul.mubr.bf16.vlgmr.msra.gmra.mxu1 %v1817_v21  ;;  %1659 = vmatpush3.bf16.msra.mxu0 %v1818_v18  ;;  %v1886_v18 = vld [vmem:[%s2244_s8] sm:$0xff]   ;;  %v1882_v21 = vld [vmem:[%s2235_s9 + $0x218] sm:$0xff]  }
  0x24   :  { %1679 = vmatpush3.bf16.msra.mxu1 %v1819_v19  ;;  %1660 = vmatprep.subr.bf16.mxu0 %v1820_v22  ;;  %v1880_v19 = vld [vmem:[%s2235_s9 + $0x228] sm:$0xff]  }
  0x25   :  { %1680 = vmatprep.subr.bf16.mxu1 %v1821_v23  ;;  %1674 = vmatprep.mubr.bf16.mxu0 %v1834_v25  ;;  %v1887_v25 = vld [vmem:[%s2244_s8 + $0x8] sm:$0xff]  }
  0x26   :  { %1694 = vmatprep.mubr.bf16.mxu1 %v1837_v27 }
  0x27   :  { %1661 = vmatpush3.bf16.msra.mxu0 %v1820_v22  ;;  %v1883_v22 = vld [vmem:[%s2235_s9 + $0x210] sm:$0xff]  }
  0x28   :  { %1681 = vmatpush3.bf16.msra.mxu1 %v1821_v23  ;;  %1662 = vmatprep.subr.bf16.mxu0 %v1822_v24  ;;  %v1884_v23 = vld [vmem:[%s2235_s9 + $0x208] sm:$0xff]  }
  0x29   :  { %1682 = vmatprep.subr.bf16.mxu1 %v1823_v26 }
  0x2b   :  { %1663 = vmatpush3.bf16.msra.mxu0 %v1822_v24  ;;  %v1885_v24 = vld [vmem:[%s2235_s9 + $0x200] sm:$0xff]  }
  0x2c   :  { %1683 = vmatpush3.bf16.msra.mxu1 %v1823_v26  ;;  %1664 = vmatprep.subr.bf16.mxu0 %v1824_v28 }
  0x2d   :  { %1684 = vmatprep.subr.bf16.mxu1 %v1825_v29 }
  0x2f   :  { %1665 = vmatpush3.bf16.msra.mxu0 %v1824_v28 }
  0x30   :  { %1685 = vmatpush3.bf16.msra.mxu1 %v1825_v29  ;;  %1666 = vmatprep.subr.bf16.mxu0 %v1826_v30 }
  0x31   :  { %1686 = vmatprep.subr.bf16.mxu1 %v1827_v31 }
  0x33   :  { %1667 = vmatpush3.bf16.msra.mxu0 %v1826_v30 }
  0x34   :  { %1687 = vmatpush3.bf16.msra.mxu1 %v1827_v31  ;;  %1668 = vmatprep.subr.bf16.mxu0 %v1828_v32 }
  0x35   :  { %1688 = vmatprep.subr.bf16.mxu1 %v1829_v33 }
  0x37   :  { %1669 = vmatpush3.bf16.msra.mxu0 %v1828_v32 }
  0x38   :  { %1689 = vmatpush3.bf16.msra.mxu1 %v1829_v33  ;;  %1670 = vmatprep.subr.bf16.mxu0 %v1830_v34 }
  0x39   :  { %1690 = vmatprep.subr.bf16.mxu1 %v1831_v35 }
  0x3b   :  { %1671 = vmatpush3.bf16.msra.mxu0 %v1830_v34 }
  0x3c   :  { %1691 = vmatpush3.bf16.msra.mxu1 %v1831_v35  ;;  %1672 = vmatprep.subr.bf16.mxu0 %v1832_v36 }
  0x3d   :  { %1692 = vmatprep.subr.bf16.mxu1 %v1833_v37 }
  0x3f   :  { %1673 = vmatpush3.bf16.msra.mxu0 %v1832_v36 }
  0x40   :  { %1693 = vmatpush3.bf16.msra.mxu1 %v1833_v37  ;;  %1698 = vmatprep.subr.bf16.mxu0 %v1836_v39 }
  0x41   :  { %1718 = vmatprep.subr.bf16.mxu1 %v1839_v40 }
  0x42   :  { %1675 = vmatmul.mubr.bf16.vlgmr.msra.gmra.mxu0 %v1835_v38 }
  0x43   :  { %1699 = vmatpush3.bf16.msra.mxu0 %v1836_v39  ;;  %1695 = vmatmul.mubr.bf16.vlgmr.msra.gmra.mxu1 %v1838_v41 }
  0x44   :  { %1719 = vmatpush3.bf16.msra.mxu1 %v1839_v40  ;;  %1700 = vmatprep.subr.bf16.mxu0 %v1840_v42 }
  0x45   :  { %1720 = vmatprep.subr.bf16.mxu1 %v1841_v43  ;;  %1714 = vmatprep.mubr.bf16.mxu0 %v1854_v44 }
  0x46   :  { %1734 = vmatprep.mubr.bf16.mxu1 %v1857_v45 }
  0x47   :  { %1701 = vmatpush3.bf16.msra.mxu0 %v1840_v42 }
  0x48   :  { %1721 = vmatpush3.bf16.msra.mxu1 %v1841_v43  ;;  %1702 = vmatprep.subr.bf16.mxu0 %v1842_v46 }
  0x49   :  { %1722 = vmatprep.subr.bf16.mxu1 %v1843_v47 }
  0x4b   :  { %1703 = vmatpush3.bf16.msra.mxu0 %v1842_v46 }
  0x4c   :  { %1723 = vmatpush3.bf16.msra.mxu1 %v1843_v47  ;;  %1704 = vmatprep.subr.bf16.mxu0 %v1844_v48 }
  0x4d   :  { %1724 = vmatprep.subr.bf16.mxu1 %v1845_v49 }
  0x4f   :  { %1705 = vmatpush3.bf16.msra.mxu0 %v1844_v48 }
  0x50   :  { %1725 = vmatpush3.bf16.msra.mxu1 %v1845_v49  ;;  %1706 = vmatprep.subr.bf16.mxu0 %v1846_v50 }
  0x51   :  { %1726 = vmatprep.subr.bf16.mxu1 %v1847_v51 }
  0x53   :  { %1707 = vmatpush3.bf16.msra.mxu0 %v1846_v50 }
  0x54   :  { %1727 = vmatpush3.bf16.msra.mxu1 %v1847_v51  ;;  %1708 = vmatprep.subr.bf16.mxu0 %v1848_v52 }
  0x55   :  { %1728 = vmatprep.subr.bf16.mxu1 %v1849_v53 }
  0x57   :  { %1709 = vmatpush3.bf16.msra.mxu0 %v1848_v52 }
  0x58   :  { %1729 = vmatpush3.bf16.msra.mxu1 %v1849_v53  ;;  %1710 = vmatprep.subr.bf16.mxu0 %v1850_v54 }
  0x59   :  { %1730 = vmatprep.subr.bf16.mxu1 %v1851_v55 }
  0x5b   :  { %1711 = vmatpush3.bf16.msra.mxu0 %v1850_v54 }
  0x5c   :  { %1731 = vmatpush3.bf16.msra.mxu1 %v1851_v55  ;;  %1712 = vmatprep.subr.bf16.mxu0 %v1852_v56 }
  0x5d   :  { %1732 = vmatprep.subr.bf16.mxu1 %v1853_v57 }
  0x5f   :  { %1713 = vmatpush3.bf16.msra.mxu0 %v1852_v56 }
  0x60   :  { %1733 = vmatpush3.bf16.msra.mxu1 %v1853_v57  ;;  %1738 = vmatprep.subr.bf16.mxu0 %v1856_v58 }
  0x61   :  { %1758 = vmatprep.subr.bf16.mxu1 %v1859_v59 }
  0x62   :  { %1715 = vmatmul.mubr.bf16.vlgmr.msra.gmra.mxu0 %v1855_v60 }
  0x63   :  { %1739 = vmatpush3.bf16.msra.mxu0 %v1856_v58  ;;  %1735 = vmatmul.mubr.bf16.vlgmr.msra.gmra.mxu1 %v1858_v61 }
  0x64   :  { %1759 = vmatpush3.bf16.msra.mxu1 %v1859_v59  ;;  %1740 = vmatprep.subr.bf16.mxu0 %v1860_v62 }
  0x65   :  { %1760 = vmatprep.subr.bf16.mxu1 %v1861_v63  ;;  %1754 = vmatprep.mubr.bf16.mxu0 %v1874_v0 }
  0x66   :  { %1774 = vmatprep.mubr.bf16.mxu1 %v1877_v1 }
  0x67   :  { %1741 = vmatpush3.bf16.msra.mxu0 %v1860_v62 }
  0x68   :  { %1761 = vmatpush3.bf16.msra.mxu1 %v1861_v63  ;;  %1742 = vmatprep.subr.bf16.mxu0 %v1862_v2 }
  0x69   :  { %1762 = vmatprep.subr.bf16.mxu1 %v1863_v3 }
  0x6b   :  { %1743 = vmatpush3.bf16.msra.mxu0 %v1862_v2 }
  0x6c   :  { %1763 = vmatpush3.bf16.msra.mxu1 %v1863_v3  ;;  %1744 = vmatprep.subr.bf16.mxu0 %v1864_v4 }
  0x6d   :  { %1764 = vmatprep.subr.bf16.mxu1 %v1865_v5 }
  0x6f   :  { %1745 = vmatpush3.bf16.msra.mxu0 %v1864_v4 }
  0x70   :  { %1765 = vmatpush3.bf16.msra.mxu1 %v1865_v5  ;;  %1746 = vmatprep.subr.bf16.mxu0 %v1866_v6 }
  0x71   :  { %1766 = vmatprep.subr.bf16.mxu1 %v1867_v7 }
  0x73   :  { %1747 = vmatpush3.bf16.msra.mxu0 %v1866_v6 }
  0x74   :  { %1767 = vmatpush3.bf16.msra.mxu1 %v1867_v7  ;;  %1748 = vmatprep.subr.bf16.mxu0 %v1868_v8 }
  0x75   :  { %1768 = vmatprep.subr.bf16.mxu1 %v1869_v9 }
  0x77   :  { %1749 = vmatpush3.bf16.msra.mxu0 %v1868_v8 }
  0x78   :  { %1769 = vmatpush3.bf16.msra.mxu1 %v1869_v9  ;;  %1750 = vmatprep.subr.bf16.mxu0 %v1870_v10 }
  0x79   :  { %1770 = vmatprep.subr.bf16.mxu1 %v1871_v11 }
  0x7b   :  { %1751 = vmatpush3.bf16.msra.mxu0 %v1870_v10 }
  0x7c   :  { %1771 = vmatpush3.bf16.msra.mxu1 %v1871_v11  ;;  %1752 = vmatprep.subr.bf16.mxu0 %v1872_v12 }
  0x7d   :  { %1772 = vmatprep.subr.bf16.mxu1 %v1873_v13 }
  0x7f   :  { %1753 = vmatpush3.bf16.msra.mxu0 %v1872_v12 }
  0x80   :  { %1773 = vmatpush3.bf16.msra.mxu1 %v1873_v13  ;;  %1778 = vmatprep.subr.bf16.mxu0 %v1876_v14 }
  0x82   :  { %1755 = vmatmul.mubr.bf16.vlgmr.msra.gmra.mxu0 %v1875_v15 }
  0x83   :  { %1779 = vmatpush3.bf16.msra.mxu0 %v1876_v14  ;;  %1775 = vmatmul.mubr.bf16.vlgmr.msra.gmra.mxu1 %v1878_v16 }
  0x84   :  { %1780 = vmatprep.subr.bf16.mxu0 %v1879_v17  ;;  %1794 = vmatprep.mubr.bf16.mxu0 %v1886_v18  ;;  %v1507_v18 = vld [vmem:[%s2245_s10] ss:$0 sm:$0xff] }
  0x87   :  { %1781 = vmatpush3.bf16.msra.mxu0 %v1879_v17 }
  0x88   :  { %1782 = vmatprep.subr.bf16.mxu0 %v1880_v19 }
  0x8b   :  { %1783 = vmatpush3.bf16.msra.mxu0 %v1880_v19 }
  0x8c   :  { %1784 = vmatprep.subr.bf16.mxu0 %v1881_v20 }
  0x8f   :  { %1785 = vmatpush3.bf16.msra.mxu0 %v1881_v20 }
  0x90   :  { %1786 = vmatprep.subr.bf16.mxu0 %v1882_v21 }
  0x93   :  { %1787 = vmatpush3.bf16.msra.mxu0 %v1882_v21 }
  0x94   :  { %1788 = vmatprep.subr.bf16.mxu0 %v1883_v22 }
  0x97   :  { %1789 = vmatpush3.bf16.msra.mxu0 %v1883_v22 }
  0x98   :  { %1790 = vmatprep.subr.bf16.mxu0 %v1884_v23 }
  0x9b   :  { %1791 = vmatpush3.bf16.msra.mxu0 %v1884_v23 }
  0x9c   :  { %1792 = vmatprep.subr.bf16.mxu0 %v1885_v24 }
  0x9f   :  { %1793 = vmatpush3.bf16.msra.mxu0 %v1885_v24 }
  0xa2   :  { %1795 = vmatmul.mubr.bf16.vlgmr.msra.gmra.mxu0 %v1887_v25 }
  0xe2   :  { %v1636_v26 = vpop.f32.mrf.mxu0 }
  0xe3   :  { %v1656_v27 = vpop.f32.mrf.mxu1 }
  0xe4   :  { %v177_v28 = vpop.f32.mrf.mxu0  ;;  %v295_v47 = vadd.f32 %v1656_v27, %v1636_v26  ;;  %v1508_v27 = vld [vmem:[%s2246_s11] ss:$0 sm:$0xff] }
  0xe5   :  { %v286_v29 = vpop.f32.mrf.mxu1 }
  0xe6   :  { %v1637_v30 = vpop.f32.mrf.mxu0  ;;  %v287_v48 = vadd.f32 %v286_v29, %v177_v28 }
  0xe7   :  { %v1657_v31 = vpop.f32.mrf.mxu1 }
  0xe8   :  { %v180_v32 = vpop.f32.mrf.mxu0  ;;  %v298_v52 = vadd.f32 %v1657_v31, %v1637_v30 }
  0xe9   :  { %v289_v34 = vpop.f32.mrf.mxu1 }
  0xea   :  { %v290_v55 = vadd.f32 %v289_v34, %v180_v32 }
 0x102   :  { %v1676_v33 = vpop.f32.mrf.mxu0 }
 0x103   :  { %v1696_v36 = vpop.f32.mrf.mxu1  ;;  %v433_v49 = vadd.f32 %v1676_v33, %v295_v47 }
 0x104   :  { %v416_v35 = vpop.f32.mrf.mxu0 }
 0x105   :  { %v550_v38 = vpop.f32.mrf.mxu1  ;;  %v431_v53 = vadd.f32 %v416_v35, %v287_v48  ;;  %v567_v56 = vadd.f32 %v1696_v36, %v433_v49 }
 0x106   :  { %v1677_v37 = vpop.f32.mrf.mxu0 }
 0x107   :  { %v1697_v40 = vpop.f32.mrf.mxu1  ;;  %v434_v57 = vadd.f32 %v1677_v37, %v298_v52  ;;  %v565_v59 = vadd.f32 %v550_v38, %v431_v53 }
 0x108   :  { %v419_v39 = vpop.f32.mrf.mxu0 }
 0x109   :  { %v553_v42 = vpop.f32.mrf.mxu1  ;;  %v432_v60 = vadd.f32 %v419_v39, %v290_v55  ;;  %v568_v0 = vadd.f32 %v1697_v40, %v434_v57 }
 0x10b   :  { %v566_v2 = vadd.f32 %v553_v42, %v432_v60 }
 0x122   :  { %v1716_v41 = vpop.f32.mrf.mxu0 }
 0x123   :  { %v1736_v44 = vpop.f32.mrf.mxu1  ;;  %v701_v61 = vadd.f32 %v1716_v41, %v567_v56 }
 0x124   :  { %v684_v43 = vpop.f32.mrf.mxu0 }
 0x125   :  { %v818_v46 = vpop.f32.mrf.mxu1  ;;  %v699_v1 = vadd.f32 %v684_v43, %v565_v59  ;;  %v835_v3 = vadd.f32 %v1736_v44, %v701_v61 }
 0x126   :  { %v1717_v45 = vpop.f32.mrf.mxu0 }
 0x127   :  { %v1737_v51 = vpop.f32.mrf.mxu1  ;;  %v702_v4 = vadd.f32 %v1717_v45, %v568_v0  ;;  %v833_v7 = vadd.f32 %v818_v46, %v699_v1 }
 0x128   :  { %v687_v50 = vpop.f32.mrf.mxu0 }
 0x129   :  { %v821_v58 = vpop.f32.mrf.mxu1  ;;  %v700_v8 = vadd.f32 %v687_v50, %v566_v2  ;;  %v836_v10 = vadd.f32 %v1737_v51, %v702_v4 }
 0x12b   :  { %v834_v14 = vadd.f32 %v821_v58, %v700_v8 }
 0x142   :  { %v1756_v54 = vpop.f32.mrf.mxu0 }
 0x143   :  { %v1776_v63 = vpop.f32.mrf.mxu1  ;;  %v969_v9 = vadd.f32 %v1756_v54, %v835_v3 }
 0x144   :  { %v952_v62 = vpop.f32.mrf.mxu0 }
 0x145   :  { %v1086_v6 = vpop.f32.mrf.mxu1  ;;  %v967_v11 = vadd.f32 %v952_v62, %v833_v7  ;;  %v1103_v15 = vadd.f32 %v1776_v63, %v969_v9 }
 0x146   :  { %v1757_v5 = vpop.f32.mrf.mxu0 }
 0x147   :  { %v1777_v13 = vpop.f32.mrf.mxu1  ;;  %v970_v16 = vadd.f32 %v1757_v5, %v836_v10  ;;  %v1101_v19 = vadd.f32 %v1086_v6, %v967_v11 }
 0x148   :  { %v955_v12 = vpop.f32.mrf.mxu0 }
 0x149   :  { %v968_v20 = vadd.f32 %v955_v12, %v834_v14  ;;  %v1089_v22 = vpop.f32.mrf.mxu1  ;;  %v1104_v24 = vadd.f32 %v1777_v13, %v970_v16 }
 0x14b   :  { %v1102_v29 = vadd.f32 %v1089_v22, %v968_v20 }
 0x162   :  { %v1796_v17 = vpop.f32.mrf.mxu0 }
 0x163   :  { %v1237_v21 = vadd.f32 %v1796_v17, %v1103_v15 }
 0x164   :  { %v1220_v23 = vpop.f32.mrf.mxu0 }
 0x165   :  { %v1248_v25 = vmul.f32 %v1507_v18, %v1237_v21  ;;  %v1235_v26 = vadd.f32 %v1220_v23, %v1101_v19 }
 0x166   :  { %v1797_v28 = vpop.f32.mrf.mxu0 }
 0x167   :  { %v1246_v30 = vmul.f32 %v1507_v18, %v1235_v26  ;;  %v1238_v31 = vadd.f32 %v1797_v28, %v1104_v24  ;;  %v1259_v33 = vadd.f32 %v1508_v27, %v1248_v25 }
 0x168   :  { %v1223_v32 = vpop.f32.mrf.mxu0 }
 0x169   :  { %v1249_v34 = vmul.f32 %v1507_v18, %v1238_v31  ;;  %v1236_v35 = vadd.f32 %v1223_v32, %v1102_v29  ;;  %v1257_v36 = vadd.f32 %v1508_v27, %v1246_v30  ;;  %v1263_v39 = vmax.f32 %v1259_v33, 0.0 }
 0x16b   :  { %v1260_v37 = vadd.f32 %v1508_v27, %v1249_v34  ;;  %v1247_v38 = vmul.f32 %v1507_v18, %v1236_v35  ;;  %v1261_v42 = vmax.f32 %v1257_v36, 0.0 }
 0x16d   :  { %v1264_v40 = vmax.f32 %v1260_v37, 0.0  ;;  %v1258_v41 = vadd.f32 %v1508_v27, %v1247_v38 }
 0x16f   :  { %v1525_v43 = vpack.c.bf16 %v1264_v40, %v1263_v39  ;;  %v1262_v44 = vmax.f32 %v1258_v41, 0.0 }
 0x171   :  { %1527 = vst [vmem:[%s2247_s12 + $0x8] sm:$0xff] %v1525_v43   ;;  %v1520_v45 = vpack.c.bf16 %v1262_v44, %v1261_v42 }
 0x173   :  { %1521 = vst [vmem:[%s2247_s12] sm:$0xff] %v1520_v45  }

// kernel: resnet101_forward.118
= control target key start
LH: loop header
LB: loop body
LE: loop exit
PB: predicated region body
PF: predicated region fallthrough
CT: control target
= control target key end

     0   :  { %s1082_s1 = inlined_call_operand.vmem [shape: bf16[1,512,256], index: 1, kind: input, shape index: {}]   ;;  %s1083_s0 = inlined_call_operand.vmem [shape: bf16[32,512], index: 0, kind: input, shape index: {}]   ;;  %s1084_s2 = inlined_call_operand.vmem [shape: f32[1,256], index: 2, kind: input, shape index: {}]   ;;  %s1085_s3 = inlined_call_operand.vmem [shape: f32[1,256], index: 3, kind: input, shape index: {}]   ;;  %s1086_s4 = inlined_call_operand.vmem [shape: bf16[32,256], index: 4, kind: output, shape index: {}]  }
   0x1   :  { %v715_v0 = vld [vmem:[%s1082_s1 + $0x74] ss:$8 sps:$4 sm:$0xff]   ;;  %v719_v2 = vld [vmem:[%s1082_s1 + $0x70] ss:$8 sps:$4 sm:$0xff]   ;;  %v721_v4 = vld [vmem:[%s1082_s1 + $0x64] ss:$8 sps:$4 sm:$0xff]  }
   0x2   :  { %v717_v1 = vld [vmem:[%s1082_s1 + $0x174] ss:$8 sps:$4 sm:$0xff]   ;;  %449 = vmatprep.subr.bf16.mxu0 %v715_v0  ;;  %v720_v3 = vld [vmem:[%s1082_s1 + $0x170] ss:$8 sps:$4 sm:$0xff]   ;;  %v723_v5 = vld [vmem:[%s1082_s1 + $0x164] ss:$8 sps:$4 sm:$0xff]  }
   0x3   :  { %502 = vmatprep.subr.bf16.mxu1 %v717_v1  ;;  %450 = vmatpush1.bf16.msra.mxu0 %v719_v2  ;;  %v725_v6 = vld [vmem:[%s1082_s1 + $0x60] ss:$8 sps:$4 sm:$0xff]   ;;  %v727_v8 = vld [vmem:[%s1082_s1 + $0x54] ss:$8 sps:$4 sm:$0xff]   ;;  %v731_v10 = vld [vmem:[%s1082_s1 + $0x50] ss:$8 sps:$4 sm:$0xff]  }
   0x4   :  { %503 = vmatpush1.bf16.msra.mxu1 %v720_v3  ;;  %451 = vmatprep.subr.bf16.mxu0 %v721_v4  ;;  %v726_v7 = vld [vmem:[%s1082_s1 + $0x160] ss:$8 sps:$4 sm:$0xff]   ;;  %v729_v9 = vld [vmem:[%s1082_s1 + $0x154] ss:$8 sps:$4 sm:$0xff]   ;;  %v732_v11 = vld [vmem:[%s1082_s1 + $0x150] ss:$8 sps:$4 sm:$0xff]  }
   0x5   :  { %504 = vmatprep.subr.bf16.mxu1 %v723_v5  ;;  %v733_v12 = vld [vmem:[%s1082_s1 + $0x44] ss:$8 sps:$4 sm:$0xff]   ;;  %v737_v14 = vld [vmem:[%s1082_s1 + $0x40] ss:$8 sps:$4 sm:$0xff]   ;;  %v739_v16 = vld [vmem:[%s1082_s1 + $0x34] ss:$8 sps:$4 sm:$0xff]  }
   0x6   :  { %v735_v13 = vld [vmem:[%s1082_s1 + $0x144] ss:$8 sps:$4 sm:$0xff]   ;;  %v738_v15 = vld [vmem:[%s1082_s1 + $0x140] ss:$8 sps:$4 sm:$0xff]   ;;  %v741_v17 = vld [vmem:[%s1082_s1 + $0x134] ss:$8 sps:$4 sm:$0xff]  }
   0x7   :  { %452 = vmatpush1.bf16.msra.mxu0 %v725_v6  ;;  %v743_v18 = vld [vmem:[%s1082_s1 + $0x30] ss:$8 sps:$4 sm:$0xff]   ;;  %v745_v20 = vld [vmem:[%s1082_s1 + $0x24] ss:$8 sps:$4 sm:$0xff]   ;;  %v749_v22 = vld [vmem:[%s1082_s1 + $0x20] ss:$8 sps:$4 sm:$0xff]  }
   0x8   :  { %505 = vmatpush1.bf16.msra.mxu1 %v726_v7  ;;  %453 = vmatprep.subr.bf16.mxu0 %v727_v8  ;;  %v744_v19 = vld [vmem:[%s1082_s1 + $0x130] ss:$8 sps:$4 sm:$0xff]   ;;  %v747_v21 = vld [vmem:[%s1082_s1 + $0x124] ss:$8 sps:$4 sm:$0xff]   ;;  %v750_v23 = vld [vmem:[%s1082_s1 + $0x120] ss:$8 sps:$4 sm:$0xff]   ;;  %v557_v8 = vlaneseq }
   0x9   :  { %506 = vmatprep.subr.bf16.mxu1 %v729_v9  ;;  %v751_v24 = vld [vmem:[%s1082_s1 + $0x14] ss:$8 sps:$4 sm:$0xff]   ;;  %v755_v26 = vld [vmem:[%s1082_s1 + $0x10] ss:$8 sps:$4 sm:$0xff]   ;;  %v757_v28 = vld [vmem:[%s1082_s1 + $0x4] ss:$8 sps:$4 sm:$0xff]  }
   0xa   :  { %v753_v25 = vld [vmem:[%s1082_s1 + $0x114] ss:$8 sps:$4 sm:$0xff]   ;;  %v756_v27 = vld [vmem:[%s1082_s1 + $0x110] ss:$8 sps:$4 sm:$0xff]   ;;  %v759_v29 = vld [vmem:[%s1082_s1 + $0x104] ss:$8 sps:$4 sm:$0xff]  }
   0xb   :  { %454 = vmatpush1.bf16.msra.mxu0 %v731_v10  ;;  %v761_v30 = vld [vmem:[%s1082_s1] ss:$8 sps:$4 sm:$0xff]   ;;  %v763_v32 = vld [vmem:[%s1082_s1 + $0xf4] ss:$8 sps:$4 sm:$0xff]   ;;  %v767_v34 = vld [vmem:[%s1082_s1 + $0xf0] ss:$8 sps:$4 sm:$0xff]  }
   0xc   :  { %507 = vmatpush1.bf16.msra.mxu1 %v732_v11  ;;  %455 = vmatprep.subr.bf16.mxu0 %v733_v12  ;;  %v762_v31 = vld [vmem:[%s1082_s1 + $0x100] ss:$8 sps:$4 sm:$0xff]   ;;  %v765_v33 = vld [vmem:[%s1082_s1 + $0x1f4] ss:$8 sps:$4 sm:$0xff]   ;;  %v768_v35 = vld [vmem:[%s1082_s1 + $0x1f0] ss:$8 sps:$4 sm:$0xff]  }
   0xd   :  { %508 = vmatprep.subr.bf16.mxu1 %v735_v13  ;;  %v769_v36 = vld [vmem:[%s1082_s1 + $0xe4] ss:$8 sps:$4 sm:$0xff]   ;;  %v773_v38 = vld [vmem:[%s1082_s1 + $0xe0] ss:$8 sps:$4 sm:$0xff]   ;;  %v775_v40 = vld [vmem:[%s1082_s1 + $0xd4] ss:$8 sps:$4 sm:$0xff]  }
   0xe   :  { %v771_v37 = vld [vmem:[%s1082_s1 + $0x1e4] ss:$8 sps:$4 sm:$0xff]   ;;  %v774_v39 = vld [vmem:[%s1082_s1 + $0x1e0] ss:$8 sps:$4 sm:$0xff]   ;;  %v777_v41 = vld [vmem:[%s1082_s1 + $0x1d4] ss:$8 sps:$4 sm:$0xff]  }
   0xf   :  { %456 = vmatpush1.bf16.msra.mxu0 %v737_v14  ;;  %v779_v42 = vld [vmem:[%s1082_s1 + $0xd0] ss:$8 sps:$4 sm:$0xff]   ;;  %v781_v44 = vld [vmem:[%s1082_s1 + $0xc4] ss:$8 sps:$4 sm:$0xff]   ;;  %v785_v46 = vld [vmem:[%s1082_s1 + $0xc0] ss:$8 sps:$4 sm:$0xff]  }
  0x10   :  { %509 = vmatpush1.bf16.msra.mxu1 %v738_v15  ;;  %457 = vmatprep.subr.bf16.mxu0 %v739_v16  ;;  %v780_v43 = vld [vmem:[%s1082_s1 + $0x1d0] ss:$8 sps:$4 sm:$0xff]   ;;  %v783_v45 = vld [vmem:[%s1082_s1 + $0x1c4] ss:$8 sps:$4 sm:$0xff]   ;;  %v786_v47 = vld [vmem:[%s1082_s1 + $0x1c0] ss:$8 sps:$4 sm:$0xff]  }
  0x11   :  { %510 = vmatprep.subr.bf16.mxu1 %v741_v17  ;;  %v787_v48 = vld [vmem:[%s1082_s1 + $0xb4] ss:$8 sps:$4 sm:$0xff]   ;;  %v791_v52 = vld [vmem:[%s1082_s1 + $0xb0] ss:$8 sps:$4 sm:$0xff]   ;;  %v793_v54 = vld [vmem:[%s1082_s1 + $0xa4] ss:$8 sps:$4 sm:$0xff]  }
  0x12   :  { %v813_v49 = vld [vmem:[%s1083_s0 + $0x4] ss:$16 sps:$4 sm:$0xff]   ;;  %v816_v51 = vld [vmem:[%s1083_s0 + $0xc] ss:$16 sps:$4 sm:$0xff]   ;;  %v792_v53 = vld [vmem:[%s1082_s1 + $0x1b0] ss:$8 sps:$4 sm:$0xff]  }
  0x13   :  { %458 = vmatpush1.bf16.msra.mxu0 %v743_v18  ;;  %v789_v50 = vld [vmem:[%s1082_s1 + $0x1b4] ss:$8 sps:$4 sm:$0xff]   ;;  %481 = vmatprep.mubr.bf16.mxu0 %v813_v49  ;;  %v795_v55 = vld [vmem:[%s1082_s1 + $0x1a4] ss:$8 sps:$4 sm:$0xff]   ;;  %v797_v56 = vld [vmem:[%s1082_s1 + $0xa0] ss:$8 sps:$4 sm:$0xff]  }
  0x14   :  { %511 = vmatpush1.bf16.msra.mxu1 %v744_v19  ;;  %459 = vmatprep.subr.bf16.mxu0 %v745_v20  ;;  %v798_v57 = vld [vmem:[%s1082_s1 + $0x1a0] ss:$8 sps:$4 sm:$0xff]   ;;  %v799_v58 = vld [vmem:[%s1082_s1 + $0x94] ss:$8 sps:$4 sm:$0xff]   ;;  %v803_v60 = vld [vmem:[%s1082_s1 + $0x90] ss:$8 sps:$4 sm:$0xff]  }
  0x15   :  { %512 = vmatprep.subr.bf16.mxu1 %v747_v21  ;;  %534 = vmatprep.mubr.bf16.mxu1 %v816_v51  ;;  %v801_v59 = vld [vmem:[%s1082_s1 + $0x194] ss:$8 sps:$4 sm:$0xff]   ;;  %v804_v61 = vld [vmem:[%s1082_s1 + $0x190] ss:$8 sps:$4 sm:$0xff]   ;;  %v805_v62 = vld [vmem:[%s1082_s1 + $0x84] ss:$8 sps:$4 sm:$0xff]  }
  0x16   :  { %v807_v63 = vld [vmem:[%s1082_s1 + $0x184] ss:$8 sps:$4 sm:$0xff]   ;;  %v809_v0 = vld [vmem:[%s1082_s1 + $0x80] ss:$8 sps:$4 sm:$0xff]   ;;  %v558_v9 = vshrl.u32 %v557_v8, 7 }
  0x17   :  { %460 = vmatpush1.bf16.msra.mxu0 %v749_v22  ;;  %v810_v1 = vld [vmem:[%s1082_s1 + $0x180] ss:$8 sps:$4 sm:$0xff]   ;;  %v817_v4 = vld [vmem:[%s1083_s0 + $0x24] ss:$16 sps:$4 sm:$0xff]   ;;  %v819_v5 = vld [vmem:[%s1083_s0 + $0x2c] ss:$16 sps:$4 sm:$0xff]  }
  0x18   :  { %513 = vmatpush1.bf16.msra.mxu1 %v750_v23  ;;  %461 = vmatprep.subr.bf16.mxu0 %v751_v24  ;;  %v811_v2 = vld [vmem:[%s1083_s0] ss:$16 sps:$4 sm:$0xff]   ;;  %v814_v3 = vld [vmem:[%s1083_s0 + $0x8] ss:$16 sps:$4 sm:$0xff]   ;;  %v559_v10 = vsub.s32 0, %v558_v9  ;;  %v563_v12 = vsub.s32 1, %v558_v9 }
  0x19   :  { %514 = vmatprep.subr.bf16.mxu1 %v753_v25  ;;  %v821_v6 = vld [vmem:[%s1083_s0 + $0x20] ss:$16 sps:$4 sm:$0xff]   ;;  %v822_v7 = vld [vmem:[%s1083_s0 + $0x28] ss:$16 sps:$4 sm:$0xff]  }
  0x1a   :  { %v555_v11 = vld [vmem:[%s1084_s2] sm:$0x3] }
  0x1b   :  { %462 = vmatpush1.bf16.msra.mxu0 %v755_v26  ;;  %v575_v13 = vld [vmem:[%s1085_s3] sm:$0x3]  ;;  %v560_v14 = vrot.slane %v555_v11, %v559_v10  ;;  %v564_v19 = vrot.slane %v555_v11, %v563_v12 }
  0x1c   :  { %515 = vmatpush1.bf16.msra.mxu1 %v756_v27  ;;  %463 = vmatprep.subr.bf16.mxu0 %v757_v28  ;;  %v580_v18 = vrot.slane %v575_v13, %v559_v10  ;;  %v584_v24 = vrot.slane %v575_v13, %v563_v12 }
  0x1d   :  { %516 = vmatprep.subr.bf16.mxu1 %v759_v29 }
  0x1f   :  { %464 = vmatpush1.bf16.msra.mxu0 %v761_v30 }
  0x20   :  { %517 = vmatpush1.bf16.msra.mxu1 %v762_v31  ;;  %465 = vmatprep.subr.bf16.mxu0 %v763_v32 }
  0x21   :  { %518 = vmatprep.subr.bf16.mxu1 %v765_v33 }
  0x23   :  { %466 = vmatpush2.bf16.msra.mxu0 %v767_v34 }
  0x24   :  { %519 = vmatpush2.bf16.msra.mxu1 %v768_v35  ;;  %467 = vmatprep.subr.bf16.mxu0 %v769_v36 }
  0x25   :  { %520 = vmatprep.subr.bf16.mxu1 %v771_v37 }
  0x27   :  { %468 = vmatpush2.bf16.msra.mxu0 %v773_v38 }
  0x28   :  { %521 = vmatpush2.bf16.msra.mxu1 %v774_v39  ;;  %469 = vmatprep.subr.bf16.mxu0 %v775_v40 }
  0x29   :  { %522 = vmatprep.subr.bf16.mxu1 %v777_v41 }
  0x2b   :  { %470 = vmatpush2.bf16.msra.mxu0 %v779_v42 }
  0x2c   :  { %523 = vmatpush2.bf16.msra.mxu1 %v780_v43  ;;  %471 = vmatprep.subr.bf16.mxu0 %v781_v44 }
  0x2d   :  { %524 = vmatprep.subr.bf16.mxu1 %v783_v45 }
  0x2f   :  { %472 = vmatpush2.bf16.msra.mxu0 %v785_v46 }
  0x30   :  { %525 = vmatpush2.bf16.msra.mxu1 %v786_v47  ;;  %473 = vmatprep.subr.bf16.mxu0 %v787_v48 }
  0x31   :  { %526 = vmatprep.subr.bf16.mxu1 %v789_v50 }
  0x33   :  { %474 = vmatpush2.bf16.msra.mxu0 %v791_v52 }
  0x34   :  { %527 = vmatpush2.bf16.msra.mxu1 %v792_v53  ;;  %475 = vmatprep.subr.bf16.mxu0 %v793_v54 }
  0x35   :  { %528 = vmatprep.subr.bf16.mxu1 %v795_v55 }
  0x37   :  { %476 = vmatpush2.bf16.msra.mxu0 %v797_v56 }
  0x38   :  { %529 = vmatpush2.bf16.msra.mxu1 %v798_v57  ;;  %477 = vmatprep.subr.bf16.mxu0 %v799_v58 }
  0x39   :  { %530 = vmatprep.subr.bf16.mxu1 %v801_v59 }
  0x3b   :  { %478 = vmatpush2.bf16.msra.mxu0 %v803_v60 }
  0x3c   :  { %531 = vmatpush2.bf16.msra.mxu1 %v804_v61  ;;  %479 = vmatprep.subr.bf16.mxu0 %v805_v62 }
  0x3d   :  { %532 = vmatprep.subr.bf16.mxu1 %v807_v63 }
  0x3f   :  { %480 = vmatpush2.bf16.msra.mxu0 %v809_v0 }
  0x40   :  { %533 = vmatpush2.bf16.msra.mxu1 %v810_v1 }
  0x42   :  { %482 = vmatmul.mubr.bf16.vlgmr.msra.gmra.mxu0 %v811_v2 }
  0x43   :  { %535 = vmatmul.mubr.bf16.vlgmr.msra.gmra.mxu1 %v814_v3  ;;  %491 = vmatprep.mubr.bf16.mxu0 %v817_v4 }
  0x44   :  { %544 = vmatprep.mubr.bf16.mxu1 %v819_v5 }
  0x4a   :  { %492 = vmatmul.mubr.bf16.gmra.mxu0 %v821_v6 }
  0x4b   :  { %545 = vmatmul.mubr.bf16.gmra.mxu1 %v822_v7 }
 0x102   :  { %v483_v15 = vpop.f32.mrf.mxu0 }
 0x103   :  { %v536_v16 = vpop.f32.mrf.mxu1 }
 0x104   :  { %v537_v17 = vadd.f32 %v536_v16, %v483_v15  ;;  %v485_v20 = vpop.f32.mrf.mxu0 }
 0x105   :  { %v538_v21 = vpop.f32.mrf.mxu1 }
 0x106   :  { %v567_v22 = vmul.f32 %v560_v14, %v537_v17  ;;  %v539_v23 = vadd.f32 %v538_v21, %v485_v20  ;;  %v487_v25 = vpop.f32.mrf.mxu0 }
 0x107   :  { %v540_v26 = vpop.f32.mrf.mxu1 }
 0x108   :  { %v587_v27 = vadd.f32 %v580_v18, %v567_v22  ;;  %v568_v28 = vmul.f32 %v564_v19, %v539_v23  ;;  %v541_v29 = vadd.f32 %v540_v26, %v487_v25  ;;  %v489_v30 = vpop.f32.mrf.mxu0 }
 0x109   :  { %v542_v31 = vpop.f32.mrf.mxu1 }
 0x10a   :  { %v588_v32 = vadd.f32 %v584_v24, %v568_v28  ;;  %v569_v33 = vmul.f32 %v560_v14, %v541_v29  ;;  %v543_v34 = vadd.f32 %v542_v31, %v489_v30  ;;  %v595_v35 = vmax.f32 %v587_v27, 0.0  ;;  %v493_v36 = vpop.f32.mrf.mxu0 }
 0x10b   :  { %v546_v37 = vpop.f32.mrf.mxu1 }
 0x10c   :  { %v596_v38 = vmax.f32 %v588_v32, 0.0  ;;  %v589_v39 = vadd.f32 %v580_v18, %v569_v33  ;;  %v570_v40 = vmul.f32 %v564_v19, %v543_v34  ;;  %v547_v41 = vadd.f32 %v546_v37, %v493_v36  ;;  %v495_v42 = vpop.f32.mrf.mxu0 }
 0x10d   :  { %v548_v43 = vpop.f32.mrf.mxu1 }
 0x10e   :  { %v711_v44 = vpack.c.bf16 %v596_v38, %v595_v35  ;;  %v590_v45 = vadd.f32 %v584_v24, %v570_v40  ;;  %v571_v46 = vmul.f32 %v560_v14, %v547_v41  ;;  %v549_v47 = vadd.f32 %v548_v43, %v495_v42  ;;  %v497_v48 = vpop.f32.mrf.mxu0 }
 0x10f   :  { %v550_v49 = vpop.f32.mrf.mxu1  ;;  %v597_v50 = vmax.f32 %v589_v39, 0.0 }
 0x110   :  { %627 = vst [vmem:[%s1086_s4] sm:$0xff] %v711_v44  ;;  %v598_v51 = vmax.f32 %v590_v45, 0.0  ;;  %v551_v52 = vadd.f32 %v550_v49, %v497_v48  ;;  %v591_v53 = vadd.f32 %v580_v18, %v571_v46  ;;  %v572_v54 = vmul.f32 %v564_v19, %v549_v47  ;;  %v499_v55 = vpop.f32.mrf.mxu0 }
 0x111   :  { %v552_v56 = vpop.f32.mrf.mxu1 }
 0x112   :  { %v712_v57 = vpack.c.bf16 %v598_v51, %v597_v50  ;;  %v573_v58 = vmul.f32 %v560_v14, %v551_v52  ;;  %v553_v59 = vadd.f32 %v552_v56, %v499_v55  ;;  %v592_v60 = vadd.f32 %v584_v24, %v572_v54 }
 0x113   :  { %v599_v63 = vmax.f32 %v591_v53, 0.0 }
 0x114   :  { %628 = vst [vmem:[%s1086_s4 + $0x8] sm:$0xff] %v712_v57  ;;  %v593_v61 = vadd.f32 %v580_v18, %v573_v58  ;;  %v574_v62 = vmul.f32 %v564_v19, %v553_v59  ;;  %v600_v0 = vmax.f32 %v592_v60, 0.0 }
 0x116   :  { %v594_v1 = vadd.f32 %v584_v24, %v574_v62  ;;  %v713_v2 = vpack.c.bf16 %v600_v0, %v599_v63  ;;  %v601_v3 = vmax.f32 %v593_v61, 0.0 }
 0x118   :  { %v602_v4 = vmax.f32 %v594_v1, 0.0  ;;  %629 = vst [vmem:[%s1086_s4 + $0x10] sm:$0xff] %v713_v2 }
 0x11a   :  { %v714_v5 = vpack.c.bf16 %v602_v4, %v601_v3 }
 0x11c   :  { %630 = vst [vmem:[%s1086_s4 + $0x18] sm:$0xff] %v714_v5 }

// kernel: resnet101_forward.120
= control target key start
LH: loop header
LB: loop body
LE: loop exit
PB: predicated region body
PF: predicated region fallthrough
CT: control target
= control target key end

     0   :  { %s2146_s15 = smov 0   ;;  %s2148_s16 = smov 0   ;;  %s2646_s0 = inlined_call_operand.vmem [shape: bf16[8,512], index: 0, kind: input, shape index: {}]   ;;  %s2647_s1 = inlined_call_operand.vmem [shape: bf16[1,512,1024], index: 1, kind: input, shape index: {}]   ;;  %s2648_s2 = inlined_call_operand.vmem [shape: f32[1,1024], index: 2, kind: input, shape index: {}]   ;;  %s2649_s3 = inlined_call_operand.vmem [shape: f32[1,1024], index: 3, kind: input, shape index: {}]   ;;  %s2650_s4 = inlined_call_operand.vmem [shape: bf16[8,1024], index: 4, kind: output, shape index: {}]  }
   0x1   :  { %s2150_s17 = smov 0   ;;  %s2152_s18 = smov 0  }
   0x2   :  { %s2154_s19 = smov 0  }
   0x3 LB: > { %s23_s20 = sadd.s32 1, %s2115_s18  ;;  %p66_p1 = scmp.ne.s32.totalorder %s2107_s16, %s2103_s15  ;;  %s2119_s19 = sphi %s2154_s19, %s14_s19   ;;  %s2115_s18 = sphi %s2152_s18, %s2654_s18   ;;  %s2111_s17 = sphi %s2150_s17, %s2653_s17   ;;  %s2107_s16 = sphi %s2148_s16, %s2652_s16   ;;  %s2103_s15 = sphi %s2146_s15, %s2651_s15  }
   0x4   : > { %p24_p0 = scmp.ge.s32.totalorder %s23_s20, 2  ;;  %p67_p2 = scmp.eq.s32.totalorder %s2119_s19, 0 }
   0x5   : > { %s59_s22 = sadd.s32 1, %s2107_s16  ;;  %p1696_p5 = scmp.ge.s32.totalorder %s2119_s19, 2 }
   0x6   : > { %s2656_s20 = smov (%p24_p0, %s23_s20), 0  ;;  %p68_p3 = por %p67_p2, %p66_p1 }
   0x7   : > { %s56_s21 = ssub.s32 %s2115_s18, %s2656_s20  ;;  %180 = sbr.rel (%p1696_p5) target bundleno = 80 (0x50), region = 20 }
   0x8   : > { %p57_p4 = scmp.eq.s32.totalorder %s56_s21, 0 }
   0xa   : > { %s2181_s23 = scalar_select %p57_p4, %s2107_s16, %s59_s22  }
   0xc   : > { %183 = sbr.rel (!%p68_p3) target bundleno = 80 (0x50), region = 24  ;;  %s185_s24 = sand.u32 (%p68_p3), 1, %s2107_s16  }
   0xd   : > { %s1842_s25 = sshll.u32 (%p68_p3), %s2115_s18, 4  ;;  %s1697_s26 = sshll.u32 (%p68_p3), %s185_s24, 10 }
   0xe   : > { %s2189_s29 = scalar_lea.vmem (%p68_p3), %s2647_s1, %s1842_s25  ;;  %s2194_s30 = scalar_lea.vmem (%p68_p3), [#allocation2], %s1697_s26 }
   0xf   : > { %v203_v0 = vld [vmem:[%s2189_s29] sm:$0xff] (%p68_p3)  ;;  %v205_v1 = vld [vmem:[%s2189_s29 + $0x8] sm:$0xff] (%p68_p3) }
  0x10   : > { %v207_v2 = vld [vmem:[%s2189_s29 + $0x20] sm:$0xff] (%p68_p3)  ;;  %204 = vst [vmem:[%s2194_s30] sm:$0xff] (%p68_p3), %v203_v0  ;;  %206 = vst [vmem:[%s2194_s30 + $0x8] sm:$0xff] (%p68_p3), %v205_v1  ;;  %v209_v3 = vld [vmem:[%s2189_s29 + $0x28] sm:$0xff] (%p68_p3) }
  0x11   : > { %208 = vst [vmem:[%s2194_s30 + $0x10] sm:$0xff] %v207_v2  ;;  %v211_v4 = vld [vmem:[%s2189_s29 + $0x40] sm:$0xff]  ;;  %v213_v5 = vld [vmem:[%s2189_s29 + $0x48] sm:$0xff]  ;;  %210 = vst [vmem:[%s2194_s30 + $0x18] sm:$0xff] %v209_v3 }
  0x12   : > { %212 = vst [vmem:[%s2194_s30 + $0x20] sm:$0xff] %v211_v4  ;;  %214 = vst [vmem:[%s2194_s30 + $0x28] sm:$0xff] %v213_v5  ;;  %v215_v6 = vld [vmem:[%s2189_s29 + $0x60] sm:$0xff]  ;;  %v217_v7 = vld [vmem:[%s2189_s29 + $0x68] sm:$0xff] }
  0x13   : > { %v219_v8 = vld [vmem:[%s2189_s29 + $0x80] sm:$0xff]  ;;  %216 = vst [vmem:[%s2194_s30 + $0x30] sm:$0xff] %v215_v6  ;;  %218 = vst [vmem:[%s2194_s30 + $0x38] sm:$0xff] %v217_v7  ;;  %v221_v9 = vld [vmem:[%s2189_s29 + $0x88] sm:$0xff] }
  0x14   : > { %220 = vst [vmem:[%s2194_s30 + $0x40] sm:$0xff] %v219_v8  ;;  %v223_v10 = vld [vmem:[%s2189_s29 + $0xa0] sm:$0xff]  ;;  %v225_v11 = vld [vmem:[%s2189_s29 + $0xa8] sm:$0xff]  ;;  %222 = vst [vmem:[%s2194_s30 + $0x48] sm:$0xff] %v221_v9 }
  0x15   : > { %224 = vst [vmem:[%s2194_s30 + $0x50] sm:$0xff] %v223_v10  ;;  %226 = vst [vmem:[%s2194_s30 + $0x58] sm:$0xff] %v225_v11  ;;  %v227_v12 = vld [vmem:[%s2189_s29 + $0xc0] sm:$0xff]  ;;  %v229_v13 = vld [vmem:[%s2189_s29 + $0xc8] sm:$0xff] }
  0x16   : > { %v231_v14 = vld [vmem:[%s2189_s29 + $0xe0] sm:$0xff]  ;;  %228 = vst [vmem:[%s2194_s30 + $0x60] sm:$0xff] %v227_v12  ;;  %230 = vst [vmem:[%s2194_s30 + $0x68] sm:$0xff] %v229_v13  ;;  %v233_v15 = vld [vmem:[%s2189_s29 + $0xe8] sm:$0xff] }
  0x17   : > { %232 = vst [vmem:[%s2194_s30 + $0x70] sm:$0xff] %v231_v14  ;;  %v235_v16 = vld [vmem:[%s2189_s29 + $0x100] sm:$0xff]  ;;  %v237_v17 = vld [vmem:[%s2189_s29 + $0x108] sm:$0xff]  ;;  %234 = vst [vmem:[%s2194_s30 + $0x78] sm:$0xff] %v233_v15 }
  0x18   : > { %236 = vst [vmem:[%s2194_s30 + $0x80] sm:$0xff] %v235_v16  ;;  %238 = vst [vmem:[%s2194_s30 + $0x88] sm:$0xff] %v237_v17  ;;  %v239_v18 = vld [vmem:[%s2189_s29 + $0x120] sm:$0xff]  ;;  %v241_v19 = vld [vmem:[%s2189_s29 + $0x128] sm:$0xff] }
  0x19   : > { %v243_v20 = vld [vmem:[%s2189_s29 + $0x140] sm:$0xff]  ;;  %240 = vst [vmem:[%s2194_s30 + $0x90] sm:$0xff] %v239_v18  ;;  %242 = vst [vmem:[%s2194_s30 + $0x98] sm:$0xff] %v241_v19  ;;  %v245_v21 = vld [vmem:[%s2189_s29 + $0x148] sm:$0xff] }
  0x1a   : > { %244 = vst [vmem:[%s2194_s30 + $0xa0] sm:$0xff] %v243_v20  ;;  %v247_v22 = vld [vmem:[%s2189_s29 + $0x160] sm:$0xff]  ;;  %v249_v23 = vld [vmem:[%s2189_s29 + $0x168] sm:$0xff]  ;;  %246 = vst [vmem:[%s2194_s30 + $0xa8] sm:$0xff] %v245_v21 }
  0x1b   : > { %248 = vst [vmem:[%s2194_s30 + $0xb0] sm:$0xff] %v247_v22  ;;  %250 = vst [vmem:[%s2194_s30 + $0xb8] sm:$0xff] %v249_v23  ;;  %v251_v24 = vld [vmem:[%s2189_s29 + $0x180] sm:$0xff]  ;;  %v253_v25 = vld [vmem:[%s2189_s29 + $0x188] sm:$0xff] }
  0x1c   : > { %v255_v26 = vld [vmem:[%s2189_s29 + $0x1a0] sm:$0xff]  ;;  %252 = vst [vmem:[%s2194_s30 + $0xc0] sm:$0xff] %v251_v24  ;;  %254 = vst [vmem:[%s2194_s30 + $0xc8] sm:$0xff] %v253_v25  ;;  %v257_v27 = vld [vmem:[%s2189_s29 + $0x1a8] sm:$0xff] }
  0x1d   : > { %256 = vst [vmem:[%s2194_s30 + $0xd0] sm:$0xff] %v255_v26  ;;  %v259_v28 = vld [vmem:[%s2189_s29 + $0x1c0] sm:$0xff]  ;;  %v261_v29 = vld [vmem:[%s2189_s29 + $0x1c8] sm:$0xff]  ;;  %258 = vst [vmem:[%s2194_s30 + $0xd8] sm:$0xff] %v257_v27 }
  0x1e   : > { %260 = vst [vmem:[%s2194_s30 + $0xe0] sm:$0xff] %v259_v28  ;;  %262 = vst [vmem:[%s2194_s30 + $0xe8] sm:$0xff] %v261_v29  ;;  %v263_v30 = vld [vmem:[%s2189_s29 + $0x1e0] sm:$0xff]  ;;  %v265_v31 = vld [vmem:[%s2189_s29 + $0x1e8] sm:$0xff] }
  0x1f   : > { %v267_v32 = vld [vmem:[%s2189_s29 + $0x200] sm:$0xff]  ;;  %264 = vst [vmem:[%s2194_s30 + $0xf0] sm:$0xff] %v263_v30  ;;  %266 = vst [vmem:[%s2194_s30 + $0xf8] sm:$0xff] %v265_v31  ;;  %v269_v33 = vld [vmem:[%s2189_s29 + $0x208] sm:$0xff] }
  0x20   : > { %268 = vst [vmem:[%s2194_s30 + $0x100] sm:$0xff] %v267_v32  ;;  %v271_v34 = vld [vmem:[%s2189_s29 + $0x220] sm:$0xff]  ;;  %v273_v35 = vld [vmem:[%s2189_s29 + $0x228] sm:$0xff]  ;;  %270 = vst [vmem:[%s2194_s30 + $0x108] sm:$0xff] %v269_v33 }
  0x21   : > { %272 = vst [vmem:[%s2194_s30 + $0x110] sm:$0xff] %v271_v34  ;;  %274 = vst [vmem:[%s2194_s30 + $0x118] sm:$0xff] %v273_v35  ;;  %v275_v36 = vld [vmem:[%s2189_s29 + $0x240] sm:$0xff]  ;;  %v277_v37 = vld [vmem:[%s2189_s29 + $0x248] sm:$0xff] }
  0x22   : > { %v279_v38 = vld [vmem:[%s2189_s29 + $0x260] sm:$0xff]  ;;  %276 = vst [vmem:[%s2194_s30 + $0x120] sm:$0xff] %v275_v36  ;;  %278 = vst [vmem:[%s2194_s30 + $0x128] sm:$0xff] %v277_v37  ;;  %v281_v39 = vld [vmem:[%s2189_s29 + $0x268] sm:$0xff] }
  0x23   : > { %280 = vst [vmem:[%s2194_s30 + $0x130] sm:$0xff] %v279_v38  ;;  %v283_v40 = vld [vmem:[%s2189_s29 + $0x280] sm:$0xff]  ;;  %v285_v41 = vld [vmem:[%s2189_s29 + $0x288] sm:$0xff]  ;;  %282 = vst [vmem:[%s2194_s30 + $0x138] sm:$0xff] %v281_v39 }
  0x24   : > { %284 = vst [vmem:[%s2194_s30 + $0x140] sm:$0xff] %v283_v40  ;;  %286 = vst [vmem:[%s2194_s30 + $0x148] sm:$0xff] %v285_v41  ;;  %v287_v42 = vld [vmem:[%s2189_s29 + $0x2a0] sm:$0xff]  ;;  %v289_v43 = vld [vmem:[%s2189_s29 + $0x2a8] sm:$0xff] }
  0x25   : > { %v291_v44 = vld [vmem:[%s2189_s29 + $0x2c0] sm:$0xff]  ;;  %288 = vst [vmem:[%s2194_s30 + $0x150] sm:$0xff] %v287_v42  ;;  %290 = vst [vmem:[%s2194_s30 + $0x158] sm:$0xff] %v289_v43  ;;  %v293_v45 = vld [vmem:[%s2189_s29 + $0x2c8] sm:$0xff] }
  0x26   : > { %292 = vst [vmem:[%s2194_s30 + $0x160] sm:$0xff] %v291_v44  ;;  %v295_v46 = vld [vmem:[%s2189_s29 + $0x2e0] sm:$0xff]  ;;  %v297_v47 = vld [vmem:[%s2189_s29 + $0x2e8] sm:$0xff]  ;;  %294 = vst [vmem:[%s2194_s30 + $0x168] sm:$0xff] %v293_v45 }
  0x27   : > { %296 = vst [vmem:[%s2194_s30 + $0x170] sm:$0xff] %v295_v46  ;;  %298 = vst [vmem:[%s2194_s30 + $0x178] sm:$0xff] %v297_v47  ;;  %v299_v48 = vld [vmem:[%s2189_s29 + $0x300] sm:$0xff]  ;;  %v301_v49 = vld [vmem:[%s2189_s29 + $0x308] sm:$0xff] }
  0x28   : > { %v303_v50 = vld [vmem:[%s2189_s29 + $0x320] sm:$0xff]  ;;  %300 = vst [vmem:[%s2194_s30 + $0x180] sm:$0xff] %v299_v48  ;;  %302 = vst [vmem:[%s2194_s30 + $0x188] sm:$0xff] %v301_v49  ;;  %v305_v51 = vld [vmem:[%s2189_s29 + $0x328] sm:$0xff] }
  0x29   : > { %304 = vst [vmem:[%s2194_s30 + $0x190] sm:$0xff] %v303_v50  ;;  %v307_v52 = vld [vmem:[%s2189_s29 + $0x340] sm:$0xff]  ;;  %v309_v53 = vld [vmem:[%s2189_s29 + $0x348] sm:$0xff]  ;;  %306 = vst [vmem:[%s2194_s30 + $0x198] sm:$0xff] %v305_v51 }
  0x2a   : > { %308 = vst [vmem:[%s2194_s30 + $0x1a0] sm:$0xff] %v307_v52  ;;  %310 = vst [vmem:[%s2194_s30 + $0x1a8] sm:$0xff] %v309_v53  ;;  %v311_v54 = vld [vmem:[%s2189_s29 + $0x360] sm:$0xff]  ;;  %v313_v55 = vld [vmem:[%s2189_s29 + $0x368] sm:$0xff] }
  0x2b   : > { %v315_v56 = vld [vmem:[%s2189_s29 + $0x380] sm:$0xff]  ;;  %312 = vst [vmem:[%s2194_s30 + $0x1b0] sm:$0xff] %v311_v54  ;;  %314 = vst [vmem:[%s2194_s30 + $0x1b8] sm:$0xff] %v313_v55  ;;  %v317_v57 = vld [vmem:[%s2189_s29 + $0x388] sm:$0xff] }
  0x2c   : > { %316 = vst [vmem:[%s2194_s30 + $0x1c0] sm:$0xff] %v315_v56  ;;  %v319_v58 = vld [vmem:[%s2189_s29 + $0x3a0] sm:$0xff]  ;;  %v321_v59 = vld [vmem:[%s2189_s29 + $0x3a8] sm:$0xff]  ;;  %318 = vst [vmem:[%s2194_s30 + $0x1c8] sm:$0xff] %v317_v57 }
  0x2d   : > { %320 = vst [vmem:[%s2194_s30 + $0x1d0] sm:$0xff] %v319_v58  ;;  %322 = vst [vmem:[%s2194_s30 + $0x1d8] sm:$0xff] %v321_v59  ;;  %v323_v60 = vld [vmem:[%s2189_s29 + $0x3c0] sm:$0xff]  ;;  %v325_v61 = vld [vmem:[%s2189_s29 + $0x3c8] sm:$0xff] }
  0x2e   : > { %v327_v62 = vld [vmem:[%s2189_s29 + $0x3e0] sm:$0xff]  ;;  %324 = vst [vmem:[%s2194_s30 + $0x1e0] sm:$0xff] %v323_v60  ;;  %326 = vst [vmem:[%s2194_s30 + $0x1e8] sm:$0xff] %v325_v61  ;;  %v329_v63 = vld [vmem:[%s2189_s29 + $0x3e8] sm:$0xff] }
  0x2f   : > { %328 = vst [vmem:[%s2194_s30 + $0x1f0] sm:$0xff] %v327_v62  ;;  %v331_v0 = vld [vmem:[%s2189_s29 + $0x400] sm:$0xff]  ;;  %v333_v1 = vld [vmem:[%s2189_s29 + $0x408] sm:$0xff]  ;;  %330 = vst [vmem:[%s2194_s30 + $0x1f8] sm:$0xff] %v329_v63 }
  0x30   : > { %332 = vst [vmem:[%s2194_s30 + $0x200] sm:$0xff] %v331_v0  ;;  %334 = vst [vmem:[%s2194_s30 + $0x208] sm:$0xff] %v333_v1  ;;  %v335_v2 = vld [vmem:[%s2189_s29 + $0x420] sm:$0xff]  ;;  %v337_v3 = vld [vmem:[%s2189_s29 + $0x428] sm:$0xff] }
  0x31   : > { %v339_v4 = vld [vmem:[%s2189_s29 + $0x440] sm:$0xff]  ;;  %336 = vst [vmem:[%s2194_s30 + $0x210] sm:$0xff] %v335_v2  ;;  %338 = vst [vmem:[%s2194_s30 + $0x218] sm:$0xff] %v337_v3  ;;  %v341_v5 = vld [vmem:[%s2189_s29 + $0x448] sm:$0xff] }
  0x32   : > { %340 = vst [vmem:[%s2194_s30 + $0x220] sm:$0xff] %v339_v4  ;;  %v343_v6 = vld [vmem:[%s2189_s29 + $0x460] sm:$0xff]  ;;  %v345_v7 = vld [vmem:[%s2189_s29 + $0x468] sm:$0xff]  ;;  %342 = vst [vmem:[%s2194_s30 + $0x228] sm:$0xff] %v341_v5 }
  0x33   : > { %344 = vst [vmem:[%s2194_s30 + $0x230] sm:$0xff] %v343_v6  ;;  %346 = vst [vmem:[%s2194_s30 + $0x238] sm:$0xff] %v345_v7  ;;  %v347_v8 = vld [vmem:[%s2189_s29 + $0x480] sm:$0xff]  ;;  %v349_v9 = vld [vmem:[%s2189_s29 + $0x488] sm:$0xff] }
  0x34   : > { %v351_v10 = vld [vmem:[%s2189_s29 + $0x4a0] sm:$0xff]  ;;  %348 = vst [vmem:[%s2194_s30 + $0x240] sm:$0xff] %v347_v8  ;;  %350 = vst [vmem:[%s2194_s30 + $0x248] sm:$0xff] %v349_v9  ;;  %v353_v11 = vld [vmem:[%s2189_s29 + $0x4a8] sm:$0xff] }
  0x35   : > { %352 = vst [vmem:[%s2194_s30 + $0x250] sm:$0xff] %v351_v10  ;;  %v355_v12 = vld [vmem:[%s2189_s29 + $0x4c0] sm:$0xff]  ;;  %v357_v13 = vld [vmem:[%s2189_s29 + $0x4c8] sm:$0xff]  ;;  %354 = vst [vmem:[%s2194_s30 + $0x258] sm:$0xff] %v353_v11 }
  0x36   : > { %356 = vst [vmem:[%s2194_s30 + $0x260] sm:$0xff] %v355_v12  ;;  %358 = vst [vmem:[%s2194_s30 + $0x268] sm:$0xff] %v357_v13  ;;  %v359_v14 = vld [vmem:[%s2189_s29 + $0x4e0] sm:$0xff]  ;;  %v361_v15 = vld [vmem:[%s2189_s29 + $0x4e8] sm:$0xff] }
  0x37   : > { %v363_v16 = vld [vmem:[%s2189_s29 + $0x500] sm:$0xff]  ;;  %360 = vst [vmem:[%s2194_s30 + $0x270] sm:$0xff] %v359_v14  ;;  %362 = vst [vmem:[%s2194_s30 + $0x278] sm:$0xff] %v361_v15  ;;  %v365_v17 = vld [vmem:[%s2189_s29 + $0x508] sm:$0xff] }
  0x38   : > { %364 = vst [vmem:[%s2194_s30 + $0x280] sm:$0xff] %v363_v16  ;;  %v367_v18 = vld [vmem:[%s2189_s29 + $0x520] sm:$0xff]  ;;  %v369_v19 = vld [vmem:[%s2189_s29 + $0x528] sm:$0xff]  ;;  %366 = vst [vmem:[%s2194_s30 + $0x288] sm:$0xff] %v365_v17 }
  0x39   : > { %368 = vst [vmem:[%s2194_s30 + $0x290] sm:$0xff] %v367_v18  ;;  %370 = vst [vmem:[%s2194_s30 + $0x298] sm:$0xff] %v369_v19  ;;  %v371_v20 = vld [vmem:[%s2189_s29 + $0x540] sm:$0xff]  ;;  %v373_v21 = vld [vmem:[%s2189_s29 + $0x548] sm:$0xff] }
  0x3a   : > { %v375_v22 = vld [vmem:[%s2189_s29 + $0x560] sm:$0xff]  ;;  %372 = vst [vmem:[%s2194_s30 + $0x2a0] sm:$0xff] %v371_v20  ;;  %374 = vst [vmem:[%s2194_s30 + $0x2a8] sm:$0xff] %v373_v21  ;;  %v377_v23 = vld [vmem:[%s2189_s29 + $0x568] sm:$0xff] }
  0x3b   : > { %376 = vst [vmem:[%s2194_s30 + $0x2b0] sm:$0xff] %v375_v22  ;;  %v379_v24 = vld [vmem:[%s2189_s29 + $0x580] sm:$0xff]  ;;  %v381_v25 = vld [vmem:[%s2189_s29 + $0x588] sm:$0xff]  ;;  %378 = vst [vmem:[%s2194_s30 + $0x2b8] sm:$0xff] %v377_v23 }
  0x3c   : > { %380 = vst [vmem:[%s2194_s30 + $0x2c0] sm:$0xff] %v379_v24  ;;  %382 = vst [vmem:[%s2194_s30 + $0x2c8] sm:$0xff] %v381_v25  ;;  %v383_v26 = vld [vmem:[%s2189_s29 + $0x5a0] sm:$0xff]  ;;  %v385_v27 = vld [vmem:[%s2189_s29 + $0x5a8] sm:$0xff] }
  0x3d   : > { %v387_v28 = vld [vmem:[%s2189_s29 + $0x5c0] sm:$0xff]  ;;  %384 = vst [vmem:[%s2194_s30 + $0x2d0] sm:$0xff] %v383_v26  ;;  %386 = vst [vmem:[%s2194_s30 + $0x2d8] sm:$0xff] %v385_v27  ;;  %v389_v29 = vld [vmem:[%s2189_s29 + $0x5c8] sm:$0xff] }
  0x3e   : > { %388 = vst [vmem:[%s2194_s30 + $0x2e0] sm:$0xff] %v387_v28  ;;  %v391_v30 = vld [vmem:[%s2189_s29 + $0x5e0] sm:$0xff]  ;;  %v393_v31 = vld [vmem:[%s2189_s29 + $0x5e8] sm:$0xff]  ;;  %390 = vst [vmem:[%s2194_s30 + $0x2e8] sm:$0xff] %v389_v29 }
  0x3f   : > { %392 = vst [vmem:[%s2194_s30 + $0x2f0] sm:$0xff] %v391_v30  ;;  %394 = vst [vmem:[%s2194_s30 + $0x2f8] sm:$0xff] %v393_v31  ;;  %v395_v32 = vld [vmem:[%s2189_s29 + $0x600] sm:$0xff]  ;;  %v397_v33 = vld [vmem:[%s2189_s29 + $0x608] sm:$0xff] }
  0x40   : > { %v399_v34 = vld [vmem:[%s2189_s29 + $0x620] sm:$0xff]  ;;  %396 = vst [vmem:[%s2194_s30 + $0x300] sm:$0xff] %v395_v32  ;;  %398 = vst [vmem:[%s2194_s30 + $0x308] sm:$0xff] %v397_v33  ;;  %v401_v35 = vld [vmem:[%s2189_s29 + $0x628] sm:$0xff] }
  0x41   : > { %400 = vst [vmem:[%s2194_s30 + $0x310] sm:$0xff] %v399_v34  ;;  %v403_v36 = vld [vmem:[%s2189_s29 + $0x640] sm:$0xff]  ;;  %v405_v37 = vld [vmem:[%s2189_s29 + $0x648] sm:$0xff]  ;;  %402 = vst [vmem:[%s2194_s30 + $0x318] sm:$0xff] %v401_v35 }
  0x42   : > { %404 = vst [vmem:[%s2194_s30 + $0x320] sm:$0xff] %v403_v36  ;;  %406 = vst [vmem:[%s2194_s30 + $0x328] sm:$0xff] %v405_v37  ;;  %v407_v38 = vld [vmem:[%s2189_s29 + $0x660] sm:$0xff]  ;;  %v409_v39 = vld [vmem:[%s2189_s29 + $0x668] sm:$0xff] }
  0x43   : > { %v411_v40 = vld [vmem:[%s2189_s29 + $0x680] sm:$0xff]  ;;  %408 = vst [vmem:[%s2194_s30 + $0x330] sm:$0xff] %v407_v38  ;;  %410 = vst [vmem:[%s2194_s30 + $0x338] sm:$0xff] %v409_v39  ;;  %v413_v41 = vld [vmem:[%s2189_s29 + $0x688] sm:$0xff] }
  0x44   : > { %412 = vst [vmem:[%s2194_s30 + $0x340] sm:$0xff] %v411_v40  ;;  %v415_v42 = vld [vmem:[%s2189_s29 + $0x6a0] sm:$0xff]  ;;  %v417_v43 = vld [vmem:[%s2189_s29 + $0x6a8] sm:$0xff]  ;;  %414 = vst [vmem:[%s2194_s30 + $0x348] sm:$0xff] %v413_v41 }
  0x45   : > { %416 = vst [vmem:[%s2194_s30 + $0x350] sm:$0xff] %v415_v42  ;;  %418 = vst [vmem:[%s2194_s30 + $0x358] sm:$0xff] %v417_v43  ;;  %v419_v44 = vld [vmem:[%s2189_s29 + $0x6c0] sm:$0xff]  ;;  %v421_v45 = vld [vmem:[%s2189_s29 + $0x6c8] sm:$0xff] }
  0x46   : > { %v423_v46 = vld [vmem:[%s2189_s29 + $0x6e0] sm:$0xff]  ;;  %420 = vst [vmem:[%s2194_s30 + $0x360] sm:$0xff] %v419_v44  ;;  %422 = vst [vmem:[%s2194_s30 + $0x368] sm:$0xff] %v421_v45  ;;  %v425_v47 = vld [vmem:[%s2189_s29 + $0x6e8] sm:$0xff] }
  0x47   : > { %424 = vst [vmem:[%s2194_s30 + $0x370] sm:$0xff] %v423_v46  ;;  %v427_v48 = vld [vmem:[%s2189_s29 + $0x700] sm:$0xff]  ;;  %v429_v49 = vld [vmem:[%s2189_s29 + $0x708] sm:$0xff]  ;;  %426 = vst [vmem:[%s2194_s30 + $0x378] sm:$0xff] %v425_v47 }
  0x48   : > { %428 = vst [vmem:[%s2194_s30 + $0x380] sm:$0xff] %v427_v48  ;;  %430 = vst [vmem:[%s2194_s30 + $0x388] sm:$0xff] %v429_v49  ;;  %v431_v50 = vld [vmem:[%s2189_s29 + $0x720] sm:$0xff]  ;;  %v433_v51 = vld [vmem:[%s2189_s29 + $0x728] sm:$0xff] }
  0x49   : > { %v435_v52 = vld [vmem:[%s2189_s29 + $0x740] sm:$0xff]  ;;  %432 = vst [vmem:[%s2194_s30 + $0x390] sm:$0xff] %v431_v50  ;;  %434 = vst [vmem:[%s2194_s30 + $0x398] sm:$0xff] %v433_v51  ;;  %v437_v53 = vld [vmem:[%s2189_s29 + $0x748] sm:$0xff] }
  0x4a   : > { %436 = vst [vmem:[%s2194_s30 + $0x3a0] sm:$0xff] %v435_v52  ;;  %v439_v54 = vld [vmem:[%s2189_s29 + $0x760] sm:$0xff]  ;;  %v441_v55 = vld [vmem:[%s2189_s29 + $0x768] sm:$0xff]  ;;  %438 = vst [vmem:[%s2194_s30 + $0x3a8] sm:$0xff] %v437_v53 }
  0x4b   : > { %440 = vst [vmem:[%s2194_s30 + $0x3b0] sm:$0xff] %v439_v54  ;;  %442 = vst [vmem:[%s2194_s30 + $0x3b8] sm:$0xff] %v441_v55  ;;  %v443_v56 = vld [vmem:[%s2189_s29 + $0x780] sm:$0xff]  ;;  %v445_v57 = vld [vmem:[%s2189_s29 + $0x788] sm:$0xff] }
  0x4c   : > { %v447_v58 = vld [vmem:[%s2189_s29 + $0x7a0] sm:$0xff]  ;;  %444 = vst [vmem:[%s2194_s30 + $0x3c0] sm:$0xff] %v443_v56  ;;  %446 = vst [vmem:[%s2194_s30 + $0x3c8] sm:$0xff] %v445_v57  ;;  %v449_v59 = vld [vmem:[%s2189_s29 + $0x7a8] sm:$0xff] }
  0x4d   : > { %448 = vst [vmem:[%s2194_s30 + $0x3d0] sm:$0xff] %v447_v58  ;;  %v451_v60 = vld [vmem:[%s2189_s29 + $0x7c0] sm:$0xff]  ;;  %v453_v61 = vld [vmem:[%s2189_s29 + $0x7c8] sm:$0xff]  ;;  %450 = vst [vmem:[%s2194_s30 + $0x3d8] sm:$0xff] %v449_v59 }
  0x4e   : > { %452 = vst [vmem:[%s2194_s30 + $0x3e0] sm:$0xff] %v451_v60  ;;  %454 = vst [vmem:[%s2194_s30 + $0x3e8] sm:$0xff] %v453_v61  ;;  %v455_v62 = vld [vmem:[%s2189_s29 + $0x7e0] sm:$0xff]  ;;  %v457_v63 = vld [vmem:[%s2189_s29 + $0x7e8] sm:$0xff] }
  0x4f   : > { %456 = vst [vmem:[%s2194_s30 + $0x3f0] sm:$0xff] %v455_v62  ;;  %458 = vst [vmem:[%s2194_s30 + $0x3f8] sm:$0xff] %v457_v63 }
  0x50 PF: > { %p1700_p6 = scmp.ge.s32.totalorder %s2119_s19, 1  ;;  %p479_p7 = scmp.lt.s32.totalorder %s2119_s19, 3 }
  0x52   : > { %p480_p8 = pnand %p1700_p6, %p479_p7 }
  0x53   : > { %s486_s5 = sand.u32 (!%p480_p8), 1, %s2103_s15   ;;  %s1702_s12 = sshll.u32 (!%p480_p8), %s2111_s17, 2 }
  0x54   : > { %483 = sbr.rel (%p480_p8) target bundleno = 425 (0x1a9), region = 55  ;;  %s1701_s10 = sshll.u32 (!%p480_p8), %s486_s5, 10 }
  0x55   : > { %s2470_s11 = scalar_lea.vmem (!%p480_p8), [#allocation2], %s1701_s10  ;;  %p535_p9 = scmp.lt.s32.totalorder (!%p480_p8), %s1702_s12, 7 }
  0x59   : > { %v2455_v0 = vld [vmem:[%s2646_s0] sm:$0xff]  ;;  %v2460_v1 = vld [vmem:[%s2646_s0 + $0x8] sm:$0xff]  ;;  %s2658_s12 = smov (!%p535_p9, %s1702_s12), 7 }
  0x5a   : > { %v2464_v2 = vcombine.high %v2455_v0, %v2455_v0  ;;  %v2468_v3 = vcombine.high %v2460_v1, %v2460_v1  ;;  %v1885_v4 = vld [vmem:[%s2470_s11 + $0xe4] ss:$16 sps:$4 sm:$0xff]   ;;  %v1889_v6 = vld [vmem:[%s2470_s11 + $0xe0] ss:$16 sps:$4 sm:$0xff]   ;;  %s537_s15 = scalar_lea.vmem %s2648_s2, %s2658_s12  ;;  %s542_s24 = scalar_lea.vmem %s2649_s3, %s2658_s12 }
  0x5b   : > { %v1887_v5 = vld [vmem:[%s2470_s11 + $0x2e4] ss:$16 sps:$4 sm:$0xff]   ;;  %1338 = vmatprep.subr.bf16.mxu0 %v1885_v4  ;;  %v1890_v7 = vld [vmem:[%s2470_s11 + $0x2e0] ss:$16 sps:$4 sm:$0xff]   ;;  %s1705_s17 = sshll.u32 %s2658_s12, 2 }
  0x5c   : > { %1370 = vmatprep.mubr.bf16.mxu0 %v2464_v2  ;;  %1411 = vmatprep.mubr.bf16.mxu1 %v2468_v3  ;;  %v1891_v8 = vld [vmem:[%s2470_s11 + $0xc4] ss:$16 sps:$4 sm:$0xff]   ;;  %v1895_v10 = vld [vmem:[%s2470_s11 + $0xc0] ss:$16 sps:$4 sm:$0xff]   ;;  %s552_s27 = scalar_lea.vmem %s2650_s4, %s1705_s17 }
  0x5d   : > { %1379 = vmatprep.subr.bf16.mxu1 %v1887_v5  ;;  %1339 = vmatpush1.bf16.msra.mxu0 %v1889_v6  ;;  %v1893_v9 = vld [vmem:[%s2470_s11 + $0x2c4] ss:$16 sps:$4 sm:$0xff]   ;;  %v1896_v11 = vld [vmem:[%s2470_s11 + $0x2c0] ss:$16 sps:$4 sm:$0xff]  }
  0x5e   : > { %1380 = vmatpush1.bf16.msra.mxu1 %v1890_v7  ;;  %1340 = vmatprep.subr.bf16.mxu0 %v1891_v8  ;;  %v1897_v12 = vld [vmem:[%s2470_s11 + $0xa4] ss:$16 sps:$4 sm:$0xff]   ;;  %v1901_v14 = vld [vmem:[%s2470_s11 + $0xa0] ss:$16 sps:$4 sm:$0xff]   ;;  %v1987_v8 = vld [vmem:[%s2470_s11 + $0xec] ss:$16 sps:$4 sm:$0xff]  }
  0x5f   : > { %1381 = vmatprep.subr.bf16.mxu1 %v1893_v9  ;;  %v1899_v13 = vld [vmem:[%s2470_s11 + $0x2a4] ss:$16 sps:$4 sm:$0xff]   ;;  %v1902_v15 = vld [vmem:[%s2470_s11 + $0x2a0] ss:$16 sps:$4 sm:$0xff]   ;;  %v1990_v9 = vld [vmem:[%s2470_s11 + $0x2ec] ss:$16 sps:$4 sm:$0xff]  }
  0x60   : > { %v1903_v16 = vld [vmem:[%s2470_s11 + $0x84] ss:$16 sps:$4 sm:$0xff]   ;;  %v1907_v18 = vld [vmem:[%s2470_s11 + $0x80] ss:$16 sps:$4 sm:$0xff]  }
  0x61   : > { %1341 = vmatpush1.bf16.msra.mxu0 %v1895_v10  ;;  %v1905_v17 = vld [vmem:[%s2470_s11 + $0x284] ss:$16 sps:$4 sm:$0xff]   ;;  %v1908_v19 = vld [vmem:[%s2470_s11 + $0x280] ss:$16 sps:$4 sm:$0xff]   ;;  %v2542_v10 = vcombine.low %v2455_v0, %v2455_v0  ;;  %v1991_v0 = vld [vmem:[%s2470_s11 + $0xc8] ss:$16 sps:$4 sm:$0xff]  }
  0x62   : > { %1382 = vmatpush1.bf16.msra.mxu1 %v1896_v11  ;;  %1342 = vmatprep.subr.bf16.mxu0 %v1897_v12  ;;  %v1909_v20 = vld [vmem:[%s2470_s11 + $0x64] ss:$16 sps:$4 sm:$0xff]   ;;  %v1913_v22 = vld [vmem:[%s2470_s11 + $0x60] ss:$16 sps:$4 sm:$0xff]   ;;  %v2546_v11 = vcombine.low %v2460_v1, %v2460_v1  ;;  %v1985_v12 = vld [vmem:[%s2470_s11 + $0xe8] ss:$16 sps:$4 sm:$0xff]  }
  0x63   : > { %1383 = vmatprep.subr.bf16.mxu1 %v1899_v13  ;;  %v1911_v21 = vld [vmem:[%s2470_s11 + $0x264] ss:$16 sps:$4 sm:$0xff]   ;;  %v1914_v23 = vld [vmem:[%s2470_s11 + $0x260] ss:$16 sps:$4 sm:$0xff]   ;;  %v1988_v13 = vld [vmem:[%s2470_s11 + $0x2e8] ss:$16 sps:$4 sm:$0xff]  }
  0x64   : > { %v1915_v24 = vld [vmem:[%s2470_s11 + $0x44] ss:$16 sps:$4 sm:$0xff]   ;;  %v1919_v26 = vld [vmem:[%s2470_s11 + $0x40] ss:$16 sps:$4 sm:$0xff]   ;;  %v1999_v1 = vld [vmem:[%s2470_s11 + $0xac] ss:$16 sps:$4 sm:$0xff]  }
  0x65   : > { %1343 = vmatpush1.bf16.msra.mxu0 %v1901_v14  ;;  %v1917_v25 = vld [vmem:[%s2470_s11 + $0x244] ss:$16 sps:$4 sm:$0xff]   ;;  %v1920_v27 = vld [vmem:[%s2470_s11 + $0x240] ss:$16 sps:$4 sm:$0xff]   ;;  %v1993_v14 = vld [vmem:[%s2470_s11 + $0xcc] ss:$16 sps:$4 sm:$0xff]  }
  0x66   : > { %1384 = vmatpush1.bf16.msra.mxu1 %v1902_v15  ;;  %1344 = vmatprep.subr.bf16.mxu0 %v1903_v16  ;;  %v1921_v28 = vld [vmem:[%s2470_s11 + $0x24] ss:$16 sps:$4 sm:$0xff]   ;;  %v1925_v30 = vld [vmem:[%s2470_s11 + $0x20] ss:$16 sps:$4 sm:$0xff]   ;;  %v1996_v15 = vld [vmem:[%s2470_s11 + $0x2cc] ss:$16 sps:$4 sm:$0xff]  }
  0x67   : > { %1385 = vmatprep.subr.bf16.mxu1 %v1905_v17  ;;  %v1923_v29 = vld [vmem:[%s2470_s11 + $0x224] ss:$16 sps:$4 sm:$0xff]   ;;  %v1926_v31 = vld [vmem:[%s2470_s11 + $0x220] ss:$16 sps:$4 sm:$0xff]   ;;  %v1994_v16 = vld [vmem:[%s2470_s11 + $0x2c8] ss:$16 sps:$4 sm:$0xff]  }
  0x68   : > { %v1927_v32 = vld [vmem:[%s2470_s11 + $0x4] ss:$16 sps:$4 sm:$0xff]   ;;  %v1931_v34 = vld [vmem:[%s2470_s11] ss:$16 sps:$4 sm:$0xff]   ;;  %v2002_v17 = vld [vmem:[%s2470_s11 + $0x2ac] ss:$16 sps:$4 sm:$0xff]  }
  0x69   : > { %1345 = vmatpush1.bf16.msra.mxu0 %v1907_v18  ;;  %v1929_v33 = vld [vmem:[%s2470_s11 + $0x204] ss:$16 sps:$4 sm:$0xff]   ;;  %v1932_v35 = vld [vmem:[%s2470_s11 + $0x200] ss:$16 sps:$4 sm:$0xff]   ;;  %v1997_v18 = vld [vmem:[%s2470_s11 + $0xa8] ss:$16 sps:$4 sm:$0xff]  }
  0x6a   : > { %1386 = vmatpush1.bf16.msra.mxu1 %v1908_v19  ;;  %1346 = vmatprep.subr.bf16.mxu0 %v1909_v20  ;;  %v1933_v36 = vld [vmem:[%s2470_s11 + $0x1e4] ss:$16 sps:$4 sm:$0xff]   ;;  %v1937_v38 = vld [vmem:[%s2470_s11 + $0x1e0] ss:$16 sps:$4 sm:$0xff]   ;;  %v2000_v19 = vld [vmem:[%s2470_s11 + $0x2a8] ss:$16 sps:$4 sm:$0xff]  }
  0x6b   : > { %1387 = vmatprep.subr.bf16.mxu1 %v1911_v21  ;;  %v1935_v37 = vld [vmem:[%s2470_s11 + $0x3e4] ss:$16 sps:$4 sm:$0xff]   ;;  %v1938_v39 = vld [vmem:[%s2470_s11 + $0x3e0] ss:$16 sps:$4 sm:$0xff]   ;;  %v2005_v20 = vld [vmem:[%s2470_s11 + $0x8c] ss:$16 sps:$4 sm:$0xff]  }
  0x6c   : > { %v1939_v40 = vld [vmem:[%s2470_s11 + $0x1c4] ss:$16 sps:$4 sm:$0xff]   ;;  %v1943_v42 = vld [vmem:[%s2470_s11 + $0x1c0] ss:$16 sps:$4 sm:$0xff]   ;;  %v2008_v21 = vld [vmem:[%s2470_s11 + $0x28c] ss:$16 sps:$4 sm:$0xff]  }
  0x6d   : > { %1347 = vmatpush1.bf16.msra.mxu0 %v1913_v22  ;;  %v1941_v41 = vld [vmem:[%s2470_s11 + $0x3c4] ss:$16 sps:$4 sm:$0xff]   ;;  %v1944_v43 = vld [vmem:[%s2470_s11 + $0x3c0] ss:$16 sps:$4 sm:$0xff]   ;;  %v2003_v22 = vld [vmem:[%s2470_s11 + $0x88] ss:$16 sps:$4 sm:$0xff]  }
  0x6e   : > { %1388 = vmatpush1.bf16.msra.mxu1 %v1914_v23  ;;  %1348 = vmatprep.subr.bf16.mxu0 %v1915_v24  ;;  %v1945_v44 = vld [vmem:[%s2470_s11 + $0x1a4] ss:$16 sps:$4 sm:$0xff]   ;;  %v1949_v46 = vld [vmem:[%s2470_s11 + $0x1a0] ss:$16 sps:$4 sm:$0xff]   ;;  %v2006_v23 = vld [vmem:[%s2470_s11 + $0x288] ss:$16 sps:$4 sm:$0xff]  }
  0x6f   : > { %1389 = vmatprep.subr.bf16.mxu1 %v1917_v25  ;;  %v1947_v45 = vld [vmem:[%s2470_s11 + $0x3a4] ss:$16 sps:$4 sm:$0xff]   ;;  %v1950_v47 = vld [vmem:[%s2470_s11 + $0x3a0] ss:$16 sps:$4 sm:$0xff]   ;;  %v2009_v24 = vld [vmem:[%s2470_s11 + $0x68] ss:$16 sps:$4 sm:$0xff]  }
  0x70   : > { %v1951_v48 = vld [vmem:[%s2470_s11 + $0x184] ss:$16 sps:$4 sm:$0xff]   ;;  %v1955_v50 = vld [vmem:[%s2470_s11 + $0x180] ss:$16 sps:$4 sm:$0xff]   ;;  %v2012_v25 = vld [vmem:[%s2470_s11 + $0x268] ss:$16 sps:$4 sm:$0xff]  }
  0x71   : > { %1349 = vmatpush1.bf16.msra.mxu0 %v1919_v26  ;;  %v1953_v49 = vld [vmem:[%s2470_s11 + $0x384] ss:$16 sps:$4 sm:$0xff]   ;;  %v1956_v51 = vld [vmem:[%s2470_s11 + $0x380] ss:$16 sps:$4 sm:$0xff]   ;;  %v2017_v26 = vld [vmem:[%s2470_s11 + $0x4c] ss:$16 sps:$4 sm:$0xff]  }
  0x72   : > { %1390 = vmatpush1.bf16.msra.mxu1 %v1920_v27  ;;  %1350 = vmatprep.subr.bf16.mxu0 %v1921_v28  ;;  %v1957_v52 = vld [vmem:[%s2470_s11 + $0x164] ss:$16 sps:$4 sm:$0xff]   ;;  %v1961_v54 = vld [vmem:[%s2470_s11 + $0x160] ss:$16 sps:$4 sm:$0xff]   ;;  %v2020_v27 = vld [vmem:[%s2470_s11 + $0x24c] ss:$16 sps:$4 sm:$0xff]  }
  0x73   : > { %1391 = vmatprep.subr.bf16.mxu1 %v1923_v29  ;;  %v1959_v53 = vld [vmem:[%s2470_s11 + $0x364] ss:$16 sps:$4 sm:$0xff]   ;;  %v1962_v55 = vld [vmem:[%s2470_s11 + $0x360] ss:$16 sps:$4 sm:$0xff]   ;;  %v2015_v28 = vld [vmem:[%s2470_s11 + $0x48] ss:$16 sps:$4 sm:$0xff]  }
  0x74   : > { %v1963_v56 = vld [vmem:[%s2470_s11 + $0x144] ss:$16 sps:$4 sm:$0xff]   ;;  %v1967_v58 = vld [vmem:[%s2470_s11 + $0x140] ss:$16 sps:$4 sm:$0xff]   ;;  %v2018_v29 = vld [vmem:[%s2470_s11 + $0x248] ss:$16 sps:$4 sm:$0xff]  }
  0x75   : > { %1351 = vmatpush1.bf16.msra.mxu0 %v1925_v30  ;;  %v1965_v57 = vld [vmem:[%s2470_s11 + $0x344] ss:$16 sps:$4 sm:$0xff]   ;;  %v1968_v59 = vld [vmem:[%s2470_s11 + $0x340] ss:$16 sps:$4 sm:$0xff]   ;;  %v2023_v30 = vld [vmem:[%s2470_s11 + $0x2c] ss:$16 sps:$4 sm:$0xff]  }
  0x76   : > { %1392 = vmatpush1.bf16.msra.mxu1 %v1926_v31  ;;  %1352 = vmatprep.subr.bf16.mxu0 %v1927_v32  ;;  %v1969_v60 = vld [vmem:[%s2470_s11 + $0x124] ss:$16 sps:$4 sm:$0xff]   ;;  %v1973_v62 = vld [vmem:[%s2470_s11 + $0x120] ss:$16 sps:$4 sm:$0xff]   ;;  %v2026_v31 = vld [vmem:[%s2470_s11 + $0x22c] ss:$16 sps:$4 sm:$0xff]  }
  0x77   : > { %1393 = vmatprep.subr.bf16.mxu1 %v1929_v33  ;;  %v1971_v61 = vld [vmem:[%s2470_s11 + $0x324] ss:$16 sps:$4 sm:$0xff]   ;;  %v1974_v63 = vld [vmem:[%s2470_s11 + $0x320] ss:$16 sps:$4 sm:$0xff]   ;;  %v2021_v32 = vld [vmem:[%s2470_s11 + $0x28] ss:$16 sps:$4 sm:$0xff]  }
  0x78   : > { %v1975_v4 = vld [vmem:[%s2470_s11 + $0x104] ss:$16 sps:$4 sm:$0xff]   ;;  %v1979_v6 = vld [vmem:[%s2470_s11 + $0x100] ss:$16 sps:$4 sm:$0xff]   ;;  %v2024_v33 = vld [vmem:[%s2470_s11 + $0x228] ss:$16 sps:$4 sm:$0xff]  }
  0x79   : > { %1353 = vmatpush1.bf16.msra.mxu0 %v1931_v34  ;;  %v1977_v5 = vld [vmem:[%s2470_s11 + $0x304] ss:$16 sps:$4 sm:$0xff]   ;;  %v1980_v7 = vld [vmem:[%s2470_s11 + $0x300] ss:$16 sps:$4 sm:$0xff]   ;;  %v2029_v34 = vld [vmem:[%s2470_s11 + $0xc] ss:$16 sps:$4 sm:$0xff]  }
  0x7a   : > { %1394 = vmatpush1.bf16.msra.mxu1 %v1932_v35  ;;  %1354 = vmatprep.subr.bf16.mxu0 %v1933_v36  ;;  %v2032_v35 = vld [vmem:[%s2470_s11 + $0x20c] ss:$16 sps:$4 sm:$0xff]   ;;  %v2027_v36 = vld [vmem:[%s2470_s11 + $0x8] ss:$16 sps:$4 sm:$0xff]  }
  0x7b   : > { %1395 = vmatprep.subr.bf16.mxu1 %v1935_v37  ;;  %v2030_v37 = vld [vmem:[%s2470_s11 + $0x208] ss:$16 sps:$4 sm:$0xff]  }
  0x7d   : > { %1355 = vmatpush2.bf16.msra.mxu0 %v1937_v38  ;;  %v2035_v38 = vld [vmem:[%s2470_s11 + $0x1ec] ss:$16 sps:$4 sm:$0xff]  }
  0x7e   : > { %1396 = vmatpush2.bf16.msra.mxu1 %v1938_v39  ;;  %1356 = vmatprep.subr.bf16.mxu0 %v1939_v40  ;;  %v2038_v39 = vld [vmem:[%s2470_s11 + $0x3ec] ss:$16 sps:$4 sm:$0xff]   ;;  %v2033_v40 = vld [vmem:[%s2470_s11 + $0x1e8] ss:$16 sps:$4 sm:$0xff]  }
  0x7f   : > { %1397 = vmatprep.subr.bf16.mxu1 %v1941_v41  ;;  %v2036_v41 = vld [vmem:[%s2470_s11 + $0x3e8] ss:$16 sps:$4 sm:$0xff]  }
  0x81   : > { %1357 = vmatpush2.bf16.msra.mxu0 %v1943_v42  ;;  %v2041_v42 = vld [vmem:[%s2470_s11 + $0x1cc] ss:$16 sps:$4 sm:$0xff]  }
  0x82   : > { %1398 = vmatpush2.bf16.msra.mxu1 %v1944_v43  ;;  %1358 = vmatprep.subr.bf16.mxu0 %v1945_v44  ;;  %v2044_v43 = vld [vmem:[%s2470_s11 + $0x3cc] ss:$16 sps:$4 sm:$0xff]   ;;  %v2039_v44 = vld [vmem:[%s2470_s11 + $0x1c8] ss:$16 sps:$4 sm:$0xff]  }
  0x83   : > { %1399 = vmatprep.subr.bf16.mxu1 %v1947_v45  ;;  %v2042_v45 = vld [vmem:[%s2470_s11 + $0x3c8] ss:$16 sps:$4 sm:$0xff]  }
  0x85   : > { %1359 = vmatpush2.bf16.msra.mxu0 %v1949_v46  ;;  %v2047_v46 = vld [vmem:[%s2470_s11 + $0x1ac] ss:$16 sps:$4 sm:$0xff]  }
  0x86   : > { %1400 = vmatpush2.bf16.msra.mxu1 %v1950_v47  ;;  %1360 = vmatprep.subr.bf16.mxu0 %v1951_v48  ;;  %v2050_v47 = vld [vmem:[%s2470_s11 + $0x3ac] ss:$16 sps:$4 sm:$0xff]   ;;  %v2045_v48 = vld [vmem:[%s2470_s11 + $0x1a8] ss:$16 sps:$4 sm:$0xff]  }
  0x87   : > { %1401 = vmatprep.subr.bf16.mxu1 %v1953_v49  ;;  %v2048_v49 = vld [vmem:[%s2470_s11 + $0x3a8] ss:$16 sps:$4 sm:$0xff]  }
  0x89   : > { %1361 = vmatpush2.bf16.msra.mxu0 %v1955_v50  ;;  %v2053_v50 = vld [vmem:[%s2470_s11 + $0x18c] ss:$16 sps:$4 sm:$0xff]  }
  0x8a   : > { %1402 = vmatpush2.bf16.msra.mxu1 %v1956_v51  ;;  %1362 = vmatprep.subr.bf16.mxu0 %v1957_v52  ;;  %v2056_v51 = vld [vmem:[%s2470_s11 + $0x38c] ss:$16 sps:$4 sm:$0xff]   ;;  %v2051_v52 = vld [vmem:[%s2470_s11 + $0x188] ss:$16 sps:$4 sm:$0xff]  }
  0x8b   : > { %1403 = vmatprep.subr.bf16.mxu1 %v1959_v53  ;;  %v2054_v53 = vld [vmem:[%s2470_s11 + $0x388] ss:$16 sps:$4 sm:$0xff]  }
  0x8d   : > { %1363 = vmatpush2.bf16.msra.mxu0 %v1961_v54  ;;  %v2059_v54 = vld [vmem:[%s2470_s11 + $0x16c] ss:$16 sps:$4 sm:$0xff]  }
  0x8e   : > { %1404 = vmatpush2.bf16.msra.mxu1 %v1962_v55  ;;  %1364 = vmatprep.subr.bf16.mxu0 %v1963_v56  ;;  %v2062_v55 = vld [vmem:[%s2470_s11 + $0x36c] ss:$16 sps:$4 sm:$0xff]   ;;  %v2057_v56 = vld [vmem:[%s2470_s11 + $0x168] ss:$16 sps:$4 sm:$0xff]  }
  0x8f   : > { %1405 = vmatprep.subr.bf16.mxu1 %v1965_v57  ;;  %v2060_v57 = vld [vmem:[%s2470_s11 + $0x368] ss:$16 sps:$4 sm:$0xff]  }
  0x91   : > { %1365 = vmatpush2.bf16.msra.mxu0 %v1967_v58  ;;  %v2065_v58 = vld [vmem:[%s2470_s11 + $0x14c] ss:$16 sps:$4 sm:$0xff]  }
  0x92   : > { %1406 = vmatpush2.bf16.msra.mxu1 %v1968_v59  ;;  %1366 = vmatprep.subr.bf16.mxu0 %v1969_v60  ;;  %v2068_v59 = vld [vmem:[%s2470_s11 + $0x34c] ss:$16 sps:$4 sm:$0xff]   ;;  %v2063_v60 = vld [vmem:[%s2470_s11 + $0x148] ss:$16 sps:$4 sm:$0xff]  }
  0x93   : > { %1407 = vmatprep.subr.bf16.mxu1 %v1971_v61  ;;  %v2066_v61 = vld [vmem:[%s2470_s11 + $0x348] ss:$16 sps:$4 sm:$0xff]  }
  0x95   : > { %1367 = vmatpush2.bf16.msra.mxu0 %v1973_v62  ;;  %v2071_v62 = vld [vmem:[%s2470_s11 + $0x12c] ss:$16 sps:$4 sm:$0xff]  }
  0x96   : > { %1408 = vmatpush2.bf16.msra.mxu1 %v1974_v63  ;;  %1368 = vmatprep.subr.bf16.mxu0 %v1975_v4  ;;  %v2074_v63 = vld [vmem:[%s2470_s11 + $0x32c] ss:$16 sps:$4 sm:$0xff]   ;;  %v2069_v4 = vld [vmem:[%s2470_s11 + $0x128] ss:$16 sps:$4 sm:$0xff]  }
  0x97   : > { %1409 = vmatprep.subr.bf16.mxu1 %v1977_v5  ;;  %v2072_v5 = vld [vmem:[%s2470_s11 + $0x328] ss:$16 sps:$4 sm:$0xff]  }
  0x99   : > { %1369 = vmatpush2.bf16.msra.mxu0 %v1979_v6  ;;  %v2077_v6 = vld [vmem:[%s2470_s11 + $0x10c] ss:$16 sps:$4 sm:$0xff]  }
  0x9a   : > { %1410 = vmatpush2.bf16.msra.mxu1 %v1980_v7  ;;  %1420 = vmatprep.subr.bf16.mxu0 %v1987_v8  ;;  %v2080_v7 = vld [vmem:[%s2470_s11 + $0x30c] ss:$16 sps:$4 sm:$0xff]   ;;  %v2075_v8 = vld [vmem:[%s2470_s11 + $0x108] ss:$16 sps:$4 sm:$0xff]  }
  0x9b   : > { %1461 = vmatprep.subr.bf16.mxu1 %v1990_v9  ;;  %v2078_v9 = vld [vmem:[%s2470_s11 + $0x308] ss:$16 sps:$4 sm:$0xff]  }
  0x9c   : > { %1371 = vmatmul.mubr.bf16.vlgmr.msra.gmra.mxu0 %v2542_v10 }
  0x9d   : > { %1412 = vmatmul.mubr.bf16.vlgmr.msra.gmra.mxu1 %v2546_v11  ;;  %1421 = vmatpush1.bf16.msra.mxu0 %v1985_v12  ;;  %v1504_v12 = vlaneseq }
  0x9e   : > { %1462 = vmatpush1.bf16.msra.mxu1 %v1988_v13  ;;  %1422 = vmatprep.subr.bf16.mxu0 %v1993_v14 }
  0x9f   : > { %1463 = vmatprep.subr.bf16.mxu1 %v1996_v15  ;;  %1452 = vmatprep.mubr.bf16.mxu0 %v2464_v2  ;;  %v2011_v2 = vld [vmem:[%s2470_s11 + $0x6c] ss:$16 sps:$4 sm:$0xff]   ;;  %v1505_v13 = vshrl.u32 %v1504_v12, 7 }
  0xa0   : > { %1493 = vmatprep.mubr.bf16.mxu1 %v2468_v3  ;;  %v2014_v3 = vld [vmem:[%s2470_s11 + $0x26c] ss:$16 sps:$4 sm:$0xff]  }
  0xa1   : > { %1423 = vmatpush1.bf16.msra.mxu0 %v1991_v0  ;;  %v1514_v14 = vsub.s32 2, %v1505_v13  ;;  %v1528_v0 = vld [vmem:[%s542_s24] sm:$0xf] }
  0xa2   : > { %1464 = vmatpush1.bf16.msra.mxu1 %v1994_v16  ;;  %1424 = vmatprep.subr.bf16.mxu0 %v1999_v1 }
  0xa3   : > { %1465 = vmatprep.subr.bf16.mxu1 %v2002_v17  ;;  %v1541_v16 = vrot.slane %v1528_v0, %v1514_v14 }
  0xa5   : > { %1425 = vmatpush1.bf16.msra.mxu0 %v1997_v18  ;;  %v1506_v18 = vsub.s32 0, %v1505_v13 }
  0xa6   : > { %1466 = vmatpush1.bf16.msra.mxu1 %v2000_v19  ;;  %1426 = vmatprep.subr.bf16.mxu0 %v2005_v20  ;;  %v1510_v19 = vsub.s32 1, %v1505_v13 }
  0xa7   : > { %1467 = vmatprep.subr.bf16.mxu1 %v2008_v21 }
  0xa9   : > { %1427 = vmatpush1.bf16.msra.mxu0 %v2003_v22 }
  0xaa   : > { %1468 = vmatpush1.bf16.msra.mxu1 %v2006_v23  ;;  %1428 = vmatprep.subr.bf16.mxu0 %v2011_v2  ;;  %v1533_v2 = vrot.slane %v1528_v0, %v1506_v18 }
  0xab   : > { %1469 = vmatprep.subr.bf16.mxu1 %v2014_v3 }
  0xad   : > { %1429 = vmatpush1.bf16.msra.mxu0 %v2009_v24 }
  0xae   : > { %1470 = vmatpush1.bf16.msra.mxu1 %v2012_v25  ;;  %1430 = vmatprep.subr.bf16.mxu0 %v2017_v26 }
  0xaf   : > { %1471 = vmatprep.subr.bf16.mxu1 %v2020_v27 }
  0xb1   : > { %1431 = vmatpush1.bf16.msra.mxu0 %v2015_v28  ;;  %v1537_v28 = vrot.slane %v1528_v0, %v1510_v19 }
  0xb2   : > { %1472 = vmatpush1.bf16.msra.mxu1 %v2018_v29  ;;  %1432 = vmatprep.subr.bf16.mxu0 %v2023_v30 }
  0xb3   : > { %1473 = vmatprep.subr.bf16.mxu1 %v2026_v31 }
  0xb5   : > { %1433 = vmatpush1.bf16.msra.mxu0 %v2021_v32 }
  0xb6   : > { %1474 = vmatpush1.bf16.msra.mxu1 %v2024_v33  ;;  %1434 = vmatprep.subr.bf16.mxu0 %v2029_v34 }
  0xb7   : > { %1475 = vmatprep.subr.bf16.mxu1 %v2032_v35 }
  0xb9   : > { %1435 = vmatpush1.bf16.msra.mxu0 %v2027_v36 }
  0xba   : > { %1476 = vmatpush1.bf16.msra.mxu1 %v2030_v37  ;;  %1436 = vmatprep.subr.bf16.mxu0 %v2035_v38 }
  0xbb   : > { %1477 = vmatprep.subr.bf16.mxu1 %v2038_v39 }
  0xbd   : > { %1437 = vmatpush2.bf16.msra.mxu0 %v2033_v40 }
  0xbe   : > { %1478 = vmatpush2.bf16.msra.mxu1 %v2036_v41  ;;  %1438 = vmatprep.subr.bf16.mxu0 %v2041_v42 }
  0xbf   : > { %1479 = vmatprep.subr.bf16.mxu1 %v2044_v43 }
  0xc1   : > { %1439 = vmatpush2.bf16.msra.mxu0 %v2039_v44 }
  0xc2   : > { %1480 = vmatpush2.bf16.msra.mxu1 %v2042_v45  ;;  %1440 = vmatprep.subr.bf16.mxu0 %v2047_v46 }
  0xc3   : > { %1481 = vmatprep.subr.bf16.mxu1 %v2050_v47 }
  0xc5   : > { %1441 = vmatpush2.bf16.msra.mxu0 %v2045_v48 }
  0xc6   : > { %1482 = vmatpush2.bf16.msra.mxu1 %v2048_v49  ;;  %1442 = vmatprep.subr.bf16.mxu0 %v2053_v50 }
  0xc7   : > { %1483 = vmatprep.subr.bf16.mxu1 %v2056_v51 }
  0xc9   : > { %1443 = vmatpush2.bf16.msra.mxu0 %v2051_v52 }
  0xca   : > { %1484 = vmatpush2.bf16.msra.mxu1 %v2054_v53  ;;  %1444 = vmatprep.subr.bf16.mxu0 %v2059_v54 }
  0xcb   : > { %1485 = vmatprep.subr.bf16.mxu1 %v2062_v55 }
  0xcd   : > { %1445 = vmatpush2.bf16.msra.mxu0 %v2057_v56 }
  0xce   : > { %1486 = vmatpush2.bf16.msra.mxu1 %v2060_v57  ;;  %1446 = vmatprep.subr.bf16.mxu0 %v2065_v58 }
  0xcf   : > { %1487 = vmatprep.subr.bf16.mxu1 %v2068_v59 }
  0xd1   : > { %1447 = vmatpush2.bf16.msra.mxu0 %v2063_v60 }
  0xd2   : > { %1488 = vmatpush2.bf16.msra.mxu1 %v2066_v61  ;;  %1448 = vmatprep.subr.bf16.mxu0 %v2071_v62 }
  0xd3   : > { %1489 = vmatprep.subr.bf16.mxu1 %v2074_v63 }
  0xd5   : > { %1449 = vmatpush2.bf16.msra.mxu0 %v2069_v4 }
  0xd6   : > { %1490 = vmatpush2.bf16.msra.mxu1 %v2072_v5  ;;  %1450 = vmatprep.subr.bf16.mxu0 %v2077_v6 }
  0xd7   : > { %1491 = vmatprep.subr.bf16.mxu1 %v2080_v7 }
  0xd9   : > { %1451 = vmatpush2.bf16.msra.mxu0 %v2075_v8 }
  0xda   : > { %1492 = vmatpush2.bf16.msra.mxu1 %v2078_v9 }
  0xdc   : > { %1453 = vmatmul.mubr.bf16.vlgmr.msra.gmra.mxu0 %v2542_v10  ;;  %v1502_v10 = vld [vmem:[%s537_s15] sm:$0xf] }
  0xdd   : > { %1494 = vmatmul.mubr.bf16.vlgmr.msra.gmra.mxu1 %v2546_v11  ;;  %v1515_v15 = vrot.slane %v1502_v10, %v1514_v14  ;;  %v1518_v11 = vsub.s32 3, %v1505_v13  ;;  %v1507_v20 = vrot.slane %v1502_v10, %v1506_v18  ;;  %v1511_v3 = vrot.slane %v1502_v10, %v1510_v19 }
  0xdf   : > { %v1519_v1 = vrot.slane %v1502_v10, %v1518_v11  ;;  %v1545_v17 = vrot.slane %v1528_v0, %v1518_v11 }
 0x15c   : > { %v1372_v21 = vpop.f32.mrf.mxu0 }
 0x15d   : > { %v1413_v22 = vpop.f32.mrf.mxu1 }
 0x15e   : > { %v1414_v23 = vadd.f32 %v1413_v22, %v1372_v21  ;;  %v1374_v24 = vpop.f32.mrf.mxu0 }
 0x15f   : > { %v1415_v25 = vpop.f32.mrf.mxu1 }
 0x160   : > { %v1524_v26 = vmul.f32 %v1507_v20, %v1414_v23  ;;  %v1416_v27 = vadd.f32 %v1415_v25, %v1374_v24  ;;  %v1376_v29 = vpop.f32.mrf.mxu0 }
 0x161   : > { %v1417_v30 = vpop.f32.mrf.mxu1 }
 0x162   : > { %v1550_v31 = vadd.f32 %v1533_v2, %v1524_v26  ;;  %v1525_v32 = vmul.f32 %v1511_v3, %v1416_v27  ;;  %v1377_v33 = vpop.f32.mrf.mxu0 }
 0x163   : > { %v1418_v34 = vpop.f32.mrf.mxu1 }
 0x164   : > { %v1551_v35 = vadd.f32 %v1537_v28, %v1525_v32 }
 0x166   : > { %v1843_v36 = vpack.c.bf16 %v1551_v35, %v1550_v31 }
 0x168   : > { %1570 = vst [vmem:[%s552_s27] sm:$0xff] %v1843_v36 }
 0x19c   : > { %v1454_v37 = vpop.f32.mrf.mxu0 }
 0x19d   : > { %v1495_v38 = vpop.f32.mrf.mxu1 }
 0x19e   : > { %v1496_v39 = vadd.f32 %v1495_v38, %v1454_v37  ;;  %v1456_v40 = vpop.f32.mrf.mxu0 }
 0x19f   : > { %v1497_v41 = vpop.f32.mrf.mxu1 }
 0x1a0   : > { %v1526_v42 = vmul.f32 %v1515_v15, %v1496_v39  ;;  %v1498_v43 = vadd.f32 %v1497_v41, %v1456_v40  ;;  %v1458_v44 = vpop.f32.mrf.mxu0 }
 0x1a1   : > { %v1499_v45 = vpop.f32.mrf.mxu1 }
 0x1a2   : > { %v1552_v46 = vadd.f32 %v1541_v16, %v1526_v42  ;;  %v1527_v47 = vmul.f32 %v1519_v1, %v1498_v43  ;;  %v1459_v48 = vpop.f32.mrf.mxu0 }
 0x1a3   : > { %v1500_v49 = vpop.f32.mrf.mxu1 }
 0x1a4   : > { %v1553_v50 = vadd.f32 %v1545_v17, %v1527_v47 }
 0x1a6   : > { %v1844_v51 = vpack.c.bf16 %v1553_v50, %v1552_v46 }
 0x1a8   : > { %1571 = vst [vmem:[%s552_s27 + $0x8] sm:$0xff] %v1844_v51 }
 0x1a9 PF: > { %s14_s19 = sadd.s32 1, %s2119_s19   ;;  %s2651_s15 = smov %s2107_s16 }
 0x1aa   : > { %p11_p10 = scmp.ge.s32.totalorder %s14_s19, 4   ;;  %s2652_s16 = smov %s2181_s23 }
 0x1ab   : > { %s2653_s17 = smov %s2115_s18  ;;  %s2654_s18 = smov %s2656_s20 }
 0x1ac   :  { %13 = sbr.rel (!%p11_p10) target bundleno = 3 (0x3), region = 103 }

// kernel: resnet101_forward.121
= control target key start
LH: loop header
LB: loop body
LE: loop exit
PB: predicated region body
PF: predicated region fallthrough
CT: control target
= control target key end

     0   :  { %s1482_s18 = smov 0   ;;  %s1484_s19 = smov 0   ;;  %s1772_s0 = inlined_call_operand.vmem [shape: bf16[8,256], index: 0, kind: input, shape index: {}]   ;;  %s1773_s1 = inlined_call_operand.vmem [shape: bf16[1,256,1024], index: 1, kind: input, shape index: {}]   ;;  %s1774_s2 = inlined_call_operand.vmem [shape: f32[1,1024], index: 2, kind: input, shape index: {}]   ;;  %s1775_s3 = inlined_call_operand.vmem [shape: f32[1,1024], index: 3, kind: input, shape index: {}]   ;;  %s1776_s4 = inlined_call_operand.vmem [shape: bf16[8,1024], index: 4, kind: input, shape index: {}]   ;;  %s1777_s5 = inlined_call_operand.vmem [shape: bf16[8,1024], index: 5, kind: output, shape index: {}]  }
   0x1   :  { %s1486_s20 = smov 0   ;;  %s1488_s21 = smov 0  }
   0x2   :  { %s1490_s22 = smov 0  }
   0x3 LB: > { %s24_s23 = sadd.s32 1, %s1446_s21  ;;  %p67_p1 = scmp.ne.s32.totalorder %s1438_s19, %s1434_s18  ;;  %s1450_s22 = sphi %s1490_s22, %s15_s22   ;;  %s1446_s21 = sphi %s1488_s21, %s1781_s21   ;;  %s1442_s20 = sphi %s1486_s20, %s1780_s20   ;;  %s1438_s19 = sphi %s1484_s19, %s1779_s19   ;;  %s1434_s18 = sphi %s1482_s18, %s1778_s18  }
   0x4   : > { %p25_p0 = scmp.ge.s32.totalorder %s24_s23, 2  ;;  %p68_p2 = scmp.eq.s32.totalorder %s1450_s22, 0 }
   0x5   : > { %s60_s25 = sadd.s32 1, %s1438_s19  ;;  %p1189_p5 = scmp.ge.s32.totalorder %s1450_s22, 2 }
   0x6   : > { %s1783_s23 = smov (%p25_p0, %s24_s23), 0  ;;  %p69_p3 = por %p68_p2, %p67_p1 }
   0x7   : > { %s57_s24 = ssub.s32 %s1446_s21, %s1783_s23  ;;  %209 = sbr.rel (%p1189_p5) target bundleno = 48 (0x30), region = 20 }
   0x8   : > { %p58_p4 = scmp.eq.s32.totalorder %s57_s24, 0 }
   0xa   : > { %s1517_s26 = scalar_select %p58_p4, %s1438_s19, %s60_s25  }
   0xc   : > { %212 = sbr.rel (!%p69_p3) target bundleno = 48 (0x30), region = 24  ;;  %s214_s27 = sand.u32 (%p69_p3), 1, %s1438_s19  }
   0xd   : > { %s1271_s28 = sshll.u32 (%p69_p3), %s1446_s21, 4  ;;  %s1190_s29 = sshll.u32 (%p69_p3), %s214_s27, 9 }
   0xe   : > { %s1525_s7 = scalar_lea.vmem (%p69_p3), %s1773_s1, %s1271_s28  ;;  %s1530_s8 = scalar_lea.vmem (%p69_p3), [#allocation2], %s1190_s29 }
   0xf   : > { %v232_v0 = vld [vmem:[%s1525_s7] sm:$0xff] (%p69_p3)  ;;  %v234_v1 = vld [vmem:[%s1525_s7 + $0x8] sm:$0xff] (%p69_p3) }
  0x10   : > { %v236_v2 = vld [vmem:[%s1525_s7 + $0x20] sm:$0xff] (%p69_p3)  ;;  %233 = vst [vmem:[%s1530_s8] sm:$0xff] (%p69_p3), %v232_v0  ;;  %235 = vst [vmem:[%s1530_s8 + $0x8] sm:$0xff] (%p69_p3), %v234_v1  ;;  %v238_v3 = vld [vmem:[%s1525_s7 + $0x28] sm:$0xff] (%p69_p3) }
  0x11   : > { %237 = vst [vmem:[%s1530_s8 + $0x10] sm:$0xff] %v236_v2  ;;  %v240_v4 = vld [vmem:[%s1525_s7 + $0x40] sm:$0xff]  ;;  %v242_v5 = vld [vmem:[%s1525_s7 + $0x48] sm:$0xff]  ;;  %239 = vst [vmem:[%s1530_s8 + $0x18] sm:$0xff] %v238_v3 }
  0x12   : > { %241 = vst [vmem:[%s1530_s8 + $0x20] sm:$0xff] %v240_v4  ;;  %243 = vst [vmem:[%s1530_s8 + $0x28] sm:$0xff] %v242_v5  ;;  %v244_v6 = vld [vmem:[%s1525_s7 + $0x60] sm:$0xff]  ;;  %v246_v7 = vld [vmem:[%s1525_s7 + $0x68] sm:$0xff] }
  0x13   : > { %v248_v8 = vld [vmem:[%s1525_s7 + $0x80] sm:$0xff]  ;;  %245 = vst [vmem:[%s1530_s8 + $0x30] sm:$0xff] %v244_v6  ;;  %247 = vst [vmem:[%s1530_s8 + $0x38] sm:$0xff] %v246_v7  ;;  %v250_v9 = vld [vmem:[%s1525_s7 + $0x88] sm:$0xff] }
  0x14   : > { %249 = vst [vmem:[%s1530_s8 + $0x40] sm:$0xff] %v248_v8  ;;  %v252_v10 = vld [vmem:[%s1525_s7 + $0xa0] sm:$0xff]  ;;  %v254_v11 = vld [vmem:[%s1525_s7 + $0xa8] sm:$0xff]  ;;  %251 = vst [vmem:[%s1530_s8 + $0x48] sm:$0xff] %v250_v9 }
  0x15   : > { %253 = vst [vmem:[%s1530_s8 + $0x50] sm:$0xff] %v252_v10  ;;  %255 = vst [vmem:[%s1530_s8 + $0x58] sm:$0xff] %v254_v11  ;;  %v256_v12 = vld [vmem:[%s1525_s7 + $0xc0] sm:$0xff]  ;;  %v258_v13 = vld [vmem:[%s1525_s7 + $0xc8] sm:$0xff] }
  0x16   : > { %v260_v14 = vld [vmem:[%s1525_s7 + $0xe0] sm:$0xff]  ;;  %257 = vst [vmem:[%s1530_s8 + $0x60] sm:$0xff] %v256_v12  ;;  %259 = vst [vmem:[%s1530_s8 + $0x68] sm:$0xff] %v258_v13  ;;  %v262_v15 = vld [vmem:[%s1525_s7 + $0xe8] sm:$0xff] }
  0x17   : > { %261 = vst [vmem:[%s1530_s8 + $0x70] sm:$0xff] %v260_v14  ;;  %v264_v16 = vld [vmem:[%s1525_s7 + $0x100] sm:$0xff]  ;;  %v266_v17 = vld [vmem:[%s1525_s7 + $0x108] sm:$0xff]  ;;  %263 = vst [vmem:[%s1530_s8 + $0x78] sm:$0xff] %v262_v15 }
  0x18   : > { %265 = vst [vmem:[%s1530_s8 + $0x80] sm:$0xff] %v264_v16  ;;  %267 = vst [vmem:[%s1530_s8 + $0x88] sm:$0xff] %v266_v17  ;;  %v268_v18 = vld [vmem:[%s1525_s7 + $0x120] sm:$0xff]  ;;  %v270_v19 = vld [vmem:[%s1525_s7 + $0x128] sm:$0xff] }
  0x19   : > { %v272_v20 = vld [vmem:[%s1525_s7 + $0x140] sm:$0xff]  ;;  %269 = vst [vmem:[%s1530_s8 + $0x90] sm:$0xff] %v268_v18  ;;  %271 = vst [vmem:[%s1530_s8 + $0x98] sm:$0xff] %v270_v19  ;;  %v274_v21 = vld [vmem:[%s1525_s7 + $0x148] sm:$0xff] }
  0x1a   : > { %273 = vst [vmem:[%s1530_s8 + $0xa0] sm:$0xff] %v272_v20  ;;  %v276_v22 = vld [vmem:[%s1525_s7 + $0x160] sm:$0xff]  ;;  %v278_v23 = vld [vmem:[%s1525_s7 + $0x168] sm:$0xff]  ;;  %275 = vst [vmem:[%s1530_s8 + $0xa8] sm:$0xff] %v274_v21 }
  0x1b   : > { %277 = vst [vmem:[%s1530_s8 + $0xb0] sm:$0xff] %v276_v22  ;;  %279 = vst [vmem:[%s1530_s8 + $0xb8] sm:$0xff] %v278_v23  ;;  %v280_v24 = vld [vmem:[%s1525_s7 + $0x180] sm:$0xff]  ;;  %v282_v25 = vld [vmem:[%s1525_s7 + $0x188] sm:$0xff] }
  0x1c   : > { %v284_v26 = vld [vmem:[%s1525_s7 + $0x1a0] sm:$0xff]  ;;  %281 = vst [vmem:[%s1530_s8 + $0xc0] sm:$0xff] %v280_v24  ;;  %283 = vst [vmem:[%s1530_s8 + $0xc8] sm:$0xff] %v282_v25  ;;  %v286_v27 = vld [vmem:[%s1525_s7 + $0x1a8] sm:$0xff] }
  0x1d   : > { %285 = vst [vmem:[%s1530_s8 + $0xd0] sm:$0xff] %v284_v26  ;;  %v288_v28 = vld [vmem:[%s1525_s7 + $0x1c0] sm:$0xff]  ;;  %v290_v29 = vld [vmem:[%s1525_s7 + $0x1c8] sm:$0xff]  ;;  %287 = vst [vmem:[%s1530_s8 + $0xd8] sm:$0xff] %v286_v27 }
  0x1e   : > { %289 = vst [vmem:[%s1530_s8 + $0xe0] sm:$0xff] %v288_v28  ;;  %291 = vst [vmem:[%s1530_s8 + $0xe8] sm:$0xff] %v290_v29  ;;  %v292_v30 = vld [vmem:[%s1525_s7 + $0x1e0] sm:$0xff]  ;;  %v294_v31 = vld [vmem:[%s1525_s7 + $0x1e8] sm:$0xff] }
  0x1f   : > { %v296_v32 = vld [vmem:[%s1525_s7 + $0x200] sm:$0xff]  ;;  %293 = vst [vmem:[%s1530_s8 + $0xf0] sm:$0xff] %v292_v30  ;;  %295 = vst [vmem:[%s1530_s8 + $0xf8] sm:$0xff] %v294_v31  ;;  %v298_v33 = vld [vmem:[%s1525_s7 + $0x208] sm:$0xff] }
  0x20   : > { %297 = vst [vmem:[%s1530_s8 + $0x100] sm:$0xff] %v296_v32  ;;  %v300_v34 = vld [vmem:[%s1525_s7 + $0x220] sm:$0xff]  ;;  %v302_v35 = vld [vmem:[%s1525_s7 + $0x228] sm:$0xff]  ;;  %299 = vst [vmem:[%s1530_s8 + $0x108] sm:$0xff] %v298_v33 }
  0x21   : > { %301 = vst [vmem:[%s1530_s8 + $0x110] sm:$0xff] %v300_v34  ;;  %303 = vst [vmem:[%s1530_s8 + $0x118] sm:$0xff] %v302_v35  ;;  %v304_v36 = vld [vmem:[%s1525_s7 + $0x240] sm:$0xff]  ;;  %v306_v37 = vld [vmem:[%s1525_s7 + $0x248] sm:$0xff] }
  0x22   : > { %v308_v38 = vld [vmem:[%s1525_s7 + $0x260] sm:$0xff]  ;;  %305 = vst [vmem:[%s1530_s8 + $0x120] sm:$0xff] %v304_v36  ;;  %307 = vst [vmem:[%s1530_s8 + $0x128] sm:$0xff] %v306_v37  ;;  %v310_v39 = vld [vmem:[%s1525_s7 + $0x268] sm:$0xff] }
  0x23   : > { %309 = vst [vmem:[%s1530_s8 + $0x130] sm:$0xff] %v308_v38  ;;  %v312_v40 = vld [vmem:[%s1525_s7 + $0x280] sm:$0xff]  ;;  %v314_v41 = vld [vmem:[%s1525_s7 + $0x288] sm:$0xff]  ;;  %311 = vst [vmem:[%s1530_s8 + $0x138] sm:$0xff] %v310_v39 }
  0x24   : > { %313 = vst [vmem:[%s1530_s8 + $0x140] sm:$0xff] %v312_v40  ;;  %315 = vst [vmem:[%s1530_s8 + $0x148] sm:$0xff] %v314_v41  ;;  %v316_v42 = vld [vmem:[%s1525_s7 + $0x2a0] sm:$0xff]  ;;  %v318_v43 = vld [vmem:[%s1525_s7 + $0x2a8] sm:$0xff] }
  0x25   : > { %v320_v44 = vld [vmem:[%s1525_s7 + $0x2c0] sm:$0xff]  ;;  %317 = vst [vmem:[%s1530_s8 + $0x150] sm:$0xff] %v316_v42  ;;  %319 = vst [vmem:[%s1530_s8 + $0x158] sm:$0xff] %v318_v43  ;;  %v322_v45 = vld [vmem:[%s1525_s7 + $0x2c8] sm:$0xff] }
  0x26   : > { %321 = vst [vmem:[%s1530_s8 + $0x160] sm:$0xff] %v320_v44  ;;  %v324_v46 = vld [vmem:[%s1525_s7 + $0x2e0] sm:$0xff]  ;;  %v326_v47 = vld [vmem:[%s1525_s7 + $0x2e8] sm:$0xff]  ;;  %323 = vst [vmem:[%s1530_s8 + $0x168] sm:$0xff] %v322_v45 }
  0x27   : > { %325 = vst [vmem:[%s1530_s8 + $0x170] sm:$0xff] %v324_v46  ;;  %327 = vst [vmem:[%s1530_s8 + $0x178] sm:$0xff] %v326_v47  ;;  %v328_v48 = vld [vmem:[%s1525_s7 + $0x300] sm:$0xff]  ;;  %v330_v49 = vld [vmem:[%s1525_s7 + $0x308] sm:$0xff] }
  0x28   : > { %v332_v50 = vld [vmem:[%s1525_s7 + $0x320] sm:$0xff]  ;;  %329 = vst [vmem:[%s1530_s8 + $0x180] sm:$0xff] %v328_v48  ;;  %331 = vst [vmem:[%s1530_s8 + $0x188] sm:$0xff] %v330_v49  ;;  %v334_v51 = vld [vmem:[%s1525_s7 + $0x328] sm:$0xff] }
  0x29   : > { %333 = vst [vmem:[%s1530_s8 + $0x190] sm:$0xff] %v332_v50  ;;  %v336_v52 = vld [vmem:[%s1525_s7 + $0x340] sm:$0xff]  ;;  %v338_v53 = vld [vmem:[%s1525_s7 + $0x348] sm:$0xff]  ;;  %335 = vst [vmem:[%s1530_s8 + $0x198] sm:$0xff] %v334_v51 }
  0x2a   : > { %337 = vst [vmem:[%s1530_s8 + $0x1a0] sm:$0xff] %v336_v52  ;;  %339 = vst [vmem:[%s1530_s8 + $0x1a8] sm:$0xff] %v338_v53  ;;  %v340_v54 = vld [vmem:[%s1525_s7 + $0x360] sm:$0xff]  ;;  %v342_v55 = vld [vmem:[%s1525_s7 + $0x368] sm:$0xff] }
  0x2b   : > { %v344_v56 = vld [vmem:[%s1525_s7 + $0x380] sm:$0xff]  ;;  %341 = vst [vmem:[%s1530_s8 + $0x1b0] sm:$0xff] %v340_v54  ;;  %343 = vst [vmem:[%s1530_s8 + $0x1b8] sm:$0xff] %v342_v55  ;;  %v346_v57 = vld [vmem:[%s1525_s7 + $0x388] sm:$0xff] }
  0x2c   : > { %345 = vst [vmem:[%s1530_s8 + $0x1c0] sm:$0xff] %v344_v56  ;;  %v348_v58 = vld [vmem:[%s1525_s7 + $0x3a0] sm:$0xff]  ;;  %v350_v59 = vld [vmem:[%s1525_s7 + $0x3a8] sm:$0xff]  ;;  %347 = vst [vmem:[%s1530_s8 + $0x1c8] sm:$0xff] %v346_v57 }
  0x2d   : > { %349 = vst [vmem:[%s1530_s8 + $0x1d0] sm:$0xff] %v348_v58  ;;  %351 = vst [vmem:[%s1530_s8 + $0x1d8] sm:$0xff] %v350_v59  ;;  %v352_v60 = vld [vmem:[%s1525_s7 + $0x3c0] sm:$0xff]  ;;  %v354_v61 = vld [vmem:[%s1525_s7 + $0x3c8] sm:$0xff] }
  0x2e   : > { %v356_v62 = vld [vmem:[%s1525_s7 + $0x3e0] sm:$0xff]  ;;  %353 = vst [vmem:[%s1530_s8 + $0x1e0] sm:$0xff] %v352_v60  ;;  %355 = vst [vmem:[%s1530_s8 + $0x1e8] sm:$0xff] %v354_v61  ;;  %v358_v63 = vld [vmem:[%s1525_s7 + $0x3e8] sm:$0xff] }
  0x2f   : > { %357 = vst [vmem:[%s1530_s8 + $0x1f0] sm:$0xff] %v356_v62  ;;  %359 = vst [vmem:[%s1530_s8 + $0x1f8] sm:$0xff] %v358_v63 }
  0x30 PF: > { %p1193_p6 = scmp.ge.s32.totalorder %s1450_s22, 1  ;;  %p393_p7 = scmp.lt.s32.totalorder %s1450_s22, 3 }
  0x32   : > { %p394_p8 = pnand %p1193_p6, %p393_p7 }
  0x33   : > { %s400_s9 = sand.u32 (!%p394_p8), 1, %s1434_s18   ;;  %s1195_s14 = sshll.u32 (!%p394_p8), %s1442_s20, 2 }
  0x34   : > { %397 = sbr.rel (%p394_p8) target bundleno = 330 (0x14a), region = 59  ;;  %s1194_s12 = sshll.u32 (!%p394_p8), %s400_s9, 9 }
  0x35   : > { %s1667_s13 = scalar_lea.vmem (!%p394_p8), [#allocation2], %s1194_s12  ;;  %p460_p9 = scmp.lt.s32.totalorder (!%p394_p8), %s1195_s14, 7 }
  0x39   : > { %v1663_v0 = vld [vmem:[%s1772_s0] sm:$0xff]  ;;  %v1316_v3 = vld [vmem:[%s1667_s13 + $0xec] ss:$16 sps:$4 sm:$0xff]   ;;  %v1319_v5 = vld [vmem:[%s1667_s13 + $0xe8] ss:$16 sps:$4 sm:$0xff]   ;;  %s1785_s14 = smov (!%p460_p9, %s1195_s14), 7 }
  0x3a   : > { %v1202_v1 = vcombine.high %v1663_v0, %v1663_v0  ;;  %v1314_v2 = vld [vmem:[%s1667_s13 + $0xe4] ss:$16 sps:$4 sm:$0xff]   ;;  %v1318_v4 = vld [vmem:[%s1667_s13 + $0xe0] ss:$16 sps:$4 sm:$0xff]   ;;  %922 = vmatprep.subr.bf16.mxu1 %v1316_v3  ;;  %v1322_v7 = vld [vmem:[%s1667_s13 + $0xcc] ss:$16 sps:$4 sm:$0xff]   ;;  %v1201_v3 = vcombine.low %v1663_v0, %v1663_v0  ;;  %s462_s17 = scalar_lea.vmem %s1774_s2, %s1785_s14  ;;  %s467_s27 = scalar_lea.vmem %s1775_s3, %s1785_s14 }
  0x3b   : > { %881 = vmatprep.subr.bf16.mxu0 %v1314_v2  ;;  %v1320_v6 = vld [vmem:[%s1667_s13 + $0xc4] ss:$16 sps:$4 sm:$0xff]   ;;  %923 = vmatpush1.bf16.msra.mxu1 %v1319_v5  ;;  %v1324_v8 = vld [vmem:[%s1667_s13 + $0xc0] ss:$16 sps:$4 sm:$0xff]   ;;  %v1325_v9 = vld [vmem:[%s1667_s13 + $0xc8] ss:$16 sps:$4 sm:$0xff]  }
  0x3c   : > { %913 = vmatprep.mubr.bf16.mxu0 %v1202_v1  ;;  %954 = vmatprep.mubr.bf16.mxu1 %v1202_v1  ;;  %v1326_v10 = vld [vmem:[%s1667_s13 + $0xa4] ss:$16 sps:$4 sm:$0xff]   ;;  %v1328_v11 = vld [vmem:[%s1667_s13 + $0xac] ss:$16 sps:$4 sm:$0xff]   ;;  %v1330_v12 = vld [vmem:[%s1667_s13 + $0xa0] ss:$16 sps:$4 sm:$0xff]  }
  0x3d   : > { %882 = vmatpush1.bf16.msra.mxu0 %v1318_v4  ;;  %924 = vmatprep.subr.bf16.mxu1 %v1322_v7  ;;  %v1331_v13 = vld [vmem:[%s1667_s13 + $0xa8] ss:$16 sps:$4 sm:$0xff]   ;;  %v1332_v14 = vld [vmem:[%s1667_s13 + $0x84] ss:$16 sps:$4 sm:$0xff]   ;;  %v1334_v15 = vld [vmem:[%s1667_s13 + $0x8c] ss:$16 sps:$4 sm:$0xff]   ;;  %v965_v4 = vlaneseq }
  0x3e   : > { %883 = vmatprep.subr.bf16.mxu0 %v1320_v6  ;;  %v1336_v16 = vld [vmem:[%s1667_s13 + $0x80] ss:$16 sps:$4 sm:$0xff]   ;;  %v1337_v17 = vld [vmem:[%s1667_s13 + $0x88] ss:$16 sps:$4 sm:$0xff]   ;;  %v1338_v18 = vld [vmem:[%s1667_s13 + $0x64] ss:$16 sps:$4 sm:$0xff]  }
  0x3f   : > { %925 = vmatpush1.bf16.msra.mxu1 %v1325_v9  ;;  %v1340_v19 = vld [vmem:[%s1667_s13 + $0x6c] ss:$16 sps:$4 sm:$0xff]   ;;  %v1342_v20 = vld [vmem:[%s1667_s13 + $0x60] ss:$16 sps:$4 sm:$0xff]   ;;  %v1343_v21 = vld [vmem:[%s1667_s13 + $0x68] ss:$16 sps:$4 sm:$0xff]  }
  0x40   : > { %926 = vmatprep.subr.bf16.mxu1 %v1328_v11  ;;  %v1344_v22 = vld [vmem:[%s1667_s13 + $0x44] ss:$16 sps:$4 sm:$0xff]   ;;  %v1346_v23 = vld [vmem:[%s1667_s13 + $0x4c] ss:$16 sps:$4 sm:$0xff]   ;;  %v1348_v24 = vld [vmem:[%s1667_s13 + $0x40] ss:$16 sps:$4 sm:$0xff]  }
  0x41   : > { %884 = vmatpush1.bf16.msra.mxu0 %v1324_v8  ;;  %v1349_v25 = vld [vmem:[%s1667_s13 + $0x48] ss:$16 sps:$4 sm:$0xff]   ;;  %v1350_v26 = vld [vmem:[%s1667_s13 + $0x24] ss:$16 sps:$4 sm:$0xff]   ;;  %v1352_v27 = vld [vmem:[%s1667_s13 + $0x2c] ss:$16 sps:$4 sm:$0xff]  }
  0x42   : > { %885 = vmatprep.subr.bf16.mxu0 %v1326_v10  ;;  %v1354_v28 = vld [vmem:[%s1667_s13 + $0x20] ss:$16 sps:$4 sm:$0xff]   ;;  %v1355_v29 = vld [vmem:[%s1667_s13 + $0x28] ss:$16 sps:$4 sm:$0xff]   ;;  %v1356_v30 = vld [vmem:[%s1667_s13 + $0x4] ss:$16 sps:$4 sm:$0xff]  }
  0x43   : > { %927 = vmatpush1.bf16.msra.mxu1 %v1331_v13  ;;  %v1358_v31 = vld [vmem:[%s1667_s13 + $0xc] ss:$16 sps:$4 sm:$0xff]   ;;  %v1360_v32 = vld [vmem:[%s1667_s13] ss:$16 sps:$4 sm:$0xff]   ;;  %v1361_v33 = vld [vmem:[%s1667_s13 + $0x8] ss:$16 sps:$4 sm:$0xff]  }
  0x44   : > { %928 = vmatprep.subr.bf16.mxu1 %v1334_v15  ;;  %v1362_v34 = vld [vmem:[%s1667_s13 + $0x1e4] ss:$16 sps:$4 sm:$0xff]   ;;  %v1364_v35 = vld [vmem:[%s1667_s13 + $0x1ec] ss:$16 sps:$4 sm:$0xff]   ;;  %v1366_v36 = vld [vmem:[%s1667_s13 + $0x1e0] ss:$16 sps:$4 sm:$0xff]  }
  0x45   : > { %886 = vmatpush1.bf16.msra.mxu0 %v1330_v12  ;;  %v1367_v37 = vld [vmem:[%s1667_s13 + $0x1e8] ss:$16 sps:$4 sm:$0xff]   ;;  %v1368_v38 = vld [vmem:[%s1667_s13 + $0x1c4] ss:$16 sps:$4 sm:$0xff]   ;;  %v1370_v39 = vld [vmem:[%s1667_s13 + $0x1cc] ss:$16 sps:$4 sm:$0xff]  }
  0x46   : > { %887 = vmatprep.subr.bf16.mxu0 %v1332_v14  ;;  %v1372_v40 = vld [vmem:[%s1667_s13 + $0x1c0] ss:$16 sps:$4 sm:$0xff]   ;;  %v1373_v41 = vld [vmem:[%s1667_s13 + $0x1c8] ss:$16 sps:$4 sm:$0xff]   ;;  %v1374_v42 = vld [vmem:[%s1667_s13 + $0x1a4] ss:$16 sps:$4 sm:$0xff]  }
  0x47   : > { %929 = vmatpush1.bf16.msra.mxu1 %v1337_v17  ;;  %v1376_v43 = vld [vmem:[%s1667_s13 + $0x1ac] ss:$16 sps:$4 sm:$0xff]   ;;  %v1378_v44 = vld [vmem:[%s1667_s13 + $0x1a0] ss:$16 sps:$4 sm:$0xff]   ;;  %v1379_v45 = vld [vmem:[%s1667_s13 + $0x1a8] ss:$16 sps:$4 sm:$0xff]  }
  0x48   : > { %930 = vmatprep.subr.bf16.mxu1 %v1340_v19  ;;  %v1380_v46 = vld [vmem:[%s1667_s13 + $0x184] ss:$16 sps:$4 sm:$0xff]   ;;  %v1382_v47 = vld [vmem:[%s1667_s13 + $0x18c] ss:$16 sps:$4 sm:$0xff]   ;;  %v1384_v48 = vld [vmem:[%s1667_s13 + $0x180] ss:$16 sps:$4 sm:$0xff]  }
  0x49   : > { %888 = vmatpush1.bf16.msra.mxu0 %v1336_v16  ;;  %v1385_v49 = vld [vmem:[%s1667_s13 + $0x188] ss:$16 sps:$4 sm:$0xff]   ;;  %v1386_v50 = vld [vmem:[%s1667_s13 + $0x164] ss:$16 sps:$4 sm:$0xff]   ;;  %v1388_v51 = vld [vmem:[%s1667_s13 + $0x16c] ss:$16 sps:$4 sm:$0xff]  }
  0x4a   : > { %889 = vmatprep.subr.bf16.mxu0 %v1338_v18  ;;  %v1390_v52 = vld [vmem:[%s1667_s13 + $0x160] ss:$16 sps:$4 sm:$0xff]   ;;  %v1391_v53 = vld [vmem:[%s1667_s13 + $0x168] ss:$16 sps:$4 sm:$0xff]   ;;  %v1392_v54 = vld [vmem:[%s1667_s13 + $0x144] ss:$16 sps:$4 sm:$0xff]  }
  0x4b   : > { %931 = vmatpush1.bf16.msra.mxu1 %v1343_v21  ;;  %v1394_v55 = vld [vmem:[%s1667_s13 + $0x14c] ss:$16 sps:$4 sm:$0xff]   ;;  %v1396_v56 = vld [vmem:[%s1667_s13 + $0x140] ss:$16 sps:$4 sm:$0xff]   ;;  %v1397_v57 = vld [vmem:[%s1667_s13 + $0x148] ss:$16 sps:$4 sm:$0xff]  }
  0x4c   : > { %932 = vmatprep.subr.bf16.mxu1 %v1346_v23  ;;  %v1398_v58 = vld [vmem:[%s1667_s13 + $0x124] ss:$16 sps:$4 sm:$0xff]   ;;  %v1400_v59 = vld [vmem:[%s1667_s13 + $0x12c] ss:$16 sps:$4 sm:$0xff]   ;;  %v1402_v60 = vld [vmem:[%s1667_s13 + $0x120] ss:$16 sps:$4 sm:$0xff]  }
  0x4d   : > { %890 = vmatpush1.bf16.msra.mxu0 %v1342_v20  ;;  %v1403_v61 = vld [vmem:[%s1667_s13 + $0x128] ss:$16 sps:$4 sm:$0xff]   ;;  %v1404_v62 = vld [vmem:[%s1667_s13 + $0x104] ss:$16 sps:$4 sm:$0xff]   ;;  %v1406_v63 = vld [vmem:[%s1667_s13 + $0x10c] ss:$16 sps:$4 sm:$0xff]  }
  0x4e   : > { %891 = vmatprep.subr.bf16.mxu0 %v1344_v22  ;;  %v1408_v1 = vld [vmem:[%s1667_s13 + $0x100] ss:$16 sps:$4 sm:$0xff]   ;;  %v1409_v2 = vld [vmem:[%s1667_s13 + $0x108] ss:$16 sps:$4 sm:$0xff]   ;;  %v966_v5 = vshrl.u32 %v965_v4, 7  ;;  %s1198_s18 = sshll.u32 %s1785_s14, 2 }
  0x4f   : > { %933 = vmatpush1.bf16.msra.mxu1 %v1349_v25  ;;  %s477_s29 = scalar_lea.vmem %s1776_s4, %s1198_s18  ;;  %v963_v7 = vld [vmem:[%s462_s17] sm:$0xf]  ;;  %s487_s7 = scalar_lea.vmem %s1777_s5, %s1198_s18 }
  0x50   : > { %934 = vmatprep.subr.bf16.mxu1 %v1352_v27  ;;  %v967_v0 = vsub.s32 0, %v966_v5  ;;  %v975_v6 = vsub.s32 2, %v966_v5  ;;  %v971_v8 = vsub.s32 1, %v966_v5  ;;  %v979_v9 = vsub.s32 3, %v966_v5  ;;  %v989_v10 = vld [vmem:[%s467_s27] sm:$0xf] }
  0x51   : > { %892 = vmatpush1.bf16.msra.mxu0 %v1348_v24  ;;  %v1015_v12 = vld [vmem:[%s477_s29] sm:$0xff]  ;;  %v1016_v14 = vld [vmem:[%s477_s29 + $0x8] sm:$0xff] }
  0x52   : > { %893 = vmatprep.subr.bf16.mxu0 %v1350_v26  ;;  %v968_v11 = vrot.slane %v963_v7, %v967_v0  ;;  %v976_v13 = vrot.slane %v963_v7, %v975_v6  ;;  %v994_v15 = vrot.slane %v989_v10, %v967_v0  ;;  %v1002_v16 = vrot.slane %v989_v10, %v975_v6 }
  0x53   : > { %935 = vmatpush1.bf16.msra.mxu1 %v1355_v29  ;;  %v972_v17 = vrot.slane %v963_v7, %v971_v8  ;;  %v980_v18 = vrot.slane %v963_v7, %v979_v9  ;;  %v1017_v20 = vunpack.c.l.bf16 %v1015_v12  ;;  %v998_v22 = vrot.slane %v989_v10, %v971_v8 }
  0x54   : > { %936 = vmatprep.subr.bf16.mxu1 %v1358_v31  ;;  %v1019_v25 = vunpack.c.l.bf16 %v1016_v14  ;;  %v1006_v26 = vrot.slane %v989_v10, %v979_v9 }
  0x55   : > { %894 = vmatpush1.bf16.msra.mxu0 %v1354_v28  ;;  %v1018_v28 = vunpack.c.h.bf16 %v1015_v12 }
  0x56   : > { %895 = vmatprep.subr.bf16.mxu0 %v1356_v30  ;;  %v1020_v30 = vunpack.c.h.bf16 %v1016_v14 }
  0x57   : > { %937 = vmatpush1.bf16.msra.mxu1 %v1361_v33 }
  0x58   : > { %938 = vmatprep.subr.bf16.mxu1 %v1364_v35 }
  0x59   : > { %896 = vmatpush1.bf16.msra.mxu0 %v1360_v32 }
  0x5a   : > { %897 = vmatprep.subr.bf16.mxu0 %v1362_v34 }
  0x5b   : > { %939 = vmatpush2.bf16.msra.mxu1 %v1367_v37 }
  0x5c   : > { %940 = vmatprep.subr.bf16.mxu1 %v1370_v39 }
  0x5d   : > { %898 = vmatpush2.bf16.msra.mxu0 %v1366_v36 }
  0x5e   : > { %899 = vmatprep.subr.bf16.mxu0 %v1368_v38 }
  0x5f   : > { %941 = vmatpush2.bf16.msra.mxu1 %v1373_v41 }
  0x60   : > { %942 = vmatprep.subr.bf16.mxu1 %v1376_v43 }
  0x61   : > { %900 = vmatpush2.bf16.msra.mxu0 %v1372_v40 }
  0x62   : > { %901 = vmatprep.subr.bf16.mxu0 %v1374_v42 }
  0x63   : > { %943 = vmatpush2.bf16.msra.mxu1 %v1379_v45 }
  0x64   : > { %944 = vmatprep.subr.bf16.mxu1 %v1382_v47 }
  0x65   : > { %902 = vmatpush2.bf16.msra.mxu0 %v1378_v44 }
  0x66   : > { %903 = vmatprep.subr.bf16.mxu0 %v1380_v46 }
  0x67   : > { %945 = vmatpush2.bf16.msra.mxu1 %v1385_v49 }
  0x68   : > { %946 = vmatprep.subr.bf16.mxu1 %v1388_v51 }
  0x69   : > { %904 = vmatpush2.bf16.msra.mxu0 %v1384_v48 }
  0x6a   : > { %905 = vmatprep.subr.bf16.mxu0 %v1386_v50 }
  0x6b   : > { %947 = vmatpush2.bf16.msra.mxu1 %v1391_v53 }
  0x6c   : > { %948 = vmatprep.subr.bf16.mxu1 %v1394_v55 }
  0x6d   : > { %906 = vmatpush2.bf16.msra.mxu0 %v1390_v52 }
  0x6e   : > { %907 = vmatprep.subr.bf16.mxu0 %v1392_v54 }
  0x6f   : > { %949 = vmatpush2.bf16.msra.mxu1 %v1397_v57 }
  0x70   : > { %950 = vmatprep.subr.bf16.mxu1 %v1400_v59 }
  0x71   : > { %908 = vmatpush2.bf16.msra.mxu0 %v1396_v56 }
  0x72   : > { %909 = vmatprep.subr.bf16.mxu0 %v1398_v58 }
  0x73   : > { %951 = vmatpush2.bf16.msra.mxu1 %v1403_v61 }
  0x74   : > { %952 = vmatprep.subr.bf16.mxu1 %v1406_v63 }
  0x75   : > { %910 = vmatpush2.bf16.msra.mxu0 %v1402_v60 }
  0x76   : > { %911 = vmatprep.subr.bf16.mxu0 %v1404_v62 }
  0x77   : > { %953 = vmatpush2.bf16.msra.mxu1 %v1409_v2 }
  0x79   : > { %912 = vmatpush2.bf16.msra.mxu0 %v1408_v1 }
  0x7a   : > { %955 = vmatmul.mubr.bf16.vlgmr.msra.gmra.mxu1 %v1201_v3 }
  0x7c   : > { %914 = vmatmul.mubr.bf16.vlgmr.msra.gmra.mxu0 %v1201_v3 }
 0x13a   : > { %v956_v21 = vpop.f32.mrf.mxu1 }
 0x13b   : > { %v987_v24 = vmul.f32 %v976_v13, %v956_v21 }
 0x13c   : > { %v915_v19 = vpop.f32.mrf.mxu0  ;;  %v958_v29 = vpop.f32.mrf.mxu1 }
 0x13d   : > { %v985_v23 = vmul.f32 %v968_v11, %v915_v19  ;;  %v1013_v32 = vadd.f32 %v1002_v16, %v987_v24  ;;  %v988_v34 = vmul.f32 %v980_v18, %v958_v29 }
 0x13e   : > { %v917_v27 = vpop.f32.mrf.mxu0  ;;  %v960_v36 = vpop.f32.mrf.mxu1 }
 0x13f   : > { %v1011_v31 = vadd.f32 %v994_v15, %v985_v23  ;;  %v986_v33 = vmul.f32 %v972_v17, %v917_v27  ;;  %v1023_v38 = vadd.f32 %v1019_v25, %v1013_v32  ;;  %v1014_v40 = vadd.f32 %v1006_v26, %v988_v34 }
 0x140   : > { %v919_v35 = vpop.f32.mrf.mxu0  ;;  %v961_v42 = vpop.f32.mrf.mxu1 }
 0x141   : > { %v1021_v37 = vadd.f32 %v1017_v20, %v1011_v31  ;;  %v1012_v39 = vadd.f32 %v998_v22, %v986_v33  ;;  %v1027_v43 = vmax.f32 %v1023_v38, 0.0  ;;  %v1024_v45 = vadd.f32 %v1020_v30, %v1014_v40 }
 0x142   : > { %v920_v41 = vpop.f32.mrf.mxu0 }
 0x143   : > { %v1022_v44 = vadd.f32 %v1018_v28, %v1012_v39  ;;  %v1025_v46 = vmax.f32 %v1021_v37, 0.0  ;;  %v1028_v48 = vmax.f32 %v1024_v45, 0.0 }
 0x145   : > { %v1026_v47 = vmax.f32 %v1022_v44, 0.0  ;;  %v1273_v50 = vpack.c.bf16 %v1028_v48, %v1027_v43 }
 0x147   : > { %v1272_v49 = vpack.c.bf16 %v1026_v47, %v1025_v46  ;;  %1046 = vst [vmem:[%s487_s7 + $0x8] sm:$0xff] %v1273_v50 }
 0x149   : > { %1045 = vst [vmem:[%s487_s7] sm:$0xff] %v1272_v49 }
 0x14a PF: > { %s15_s22 = sadd.s32 1, %s1450_s22   ;;  %s1778_s18 = smov %s1438_s19 }
 0x14b   : > { %p12_p10 = scmp.ge.s32.totalorder %s15_s22, 4   ;;  %s1779_s19 = smov %s1517_s26 }
 0x14c   : > { %s1780_s20 = smov %s1446_s21  ;;  %s1781_s21 = smov %s1783_s23 }
 0x14d   :  { %14 = sbr.rel (!%p12_p10) target bundleno = 3 (0x3), region = 110 }

// kernel: resnet101_forward.122
= control target key start
LH: loop header
LB: loop body
LE: loop exit
PB: predicated region body
PF: predicated region fallthrough
CT: control target
= control target key end

     0   :  { %s1804_s1 = inlined_call_operand.vmem [shape: bf16[1,1024,256], index: 1, kind: input, shape index: {}]   ;;  %s1805_s0 = inlined_call_operand.vmem [shape: bf16[8,1024], index: 0, kind: input, shape index: {}]   ;;  %s1806_s2 = inlined_call_operand.vmem [shape: f32[1,256], index: 2, kind: input, shape index: {}]   ;;  %s1807_s3 = inlined_call_operand.vmem [shape: f32[1,256], index: 3, kind: input, shape index: {}]   ;;  %s1808_s4 = inlined_call_operand.vmem [shape: bf16[8,256], index: 4, kind: output, shape index: {}]  }
   0x1   :  { %v1162_v0 = vld [vmem:[%s1804_s1 + $0x74] ss:$8 sps:$4 sm:$0xff]   ;;  %v1166_v2 = vld [vmem:[%s1804_s1 + $0x70] ss:$8 sps:$4 sm:$0xff]   ;;  %v1168_v4 = vld [vmem:[%s1804_s1 + $0x64] ss:$8 sps:$4 sm:$0xff]  }
   0x2   :  { %v1164_v1 = vld [vmem:[%s1804_s1 + $0x174] ss:$8 sps:$4 sm:$0xff]   ;;  %817 = vmatprep.subr.bf16.mxu0 %v1162_v0  ;;  %v1167_v3 = vld [vmem:[%s1804_s1 + $0x170] ss:$8 sps:$4 sm:$0xff]   ;;  %v1170_v5 = vld [vmem:[%s1804_s1 + $0x164] ss:$8 sps:$4 sm:$0xff]  }
   0x3   :  { %858 = vmatprep.subr.bf16.mxu1 %v1164_v1  ;;  %818 = vmatpush1.bf16.msra.mxu0 %v1166_v2  ;;  %v1172_v6 = vld [vmem:[%s1804_s1 + $0x60] ss:$8 sps:$4 sm:$0xff]   ;;  %v1174_v8 = vld [vmem:[%s1804_s1 + $0x54] ss:$8 sps:$4 sm:$0xff]   ;;  %v1178_v10 = vld [vmem:[%s1804_s1 + $0x50] ss:$8 sps:$4 sm:$0xff]  }
   0x4   :  { %859 = vmatpush1.bf16.msra.mxu1 %v1167_v3  ;;  %819 = vmatprep.subr.bf16.mxu0 %v1168_v4  ;;  %v1173_v7 = vld [vmem:[%s1804_s1 + $0x160] ss:$8 sps:$4 sm:$0xff]   ;;  %v1176_v9 = vld [vmem:[%s1804_s1 + $0x154] ss:$8 sps:$4 sm:$0xff]   ;;  %v1179_v11 = vld [vmem:[%s1804_s1 + $0x150] ss:$8 sps:$4 sm:$0xff]  }
   0x5   :  { %860 = vmatprep.subr.bf16.mxu1 %v1170_v5  ;;  %v1180_v12 = vld [vmem:[%s1804_s1 + $0x44] ss:$8 sps:$4 sm:$0xff]   ;;  %v1184_v14 = vld [vmem:[%s1804_s1 + $0x40] ss:$8 sps:$4 sm:$0xff]   ;;  %v1186_v16 = vld [vmem:[%s1804_s1 + $0x34] ss:$8 sps:$4 sm:$0xff]  }
   0x6   :  { %v1182_v13 = vld [vmem:[%s1804_s1 + $0x144] ss:$8 sps:$4 sm:$0xff]   ;;  %v1185_v15 = vld [vmem:[%s1804_s1 + $0x140] ss:$8 sps:$4 sm:$0xff]   ;;  %v1188_v17 = vld [vmem:[%s1804_s1 + $0x134] ss:$8 sps:$4 sm:$0xff]  }
   0x7   :  { %820 = vmatpush1.bf16.msra.mxu0 %v1172_v6  ;;  %v1190_v18 = vld [vmem:[%s1804_s1 + $0x30] ss:$8 sps:$4 sm:$0xff]   ;;  %v1192_v20 = vld [vmem:[%s1804_s1 + $0x24] ss:$8 sps:$4 sm:$0xff]   ;;  %v1196_v22 = vld [vmem:[%s1804_s1 + $0x20] ss:$8 sps:$4 sm:$0xff]  }
   0x8   :  { %861 = vmatpush1.bf16.msra.mxu1 %v1173_v7  ;;  %821 = vmatprep.subr.bf16.mxu0 %v1174_v8  ;;  %v1191_v19 = vld [vmem:[%s1804_s1 + $0x130] ss:$8 sps:$4 sm:$0xff]   ;;  %v1194_v21 = vld [vmem:[%s1804_s1 + $0x124] ss:$8 sps:$4 sm:$0xff]   ;;  %v1197_v23 = vld [vmem:[%s1804_s1 + $0x120] ss:$8 sps:$4 sm:$0xff]  }
   0x9   :  { %862 = vmatprep.subr.bf16.mxu1 %v1176_v9  ;;  %v1198_v24 = vld [vmem:[%s1804_s1 + $0x14] ss:$8 sps:$4 sm:$0xff]   ;;  %v1202_v26 = vld [vmem:[%s1804_s1 + $0x10] ss:$8 sps:$4 sm:$0xff]   ;;  %v1204_v28 = vld [vmem:[%s1804_s1 + $0x4] ss:$8 sps:$4 sm:$0xff]  }
   0xa   :  { %v1200_v25 = vld [vmem:[%s1804_s1 + $0x114] ss:$8 sps:$4 sm:$0xff]   ;;  %v1203_v27 = vld [vmem:[%s1804_s1 + $0x110] ss:$8 sps:$4 sm:$0xff]   ;;  %v1206_v29 = vld [vmem:[%s1804_s1 + $0x104] ss:$8 sps:$4 sm:$0xff]  }
   0xb   :  { %822 = vmatpush1.bf16.msra.mxu0 %v1178_v10  ;;  %v1208_v30 = vld [vmem:[%s1804_s1] ss:$8 sps:$4 sm:$0xff]   ;;  %v1210_v32 = vld [vmem:[%s1804_s1 + $0xf4] ss:$8 sps:$4 sm:$0xff]   ;;  %v1214_v34 = vld [vmem:[%s1804_s1 + $0xf0] ss:$8 sps:$4 sm:$0xff]  }
   0xc   :  { %863 = vmatpush1.bf16.msra.mxu1 %v1179_v11  ;;  %823 = vmatprep.subr.bf16.mxu0 %v1180_v12  ;;  %v1209_v31 = vld [vmem:[%s1804_s1 + $0x100] ss:$8 sps:$4 sm:$0xff]   ;;  %v1212_v33 = vld [vmem:[%s1804_s1 + $0x1f4] ss:$8 sps:$4 sm:$0xff]   ;;  %v1215_v35 = vld [vmem:[%s1804_s1 + $0x1f0] ss:$8 sps:$4 sm:$0xff]  }
   0xd   :  { %864 = vmatprep.subr.bf16.mxu1 %v1182_v13  ;;  %v1216_v36 = vld [vmem:[%s1804_s1 + $0xe4] ss:$8 sps:$4 sm:$0xff]   ;;  %v1220_v38 = vld [vmem:[%s1804_s1 + $0xe0] ss:$8 sps:$4 sm:$0xff]   ;;  %v1222_v40 = vld [vmem:[%s1804_s1 + $0xd4] ss:$8 sps:$4 sm:$0xff]  }
   0xe   :  { %v1218_v37 = vld [vmem:[%s1804_s1 + $0x1e4] ss:$8 sps:$4 sm:$0xff]   ;;  %v1221_v39 = vld [vmem:[%s1804_s1 + $0x1e0] ss:$8 sps:$4 sm:$0xff]   ;;  %v1224_v41 = vld [vmem:[%s1804_s1 + $0x1d4] ss:$8 sps:$4 sm:$0xff]  }
   0xf   :  { %824 = vmatpush1.bf16.msra.mxu0 %v1184_v14  ;;  %v1226_v42 = vld [vmem:[%s1804_s1 + $0xd0] ss:$8 sps:$4 sm:$0xff]   ;;  %v1228_v44 = vld [vmem:[%s1804_s1 + $0xc4] ss:$8 sps:$4 sm:$0xff]   ;;  %v1232_v49 = vld [vmem:[%s1804_s1 + $0xc0] ss:$8 sps:$4 sm:$0xff]  }
  0x10   :  { %865 = vmatpush1.bf16.msra.mxu1 %v1185_v15  ;;  %825 = vmatprep.subr.bf16.mxu0 %v1186_v16  ;;  %v1227_v43 = vld [vmem:[%s1804_s1 + $0x1d0] ss:$8 sps:$4 sm:$0xff]   ;;  %v1230_v45 = vld [vmem:[%s1804_s1 + $0x1c4] ss:$8 sps:$4 sm:$0xff]   ;;  %v1233_v50 = vld [vmem:[%s1804_s1 + $0x1c0] ss:$8 sps:$4 sm:$0xff]  }
  0x11   :  { %866 = vmatprep.subr.bf16.mxu1 %v1188_v17  ;;  %v17_v46 = vld [vmem:[%s1805_s0] sm:$0xff]  ;;  %v18_v48 = vld [vmem:[%s1805_s0 + $0x8] sm:$0xff]  ;;  %v1234_v52 = vld [vmem:[%s1804_s1 + $0xb4] ss:$8 sps:$4 sm:$0xff]  }
  0x12   :  { %v1025_v47 = vcombine.high %v17_v46, %v17_v46  ;;  %v1027_v51 = vcombine.high %v18_v48, %v18_v48  ;;  %v1236_v53 = vld [vmem:[%s1804_s1 + $0x1b4] ss:$8 sps:$4 sm:$0xff]   ;;  %v1238_v54 = vld [vmem:[%s1804_s1 + $0xb0] ss:$8 sps:$4 sm:$0xff]   ;;  %v1240_v56 = vld [vmem:[%s1804_s1 + $0xa4] ss:$8 sps:$4 sm:$0xff]   ;;  %v1024_v6 = vcombine.low %v17_v46, %v17_v46  ;;  %v1026_v7 = vcombine.low %v18_v48, %v18_v48 }
  0x13   :  { %826 = vmatpush1.bf16.msra.mxu0 %v1190_v18  ;;  %v1239_v55 = vld [vmem:[%s1804_s1 + $0x1b0] ss:$8 sps:$4 sm:$0xff]   ;;  %v1242_v57 = vld [vmem:[%s1804_s1 + $0x1a4] ss:$8 sps:$4 sm:$0xff]   ;;  %v1244_v58 = vld [vmem:[%s1804_s1 + $0xa0] ss:$8 sps:$4 sm:$0xff]  }
  0x14   :  { %867 = vmatpush1.bf16.msra.mxu1 %v1191_v19  ;;  %827 = vmatprep.subr.bf16.mxu0 %v1192_v20  ;;  %v1245_v59 = vld [vmem:[%s1804_s1 + $0x1a0] ss:$8 sps:$4 sm:$0xff]   ;;  %v1246_v60 = vld [vmem:[%s1804_s1 + $0x94] ss:$8 sps:$4 sm:$0xff]   ;;  %v1250_v62 = vld [vmem:[%s1804_s1 + $0x90] ss:$8 sps:$4 sm:$0xff]  }
  0x15   :  { %868 = vmatprep.subr.bf16.mxu1 %v1194_v21  ;;  %849 = vmatprep.mubr.bf16.mxu0 %v1025_v47  ;;  %v1248_v61 = vld [vmem:[%s1804_s1 + $0x194] ss:$8 sps:$4 sm:$0xff]   ;;  %v1251_v63 = vld [vmem:[%s1804_s1 + $0x190] ss:$8 sps:$4 sm:$0xff]   ;;  %v1252_v0 = vld [vmem:[%s1804_s1 + $0x84] ss:$8 sps:$4 sm:$0xff]  }
  0x16   :  { %890 = vmatprep.mubr.bf16.mxu1 %v1027_v51  ;;  %v1254_v1 = vld [vmem:[%s1804_s1 + $0x184] ss:$8 sps:$4 sm:$0xff]   ;;  %v1256_v2 = vld [vmem:[%s1804_s1 + $0x80] ss:$8 sps:$4 sm:$0xff]   ;;  %v1264_v4 = vld [vmem:[%s1804_s1 + $0x274] ss:$8 sps:$4 sm:$0xff]  }
  0x17   :  { %828 = vmatpush1.bf16.msra.mxu0 %v1196_v22  ;;  %v1257_v3 = vld [vmem:[%s1804_s1 + $0x180] ss:$8 sps:$4 sm:$0xff]   ;;  %v1267_v5 = vld [vmem:[%s1804_s1 + $0x374] ss:$8 sps:$4 sm:$0xff]   ;;  %v1262_v8 = vld [vmem:[%s1804_s1 + $0x270] ss:$8 sps:$4 sm:$0xff]  }
  0x18   :  { %869 = vmatpush1.bf16.msra.mxu1 %v1197_v23  ;;  %829 = vmatprep.subr.bf16.mxu0 %v1198_v24  ;;  %v1265_v9 = vld [vmem:[%s1804_s1 + $0x370] ss:$8 sps:$4 sm:$0xff]   ;;  %v1270_v10 = vld [vmem:[%s1804_s1 + $0x264] ss:$8 sps:$4 sm:$0xff]   ;;  %v1268_v12 = vld [vmem:[%s1804_s1 + $0x260] ss:$8 sps:$4 sm:$0xff]  }
  0x19   :  { %870 = vmatprep.subr.bf16.mxu1 %v1200_v25  ;;  %v1273_v11 = vld [vmem:[%s1804_s1 + $0x364] ss:$8 sps:$4 sm:$0xff]   ;;  %v1271_v13 = vld [vmem:[%s1804_s1 + $0x360] ss:$8 sps:$4 sm:$0xff]   ;;  %v1276_v14 = vld [vmem:[%s1804_s1 + $0x254] ss:$8 sps:$4 sm:$0xff]  }
  0x1a   :  { %v1279_v15 = vld [vmem:[%s1804_s1 + $0x354] ss:$8 sps:$4 sm:$0xff]   ;;  %v1274_v16 = vld [vmem:[%s1804_s1 + $0x250] ss:$8 sps:$4 sm:$0xff]   ;;  %v1282_v18 = vld [vmem:[%s1804_s1 + $0x244] ss:$8 sps:$4 sm:$0xff]  }
  0x1b   :  { %830 = vmatpush1.bf16.msra.mxu0 %v1202_v26  ;;  %v1277_v17 = vld [vmem:[%s1804_s1 + $0x350] ss:$8 sps:$4 sm:$0xff]   ;;  %v1285_v19 = vld [vmem:[%s1804_s1 + $0x344] ss:$8 sps:$4 sm:$0xff]   ;;  %v1280_v20 = vld [vmem:[%s1804_s1 + $0x240] ss:$8 sps:$4 sm:$0xff]  }
  0x1c   :  { %871 = vmatpush1.bf16.msra.mxu1 %v1203_v27  ;;  %831 = vmatprep.subr.bf16.mxu0 %v1204_v28  ;;  %v1283_v21 = vld [vmem:[%s1804_s1 + $0x340] ss:$8 sps:$4 sm:$0xff]   ;;  %v1288_v22 = vld [vmem:[%s1804_s1 + $0x234] ss:$8 sps:$4 sm:$0xff]   ;;  %v1286_v24 = vld [vmem:[%s1804_s1 + $0x230] ss:$8 sps:$4 sm:$0xff]  }
  0x1d   :  { %872 = vmatprep.subr.bf16.mxu1 %v1206_v29  ;;  %v1291_v23 = vld [vmem:[%s1804_s1 + $0x334] ss:$8 sps:$4 sm:$0xff]   ;;  %v1289_v25 = vld [vmem:[%s1804_s1 + $0x330] ss:$8 sps:$4 sm:$0xff]   ;;  %v1294_v26 = vld [vmem:[%s1804_s1 + $0x224] ss:$8 sps:$4 sm:$0xff]  }
  0x1e   :  { %v1297_v27 = vld [vmem:[%s1804_s1 + $0x324] ss:$8 sps:$4 sm:$0xff]   ;;  %v1292_v28 = vld [vmem:[%s1804_s1 + $0x220] ss:$8 sps:$4 sm:$0xff]   ;;  %v1327_v51 = vld [vmem:[%s1804_s1 + $0x3d4] ss:$8 sps:$4 sm:$0xff]  }
  0x1f   :  { %832 = vmatpush1.bf16.msra.mxu0 %v1208_v30  ;;  %v1295_v29 = vld [vmem:[%s1804_s1 + $0x320] ss:$8 sps:$4 sm:$0xff]   ;;  %v1300_v30 = vld [vmem:[%s1804_s1 + $0x214] ss:$8 sps:$4 sm:$0xff]   ;;  %v1318_v46 = vld [vmem:[%s1804_s1 + $0x2e4] ss:$8 sps:$4 sm:$0xff]  }
  0x20   :  { %873 = vmatpush1.bf16.msra.mxu1 %v1209_v31  ;;  %833 = vmatprep.subr.bf16.mxu0 %v1210_v32  ;;  %v1303_v31 = vld [vmem:[%s1804_s1 + $0x314] ss:$8 sps:$4 sm:$0xff]   ;;  %v1321_v47 = vld [vmem:[%s1804_s1 + $0x3e4] ss:$8 sps:$4 sm:$0xff]   ;;  %v1316_v48 = vld [vmem:[%s1804_s1 + $0x2e0] ss:$8 sps:$4 sm:$0xff]  }
  0x21   :  { %874 = vmatprep.subr.bf16.mxu1 %v1212_v33  ;;  %v1666_v32 = vld [vmem:[%s1805_s0 + $0x10] sm:$0xff]  ;;  %v1671_v33 = vld [vmem:[%s1805_s0 + $0x18] sm:$0xff] }
  0x23   :  { %834 = vmatpush2.bf16.msra.mxu0 %v1214_v34  ;;  %v1029_v34 = vcombine.high %v1666_v32, %v1666_v32 }
  0x24   :  { %875 = vmatpush2.bf16.msra.mxu1 %v1215_v35  ;;  %835 = vmatprep.subr.bf16.mxu0 %v1216_v36  ;;  %v1031_v35 = vcombine.high %v1671_v33, %v1671_v33  ;;  %v1298_v36 = vld [vmem:[%s1804_s1 + $0x210] ss:$8 sps:$4 sm:$0xff]  }
  0x25   :  { %876 = vmatprep.subr.bf16.mxu1 %v1218_v37  ;;  %v1301_v37 = vld [vmem:[%s1804_s1 + $0x310] ss:$8 sps:$4 sm:$0xff]  }
  0x27   :  { %836 = vmatpush2.bf16.msra.mxu0 %v1220_v38  ;;  %v1306_v38 = vld [vmem:[%s1804_s1 + $0x204] ss:$8 sps:$4 sm:$0xff]  }
  0x28   :  { %877 = vmatpush2.bf16.msra.mxu1 %v1221_v39  ;;  %837 = vmatprep.subr.bf16.mxu0 %v1222_v40  ;;  %v1309_v39 = vld [vmem:[%s1804_s1 + $0x304] ss:$8 sps:$4 sm:$0xff]   ;;  %v1304_v40 = vld [vmem:[%s1804_s1 + $0x200] ss:$8 sps:$4 sm:$0xff]  }
  0x29   :  { %878 = vmatprep.subr.bf16.mxu1 %v1224_v41  ;;  %v1307_v41 = vld [vmem:[%s1804_s1 + $0x300] ss:$8 sps:$4 sm:$0xff]  }
  0x2b   :  { %838 = vmatpush2.bf16.msra.mxu0 %v1226_v42  ;;  %v1312_v42 = vld [vmem:[%s1804_s1 + $0x2f4] ss:$8 sps:$4 sm:$0xff]  }
  0x2c   :  { %879 = vmatpush2.bf16.msra.mxu1 %v1227_v43  ;;  %839 = vmatprep.subr.bf16.mxu0 %v1228_v44  ;;  %v1315_v43 = vld [vmem:[%s1804_s1 + $0x3f4] ss:$8 sps:$4 sm:$0xff]   ;;  %v1310_v44 = vld [vmem:[%s1804_s1 + $0x2f0] ss:$8 sps:$4 sm:$0xff]  }
  0x2d   :  { %880 = vmatprep.subr.bf16.mxu1 %v1230_v45  ;;  %v1313_v45 = vld [vmem:[%s1804_s1 + $0x3f0] ss:$8 sps:$4 sm:$0xff]  }
  0x2f   :  { %840 = vmatpush2.bf16.msra.mxu0 %v1232_v49  ;;  %v1319_v49 = vld [vmem:[%s1804_s1 + $0x3e0] ss:$8 sps:$4 sm:$0xff]  }
  0x30   :  { %881 = vmatpush2.bf16.msra.mxu1 %v1233_v50  ;;  %841 = vmatprep.subr.bf16.mxu0 %v1234_v52  ;;  %v1324_v50 = vld [vmem:[%s1804_s1 + $0x2d4] ss:$8 sps:$4 sm:$0xff]   ;;  %v1322_v52 = vld [vmem:[%s1804_s1 + $0x2d0] ss:$8 sps:$4 sm:$0xff]  }
  0x31   :  { %882 = vmatprep.subr.bf16.mxu1 %v1236_v53  ;;  %v1325_v53 = vld [vmem:[%s1804_s1 + $0x3d0] ss:$8 sps:$4 sm:$0xff]  }
  0x33   :  { %842 = vmatpush2.bf16.msra.mxu0 %v1238_v54  ;;  %v1330_v54 = vld [vmem:[%s1804_s1 + $0x2c4] ss:$8 sps:$4 sm:$0xff]  }
  0x34   :  { %883 = vmatpush2.bf16.msra.mxu1 %v1239_v55  ;;  %843 = vmatprep.subr.bf16.mxu0 %v1240_v56  ;;  %v1333_v55 = vld [vmem:[%s1804_s1 + $0x3c4] ss:$8 sps:$4 sm:$0xff]   ;;  %v1328_v56 = vld [vmem:[%s1804_s1 + $0x2c0] ss:$8 sps:$4 sm:$0xff]  }
  0x35   :  { %884 = vmatprep.subr.bf16.mxu1 %v1242_v57  ;;  %v1331_v57 = vld [vmem:[%s1804_s1 + $0x3c0] ss:$8 sps:$4 sm:$0xff]  }
  0x37   :  { %844 = vmatpush2.bf16.msra.mxu0 %v1244_v58  ;;  %v1336_v58 = vld [vmem:[%s1804_s1 + $0x2b4] ss:$8 sps:$4 sm:$0xff]  }
  0x38   :  { %885 = vmatpush2.bf16.msra.mxu1 %v1245_v59  ;;  %845 = vmatprep.subr.bf16.mxu0 %v1246_v60  ;;  %v1339_v59 = vld [vmem:[%s1804_s1 + $0x3b4] ss:$8 sps:$4 sm:$0xff]   ;;  %v1334_v60 = vld [vmem:[%s1804_s1 + $0x2b0] ss:$8 sps:$4 sm:$0xff]  }
  0x39   :  { %886 = vmatprep.subr.bf16.mxu1 %v1248_v61  ;;  %v1337_v61 = vld [vmem:[%s1804_s1 + $0x3b0] ss:$8 sps:$4 sm:$0xff]  }
  0x3b   :  { %846 = vmatpush2.bf16.msra.mxu0 %v1250_v62  ;;  %v1342_v62 = vld [vmem:[%s1804_s1 + $0x2a4] ss:$8 sps:$4 sm:$0xff]  }
  0x3c   :  { %887 = vmatpush2.bf16.msra.mxu1 %v1251_v63  ;;  %847 = vmatprep.subr.bf16.mxu0 %v1252_v0  ;;  %v1345_v63 = vld [vmem:[%s1804_s1 + $0x3a4] ss:$8 sps:$4 sm:$0xff]   ;;  %v1340_v0 = vld [vmem:[%s1804_s1 + $0x2a0] ss:$8 sps:$4 sm:$0xff]  }
  0x3d   :  { %888 = vmatprep.subr.bf16.mxu1 %v1254_v1  ;;  %v1343_v1 = vld [vmem:[%s1804_s1 + $0x3a0] ss:$8 sps:$4 sm:$0xff]  }
  0x3f   :  { %848 = vmatpush2.bf16.msra.mxu0 %v1256_v2  ;;  %v1348_v2 = vld [vmem:[%s1804_s1 + $0x294] ss:$8 sps:$4 sm:$0xff]  }
  0x40   :  { %889 = vmatpush2.bf16.msra.mxu1 %v1257_v3  ;;  %899 = vmatprep.subr.bf16.mxu0 %v1264_v4  ;;  %v1351_v3 = vld [vmem:[%s1804_s1 + $0x394] ss:$8 sps:$4 sm:$0xff]   ;;  %v1346_v4 = vld [vmem:[%s1804_s1 + $0x290] ss:$8 sps:$4 sm:$0xff]  }
  0x41   :  { %940 = vmatprep.subr.bf16.mxu1 %v1267_v5  ;;  %v1349_v5 = vld [vmem:[%s1804_s1 + $0x390] ss:$8 sps:$4 sm:$0xff]  }
  0x42   :  { %850 = vmatmul.mubr.bf16.vlgmr.msra.gmra.mxu0 %v1024_v6  ;;  %v1354_v6 = vld [vmem:[%s1804_s1 + $0x284] ss:$8 sps:$4 sm:$0xff]  }
  0x43   :  { %891 = vmatmul.mubr.bf16.vlgmr.msra.gmra.mxu1 %v1026_v7  ;;  %900 = vmatpush1.bf16.msra.mxu0 %v1262_v8  ;;  %v1357_v7 = vld [vmem:[%s1804_s1 + $0x384] ss:$8 sps:$4 sm:$0xff]   ;;  %v1352_v8 = vld [vmem:[%s1804_s1 + $0x280] ss:$8 sps:$4 sm:$0xff]  }
  0x44   :  { %941 = vmatpush1.bf16.msra.mxu1 %v1265_v9  ;;  %901 = vmatprep.subr.bf16.mxu0 %v1270_v10  ;;  %v1355_v9 = vld [vmem:[%s1804_s1 + $0x380] ss:$8 sps:$4 sm:$0xff]   ;;  %v1028_v10 = vcombine.low %v1666_v32, %v1666_v32 }
  0x45   :  { %942 = vmatprep.subr.bf16.mxu1 %v1273_v11  ;;  %931 = vmatprep.mubr.bf16.mxu0 %v1029_v34  ;;  %v1030_v11 = vcombine.low %v1671_v33, %v1671_v33 }
  0x46   :  { %972 = vmatprep.mubr.bf16.mxu1 %v1031_v35 }
  0x47   :  { %902 = vmatpush1.bf16.msra.mxu0 %v1268_v12 }
  0x48   :  { %943 = vmatpush1.bf16.msra.mxu1 %v1271_v13  ;;  %903 = vmatprep.subr.bf16.mxu0 %v1276_v14 }
  0x49   :  { %944 = vmatprep.subr.bf16.mxu1 %v1279_v15 }
  0x4b   :  { %904 = vmatpush1.bf16.msra.mxu0 %v1274_v16 }
  0x4c   :  { %945 = vmatpush1.bf16.msra.mxu1 %v1277_v17  ;;  %905 = vmatprep.subr.bf16.mxu0 %v1282_v18 }
  0x4d   :  { %946 = vmatprep.subr.bf16.mxu1 %v1285_v19 }
  0x4f   :  { %906 = vmatpush1.bf16.msra.mxu0 %v1280_v20 }
  0x50   :  { %947 = vmatpush1.bf16.msra.mxu1 %v1283_v21  ;;  %907 = vmatprep.subr.bf16.mxu0 %v1288_v22  ;;  %v983_v21 = vlaneseq }
  0x51   :  { %948 = vmatprep.subr.bf16.mxu1 %v1291_v23 }
  0x52   :  { %v984_v22 = vshrl.u32 %v983_v21, 7 }
  0x53   :  { %908 = vmatpush1.bf16.msra.mxu0 %v1286_v24  ;;  %v981_v24 = vld [vmem:[%s1806_s2] sm:$0x3] }
  0x54   :  { %949 = vmatpush1.bf16.msra.mxu1 %v1289_v25  ;;  %909 = vmatprep.subr.bf16.mxu0 %v1294_v26  ;;  %v985_v23 = vsub.s32 0, %v984_v22  ;;  %v989_v25 = vsub.s32 1, %v984_v22 }
  0x55   :  { %950 = vmatprep.subr.bf16.mxu1 %v1297_v27 }
  0x57   :  { %910 = vmatpush1.bf16.msra.mxu0 %v1292_v28  ;;  %v995_v28 = vld [vmem:[%s1807_s3] sm:$0x3] }
  0x58   :  { %951 = vmatpush1.bf16.msra.mxu1 %v1295_v29  ;;  %911 = vmatprep.subr.bf16.mxu0 %v1300_v30  ;;  %v1000_v35 = vrot.slane %v995_v28, %v985_v23 }
  0x59   :  { %952 = vmatprep.subr.bf16.mxu1 %v1303_v31  ;;  %v986_v31 = vrot.slane %v981_v24, %v985_v23 }
  0x5b   :  { %912 = vmatpush1.bf16.msra.mxu0 %v1298_v36 }
  0x5c   :  { %953 = vmatpush1.bf16.msra.mxu1 %v1301_v37  ;;  %913 = vmatprep.subr.bf16.mxu0 %v1306_v38  ;;  %v990_v37 = vrot.slane %v981_v24, %v989_v25 }
  0x5d   :  { %954 = vmatprep.subr.bf16.mxu1 %v1309_v39 }
  0x5f   :  { %914 = vmatpush1.bf16.msra.mxu0 %v1304_v40 }
  0x60   :  { %955 = vmatpush1.bf16.msra.mxu1 %v1307_v41  ;;  %915 = vmatprep.subr.bf16.mxu0 %v1312_v42  ;;  %v1004_v42 = vrot.slane %v995_v28, %v989_v25 }
  0x61   :  { %956 = vmatprep.subr.bf16.mxu1 %v1315_v43 }
  0x63   :  { %916 = vmatpush2.bf16.msra.mxu0 %v1310_v44 }
  0x64   :  { %957 = vmatpush2.bf16.msra.mxu1 %v1313_v45  ;;  %917 = vmatprep.subr.bf16.mxu0 %v1318_v46 }
  0x65   :  { %958 = vmatprep.subr.bf16.mxu1 %v1321_v47 }
  0x67   :  { %918 = vmatpush2.bf16.msra.mxu0 %v1316_v48 }
  0x68   :  { %959 = vmatpush2.bf16.msra.mxu1 %v1319_v49  ;;  %919 = vmatprep.subr.bf16.mxu0 %v1324_v50 }
  0x69   :  { %960 = vmatprep.subr.bf16.mxu1 %v1327_v51 }
  0x6b   :  { %920 = vmatpush2.bf16.msra.mxu0 %v1322_v52 }
  0x6c   :  { %961 = vmatpush2.bf16.msra.mxu1 %v1325_v53  ;;  %921 = vmatprep.subr.bf16.mxu0 %v1330_v54 }
  0x6d   :  { %962 = vmatprep.subr.bf16.mxu1 %v1333_v55 }
  0x6f   :  { %922 = vmatpush2.bf16.msra.mxu0 %v1328_v56 }
  0x70   :  { %963 = vmatpush2.bf16.msra.mxu1 %v1331_v57  ;;  %923 = vmatprep.subr.bf16.mxu0 %v1336_v58 }
  0x71   :  { %964 = vmatprep.subr.bf16.mxu1 %v1339_v59 }
  0x73   :  { %924 = vmatpush2.bf16.msra.mxu0 %v1334_v60 }
  0x74   :  { %965 = vmatpush2.bf16.msra.mxu1 %v1337_v61  ;;  %925 = vmatprep.subr.bf16.mxu0 %v1342_v62 }
  0x75   :  { %966 = vmatprep.subr.bf16.mxu1 %v1345_v63 }
  0x77   :  { %926 = vmatpush2.bf16.msra.mxu0 %v1340_v0 }
  0x78   :  { %967 = vmatpush2.bf16.msra.mxu1 %v1343_v1  ;;  %927 = vmatprep.subr.bf16.mxu0 %v1348_v2 }
  0x79   :  { %968 = vmatprep.subr.bf16.mxu1 %v1351_v3 }
  0x7b   :  { %928 = vmatpush2.bf16.msra.mxu0 %v1346_v4 }
  0x7c   :  { %969 = vmatpush2.bf16.msra.mxu1 %v1349_v5  ;;  %929 = vmatprep.subr.bf16.mxu0 %v1354_v6 }
  0x7d   :  { %970 = vmatprep.subr.bf16.mxu1 %v1357_v7 }
  0x7f   :  { %930 = vmatpush2.bf16.msra.mxu0 %v1352_v8 }
  0x80   :  { %971 = vmatpush2.bf16.msra.mxu1 %v1355_v9 }
  0x82   :  { %932 = vmatmul.mubr.bf16.vlgmr.msra.gmra.mxu0 %v1028_v10 }
  0x83   :  { %973 = vmatmul.mubr.bf16.vlgmr.msra.gmra.mxu1 %v1030_v11 }
 0x102   :  { %v851_v12 = vpop.f32.mrf.mxu0 }
 0x103   :  { %v892_v13 = vpop.f32.mrf.mxu1 }
 0x104   :  { %v893_v14 = vadd.f32 %v892_v13, %v851_v12  ;;  %v853_v15 = vpop.f32.mrf.mxu0 }
 0x105   :  { %v894_v16 = vpop.f32.mrf.mxu1 }
 0x106   :  { %v855_v17 = vpop.f32.mrf.mxu0  ;;  %v895_v29 = vadd.f32 %v894_v16, %v853_v15 }
 0x107   :  { %v896_v18 = vpop.f32.mrf.mxu1 }
 0x108   :  { %v856_v19 = vpop.f32.mrf.mxu0 }
 0x109   :  { %v897_v20 = vpop.f32.mrf.mxu1 }
 0x142   :  { %v933_v26 = vpop.f32.mrf.mxu0 }
 0x143   :  { %v974_v27 = vpop.f32.mrf.mxu1  ;;  %v934_v30 = vadd.f32 %v933_v26, %v893_v14 }
 0x144   :  { %v935_v32 = vpop.f32.mrf.mxu0 }
 0x145   :  { %v976_v33 = vpop.f32.mrf.mxu1  ;;  %v975_v34 = vadd.f32 %v974_v27, %v934_v30  ;;  %v936_v36 = vadd.f32 %v935_v32, %v895_v29 }
 0x146   :  { %v937_v38 = vpop.f32.mrf.mxu0 }
 0x147   :  { %v978_v39 = vpop.f32.mrf.mxu1  ;;  %v993_v40 = vmul.f32 %v986_v31, %v975_v34  ;;  %v977_v41 = vadd.f32 %v976_v33, %v936_v36 }
 0x148   :  { %v938_v43 = vpop.f32.mrf.mxu0 }
 0x149   :  { %v979_v44 = vpop.f32.mrf.mxu1  ;;  %v1007_v45 = vadd.f32 %v1000_v35, %v993_v40  ;;  %v994_v46 = vmul.f32 %v990_v37, %v977_v41 }
 0x14b   :  { %v1008_v47 = vadd.f32 %v1004_v42, %v994_v46  ;;  %v1009_v48 = vmax.f32 %v1007_v45, 0.0 }
 0x14d   :  { %v1010_v49 = vmax.f32 %v1008_v47, 0.0 }
 0x14f   :  { %v1161_v50 = vpack.c.bf16 %v1010_v49, %v1009_v48 }
 0x151   :  { %1019 = vst [vmem:[%s1808_s4] sm:$0xff] %v1161_v50 }

// kernel: resnet101_forward.119
= control target key start
LH: loop header
LB: loop body
LE: loop exit
PB: predicated region body
PF: predicated region fallthrough
CT: control target
= control target key end

     0   :  { %s4302_s9 = inlined_call_operand.vmem [shape: bf16[9,256,256], index: 9, kind: input, shape index: {}]   ;;  %s4303_s1 = inlined_call_operand.vmem [shape: bf16[8,256], index: 1, kind: input, shape index: {}]   ;;  %s4304_s0 = inlined_call_operand.vmem [shape: bf16[8,256], index: 0, kind: input, shape index: {}]   ;;  %s4305_s2 = inlined_call_operand.vmem [shape: bf16[8,256], index: 2, kind: input, shape index: {}]   ;;  %s4306_s3 = inlined_call_operand.vmem [shape: bf16[8,256], index: 3, kind: input, shape index: {}]   ;;  %s4307_s4 = inlined_call_operand.vmem [shape: bf16[8,256], index: 4, kind: input, shape index: {}]   ;;  %s4308_s5 = inlined_call_operand.vmem [shape: bf16[8,256], index: 5, kind: input, shape index: {}]   ;;  %s4309_s6 = inlined_call_operand.vmem [shape: bf16[8,256], index: 6, kind: input, shape index: {}]   ;;  %s4310_s7 = inlined_call_operand.vmem [shape: bf16[8,256], index: 7, kind: input, shape index: {}]   ;;  %s4311_s8 = inlined_call_operand.vmem [shape: bf16[8,256], index: 8, kind: input, shape index: {}]   ;;  %s4312_s10 = inlined_call_operand.vmem [shape: f32[1,256], index: 10, kind: input, shape index: {}]   ;;  %s4313_s11 = inlined_call_operand.vmem [shape: f32[1,256], index: 11, kind: input, shape index: {}]   ;;  %s4314_s12 = inlined_call_operand.vmem [shape: bf16[8,256], index: 12, kind: output, shape index: {}]  }
   0x1   :  { %v2839_v0 = vld [vmem:[%s4302_s9 + $0x174] ss:$8 sps:$4 sm:$0xff]   ;;  %v2843_v2 = vld [vmem:[%s4302_s9 + $0x170] ss:$8 sps:$4 sm:$0xff]   ;;  %v2845_v4 = vld [vmem:[%s4302_s9 + $0x164] ss:$8 sps:$4 sm:$0xff]  }
   0x2   :  { %v2841_v1 = vld [vmem:[%s4302_s9 + $0x74] ss:$8 sps:$4 sm:$0xff]   ;;  %275 = vmatprep.subr.bf16.mxu0 %v2839_v0  ;;  %v2844_v3 = vld [vmem:[%s4302_s9 + $0x70] ss:$8 sps:$4 sm:$0xff]   ;;  %v2847_v5 = vld [vmem:[%s4302_s9 + $0x64] ss:$8 sps:$4 sm:$0xff]  }
   0x3   :  { %483 = vmatprep.subr.bf16.mxu1 %v2841_v1  ;;  %276 = vmatpush1.bf16.msra.mxu0 %v2843_v2  ;;  %v2849_v6 = vld [vmem:[%s4302_s9 + $0x160] ss:$8 sps:$4 sm:$0xff]   ;;  %v2851_v8 = vld [vmem:[%s4302_s9 + $0x154] ss:$8 sps:$4 sm:$0xff]   ;;  %v2855_v10 = vld [vmem:[%s4302_s9 + $0x150] ss:$8 sps:$4 sm:$0xff]  }
   0x4   :  { %484 = vmatpush1.bf16.msra.mxu1 %v2844_v3  ;;  %277 = vmatprep.subr.bf16.mxu0 %v2845_v4  ;;  %v2850_v7 = vld [vmem:[%s4302_s9 + $0x60] ss:$8 sps:$4 sm:$0xff]   ;;  %v2853_v9 = vld [vmem:[%s4302_s9 + $0x54] ss:$8 sps:$4 sm:$0xff]   ;;  %v2856_v11 = vld [vmem:[%s4302_s9 + $0x50] ss:$8 sps:$4 sm:$0xff]  }
   0x5   :  { %485 = vmatprep.subr.bf16.mxu1 %v2847_v5  ;;  %v2857_v12 = vld [vmem:[%s4302_s9 + $0x144] ss:$8 sps:$4 sm:$0xff]   ;;  %v2861_v14 = vld [vmem:[%s4302_s9 + $0x140] ss:$8 sps:$4 sm:$0xff]   ;;  %v2863_v16 = vld [vmem:[%s4302_s9 + $0x134] ss:$8 sps:$4 sm:$0xff]  }
   0x6   :  { %v2859_v13 = vld [vmem:[%s4302_s9 + $0x44] ss:$8 sps:$4 sm:$0xff]   ;;  %v2862_v15 = vld [vmem:[%s4302_s9 + $0x40] ss:$8 sps:$4 sm:$0xff]   ;;  %v2865_v17 = vld [vmem:[%s4302_s9 + $0x34] ss:$8 sps:$4 sm:$0xff]  }
   0x7   :  { %278 = vmatpush1.bf16.msra.mxu0 %v2849_v6  ;;  %v2867_v18 = vld [vmem:[%s4302_s9 + $0x130] ss:$8 sps:$4 sm:$0xff]   ;;  %v2869_v20 = vld [vmem:[%s4302_s9 + $0x124] ss:$8 sps:$4 sm:$0xff]   ;;  %v2873_v22 = vld [vmem:[%s4302_s9 + $0x120] ss:$8 sps:$4 sm:$0xff]  }
   0x8   :  { %486 = vmatpush1.bf16.msra.mxu1 %v2850_v7  ;;  %279 = vmatprep.subr.bf16.mxu0 %v2851_v8  ;;  %v2868_v19 = vld [vmem:[%s4302_s9 + $0x30] ss:$8 sps:$4 sm:$0xff]   ;;  %v2871_v21 = vld [vmem:[%s4302_s9 + $0x24] ss:$8 sps:$4 sm:$0xff]   ;;  %v2874_v23 = vld [vmem:[%s4302_s9 + $0x20] ss:$8 sps:$4 sm:$0xff]  }
   0x9   :  { %487 = vmatprep.subr.bf16.mxu1 %v2853_v9  ;;  %v2875_v24 = vld [vmem:[%s4302_s9 + $0x114] ss:$8 sps:$4 sm:$0xff]   ;;  %v2879_v26 = vld [vmem:[%s4302_s9 + $0x110] ss:$8 sps:$4 sm:$0xff]   ;;  %v2881_v28 = vld [vmem:[%s4302_s9 + $0x104] ss:$8 sps:$4 sm:$0xff]  }
   0xa   :  { %v2877_v25 = vld [vmem:[%s4302_s9 + $0x14] ss:$8 sps:$4 sm:$0xff]   ;;  %v2880_v27 = vld [vmem:[%s4302_s9 + $0x10] ss:$8 sps:$4 sm:$0xff]   ;;  %v2883_v29 = vld [vmem:[%s4302_s9 + $0x4] ss:$8 sps:$4 sm:$0xff]  }
   0xb   :  { %280 = vmatpush1.bf16.msra.mxu0 %v2855_v10  ;;  %v2885_v30 = vld [vmem:[%s4302_s9 + $0x100] ss:$8 sps:$4 sm:$0xff]   ;;  %v2887_v32 = vld [vmem:[%s4302_s9 + $0x1f4] ss:$8 sps:$4 sm:$0xff]   ;;  %v2891_v34 = vld [vmem:[%s4302_s9 + $0x1f0] ss:$8 sps:$4 sm:$0xff]  }
   0xc   :  { %488 = vmatpush1.bf16.msra.mxu1 %v2856_v11  ;;  %281 = vmatprep.subr.bf16.mxu0 %v2857_v12  ;;  %v2886_v31 = vld [vmem:[%s4302_s9] ss:$8 sps:$4 sm:$0xff]   ;;  %v2889_v33 = vld [vmem:[%s4302_s9 + $0xf4] ss:$8 sps:$4 sm:$0xff]   ;;  %v2892_v35 = vld [vmem:[%s4302_s9 + $0xf0] ss:$8 sps:$4 sm:$0xff]  }
   0xd   :  { %489 = vmatprep.subr.bf16.mxu1 %v2859_v13  ;;  %v2893_v36 = vld [vmem:[%s4302_s9 + $0x1e4] ss:$8 sps:$4 sm:$0xff]   ;;  %v2897_v38 = vld [vmem:[%s4302_s9 + $0x1e0] ss:$8 sps:$4 sm:$0xff]   ;;  %v2899_v40 = vld [vmem:[%s4302_s9 + $0x1d4] ss:$8 sps:$4 sm:$0xff]  }
   0xe   :  { %v2895_v37 = vld [vmem:[%s4302_s9 + $0xe4] ss:$8 sps:$4 sm:$0xff]   ;;  %v2898_v39 = vld [vmem:[%s4302_s9 + $0xe0] ss:$8 sps:$4 sm:$0xff]   ;;  %v2901_v41 = vld [vmem:[%s4302_s9 + $0xd4] ss:$8 sps:$4 sm:$0xff]  }
   0xf   :  { %282 = vmatpush1.bf16.msra.mxu0 %v2861_v14  ;;  %v2903_v42 = vld [vmem:[%s4302_s9 + $0x1d0] ss:$8 sps:$4 sm:$0xff]   ;;  %v2905_v44 = vld [vmem:[%s4302_s9 + $0x1c4] ss:$8 sps:$4 sm:$0xff]   ;;  %v2909_v49 = vld [vmem:[%s4302_s9 + $0x1c0] ss:$8 sps:$4 sm:$0xff]  }
  0x10   :  { %490 = vmatpush1.bf16.msra.mxu1 %v2862_v15  ;;  %283 = vmatprep.subr.bf16.mxu0 %v2863_v16  ;;  %v2904_v43 = vld [vmem:[%s4302_s9 + $0xd0] ss:$8 sps:$4 sm:$0xff]   ;;  %v2907_v45 = vld [vmem:[%s4302_s9 + $0xc4] ss:$8 sps:$4 sm:$0xff]   ;;  %v2910_v50 = vld [vmem:[%s4302_s9 + $0xc0] ss:$8 sps:$4 sm:$0xff]  }
  0x11   :  { %491 = vmatprep.subr.bf16.mxu1 %v2865_v17  ;;  %v74_v46 = vld [vmem:[%s4303_s1] sm:$0xff]  ;;  %v2911_v52 = vld [vmem:[%s4302_s9 + $0x1b4] ss:$8 sps:$4 sm:$0xff]   ;;  %v2915_v54 = vld [vmem:[%s4302_s9 + $0x1b0] ss:$8 sps:$4 sm:$0xff]  }
  0x12   :  { %v2308_v47 = vcombine.high %v74_v46, %v74_v46  ;;  %v41_v48 = vld [vmem:[%s4304_s0] sm:$0xff]  ;;  %v2913_v53 = vld [vmem:[%s4302_s9 + $0xb4] ss:$8 sps:$4 sm:$0xff]   ;;  %v2916_v55 = vld [vmem:[%s4302_s9 + $0xb0] ss:$8 sps:$4 sm:$0xff]   ;;  %v2307_v6 = vcombine.low %v74_v46, %v74_v46 }
  0x13   :  { %284 = vmatpush1.bf16.msra.mxu0 %v2867_v18  ;;  %v2342_v51 = vcombine.high %v41_v48, %v41_v48  ;;  %v2917_v56 = vld [vmem:[%s4302_s9 + $0x1a4] ss:$8 sps:$4 sm:$0xff]   ;;  %v2921_v58 = vld [vmem:[%s4302_s9 + $0x1a0] ss:$8 sps:$4 sm:$0xff]   ;;  %v2923_v60 = vld [vmem:[%s4302_s9 + $0x194] ss:$8 sps:$4 sm:$0xff]   ;;  %v2341_v7 = vcombine.low %v41_v48, %v41_v48 }
  0x14   :  { %492 = vmatpush1.bf16.msra.mxu1 %v2868_v19  ;;  %285 = vmatprep.subr.bf16.mxu0 %v2869_v20  ;;  %v2919_v57 = vld [vmem:[%s4302_s9 + $0xa4] ss:$8 sps:$4 sm:$0xff]   ;;  %v2922_v59 = vld [vmem:[%s4302_s9 + $0xa0] ss:$8 sps:$4 sm:$0xff]   ;;  %v2925_v61 = vld [vmem:[%s4302_s9 + $0x94] ss:$8 sps:$4 sm:$0xff]  }
  0x15   :  { %493 = vmatprep.subr.bf16.mxu1 %v2871_v21  ;;  %307 = vmatprep.mubr.bf16.mxu0 %v2308_v47  ;;  %v2927_v62 = vld [vmem:[%s4302_s9 + $0x190] ss:$8 sps:$4 sm:$0xff]   ;;  %v2929_v0 = vld [vmem:[%s4302_s9 + $0x184] ss:$8 sps:$4 sm:$0xff]   ;;  %v2933_v2 = vld [vmem:[%s4302_s9 + $0x180] ss:$8 sps:$4 sm:$0xff]  }
  0x16   :  { %515 = vmatprep.mubr.bf16.mxu1 %v2342_v51  ;;  %v2928_v63 = vld [vmem:[%s4302_s9 + $0x90] ss:$8 sps:$4 sm:$0xff]   ;;  %v2931_v1 = vld [vmem:[%s4302_s9 + $0x84] ss:$8 sps:$4 sm:$0xff]   ;;  %v2934_v3 = vld [vmem:[%s4302_s9 + $0x80] ss:$8 sps:$4 sm:$0xff]  }
  0x17   :  { %286 = vmatpush1.bf16.msra.mxu0 %v2873_v22  ;;  %v2941_v4 = vld [vmem:[%s4302_s9 + $0x274] ss:$8 sps:$4 sm:$0xff]   ;;  %v2939_v8 = vld [vmem:[%s4302_s9 + $0x270] ss:$8 sps:$4 sm:$0xff]   ;;  %v2947_v10 = vld [vmem:[%s4302_s9 + $0x264] ss:$8 sps:$4 sm:$0xff]  }
  0x18   :  { %494 = vmatpush1.bf16.msra.mxu1 %v2874_v23  ;;  %287 = vmatprep.subr.bf16.mxu0 %v2875_v24  ;;  %v2944_v5 = vld [vmem:[%s4302_s9 + $0x374] ss:$8 sps:$4 sm:$0xff]   ;;  %v2942_v9 = vld [vmem:[%s4302_s9 + $0x370] ss:$8 sps:$4 sm:$0xff]   ;;  %v2950_v11 = vld [vmem:[%s4302_s9 + $0x364] ss:$8 sps:$4 sm:$0xff]  }
  0x19   :  { %495 = vmatprep.subr.bf16.mxu1 %v2877_v25  ;;  %v2945_v12 = vld [vmem:[%s4302_s9 + $0x260] ss:$8 sps:$4 sm:$0xff]   ;;  %v2953_v14 = vld [vmem:[%s4302_s9 + $0x254] ss:$8 sps:$4 sm:$0xff]   ;;  %v2951_v16 = vld [vmem:[%s4302_s9 + $0x250] ss:$8 sps:$4 sm:$0xff]  }
  0x1a   :  { %v2948_v13 = vld [vmem:[%s4302_s9 + $0x360] ss:$8 sps:$4 sm:$0xff]   ;;  %v2956_v15 = vld [vmem:[%s4302_s9 + $0x354] ss:$8 sps:$4 sm:$0xff]   ;;  %v2954_v17 = vld [vmem:[%s4302_s9 + $0x350] ss:$8 sps:$4 sm:$0xff]  }
  0x1b   :  { %288 = vmatpush1.bf16.msra.mxu0 %v2879_v26  ;;  %v2959_v18 = vld [vmem:[%s4302_s9 + $0x244] ss:$8 sps:$4 sm:$0xff]   ;;  %v2957_v20 = vld [vmem:[%s4302_s9 + $0x240] ss:$8 sps:$4 sm:$0xff]   ;;  %v2965_v22 = vld [vmem:[%s4302_s9 + $0x234] ss:$8 sps:$4 sm:$0xff]  }
  0x1c   :  { %496 = vmatpush1.bf16.msra.mxu1 %v2880_v27  ;;  %289 = vmatprep.subr.bf16.mxu0 %v2881_v28  ;;  %v2962_v19 = vld [vmem:[%s4302_s9 + $0x344] ss:$8 sps:$4 sm:$0xff]   ;;  %v2960_v21 = vld [vmem:[%s4302_s9 + $0x340] ss:$8 sps:$4 sm:$0xff]   ;;  %v2968_v23 = vld [vmem:[%s4302_s9 + $0x334] ss:$8 sps:$4 sm:$0xff]  }
  0x1d   :  { %497 = vmatprep.subr.bf16.mxu1 %v2883_v29  ;;  %v2963_v24 = vld [vmem:[%s4302_s9 + $0x230] ss:$8 sps:$4 sm:$0xff]   ;;  %v2971_v26 = vld [vmem:[%s4302_s9 + $0x224] ss:$8 sps:$4 sm:$0xff]   ;;  %v2969_v28 = vld [vmem:[%s4302_s9 + $0x220] ss:$8 sps:$4 sm:$0xff]  }
  0x1e   :  { %v2966_v25 = vld [vmem:[%s4302_s9 + $0x330] ss:$8 sps:$4 sm:$0xff]   ;;  %v2974_v27 = vld [vmem:[%s4302_s9 + $0x324] ss:$8 sps:$4 sm:$0xff]   ;;  %v2972_v29 = vld [vmem:[%s4302_s9 + $0x320] ss:$8 sps:$4 sm:$0xff]  }
  0x1f   :  { %290 = vmatpush1.bf16.msra.mxu0 %v2885_v30  ;;  %v2977_v30 = vld [vmem:[%s4302_s9 + $0x214] ss:$8 sps:$4 sm:$0xff]   ;;  %v2995_v46 = vld [vmem:[%s4302_s9 + $0x2e4] ss:$8 sps:$4 sm:$0xff]   ;;  %v2993_v48 = vld [vmem:[%s4302_s9 + $0x2e0] ss:$8 sps:$4 sm:$0xff]  }
  0x20   :  { %498 = vmatpush1.bf16.msra.mxu1 %v2886_v31  ;;  %291 = vmatprep.subr.bf16.mxu0 %v2887_v32  ;;  %v2980_v31 = vld [vmem:[%s4302_s9 + $0x314] ss:$8 sps:$4 sm:$0xff]   ;;  %v3633_v32 = vld [vmem:[%s4305_s2] sm:$0xff] }
  0x21   :  { %499 = vmatprep.subr.bf16.mxu1 %v2889_v33  ;;  %v2975_v33 = vld [vmem:[%s4302_s9 + $0x210] ss:$8 sps:$4 sm:$0xff]   ;;  %v2998_v47 = vld [vmem:[%s4302_s9 + $0x3e4] ss:$8 sps:$4 sm:$0xff]   ;;  %v3004_v51 = vld [vmem:[%s4302_s9 + $0x3d4] ss:$8 sps:$4 sm:$0xff]  }
  0x23   :  { %292 = vmatpush2.bf16.msra.mxu0 %v2891_v34  ;;  %v2978_v34 = vld [vmem:[%s4302_s9 + $0x310] ss:$8 sps:$4 sm:$0xff]  }
  0x24   :  { %500 = vmatpush2.bf16.msra.mxu1 %v2892_v35  ;;  %293 = vmatprep.subr.bf16.mxu0 %v2893_v36  ;;  %v2408_v35 = vcombine.high %v3633_v32, %v3633_v32  ;;  %v3646_v36 = vld [vmem:[%s4306_s3] sm:$0xff] }
  0x25   :  { %501 = vmatprep.subr.bf16.mxu1 %v2895_v37  ;;  %v2983_v37 = vld [vmem:[%s4302_s9 + $0x204] ss:$8 sps:$4 sm:$0xff]  }
  0x27   :  { %294 = vmatpush2.bf16.msra.mxu0 %v2897_v38  ;;  %v2474_v38 = vcombine.high %v3646_v36, %v3646_v36 }
  0x28   :  { %502 = vmatpush2.bf16.msra.mxu1 %v2898_v39  ;;  %295 = vmatprep.subr.bf16.mxu0 %v2899_v40  ;;  %v2986_v39 = vld [vmem:[%s4302_s9 + $0x304] ss:$8 sps:$4 sm:$0xff]   ;;  %v2981_v40 = vld [vmem:[%s4302_s9 + $0x200] ss:$8 sps:$4 sm:$0xff]  }
  0x29   :  { %503 = vmatprep.subr.bf16.mxu1 %v2901_v41  ;;  %v2984_v41 = vld [vmem:[%s4302_s9 + $0x300] ss:$8 sps:$4 sm:$0xff]  }
  0x2b   :  { %296 = vmatpush2.bf16.msra.mxu0 %v2903_v42  ;;  %v2989_v42 = vld [vmem:[%s4302_s9 + $0x2f4] ss:$8 sps:$4 sm:$0xff]  }
  0x2c   :  { %504 = vmatpush2.bf16.msra.mxu1 %v2904_v43  ;;  %297 = vmatprep.subr.bf16.mxu0 %v2905_v44  ;;  %v2992_v43 = vld [vmem:[%s4302_s9 + $0x3f4] ss:$8 sps:$4 sm:$0xff]   ;;  %v2987_v44 = vld [vmem:[%s4302_s9 + $0x2f0] ss:$8 sps:$4 sm:$0xff]  }
  0x2d   :  { %505 = vmatprep.subr.bf16.mxu1 %v2907_v45  ;;  %v2990_v45 = vld [vmem:[%s4302_s9 + $0x3f0] ss:$8 sps:$4 sm:$0xff]  }
  0x2f   :  { %298 = vmatpush2.bf16.msra.mxu0 %v2909_v49  ;;  %v2996_v49 = vld [vmem:[%s4302_s9 + $0x3e0] ss:$8 sps:$4 sm:$0xff]  }
  0x30   :  { %506 = vmatpush2.bf16.msra.mxu1 %v2910_v50  ;;  %299 = vmatprep.subr.bf16.mxu0 %v2911_v52  ;;  %v3001_v50 = vld [vmem:[%s4302_s9 + $0x2d4] ss:$8 sps:$4 sm:$0xff]   ;;  %v2999_v52 = vld [vmem:[%s4302_s9 + $0x2d0] ss:$8 sps:$4 sm:$0xff]  }
  0x31   :  { %507 = vmatprep.subr.bf16.mxu1 %v2913_v53  ;;  %v3002_v53 = vld [vmem:[%s4302_s9 + $0x3d0] ss:$8 sps:$4 sm:$0xff]  }
  0x33   :  { %300 = vmatpush2.bf16.msra.mxu0 %v2915_v54  ;;  %v3007_v54 = vld [vmem:[%s4302_s9 + $0x2c4] ss:$8 sps:$4 sm:$0xff]  }
  0x34   :  { %508 = vmatpush2.bf16.msra.mxu1 %v2916_v55  ;;  %301 = vmatprep.subr.bf16.mxu0 %v2917_v56  ;;  %v3010_v55 = vld [vmem:[%s4302_s9 + $0x3c4] ss:$8 sps:$4 sm:$0xff]   ;;  %v3005_v56 = vld [vmem:[%s4302_s9 + $0x2c0] ss:$8 sps:$4 sm:$0xff]  }
  0x35   :  { %509 = vmatprep.subr.bf16.mxu1 %v2919_v57  ;;  %v3008_v57 = vld [vmem:[%s4302_s9 + $0x3c0] ss:$8 sps:$4 sm:$0xff]  }
  0x37   :  { %302 = vmatpush2.bf16.msra.mxu0 %v2921_v58  ;;  %v3013_v58 = vld [vmem:[%s4302_s9 + $0x2b4] ss:$8 sps:$4 sm:$0xff]  }
  0x38   :  { %510 = vmatpush2.bf16.msra.mxu1 %v2922_v59  ;;  %303 = vmatprep.subr.bf16.mxu0 %v2923_v60  ;;  %v3016_v59 = vld [vmem:[%s4302_s9 + $0x3b4] ss:$8 sps:$4 sm:$0xff]   ;;  %v3011_v60 = vld [vmem:[%s4302_s9 + $0x2b0] ss:$8 sps:$4 sm:$0xff]  }
  0x39   :  { %511 = vmatprep.subr.bf16.mxu1 %v2925_v61  ;;  %v3014_v61 = vld [vmem:[%s4302_s9 + $0x3b0] ss:$8 sps:$4 sm:$0xff]  }
  0x3b   :  { %304 = vmatpush2.bf16.msra.mxu0 %v2927_v62  ;;  %v3019_v62 = vld [vmem:[%s4302_s9 + $0x2a4] ss:$8 sps:$4 sm:$0xff]  }
  0x3c   :  { %512 = vmatpush2.bf16.msra.mxu1 %v2928_v63  ;;  %305 = vmatprep.subr.bf16.mxu0 %v2929_v0  ;;  %v3022_v63 = vld [vmem:[%s4302_s9 + $0x3a4] ss:$8 sps:$4 sm:$0xff]   ;;  %v3017_v0 = vld [vmem:[%s4302_s9 + $0x2a0] ss:$8 sps:$4 sm:$0xff]  }
  0x3d   :  { %513 = vmatprep.subr.bf16.mxu1 %v2931_v1  ;;  %v3020_v1 = vld [vmem:[%s4302_s9 + $0x3a0] ss:$8 sps:$4 sm:$0xff]  }
  0x3f   :  { %306 = vmatpush2.bf16.msra.mxu0 %v2933_v2  ;;  %v3025_v2 = vld [vmem:[%s4302_s9 + $0x294] ss:$8 sps:$4 sm:$0xff]  }
  0x40   :  { %514 = vmatpush2.bf16.msra.mxu1 %v2934_v3  ;;  %725 = vmatprep.subr.bf16.mxu0 %v2941_v4  ;;  %v3028_v3 = vld [vmem:[%s4302_s9 + $0x394] ss:$8 sps:$4 sm:$0xff]   ;;  %v3023_v4 = vld [vmem:[%s4302_s9 + $0x290] ss:$8 sps:$4 sm:$0xff]  }
  0x41   :  { %969 = vmatprep.subr.bf16.mxu1 %v2944_v5  ;;  %v3026_v5 = vld [vmem:[%s4302_s9 + $0x390] ss:$8 sps:$4 sm:$0xff]  }
  0x42   :  { %308 = vmatmul.mubr.bf16.vlgmr.msra.gmra.mxu0 %v2307_v6  ;;  %v3031_v6 = vld [vmem:[%s4302_s9 + $0x284] ss:$8 sps:$4 sm:$0xff]  }
  0x43   :  { %516 = vmatmul.mubr.bf16.vlgmr.msra.gmra.mxu1 %v2341_v7  ;;  %726 = vmatpush1.bf16.msra.mxu0 %v2939_v8  ;;  %v3034_v7 = vld [vmem:[%s4302_s9 + $0x384] ss:$8 sps:$4 sm:$0xff]   ;;  %v3029_v8 = vld [vmem:[%s4302_s9 + $0x280] ss:$8 sps:$4 sm:$0xff]  }
  0x44   :  { %970 = vmatpush1.bf16.msra.mxu1 %v2942_v9  ;;  %727 = vmatprep.subr.bf16.mxu0 %v2947_v10  ;;  %v3032_v9 = vld [vmem:[%s4302_s9 + $0x380] ss:$8 sps:$4 sm:$0xff]   ;;  %v3039_v10 = vld [vmem:[%s4302_s9 + $0x474] ss:$8 sps:$4 sm:$0xff]  }
  0x45   :  { %971 = vmatprep.subr.bf16.mxu1 %v2950_v11  ;;  %757 = vmatprep.mubr.bf16.mxu0 %v2408_v35  ;;  %v3044_v11 = vld [vmem:[%s4302_s9 + $0x574] ss:$8 sps:$4 sm:$0xff]   ;;  %v3066_v35 = vld [vmem:[%s4302_s9 + $0x530] ss:$8 sps:$4 sm:$0xff]  }
  0x46   :  { %1001 = vmatprep.mubr.bf16.mxu1 %v2474_v38  ;;  %v3069_v38 = vld [vmem:[%s4302_s9 + $0x420] ss:$8 sps:$4 sm:$0xff]  }
  0x47   :  { %728 = vmatpush1.bf16.msra.mxu0 %v2945_v12  ;;  %v2407_v12 = vcombine.low %v3633_v32, %v3633_v32  ;;  %v3065_v32 = vld [vmem:[%s4302_s9 + $0x434] ss:$8 sps:$4 sm:$0xff]  }
  0x48   :  { %972 = vmatpush1.bf16.msra.mxu1 %v2948_v13  ;;  %729 = vmatprep.subr.bf16.mxu0 %v2953_v14  ;;  %v3037_v13 = vld [vmem:[%s4302_s9 + $0x470] ss:$8 sps:$4 sm:$0xff]   ;;  %v2473_v14 = vcombine.low %v3646_v36, %v3646_v36  ;;  %v3071_v36 = vld [vmem:[%s4302_s9 + $0x424] ss:$8 sps:$4 sm:$0xff]  }
  0x49   :  { %973 = vmatprep.subr.bf16.mxu1 %v2956_v15  ;;  %v3042_v15 = vld [vmem:[%s4302_s9 + $0x570] ss:$8 sps:$4 sm:$0xff]  }
  0x4b   :  { %730 = vmatpush1.bf16.msra.mxu0 %v2951_v16  ;;  %v3047_v16 = vld [vmem:[%s4302_s9 + $0x464] ss:$8 sps:$4 sm:$0xff]  }
  0x4c   :  { %974 = vmatpush1.bf16.msra.mxu1 %v2954_v17  ;;  %731 = vmatprep.subr.bf16.mxu0 %v2959_v18  ;;  %v3050_v17 = vld [vmem:[%s4302_s9 + $0x564] ss:$8 sps:$4 sm:$0xff]  }
  0x4d   :  { %975 = vmatprep.subr.bf16.mxu1 %v2962_v19  ;;  %v3783_v18 = vld [vmem:[%s4307_s4] sm:$0xff] }
  0x4e   :  { %v2540_v19 = vcombine.high %v3783_v18, %v3783_v18 }
  0x4f   :  { %732 = vmatpush1.bf16.msra.mxu0 %v2957_v20  ;;  %v3790_v20 = vld [vmem:[%s4308_s5] sm:$0xff] }
  0x50   :  { %976 = vmatpush1.bf16.msra.mxu1 %v2960_v21  ;;  %733 = vmatprep.subr.bf16.mxu0 %v2965_v22  ;;  %v3045_v21 = vld [vmem:[%s4302_s9 + $0x460] ss:$8 sps:$4 sm:$0xff]  }
  0x51   :  { %977 = vmatprep.subr.bf16.mxu1 %v2968_v23  ;;  %v3048_v22 = vld [vmem:[%s4302_s9 + $0x560] ss:$8 sps:$4 sm:$0xff]   ;;  %v2606_v23 = vcombine.high %v3790_v20, %v3790_v20 }
  0x53   :  { %734 = vmatpush1.bf16.msra.mxu0 %v2963_v24  ;;  %v3053_v24 = vld [vmem:[%s4302_s9 + $0x454] ss:$8 sps:$4 sm:$0xff]  }
  0x54   :  { %978 = vmatpush1.bf16.msra.mxu1 %v2966_v25  ;;  %735 = vmatprep.subr.bf16.mxu0 %v2971_v26  ;;  %v3056_v25 = vld [vmem:[%s4302_s9 + $0x554] ss:$8 sps:$4 sm:$0xff]   ;;  %v3051_v26 = vld [vmem:[%s4302_s9 + $0x450] ss:$8 sps:$4 sm:$0xff]  }
  0x55   :  { %979 = vmatprep.subr.bf16.mxu1 %v2974_v27  ;;  %v3054_v27 = vld [vmem:[%s4302_s9 + $0x550] ss:$8 sps:$4 sm:$0xff]  }
  0x57   :  { %736 = vmatpush1.bf16.msra.mxu0 %v2969_v28  ;;  %v3059_v28 = vld [vmem:[%s4302_s9 + $0x444] ss:$8 sps:$4 sm:$0xff]  }
  0x58   :  { %980 = vmatpush1.bf16.msra.mxu1 %v2972_v29  ;;  %737 = vmatprep.subr.bf16.mxu0 %v2977_v30  ;;  %v3062_v29 = vld [vmem:[%s4302_s9 + $0x544] ss:$8 sps:$4 sm:$0xff]   ;;  %v3057_v30 = vld [vmem:[%s4302_s9 + $0x440] ss:$8 sps:$4 sm:$0xff]  }
  0x59   :  { %981 = vmatprep.subr.bf16.mxu1 %v2980_v31  ;;  %v3060_v31 = vld [vmem:[%s4302_s9 + $0x540] ss:$8 sps:$4 sm:$0xff]  }
  0x5b   :  { %738 = vmatpush1.bf16.msra.mxu0 %v2975_v33  ;;  %v3068_v33 = vld [vmem:[%s4302_s9 + $0x534] ss:$8 sps:$4 sm:$0xff]  }
  0x5c   :  { %982 = vmatpush1.bf16.msra.mxu1 %v2978_v34  ;;  %739 = vmatprep.subr.bf16.mxu0 %v2983_v37  ;;  %v3063_v34 = vld [vmem:[%s4302_s9 + $0x430] ss:$8 sps:$4 sm:$0xff]   ;;  %v3074_v37 = vld [vmem:[%s4302_s9 + $0x524] ss:$8 sps:$4 sm:$0xff]  }
  0x5d   :  { %983 = vmatprep.subr.bf16.mxu1 %v2986_v39  ;;  %v3072_v39 = vld [vmem:[%s4302_s9 + $0x520] ss:$8 sps:$4 sm:$0xff]  }
  0x5f   :  { %740 = vmatpush1.bf16.msra.mxu0 %v2981_v40  ;;  %v3077_v40 = vld [vmem:[%s4302_s9 + $0x414] ss:$8 sps:$4 sm:$0xff]  }
  0x60   :  { %984 = vmatpush1.bf16.msra.mxu1 %v2984_v41  ;;  %741 = vmatprep.subr.bf16.mxu0 %v2989_v42  ;;  %v3080_v41 = vld [vmem:[%s4302_s9 + $0x514] ss:$8 sps:$4 sm:$0xff]   ;;  %v3075_v42 = vld [vmem:[%s4302_s9 + $0x410] ss:$8 sps:$4 sm:$0xff]  }
  0x61   :  { %985 = vmatprep.subr.bf16.mxu1 %v2992_v43  ;;  %v3078_v43 = vld [vmem:[%s4302_s9 + $0x510] ss:$8 sps:$4 sm:$0xff]  }
  0x63   :  { %742 = vmatpush2.bf16.msra.mxu0 %v2987_v44  ;;  %v3083_v44 = vld [vmem:[%s4302_s9 + $0x404] ss:$8 sps:$4 sm:$0xff]  }
  0x64   :  { %986 = vmatpush2.bf16.msra.mxu1 %v2990_v45  ;;  %743 = vmatprep.subr.bf16.mxu0 %v2995_v46  ;;  %v3086_v45 = vld [vmem:[%s4302_s9 + $0x504] ss:$8 sps:$4 sm:$0xff]   ;;  %v3081_v46 = vld [vmem:[%s4302_s9 + $0x400] ss:$8 sps:$4 sm:$0xff]  }
  0x65   :  { %987 = vmatprep.subr.bf16.mxu1 %v2998_v47  ;;  %v3084_v47 = vld [vmem:[%s4302_s9 + $0x500] ss:$8 sps:$4 sm:$0xff]  }
  0x67   :  { %744 = vmatpush2.bf16.msra.mxu0 %v2993_v48  ;;  %v3089_v48 = vld [vmem:[%s4302_s9 + $0x4f4] ss:$8 sps:$4 sm:$0xff]  }
  0x68   :  { %988 = vmatpush2.bf16.msra.mxu1 %v2996_v49  ;;  %745 = vmatprep.subr.bf16.mxu0 %v3001_v50  ;;  %v3092_v49 = vld [vmem:[%s4302_s9 + $0x5f4] ss:$8 sps:$4 sm:$0xff]   ;;  %v3087_v50 = vld [vmem:[%s4302_s9 + $0x4f0] ss:$8 sps:$4 sm:$0xff]  }
  0x69   :  { %989 = vmatprep.subr.bf16.mxu1 %v3004_v51  ;;  %v3090_v51 = vld [vmem:[%s4302_s9 + $0x5f0] ss:$8 sps:$4 sm:$0xff]  }
  0x6b   :  { %746 = vmatpush2.bf16.msra.mxu0 %v2999_v52  ;;  %v3095_v52 = vld [vmem:[%s4302_s9 + $0x4e4] ss:$8 sps:$4 sm:$0xff]  }
  0x6c   :  { %990 = vmatpush2.bf16.msra.mxu1 %v3002_v53  ;;  %747 = vmatprep.subr.bf16.mxu0 %v3007_v54  ;;  %v3098_v53 = vld [vmem:[%s4302_s9 + $0x5e4] ss:$8 sps:$4 sm:$0xff]   ;;  %v3093_v54 = vld [vmem:[%s4302_s9 + $0x4e0] ss:$8 sps:$4 sm:$0xff]  }
  0x6d   :  { %991 = vmatprep.subr.bf16.mxu1 %v3010_v55  ;;  %v3096_v55 = vld [vmem:[%s4302_s9 + $0x5e0] ss:$8 sps:$4 sm:$0xff]  }
  0x6f   :  { %748 = vmatpush2.bf16.msra.mxu0 %v3005_v56  ;;  %v3101_v56 = vld [vmem:[%s4302_s9 + $0x4d4] ss:$8 sps:$4 sm:$0xff]  }
  0x70   :  { %992 = vmatpush2.bf16.msra.mxu1 %v3008_v57  ;;  %749 = vmatprep.subr.bf16.mxu0 %v3013_v58  ;;  %v3104_v57 = vld [vmem:[%s4302_s9 + $0x5d4] ss:$8 sps:$4 sm:$0xff]   ;;  %v3099_v58 = vld [vmem:[%s4302_s9 + $0x4d0] ss:$8 sps:$4 sm:$0xff]  }
  0x71   :  { %993 = vmatprep.subr.bf16.mxu1 %v3016_v59  ;;  %v3102_v59 = vld [vmem:[%s4302_s9 + $0x5d0] ss:$8 sps:$4 sm:$0xff]  }
  0x73   :  { %750 = vmatpush2.bf16.msra.mxu0 %v3011_v60  ;;  %v3107_v60 = vld [vmem:[%s4302_s9 + $0x4c4] ss:$8 sps:$4 sm:$0xff]  }
  0x74   :  { %994 = vmatpush2.bf16.msra.mxu1 %v3014_v61  ;;  %751 = vmatprep.subr.bf16.mxu0 %v3019_v62  ;;  %v3110_v61 = vld [vmem:[%s4302_s9 + $0x5c4] ss:$8 sps:$4 sm:$0xff]   ;;  %v3105_v62 = vld [vmem:[%s4302_s9 + $0x4c0] ss:$8 sps:$4 sm:$0xff]  }
  0x75   :  { %995 = vmatprep.subr.bf16.mxu1 %v3022_v63  ;;  %v3108_v63 = vld [vmem:[%s4302_s9 + $0x5c0] ss:$8 sps:$4 sm:$0xff]  }
  0x77   :  { %752 = vmatpush2.bf16.msra.mxu0 %v3017_v0  ;;  %v3113_v0 = vld [vmem:[%s4302_s9 + $0x4b4] ss:$8 sps:$4 sm:$0xff]  }
  0x78   :  { %996 = vmatpush2.bf16.msra.mxu1 %v3020_v1  ;;  %753 = vmatprep.subr.bf16.mxu0 %v3025_v2  ;;  %v3116_v1 = vld [vmem:[%s4302_s9 + $0x5b4] ss:$8 sps:$4 sm:$0xff]   ;;  %v3111_v2 = vld [vmem:[%s4302_s9 + $0x4b0] ss:$8 sps:$4 sm:$0xff]  }
  0x79   :  { %997 = vmatprep.subr.bf16.mxu1 %v3028_v3  ;;  %v3114_v3 = vld [vmem:[%s4302_s9 + $0x5b0] ss:$8 sps:$4 sm:$0xff]  }
  0x7b   :  { %754 = vmatpush2.bf16.msra.mxu0 %v3023_v4  ;;  %v3119_v4 = vld [vmem:[%s4302_s9 + $0x4a4] ss:$8 sps:$4 sm:$0xff]  }
  0x7c   :  { %998 = vmatpush2.bf16.msra.mxu1 %v3026_v5  ;;  %755 = vmatprep.subr.bf16.mxu0 %v3031_v6  ;;  %v3122_v5 = vld [vmem:[%s4302_s9 + $0x5a4] ss:$8 sps:$4 sm:$0xff]   ;;  %v3117_v6 = vld [vmem:[%s4302_s9 + $0x4a0] ss:$8 sps:$4 sm:$0xff]  }
  0x7d   :  { %999 = vmatprep.subr.bf16.mxu1 %v3034_v7  ;;  %v3120_v7 = vld [vmem:[%s4302_s9 + $0x5a0] ss:$8 sps:$4 sm:$0xff]  }
  0x7f   :  { %756 = vmatpush2.bf16.msra.mxu0 %v3029_v8  ;;  %v3125_v8 = vld [vmem:[%s4302_s9 + $0x494] ss:$8 sps:$4 sm:$0xff]  }
  0x80   :  { %1000 = vmatpush2.bf16.msra.mxu1 %v3032_v9  ;;  %1213 = vmatprep.subr.bf16.mxu0 %v3039_v10  ;;  %v3128_v9 = vld [vmem:[%s4302_s9 + $0x594] ss:$8 sps:$4 sm:$0xff]   ;;  %v3123_v10 = vld [vmem:[%s4302_s9 + $0x490] ss:$8 sps:$4 sm:$0xff]  }
  0x81   :  { %1457 = vmatprep.subr.bf16.mxu1 %v3044_v11  ;;  %v3126_v11 = vld [vmem:[%s4302_s9 + $0x590] ss:$8 sps:$4 sm:$0xff]  }
  0x82   :  { %758 = vmatmul.mubr.bf16.vlgmr.msra.gmra.mxu0 %v2407_v12  ;;  %v3131_v12 = vld [vmem:[%s4302_s9 + $0x484] ss:$8 sps:$4 sm:$0xff]  }
  0x83   :  { %1002 = vmatmul.mubr.bf16.vlgmr.msra.gmra.mxu1 %v2473_v14  ;;  %1214 = vmatpush1.bf16.msra.mxu0 %v3037_v13  ;;  %v3134_v13 = vld [vmem:[%s4302_s9 + $0x584] ss:$8 sps:$4 sm:$0xff]   ;;  %v3129_v14 = vld [vmem:[%s4302_s9 + $0x480] ss:$8 sps:$4 sm:$0xff]  }
  0x84   :  { %1458 = vmatpush1.bf16.msra.mxu1 %v3042_v15  ;;  %1215 = vmatprep.subr.bf16.mxu0 %v3047_v16  ;;  %v3132_v15 = vld [vmem:[%s4302_s9 + $0x580] ss:$8 sps:$4 sm:$0xff]   ;;  %v3139_v16 = vld [vmem:[%s4302_s9 + $0x674] ss:$8 sps:$4 sm:$0xff]  }
  0x85   :  { %1459 = vmatprep.subr.bf16.mxu1 %v3050_v17  ;;  %1245 = vmatprep.mubr.bf16.mxu0 %v2540_v19  ;;  %v3144_v17 = vld [vmem:[%s4302_s9 + $0x774] ss:$8 sps:$4 sm:$0xff]   ;;  %v3137_v19 = vld [vmem:[%s4302_s9 + $0x670] ss:$8 sps:$4 sm:$0xff]  }
  0x86   :  { %1489 = vmatprep.mubr.bf16.mxu1 %v2606_v23  ;;  %v2605_v23 = vcombine.low %v3790_v20, %v3790_v20 }
  0x87   :  { %1216 = vmatpush1.bf16.msra.mxu0 %v3045_v21  ;;  %v3142_v21 = vld [vmem:[%s4302_s9 + $0x770] ss:$8 sps:$4 sm:$0xff]  }
  0x88   :  { %1460 = vmatpush1.bf16.msra.mxu1 %v3048_v22  ;;  %1217 = vmatprep.subr.bf16.mxu0 %v3053_v24  ;;  %v2539_v22 = vcombine.low %v3783_v18, %v3783_v18  ;;  %v3987_v24 = vld [vmem:[%s4309_s6] sm:$0xff] }
  0x89   :  { %1461 = vmatprep.subr.bf16.mxu1 %v3056_v25  ;;  %v3992_v25 = vld [vmem:[%s4310_s7] sm:$0xff]  ;;  %v2672_v20 = vcombine.high %v3987_v24, %v3987_v24 }
  0x8a   :  { %v3150_v18 = vld [vmem:[%s4302_s9 + $0x764] ss:$8 sps:$4 sm:$0xff]  }
  0x8b   :  { %1218 = vmatpush1.bf16.msra.mxu0 %v3051_v26  ;;  %v3147_v26 = vld [vmem:[%s4302_s9 + $0x664] ss:$8 sps:$4 sm:$0xff]  }
  0x8c   :  { %1462 = vmatpush1.bf16.msra.mxu1 %v3054_v27  ;;  %1219 = vmatprep.subr.bf16.mxu0 %v3059_v28  ;;  %v2738_v27 = vcombine.high %v3992_v25, %v3992_v25  ;;  %v3145_v28 = vld [vmem:[%s4302_s9 + $0x660] ss:$8 sps:$4 sm:$0xff]  }
  0x8d   :  { %1463 = vmatprep.subr.bf16.mxu1 %v3062_v29  ;;  %v3148_v29 = vld [vmem:[%s4302_s9 + $0x760] ss:$8 sps:$4 sm:$0xff]  }
  0x8f   :  { %1220 = vmatpush1.bf16.msra.mxu0 %v3057_v30  ;;  %v3153_v30 = vld [vmem:[%s4302_s9 + $0x654] ss:$8 sps:$4 sm:$0xff]  }
  0x90   :  { %1464 = vmatpush1.bf16.msra.mxu1 %v3060_v31  ;;  %1221 = vmatprep.subr.bf16.mxu0 %v3065_v32  ;;  %v3156_v31 = vld [vmem:[%s4302_s9 + $0x754] ss:$8 sps:$4 sm:$0xff]   ;;  %v3151_v32 = vld [vmem:[%s4302_s9 + $0x650] ss:$8 sps:$4 sm:$0xff]  }
  0x91   :  { %1465 = vmatprep.subr.bf16.mxu1 %v3068_v33  ;;  %v3154_v33 = vld [vmem:[%s4302_s9 + $0x750] ss:$8 sps:$4 sm:$0xff]  }
  0x93   :  { %1222 = vmatpush1.bf16.msra.mxu0 %v3063_v34  ;;  %v3159_v34 = vld [vmem:[%s4302_s9 + $0x644] ss:$8 sps:$4 sm:$0xff]  }
  0x94   :  { %1466 = vmatpush1.bf16.msra.mxu1 %v3066_v35  ;;  %1223 = vmatprep.subr.bf16.mxu0 %v3071_v36  ;;  %v3162_v35 = vld [vmem:[%s4302_s9 + $0x744] ss:$8 sps:$4 sm:$0xff]   ;;  %v3157_v36 = vld [vmem:[%s4302_s9 + $0x640] ss:$8 sps:$4 sm:$0xff]  }
  0x95   :  { %1467 = vmatprep.subr.bf16.mxu1 %v3074_v37  ;;  %v3160_v37 = vld [vmem:[%s4302_s9 + $0x740] ss:$8 sps:$4 sm:$0xff]  }
  0x97   :  { %1224 = vmatpush1.bf16.msra.mxu0 %v3069_v38  ;;  %v3165_v38 = vld [vmem:[%s4302_s9 + $0x634] ss:$8 sps:$4 sm:$0xff]  }
  0x98   :  { %1468 = vmatpush1.bf16.msra.mxu1 %v3072_v39  ;;  %1225 = vmatprep.subr.bf16.mxu0 %v3077_v40  ;;  %v3168_v39 = vld [vmem:[%s4302_s9 + $0x734] ss:$8 sps:$4 sm:$0xff]   ;;  %v3163_v40 = vld [vmem:[%s4302_s9 + $0x630] ss:$8 sps:$4 sm:$0xff]  }
  0x99   :  { %1469 = vmatprep.subr.bf16.mxu1 %v3080_v41  ;;  %v3166_v41 = vld [vmem:[%s4302_s9 + $0x730] ss:$8 sps:$4 sm:$0xff]  }
  0x9b   :  { %1226 = vmatpush1.bf16.msra.mxu0 %v3075_v42  ;;  %v3171_v42 = vld [vmem:[%s4302_s9 + $0x624] ss:$8 sps:$4 sm:$0xff]  }
  0x9c   :  { %1470 = vmatpush1.bf16.msra.mxu1 %v3078_v43  ;;  %1227 = vmatprep.subr.bf16.mxu0 %v3083_v44  ;;  %v3174_v43 = vld [vmem:[%s4302_s9 + $0x724] ss:$8 sps:$4 sm:$0xff]   ;;  %v3169_v44 = vld [vmem:[%s4302_s9 + $0x620] ss:$8 sps:$4 sm:$0xff]  }
  0x9d   :  { %1471 = vmatprep.subr.bf16.mxu1 %v3086_v45  ;;  %v3172_v45 = vld [vmem:[%s4302_s9 + $0x720] ss:$8 sps:$4 sm:$0xff]  }
  0x9f   :  { %1228 = vmatpush1.bf16.msra.mxu0 %v3081_v46  ;;  %v3177_v46 = vld [vmem:[%s4302_s9 + $0x614] ss:$8 sps:$4 sm:$0xff]  }
  0xa0   :  { %1472 = vmatpush1.bf16.msra.mxu1 %v3084_v47  ;;  %1229 = vmatprep.subr.bf16.mxu0 %v3089_v48  ;;  %v3180_v47 = vld [vmem:[%s4302_s9 + $0x714] ss:$8 sps:$4 sm:$0xff]   ;;  %v3175_v48 = vld [vmem:[%s4302_s9 + $0x610] ss:$8 sps:$4 sm:$0xff]  }
  0xa1   :  { %1473 = vmatprep.subr.bf16.mxu1 %v3092_v49  ;;  %v3178_v49 = vld [vmem:[%s4302_s9 + $0x710] ss:$8 sps:$4 sm:$0xff]  }
  0xa3   :  { %1230 = vmatpush2.bf16.msra.mxu0 %v3087_v50  ;;  %v3183_v50 = vld [vmem:[%s4302_s9 + $0x604] ss:$8 sps:$4 sm:$0xff]  }
  0xa4   :  { %1474 = vmatpush2.bf16.msra.mxu1 %v3090_v51  ;;  %1231 = vmatprep.subr.bf16.mxu0 %v3095_v52  ;;  %v3186_v51 = vld [vmem:[%s4302_s9 + $0x704] ss:$8 sps:$4 sm:$0xff]   ;;  %v3181_v52 = vld [vmem:[%s4302_s9 + $0x600] ss:$8 sps:$4 sm:$0xff]  }
  0xa5   :  { %1475 = vmatprep.subr.bf16.mxu1 %v3098_v53  ;;  %v3184_v53 = vld [vmem:[%s4302_s9 + $0x700] ss:$8 sps:$4 sm:$0xff]  }
  0xa7   :  { %1232 = vmatpush2.bf16.msra.mxu0 %v3093_v54  ;;  %v3189_v54 = vld [vmem:[%s4302_s9 + $0x6f4] ss:$8 sps:$4 sm:$0xff]  }
  0xa8   :  { %1476 = vmatpush2.bf16.msra.mxu1 %v3096_v55  ;;  %1233 = vmatprep.subr.bf16.mxu0 %v3101_v56  ;;  %v3192_v55 = vld [vmem:[%s4302_s9 + $0x7f4] ss:$8 sps:$4 sm:$0xff]   ;;  %v3187_v56 = vld [vmem:[%s4302_s9 + $0x6f0] ss:$8 sps:$4 sm:$0xff]  }
  0xa9   :  { %1477 = vmatprep.subr.bf16.mxu1 %v3104_v57  ;;  %v3190_v57 = vld [vmem:[%s4302_s9 + $0x7f0] ss:$8 sps:$4 sm:$0xff]  }
  0xab   :  { %1234 = vmatpush2.bf16.msra.mxu0 %v3099_v58  ;;  %v3195_v58 = vld [vmem:[%s4302_s9 + $0x6e4] ss:$8 sps:$4 sm:$0xff]  }
  0xac   :  { %1478 = vmatpush2.bf16.msra.mxu1 %v3102_v59  ;;  %1235 = vmatprep.subr.bf16.mxu0 %v3107_v60  ;;  %v3198_v59 = vld [vmem:[%s4302_s9 + $0x7e4] ss:$8 sps:$4 sm:$0xff]   ;;  %v3193_v60 = vld [vmem:[%s4302_s9 + $0x6e0] ss:$8 sps:$4 sm:$0xff]  }
  0xad   :  { %1479 = vmatprep.subr.bf16.mxu1 %v3110_v61  ;;  %v3196_v61 = vld [vmem:[%s4302_s9 + $0x7e0] ss:$8 sps:$4 sm:$0xff]  }
  0xaf   :  { %1236 = vmatpush2.bf16.msra.mxu0 %v3105_v62  ;;  %v3201_v62 = vld [vmem:[%s4302_s9 + $0x6d4] ss:$8 sps:$4 sm:$0xff]  }
  0xb0   :  { %1480 = vmatpush2.bf16.msra.mxu1 %v3108_v63  ;;  %1237 = vmatprep.subr.bf16.mxu0 %v3113_v0  ;;  %v3204_v63 = vld [vmem:[%s4302_s9 + $0x7d4] ss:$8 sps:$4 sm:$0xff]   ;;  %v3199_v0 = vld [vmem:[%s4302_s9 + $0x6d0] ss:$8 sps:$4 sm:$0xff]  }
  0xb1   :  { %1481 = vmatprep.subr.bf16.mxu1 %v3116_v1  ;;  %v3202_v1 = vld [vmem:[%s4302_s9 + $0x7d0] ss:$8 sps:$4 sm:$0xff]  }
  0xb3   :  { %1238 = vmatpush2.bf16.msra.mxu0 %v3111_v2  ;;  %v3207_v2 = vld [vmem:[%s4302_s9 + $0x6c4] ss:$8 sps:$4 sm:$0xff]  }
  0xb4   :  { %1482 = vmatpush2.bf16.msra.mxu1 %v3114_v3  ;;  %1239 = vmatprep.subr.bf16.mxu0 %v3119_v4  ;;  %v3210_v3 = vld [vmem:[%s4302_s9 + $0x7c4] ss:$8 sps:$4 sm:$0xff]   ;;  %v3205_v4 = vld [vmem:[%s4302_s9 + $0x6c0] ss:$8 sps:$4 sm:$0xff]  }
  0xb5   :  { %1483 = vmatprep.subr.bf16.mxu1 %v3122_v5  ;;  %v3208_v5 = vld [vmem:[%s4302_s9 + $0x7c0] ss:$8 sps:$4 sm:$0xff]  }
  0xb7   :  { %1240 = vmatpush2.bf16.msra.mxu0 %v3117_v6  ;;  %v3213_v6 = vld [vmem:[%s4302_s9 + $0x6b4] ss:$8 sps:$4 sm:$0xff]  }
  0xb8   :  { %1484 = vmatpush2.bf16.msra.mxu1 %v3120_v7  ;;  %1241 = vmatprep.subr.bf16.mxu0 %v3125_v8  ;;  %v3216_v7 = vld [vmem:[%s4302_s9 + $0x7b4] ss:$8 sps:$4 sm:$0xff]   ;;  %v3211_v8 = vld [vmem:[%s4302_s9 + $0x6b0] ss:$8 sps:$4 sm:$0xff]  }
  0xb9   :  { %1485 = vmatprep.subr.bf16.mxu1 %v3128_v9  ;;  %v3214_v9 = vld [vmem:[%s4302_s9 + $0x7b0] ss:$8 sps:$4 sm:$0xff]  }
  0xbb   :  { %1242 = vmatpush2.bf16.msra.mxu0 %v3123_v10  ;;  %v3219_v10 = vld [vmem:[%s4302_s9 + $0x6a4] ss:$8 sps:$4 sm:$0xff]  }
  0xbc   :  { %1486 = vmatpush2.bf16.msra.mxu1 %v3126_v11  ;;  %1243 = vmatprep.subr.bf16.mxu0 %v3131_v12  ;;  %v3222_v11 = vld [vmem:[%s4302_s9 + $0x7a4] ss:$8 sps:$4 sm:$0xff]   ;;  %v3217_v12 = vld [vmem:[%s4302_s9 + $0x6a0] ss:$8 sps:$4 sm:$0xff]  }
  0xbd   :  { %1487 = vmatprep.subr.bf16.mxu1 %v3134_v13  ;;  %v3220_v13 = vld [vmem:[%s4302_s9 + $0x7a0] ss:$8 sps:$4 sm:$0xff]  }
  0xbf   :  { %1244 = vmatpush2.bf16.msra.mxu0 %v3129_v14  ;;  %v3225_v14 = vld [vmem:[%s4302_s9 + $0x694] ss:$8 sps:$4 sm:$0xff]  }
  0xc0   :  { %1488 = vmatpush2.bf16.msra.mxu1 %v3132_v15  ;;  %1701 = vmatprep.subr.bf16.mxu0 %v3139_v16  ;;  %v3228_v15 = vld [vmem:[%s4302_s9 + $0x794] ss:$8 sps:$4 sm:$0xff]   ;;  %v3223_v16 = vld [vmem:[%s4302_s9 + $0x690] ss:$8 sps:$4 sm:$0xff]  }
  0xc1   :  { %1945 = vmatprep.subr.bf16.mxu1 %v3144_v17  ;;  %v3226_v17 = vld [vmem:[%s4302_s9 + $0x790] ss:$8 sps:$4 sm:$0xff]  }
  0xc2   :  { %1246 = vmatmul.mubr.bf16.vlgmr.msra.gmra.mxu0 %v2539_v22  ;;  %v3229_v22 = vld [vmem:[%s4302_s9 + $0x680] ss:$8 sps:$4 sm:$0xff]  }
  0xc3   :  { %1490 = vmatmul.mubr.bf16.vlgmr.msra.gmra.mxu1 %v2605_v23  ;;  %1702 = vmatpush1.bf16.msra.mxu0 %v3137_v19  ;;  %v3231_v19 = vld [vmem:[%s4302_s9 + $0x684] ss:$8 sps:$4 sm:$0xff]   ;;  %v3232_v23 = vld [vmem:[%s4302_s9 + $0x780] ss:$8 sps:$4 sm:$0xff]  }
  0xc4   :  { %1946 = vmatpush1.bf16.msra.mxu1 %v3142_v21  ;;  %1703 = vmatprep.subr.bf16.mxu0 %v3147_v26  ;;  %v3234_v21 = vld [vmem:[%s4302_s9 + $0x784] ss:$8 sps:$4 sm:$0xff]   ;;  %v3239_v26 = vld [vmem:[%s4302_s9 + $0x874] ss:$8 sps:$4 sm:$0xff]  }
  0xc5   :  { %1947 = vmatprep.subr.bf16.mxu1 %v3150_v18  ;;  %1733 = vmatprep.mubr.bf16.mxu0 %v2672_v20  ;;  %v4184_v18 = vld [vmem:[%s4311_s8] sm:$0xff]  ;;  %v2671_v20 = vcombine.low %v3987_v24, %v3987_v24 }
  0xc6   :  { %1977 = vmatprep.mubr.bf16.mxu1 %v2738_v27  ;;  %v2737_v27 = vcombine.low %v3992_v25, %v3992_v25  ;;  %v3242_v25 = vld [vmem:[%s4302_s9 + $0x860] ss:$8 sps:$4 sm:$0xff]  }
  0xc7   :  { %1704 = vmatpush1.bf16.msra.mxu0 %v3145_v28  ;;  %v3237_v28 = vld [vmem:[%s4302_s9 + $0x870] ss:$8 sps:$4 sm:$0xff]  }
  0xc8   :  { %1948 = vmatpush1.bf16.msra.mxu1 %v3148_v29  ;;  %1705 = vmatprep.subr.bf16.mxu0 %v3153_v30  ;;  %v2804_v29 = vcombine.high %v4184_v18, %v4184_v18  ;;  %v3244_v30 = vld [vmem:[%s4302_s9 + $0x864] ss:$8 sps:$4 sm:$0xff]  }
  0xc9   :  { %1949 = vmatprep.subr.bf16.mxu1 %v3156_v31 }
  0xcb   :  { %1706 = vmatpush1.bf16.msra.mxu0 %v3151_v32 }
  0xcc   :  { %1950 = vmatpush1.bf16.msra.mxu1 %v3154_v33  ;;  %1707 = vmatprep.subr.bf16.mxu0 %v3159_v34 }
  0xcd   :  { %1951 = vmatprep.subr.bf16.mxu1 %v3162_v35  ;;  %v3247_v35 = vld [vmem:[%s4302_s9 + $0x854] ss:$8 sps:$4 sm:$0xff]  }
  0xcf   :  { %1708 = vmatpush1.bf16.msra.mxu0 %v3157_v36 }
  0xd0   :  { %1952 = vmatpush1.bf16.msra.mxu1 %v3160_v37  ;;  %1709 = vmatprep.subr.bf16.mxu0 %v3165_v38 }
  0xd1   :  { %1953 = vmatprep.subr.bf16.mxu1 %v3168_v39  ;;  %v3245_v39 = vld [vmem:[%s4302_s9 + $0x850] ss:$8 sps:$4 sm:$0xff]  }
  0xd3   :  { %1710 = vmatpush1.bf16.msra.mxu0 %v3163_v40 }
  0xd4   :  { %1954 = vmatpush1.bf16.msra.mxu1 %v3166_v41  ;;  %1711 = vmatprep.subr.bf16.mxu0 %v3171_v42  ;;  %v3250_v41 = vld [vmem:[%s4302_s9 + $0x844] ss:$8 sps:$4 sm:$0xff]  }
  0xd5   :  { %1955 = vmatprep.subr.bf16.mxu1 %v3174_v43  ;;  %v3248_v43 = vld [vmem:[%s4302_s9 + $0x840] ss:$8 sps:$4 sm:$0xff]  }
  0xd7   :  { %1712 = vmatpush1.bf16.msra.mxu0 %v3169_v44  ;;  %v3253_v44 = vld [vmem:[%s4302_s9 + $0x834] ss:$8 sps:$4 sm:$0xff]  }
  0xd8   :  { %1956 = vmatpush1.bf16.msra.mxu1 %v3172_v45  ;;  %1713 = vmatprep.subr.bf16.mxu0 %v3177_v46  ;;  %v3251_v45 = vld [vmem:[%s4302_s9 + $0x830] ss:$8 sps:$4 sm:$0xff]   ;;  %v3256_v46 = vld [vmem:[%s4302_s9 + $0x824] ss:$8 sps:$4 sm:$0xff]  }
  0xd9   :  { %1957 = vmatprep.subr.bf16.mxu1 %v3180_v47  ;;  %v3254_v47 = vld [vmem:[%s4302_s9 + $0x820] ss:$8 sps:$4 sm:$0xff]  }
  0xdb   :  { %1714 = vmatpush1.bf16.msra.mxu0 %v3175_v48  ;;  %v3259_v48 = vld [vmem:[%s4302_s9 + $0x814] ss:$8 sps:$4 sm:$0xff]  }
  0xdc   :  { %1958 = vmatpush1.bf16.msra.mxu1 %v3178_v49  ;;  %1715 = vmatprep.subr.bf16.mxu0 %v3183_v50  ;;  %v3257_v49 = vld [vmem:[%s4302_s9 + $0x810] ss:$8 sps:$4 sm:$0xff]   ;;  %v3262_v50 = vld [vmem:[%s4302_s9 + $0x804] ss:$8 sps:$4 sm:$0xff]  }
  0xdd   :  { %1959 = vmatprep.subr.bf16.mxu1 %v3186_v51  ;;  %v3260_v51 = vld [vmem:[%s4302_s9 + $0x800] ss:$8 sps:$4 sm:$0xff]  }
  0xdf   :  { %1716 = vmatpush1.bf16.msra.mxu0 %v3181_v52  ;;  %v3265_v52 = vld [vmem:[%s4302_s9 + $0x8f4] ss:$8 sps:$4 sm:$0xff]  }
  0xe0   :  { %1960 = vmatpush1.bf16.msra.mxu1 %v3184_v53  ;;  %1717 = vmatprep.subr.bf16.mxu0 %v3189_v54  ;;  %v3263_v53 = vld [vmem:[%s4302_s9 + $0x8f0] ss:$8 sps:$4 sm:$0xff]   ;;  %v3268_v54 = vld [vmem:[%s4302_s9 + $0x8e4] ss:$8 sps:$4 sm:$0xff]  }
  0xe1   :  { %1961 = vmatprep.subr.bf16.mxu1 %v3192_v55  ;;  %v3266_v55 = vld [vmem:[%s4302_s9 + $0x8e0] ss:$8 sps:$4 sm:$0xff]  }
  0xe3   :  { %1718 = vmatpush2.bf16.msra.mxu0 %v3187_v56  ;;  %v3271_v56 = vld [vmem:[%s4302_s9 + $0x8d4] ss:$8 sps:$4 sm:$0xff]  }
  0xe4   :  { %1962 = vmatpush2.bf16.msra.mxu1 %v3190_v57  ;;  %1719 = vmatprep.subr.bf16.mxu0 %v3195_v58  ;;  %v3269_v57 = vld [vmem:[%s4302_s9 + $0x8d0] ss:$8 sps:$4 sm:$0xff]   ;;  %v3274_v58 = vld [vmem:[%s4302_s9 + $0x8c4] ss:$8 sps:$4 sm:$0xff]  }
  0xe5   :  { %1963 = vmatprep.subr.bf16.mxu1 %v3198_v59  ;;  %v3272_v59 = vld [vmem:[%s4302_s9 + $0x8c0] ss:$8 sps:$4 sm:$0xff]  }
  0xe7   :  { %1720 = vmatpush2.bf16.msra.mxu0 %v3193_v60  ;;  %v3277_v60 = vld [vmem:[%s4302_s9 + $0x8b4] ss:$8 sps:$4 sm:$0xff]  }
  0xe8   :  { %1964 = vmatpush2.bf16.msra.mxu1 %v3196_v61  ;;  %1721 = vmatprep.subr.bf16.mxu0 %v3201_v62  ;;  %v3275_v61 = vld [vmem:[%s4302_s9 + $0x8b0] ss:$8 sps:$4 sm:$0xff]   ;;  %v3280_v62 = vld [vmem:[%s4302_s9 + $0x8a4] ss:$8 sps:$4 sm:$0xff]  }
  0xe9   :  { %1965 = vmatprep.subr.bf16.mxu1 %v3204_v63  ;;  %v3278_v63 = vld [vmem:[%s4302_s9 + $0x8a0] ss:$8 sps:$4 sm:$0xff]  }
  0xeb   :  { %1722 = vmatpush2.bf16.msra.mxu0 %v3199_v0  ;;  %v3283_v0 = vld [vmem:[%s4302_s9 + $0x894] ss:$8 sps:$4 sm:$0xff]  }
  0xec   :  { %1966 = vmatpush2.bf16.msra.mxu1 %v3202_v1  ;;  %1723 = vmatprep.subr.bf16.mxu0 %v3207_v2  ;;  %v3281_v1 = vld [vmem:[%s4302_s9 + $0x890] ss:$8 sps:$4 sm:$0xff]   ;;  %v3286_v2 = vld [vmem:[%s4302_s9 + $0x884] ss:$8 sps:$4 sm:$0xff]  }
  0xed   :  { %1967 = vmatprep.subr.bf16.mxu1 %v3210_v3  ;;  %v3284_v3 = vld [vmem:[%s4302_s9 + $0x880] ss:$8 sps:$4 sm:$0xff]  }
  0xef   :  { %1724 = vmatpush2.bf16.msra.mxu0 %v3205_v4  ;;  %v2803_v4 = vcombine.low %v4184_v18, %v4184_v18 }
  0xf0   :  { %1968 = vmatpush2.bf16.msra.mxu1 %v3208_v5  ;;  %1725 = vmatprep.subr.bf16.mxu0 %v3213_v6 }
  0xf1   :  { %1969 = vmatprep.subr.bf16.mxu1 %v3216_v7 }
  0xf3   :  { %1726 = vmatpush2.bf16.msra.mxu0 %v3211_v8 }
  0xf4   :  { %1970 = vmatpush2.bf16.msra.mxu1 %v3214_v9  ;;  %1727 = vmatprep.subr.bf16.mxu0 %v3219_v10 }
  0xf5   :  { %1971 = vmatprep.subr.bf16.mxu1 %v3222_v11 }
  0xf7   :  { %1728 = vmatpush2.bf16.msra.mxu0 %v3217_v12 }
  0xf8   :  { %1972 = vmatpush2.bf16.msra.mxu1 %v3220_v13  ;;  %1729 = vmatprep.subr.bf16.mxu0 %v3225_v14 }
  0xf9   :  { %1973 = vmatprep.subr.bf16.mxu1 %v3228_v15 }
  0xfb   :  { %1730 = vmatpush2.bf16.msra.mxu0 %v3223_v16 }
  0xfc   :  { %1974 = vmatpush2.bf16.msra.mxu1 %v3226_v17  ;;  %1731 = vmatprep.subr.bf16.mxu0 %v3231_v19 }
  0xfd   :  { %1975 = vmatprep.subr.bf16.mxu1 %v3234_v21 }
  0xff   :  { %1732 = vmatpush2.bf16.msra.mxu0 %v3229_v22 }
 0x100   :  { %1976 = vmatpush2.bf16.msra.mxu1 %v3232_v23  ;;  %2189 = vmatprep.subr.bf16.mxu0 %v3239_v26 }
 0x102   :  { %v309_v31 = vpop.f32.mrf.mxu0  ;;  %1734 = vmatmul.mubr.bf16.vlgmr.msra.gmra.mxu0 %v2671_v20 }
 0x103   :  { %v517_v32 = vpop.f32.mrf.mxu1  ;;  %1978 = vmatmul.mubr.bf16.vlgmr.msra.gmra.mxu1 %v2737_v27  ;;  %2190 = vmatpush1.bf16.msra.mxu0 %v3237_v28 }
 0x104   :  { %v4198_v24 = vadd.f32 %v517_v32, %v309_v31  ;;  %2221 = vmatprep.mubr.bf16.mxu0 %v2804_v29  ;;  %v311_v33 = vpop.f32.mrf.mxu0  ;;  %2191 = vmatprep.subr.bf16.mxu0 %v3244_v30 }
 0x105   :  { %v519_v34 = vpop.f32.mrf.mxu1 }
 0x106   :  { %v4206_v36 = vadd.f32 %v519_v34, %v311_v33  ;;  %v313_v37 = vpop.f32.mrf.mxu0 }
 0x107   :  { %v521_v38 = vpop.f32.mrf.mxu1  ;;  %2192 = vmatpush1.bf16.msra.mxu0 %v3242_v25 }
 0x108   :  { %v314_v40 = vpop.f32.mrf.mxu0  ;;  %2193 = vmatprep.subr.bf16.mxu0 %v3247_v35 }
 0x109   :  { %v522_v42 = vpop.f32.mrf.mxu1 }
 0x10a   :  { %v2232_v42 = vld [vmem:[%s4312_s10] sm:$0x3] }
 0x10b   :  { %2194 = vmatpush1.bf16.msra.mxu0 %v3245_v39  ;;  %v2234_v39 = vlaneseq }
 0x10c   :  { %2195 = vmatprep.subr.bf16.mxu0 %v3250_v41 }
 0x10d   :  { %v2235_v40 = vshrl.u32 %v2234_v39, 7 }
 0x10f   :  { %2196 = vmatpush1.bf16.msra.mxu0 %v3248_v43  ;;  %v2236_v41 = vsub.s32 0, %v2235_v40 }
 0x110   :  { %2197 = vmatprep.subr.bf16.mxu0 %v3253_v44  ;;  %v2240_v44 = vsub.s32 1, %v2235_v40 }
 0x113   :  { %2198 = vmatpush1.bf16.msra.mxu0 %v3251_v45  ;;  %v2246_v45 = vld [vmem:[%s4313_s11] sm:$0x3] }
 0x114   :  { %2199 = vmatprep.subr.bf16.mxu0 %v3256_v46  ;;  %v2237_v46 = vrot.slane %v2232_v42, %v2236_v41 }
 0x117   :  { %2200 = vmatpush1.bf16.msra.mxu0 %v3254_v47 }
 0x118   :  { %2201 = vmatprep.subr.bf16.mxu0 %v3259_v48 }
 0x11b   :  { %2202 = vmatpush1.bf16.msra.mxu0 %v3257_v49 }
 0x11c   :  { %2203 = vmatprep.subr.bf16.mxu0 %v3262_v50  ;;  %v2251_v50 = vrot.slane %v2246_v45, %v2236_v41 }
 0x11f   :  { %2204 = vmatpush1.bf16.msra.mxu0 %v3260_v51  ;;  %v2241_v51 = vrot.slane %v2232_v42, %v2240_v44 }
 0x120   :  { %2205 = vmatprep.subr.bf16.mxu0 %v3265_v52 }
 0x123   :  { %2206 = vmatpush2.bf16.msra.mxu0 %v3263_v53 }
 0x124   :  { %2207 = vmatprep.subr.bf16.mxu0 %v3268_v54 }
 0x127   :  { %2208 = vmatpush2.bf16.msra.mxu0 %v3266_v55  ;;  %v2255_v55 = vrot.slane %v2246_v45, %v2240_v44 }
 0x128   :  { %2209 = vmatprep.subr.bf16.mxu0 %v3271_v56 }
 0x12b   :  { %2210 = vmatpush2.bf16.msra.mxu0 %v3269_v57 }
 0x12c   :  { %2211 = vmatprep.subr.bf16.mxu0 %v3274_v58 }
 0x12f   :  { %2212 = vmatpush2.bf16.msra.mxu0 %v3272_v59 }
 0x130   :  { %2213 = vmatprep.subr.bf16.mxu0 %v3277_v60 }
 0x133   :  { %2214 = vmatpush2.bf16.msra.mxu0 %v3275_v61 }
 0x134   :  { %2215 = vmatprep.subr.bf16.mxu0 %v3280_v62 }
 0x137   :  { %2216 = vmatpush2.bf16.msra.mxu0 %v3278_v63 }
 0x138   :  { %2217 = vmatprep.subr.bf16.mxu0 %v3283_v0 }
 0x13b   :  { %2218 = vmatpush2.bf16.msra.mxu0 %v3281_v1 }
 0x13c   :  { %2219 = vmatprep.subr.bf16.mxu0 %v3286_v2 }
 0x13f   :  { %2220 = vmatpush2.bf16.msra.mxu0 %v3284_v3 }
 0x142   :  { %v759_v5 = vpop.f32.mrf.mxu0  ;;  %2222 = vmatmul.mubr.bf16.vlgmr.msra.gmra.mxu0 %v2803_v4 }
 0x143   :  { %v1003_v6 = vpop.f32.mrf.mxu1  ;;  %v766_v7 = vadd.f32 %v759_v5, %v4198_v24 }
 0x144   :  { %v761_v8 = vpop.f32.mrf.mxu0 }
 0x145   :  { %v1005_v9 = vpop.f32.mrf.mxu1  ;;  %v767_v10 = vadd.f32 %v761_v8, %v4206_v36  ;;  %v1010_v11 = vadd.f32 %v1003_v6, %v766_v7 }
 0x146   :  { %v763_v12 = vpop.f32.mrf.mxu0 }
 0x147   :  { %v1007_v13 = vpop.f32.mrf.mxu1  ;;  %v1011_v14 = vadd.f32 %v1005_v9, %v767_v10 }
 0x148   :  { %v764_v15 = vpop.f32.mrf.mxu0 }
 0x149   :  { %v1008_v16 = vpop.f32.mrf.mxu1 }
 0x182   :  { %v1247_v17 = vpop.f32.mrf.mxu0 }
 0x183   :  { %v1491_v19 = vpop.f32.mrf.mxu1  ;;  %v1254_v21 = vadd.f32 %v1247_v17, %v1010_v11 }
 0x184   :  { %v1249_v22 = vpop.f32.mrf.mxu0 }
 0x185   :  { %v1493_v23 = vpop.f32.mrf.mxu1  ;;  %v1255_v26 = vadd.f32 %v1249_v22, %v1011_v14  ;;  %v1498_v18 = vadd.f32 %v1491_v19, %v1254_v21 }
 0x186   :  { %v1251_v20 = vpop.f32.mrf.mxu0 }
 0x187   :  { %v1495_v27 = vpop.f32.mrf.mxu1  ;;  %v1499_v28 = vadd.f32 %v1493_v23, %v1255_v26 }
 0x188   :  { %v1252_v29 = vpop.f32.mrf.mxu0 }
 0x189   :  { %v1496_v30 = vpop.f32.mrf.mxu1 }
 0x1c2   :  { %v1735_v31 = vpop.f32.mrf.mxu0 }
 0x1c3   :  { %v1979_v32 = vpop.f32.mrf.mxu1  ;;  %v1742_v24 = vadd.f32 %v1735_v31, %v1498_v18 }
 0x1c4   :  { %v1737_v25 = vpop.f32.mrf.mxu0 }
 0x1c5   :  { %v1981_v33 = vpop.f32.mrf.mxu1  ;;  %v1986_v34 = vadd.f32 %v1979_v32, %v1742_v24  ;;  %v1743_v43 = vadd.f32 %v1737_v25, %v1499_v28 }
 0x1c6   :  { %v1739_v35 = vpop.f32.mrf.mxu0 }
 0x1c7   :  { %v1983_v36 = vpop.f32.mrf.mxu1  ;;  %v1987_v48 = vadd.f32 %v1981_v33, %v1743_v43 }
 0x1c8   :  { %v1740_v37 = vpop.f32.mrf.mxu0 }
 0x1c9   :  { %v1984_v38 = vpop.f32.mrf.mxu1 }
 0x202   :  { %v2223_v47 = vpop.f32.mrf.mxu0 }
 0x203   :  { %v2230_v49 = vadd.f32 %v2223_v47, %v1986_v34 }
 0x204   :  { %v2225_v52 = vpop.f32.mrf.mxu0 }
 0x205   :  { %v2244_v53 = vmul.f32 %v2237_v46, %v2230_v49  ;;  %v2231_v54 = vadd.f32 %v2225_v52, %v1987_v48 }
 0x206   :  { %v2227_v56 = vpop.f32.mrf.mxu0 }
 0x207   :  { %v2258_v57 = vadd.f32 %v2251_v50, %v2244_v53  ;;  %v2245_v58 = vmul.f32 %v2241_v51, %v2231_v54 }
 0x208   :  { %v2228_v59 = vpop.f32.mrf.mxu0 }
 0x209   :  { %v2259_v60 = vadd.f32 %v2255_v55, %v2245_v58  ;;  %v2260_v61 = vmax.f32 %v2258_v57, 0.0 }
 0x20b   :  { %v2261_v62 = vmax.f32 %v2259_v60, 0.0 }
 0x20d   :  { %v2838_v63 = vpack.c.bf16 %v2261_v62, %v2260_v61 }
 0x20f   :  { %2270 = vst [vmem:[%s4314_s12] sm:$0xff] %v2838_v63 }

</bundles_post_ra>
